<compile_context>
chip_gen: v7x
topology: tpu7x:2x2x1
jax: 0.10.0
libtpu: 0.0.40
codegen_flags: <defaults>
</compile_context>

<pallas_src>
import functools

import jax
import jax.numpy as jnp
from jax import lax
from jax.experimental import pallas as pl
from jax.experimental.pallas import tpu as pltpu

LN_EPS = 1e-5

# Single-buffer the VMEM-resident (constant index-map) weight / LN-param blocks.
# Flipped to False at runtime if this jax build rejects pl.Buffered(1).
_WEIGHT_SINGLE_BUFFER = True
_HAS_BUFFERED = hasattr(pl, "Buffered")

_MATMUL_WEIGHTS = ("qkv_w", "attn_proj_w", "cq_w", "ck_w", "cv_w",
                   "cproj_w", "fc1_w", "fc2_w")


# ----------------------------- spec / sizing helpers ------------------------

def _const_spec(block_shape):
    """BlockSpec for grid-invariant operands (weights, LN params, biases)."""
    index_map = lambda *_: (0,) * len(block_shape)
    if _WEIGHT_SINGLE_BUFFER and _HAS_BUFFERED:
        try:
            return pl.BlockSpec(block_shape, index_map, pipeline_mode=pl.Buffered(1))
        except Exception:
            pass  # pipeline_mode kwarg unsupported -> default double buffering
    return pl.BlockSpec(block_shape, index_map)


def _device_budgets():
    """(vmem_limit_bytes, row_tile_target) derived from the TPU generation."""
    cap = 128 * 1024 * 1024
    try:
        cap = int(pltpu.get_tpu_info().vmem_capacity_bytes)
    except Exception:
        pass
    vmem_limit = min(cap * 3 // 4, cap - 8 * 1024 * 1024)  # ~48MiB v7x, ~96MiB v5e/v6e
    row_target = 256 if cap <= 64 * 1024 * 1024 else 1024
    return vmem_limit, row_target


def _row_tile(m, target):
    """Largest multiple-of-8 divisor of m that is <= target (m itself if small)."""
    if m <= target:
        return m
    t = (min(m, target) // 8) * 8
    while t >= 8:
        if m % t == 0:
            return t
        t -= 8
    # TODO(synk): pad + mask ragged row counts instead of one full-size block.
    return m


def _col_tile(n, target=512):
    """MLP hidden-dim tile: multiple of 128 dividing n (n itself if small)."""
    if n <= target:
        return n
    t = (min(n, target) // 128) * 128
    while t >= 128:
        if n % t == 0:
            return t
        t -= 128
    return n


# ----------------------------- in-kernel math --------------------------------

def _erf(x):
    # Abramowitz & Stegun 7.1.26 polynomial approximation of erf (~1.5e-7 abs).
    a1, a2, a3, a4, a5 = 0.254829592, -0.284496736, 1.421413741, -1.453152027, 1.061405429
    p = 0.3275911
    sign = jnp.where(x >= 0.0, 1.0, -1.0)
    ax = jnp.abs(x)
    t = 1.0 / (1.0 + p * ax)
    poly = ((((a5 * t + a4) * t + a3) * t + a2) * t + a1) * t
    return sign * (1.0 - poly * jnp.exp(-ax * ax))


def _gelu(x):
    # exact (erf-based) GELU, matching torch.nn.GELU() default.
    return 0.5 * x * (1.0 + _erf(x * 0.7071067811865476))


def _layernorm(x, g, b):
    # two-pass (centered) variance, matching torch LayerNorm numerics.
    mu = jnp.mean(x, axis=-1, keepdims=True)
    xc = x - mu
    var = jnp.mean(xc * xc, axis=-1, keepdims=True)
    return xc * lax.rsqrt(var + LN_EPS) * g + b


# ------------------------------ Pallas kernels --------------------------------

def _ln_qkv_kernel(x_ref, g1_ref, b1_ref, wqkv_ref, q_ref, k_ref, v_ref):
    """K0: q,k,v = LN1(x) @ Wqkv   (bf16 outputs for the MXU)."""
    C = q_ref.shape[-1]
    xn = _layernorm(x_ref[...], g1_ref[...], b1_ref[...]).astype(jnp.bfloat16)
    qkv = jnp.dot(xn, wqkv_ref[...], preferred_element_type=jnp.float32)  # (tm, 3C)
    q_ref[...] = qkv[:, 0 * C:1 * C].astype(jnp.bfloat16)
    k_ref[...] = qkv[:, 1 * C:2 * C].astype(jnp.bfloat16)
    v_ref[...] = qkv[:, 2 * C:3 * C].astype(jnp.bfloat16)


def _self_attn_kernel(x_ref, q_ref, k_ref, v_ref, wproj_ref, bproj_ref, o_ref,
                      o_stage, *, num_heads, head_dim, scale):
    """K1: x <- x + Proj(SelfAttention) for one (batch, query-tile)."""
    q = q_ref[0]          # (tq, C) bf16
    k = k_ref[0]          # (N,  C) bf16
    v = v_ref[0]          # (N,  C) bf16
    D = head_dim
    for h in range(num_heads):
        lo = h * D
        qh = q[:, lo:lo + D]
        kh = k[:, lo:lo + D]
        vh = v[:, lo:lo + D]
        s = lax.dot_general(qh, kh, (((1,), (1,)), ((), ())),
                            preferred_element_type=jnp.float32) * scale   # (tq, N)
        s = s - jnp.max(s, axis=-1, keepdims=True)
        pr = jnp.exp(s)
        pr = pr * pl.reciprocal(jnp.sum(pr, axis=-1, keepdims=True), approx=True)
        o_stage[:, lo:lo + D] = jnp.dot(pr.astype(jnp.bfloat16), vh,
                                        preferred_element_type=jnp.float32)
    # one full-width out-projection matmul (proper MXU fill) + residual + bias
    o_ref[0] = (x_ref[0] + bproj_ref[...]
                + jnp.dot(o_stage[...].astype(jnp.bfloat16), wproj_ref[...],
                          preferred_element_type=jnp.float32))


def _cross_core_kernel(x_ref, y_ref, g2_ref, b2_ref, gy_ref, by_ref,
                       wq_ref, wk_ref, wv_ref, hg_ref, hgt_ref, sp_ref, spt_ref,
                       o_ref, *, num_heads, head_dim, scale):
    """K2: LN2(x), LN_y(y), cross q/k/v projections and the reference's
    per-token (H x H) attention.  The scores / softmax / output contraction are
    expressed with dense 2-D MXU matmuls against constant head-select (hg/hgt)
    and lane-spread (sp/spt) 0/1 matrices, avoiding H^2 (tm,1) intermediates
    and lane-splitting reshapes.  Output is written per head into the
    (B, H, N, D) "shuffled" layout used by the PyTorch module, so no XLA
    transpose is needed afterwards."""
    xn = _layernorm(x_ref[0], g2_ref[...], b2_ref[...]).astype(jnp.bfloat16)
    yn = _layernorm(y_ref[0], gy_ref[...], by_ref[...]).astype(jnp.bfloat16)
    q = jnp.dot(xn, wq_ref[...], preferred_element_type=jnp.float32)   # (tn, C)
    k = jnp.dot(yn, wk_ref[...], preferred_element_type=jnp.float32)
    v = jnp.dot(yn, wv_ref[...], preferred_element_type=jnp.float32)
    hg, hgt = hg_ref[...], hgt_ref[...]     # (C,H), (H,C)
    sp, spt = sp_ref[...], spt_ref[...]     # (D,C), (C,D)
    D = head_dim
    for h1 in range(num_heads):
        qh = q[:, h1 * D:(h1 + 1) * D].astype(jnp.bfloat16)                  # (tn, D)
        qt = jnp.dot(qh, sp, preferred_element_type=jnp.float32)             # (tn, C)
        s = jnp.dot((qt * k).astype(jnp.bfloat16), hg,
                    preferred_element_type=jnp.float32) * scale              # (tn, H)
        s = s - jnp.max(s, axis=-1, keepdims=True)
        pr = jnp.exp(s)
        pr = pr * pl.reciprocal(jnp.sum(pr, axis=-1, keepdims=True), approx=True)
        pe = jnp.dot(pr.astype(jnp.bfloat16), hgt,
                     preferred_element_type=jnp.float32)                     # (tn, C)
        oh = jnp.dot((pe * v).astype(jnp.bfloat16), spt,
                     preferred_element_type=jnp.float32)                     # (tn, D)
        o_ref[0, h1] = oh.astype(jnp.bfloat16)


def _proj_mlp_kernel(x_ref, a_ref, wcp_ref, bcp_ref, g3_ref, b3_ref,
                     w1_ref, bb1_ref, w2_ref, bb2_ref, o_ref,
                     x2_s, xn_s, acc_s):
    """K3: x2 = x + a @ Wcross + b;  out = x2 + MLP(LN3(x2)).
    Grid = (row tiles, hidden tiles); the hidden axis is a reduction
    accumulated in VMEM scratch (pl.when init / finalize)."""
    j = pl.program_id(1)

    @pl.when(j == 0)
    def _():
        x2 = (x_ref[...] + bcp_ref[...]
              + jnp.dot(a_ref[...].astype(jnp.bfloat16), wcp_ref[...],
                        preferred_element_type=jnp.float32))
        x2_s[...] = x2
        xn_s[...] = _layernorm(x2, g3_ref[...], b3_ref[...]).astype(jnp.bfloat16)
        acc_s[...] = jnp.zeros_like(acc_s)

    h = jnp.dot(xn_s[...], w1_ref[...], preferred_element_type=jnp.float32) + bb1_ref[...]
    h = _gelu(h)
    acc_s[...] += jnp.dot(h.astype(jnp.bfloat16), w2_ref[...],
                          preferred_element_type=jnp.float32)

    @pl.when(j == pl.num_programs(1) - 1)
    def _():
        o_ref[...] = x2_s[...] + acc_s[...] + bb2_ref[...]


# ------------------------------ wrappers --------------------------------------

def ln_qkv_proj(x2d, p, vmem_limit, row_target):
    M, C = x2d.shape
    tm = _row_tile(M, row_target)
    row = pl.BlockSpec((tm, C), lambda i: (i, 0))
    return pl.pallas_call(
        _ln_qkv_kernel,
        out_shape=tuple(jax.ShapeDtypeStruct((M, C), jnp.bfloat16) for _ in range(3)),
        grid=(M // tm,),
        in_specs=[row, _const_spec((1, C)), _const_spec((1, C)),
                  _const_spec((C, 3 * C))],
        out_specs=(row, row, row),
        compiler_params=pltpu.CompilerParams(
            dimension_semantics=("parallel",), vmem_limit_bytes=vmem_limit),
    )(x2d, p["n1_g"], p["n1_b"], p["qkv_w"])


def self_attn_block(x, q, k, v, p, num_heads, vmem_limit):
    B, N, C = x.shape
    D = C // num_heads
    scale = float(D) ** -0.5
    tq = _row_tile(N, 256)
    kern = functools.partial(_self_attn_kernel,
                             num_heads=num_heads, head_dim=D, scale=scale)
    qtile = pl.BlockSpec((1, tq, C), lambda b, i: (b, i, 0))
    full = pl.BlockSpec((1, N, C), lambda b, i: (b, 0, 0))
    return pl.pallas_call(
        kern,
        out_shape=jax.ShapeDtypeStruct((B, N, C), jnp.float32),
        grid=(B, N // tq),
        in_specs=[qtile, qtile, full, full,
                  _const_spec((C, C)), _const_spec((1, C))],
        out_specs=qtile,
        scratch_shapes=[pltpu.VMEM((tq, C), jnp.float32)],
        compiler_params=pltpu.CompilerParams(
            dimension_semantics=("parallel", "parallel"),
            vmem_limit_bytes=vmem_limit),
    )(x, q, k, v, p["attn_proj_w"], p["attn_proj_b"])


def cross_attn_core(x1, y, p, num_heads, sel_mats, vmem_limit, row_target):
    B, N, C = x1.shape
    H = num_heads
    D = C // H
    scale = float(D) ** -0.5
    tn = _row_tile(N, row_target)
    hg, hgt, sp, spt = sel_mats
    kern = functools.partial(_cross_core_kernel,
                             num_heads=H, head_dim=D, scale=scale)
    row = pl.BlockSpec((1, tn, C), lambda b, i: (b, i, 0))
    out = pl.BlockSpec((1, H, tn, D), lambda b, i: (b, 0, i, 0))
    return pl.pallas_call(
        kern,
        out_shape=jax.ShapeDtypeStruct((B, H, N, D), jnp.bfloat16),
        grid=(B, N // tn),
        in_specs=[row, row,
                  _const_spec((1, C)), _const_spec((1, C)),
                  _const_spec((1, C)), _const_spec((1, C)),
                  _const_spec((C, C)), _const_spec((C, C)), _const_spec((C, C)),
                  _const_spec((C, H)), _const_spec((H, C)),
                  _const_spec((D, C)), _const_spec((C, D))],
        out_specs=out,
        compiler_params=pltpu.CompilerParams(
            dimension_semantics=("parallel", "parallel"),
            vmem_limit_bytes=vmem_limit),
    )(x1, y, p["n2_g"], p["n2_b"], p["ny_g"], p["ny_b"],
      p["cq_w"], p["ck_w"], p["cv_w"], hg, hgt, sp, spt)


def cross_proj_mlp_block(x2d, a2d, p, vmem_limit, row_target):
    M, C = x2d.shape
    Hid = p["fc1_w"].shape[1]
    tm = _row_tile(M, row_target)
    th = _col_tile(Hid, 512)
    row = pl.BlockSpec((tm, C), lambda i, j: (i, 0))
    return pl.pallas_call(
        _proj_mlp_kernel,
        out_shape=jax.ShapeDtypeStruct((M, C), jnp.float32),
        grid=(M // tm, Hid // th),
        in_specs=[row, row,
                  _const_spec((C, C)), _const_spec((1, C)),
                  _const_spec((1, C)), _const_spec((1, C)),
                  pl.BlockSpec((C, th), lambda i, j: (0, j)),
                  pl.BlockSpec((1, th), lambda i, j: (0, j)),
                  pl.BlockSpec((th, C), lambda i, j: (j, 0)),
                  _const_spec((1, C))],
        out_specs=row,
        scratch_shapes=[pltpu.VMEM((tm, C), jnp.float32),
                        pltpu.VMEM((tm, C), jnp.bfloat16),
                        pltpu.VMEM((tm, C), jnp.float32)],
        compiler_params=pltpu.CompilerParams(
            dimension_semantics=("parallel", "arbitrary"),
            vmem_limit_bytes=vmem_limit),
    )(x2d, a2d, p["cproj_w"], p["cproj_b"], p["n3_g"], p["n3_b"],
      p["fc1_w"], p["fc1_b"], p["fc2_w"], p["fc2_b"])


# ------------------------------ Decoder forward --------------------------------

def _head_select_mats(C, H, D):
    """Constant 0/1 matrices used by the cross-attention core (exact in bf16)."""
    c = jnp.arange(C, dtype=jnp.int32)
    h = jnp.arange(H, dtype=jnp.int32)
    d = jnp.arange(D, dtype=jnp.int32)
    hg = (c[:, None] // D == h[None, :]).astype(jnp.bfloat16)   # (C, H) group-sum
    sp = (c[None, :] % D == d[:, None]).astype(jnp.bfloat16)    # (D, C) lane spread
    return hg, hg.T, sp, sp.T


def decoder_forward(x, y, xpos, ypos, params, *, num_heads):
    del xpos, ypos  # rope=None in the reference module -> positions unused.
    B, N, C = x.shape
    H = num_heads
    D = C // H
    M = B * N
    vmem_limit, row_target = _device_budgets()

    # K0: LN1 + fused QKV projection (bf16 q/k/v).
    q2d, k2d, v2d = ln_qkv_proj(x.reshape(M, C), params, vmem_limit, row_target)

    # K1: self-attention + out-proj + residual, query-tiled over (B, N//tq).
    x1 = self_attn_block(x, q2d.reshape(B, N, C), k2d.reshape(B, N, C),
                         v2d.reshape(B, N, C), params, H, vmem_limit)

    # K2: LN2/LN_y + cross q/k/v proj + per-token (HxH) attention, written
    # directly in the (B, H, N, D) shuffled layout -> the reshape below is free.
    sel = _head_select_mats(C, H, D)
    o_bhnd = cross_attn_core(x1, y, params, H, sel, vmem_limit, row_target)

    # K3: cross out-proj + residual + LN3 + MLP (hidden-tiled) + residual.
    x_out = cross_proj_mlp_block(x1.reshape(M, C), o_bhnd.reshape(M, C),
                                 params, vmem_limit, row_target)
    return x_out.reshape(B, N, C), y


# ------------------------------ parameter init ---------------------------------

def init_params(key, dim, mlp_ratio=4):
    hid = int(dim * mlp_ratio)
    ks = jax.random.split(key, 12)
    w = lambda k, i, o: jax.random.normal(k, (i, o), jnp.float32) * 0.02
    b = lambda k, o: jax.random.normal(k, (1, o), jnp.float32) * 0.02
    ones = jnp.ones((1, dim), jnp.float32)
    zeros = jnp.zeros((1, dim), jnp.float32)
    return {
        "n1_g": ones, "n1_b": zeros,
        "n2_g": ones, "n2_b": zeros,
        "n3_g": ones, "n3_b": zeros,
        "ny_g": ones, "ny_b": zeros,
        "qkv_w": w(ks[0], dim, 3 * dim),          # qkv_bias=False
        "attn_proj_w": w(ks[1], dim, dim),
        "attn_proj_b": b(ks[2], dim),
        "cq_w": w(ks[3], dim, dim),
        "ck_w": w(ks[4], dim, dim),
        "cv_w": w(ks[5], dim, dim),
        "cproj_w": w(ks[6], dim, dim),
        "cproj_b": b(ks[7], dim),
        "fc1_w": w(ks[8], dim, hid),
        "fc1_b": b(ks[9], hid),
        "fc2_w": w(ks[10], hid, dim),
        "fc2_b": b(ks[11], dim),
    }


def cast_matmul_weights(params):
    """Store matmul weights in bf16 (HBM + MXU operands); LN params / biases f32."""
    return {k: (v.astype(jnp.bfloat16) if k in _MATMUL_WEIGHTS else v)
            for k, v in params.items()}


# ------------------------- pure-JAX reference (check) ---------------------------

def decoder_reference(x, y, params, num_heads):
    B, N, C = x.shape
    H = num_heads
    D = C // H
    scale = float(D) ** -0.5
    p = {k: v.astype(jnp.float32) for k, v in params.items()}
    hp = jax.lax.Precision.HIGHEST

    def ln(t, g, b):
        mu = jnp.mean(t, axis=-1, keepdims=True)
        var = jnp.mean((t - mu) ** 2, axis=-1, keepdims=True)
        return (t - mu) / jnp.sqrt(var + LN_EPS) * g + b

    # self attention
    xn = ln(x, p["n1_g"], p["n1_b"])
    qkv = jnp.einsum("bnc,cd->bnd", xn, p["qkv_w"], precision=hp)
    qkv = qkv.reshape(B, N, 3, H, D).transpose(0, 3, 2, 1, 4)
    q, k, v = qkv[:, :, 0], qkv[:, :, 1], qkv[:, :, 2]
    att = jnp.einsum("bhqd,bhkd->bhqk", q, k, precision=hp) * scale
    att = jax.nn.softmax(att, axis=-1)
    o = jnp.einsum("bhqk,bhkd->bhqd", att, v, precision=hp)
    o = o.transpose(0, 2, 1, 3).reshape(B, N, C)
    x = x + jnp.einsum("bnc,cd->bnd", o, p["attn_proj_w"], precision=hp) + p["attn_proj_b"]

    # cross attention (faithful per-token H x H attention of the reference module)
    yn = ln(y, p["ny_g"], p["ny_b"])
    xn2 = ln(x, p["n2_g"], p["n2_b"])
    qc = jnp.einsum("bnc,cd->bnd", xn2, p["cq_w"], precision=hp).reshape(B, N, H, D)
    kc = jnp.einsum("bnc,cd->bnd", yn, p["ck_w"], precision=hp).reshape(B, N, H, D)
    vc = jnp.einsum("bnc,cd->bnd", yn, p["cv_w"], precision=hp).reshape(B, N, H, D)
    ac = jnp.einsum("bnxd,bnyd->bnxy", qc, kc, precision=hp) * scale
    ac = jax.nn.softmax(ac, axis=-1)
    oc = jnp.einsum("bnxy,bnyd->bnxd", ac, vc, precision=hp)          # (B,N,H,D)
    oc = oc.transpose(0, 2, 1, 3).reshape(B, N, C)
    x = x + jnp.einsum("bnc,cd->bnd", oc, p["cproj_w"], precision=hp) + p["cproj_b"]

    # mlp
    xn3 = ln(x, p["n3_g"], p["n3_b"])
    h = jnp.einsum("bnc,ch->bnh", xn3, p["fc1_w"], precision=hp) + p["fc1_b"]
    h = jax.nn.gelu(h, approximate=False)
    x = x + jnp.einsum("bnh,hc->bnc", h, p["fc2_w"], precision=hp) + p["fc2_b"]
    return x, y


# ------------------------------------ main --------------------------------------

if __name__ == "__main__":
    B, N, C, H = 2, 16, 32, 4                      # batch, seq, dim, num_heads
    key = jax.random.PRNGKey(0)
    kx, ky, kp = jax.random.split(key, 3)
    x = jax.random.normal(kx, (B, N, C), jnp.float32)
    y = jax.random.normal(ky, (B, N, C), jnp.float32)
    xpos = jnp.zeros((B, N, 2), jnp.int32)         # unused (rope=None)
    ypos = jnp.zeros((B, N, 2), jnp.int32)         # unused (rope=None)
    params = cast_matmul_weights(init_params(kp, C))

    def _run():
        fwd = jax.jit(functools.partial(decoder_forward, num_heads=H))
        out = fwd(x, y, xpos, ypos, params)
        jax.block_until_ready(out)
        return out

    try:
        x_out, y_out = _run()
    except Exception:
        # This jax build rejects single-buffered (pl.Buffered(1)) weight blocks:
        # fall back to default double buffering and retry.
        _WEIGHT_SINGLE_BUFFER = False
        x_out, y_out = _run()

    assert x_out.shape == (B, N, C) and y_out.shape == (B, N, C)
    assert bool(jnp.all(jnp.isfinite(x_out)))

    # correctness check vs. a pure-JAX f32 (highest-precision) reference that
    # uses the same (bf16-stored) weights; residual differences come only from
    # bf16 MXU operands, approx reciprocal and the erf polynomial.
    x_ref, y_ref = decoder_reference(x, y, params, H)
    assert bool(jnp.allclose(x_out, x_ref, atol=1e-2, rtol=1e-2))
    assert bool(jnp.allclose(y_out, y_ref, atol=1e-2, rtol=1e-2))

    print("KERNEL_OK")
</pallas_src>

<mosaic_0001>
module attributes {stable_mosaic.version = 11 : i64} {
  func.func @_ln_qkv_kernel(%arg0: i32, %arg1: memref<32x32xf32, #tpu.memory_space<vmem>>, %arg2: memref<1x32xf32, #tpu.memory_space<vmem>>, %arg3: memref<1x32xf32, #tpu.memory_space<vmem>>, %arg4: memref<32x96xbf16, #tpu.memory_space<vmem>>, %arg5: memref<32x32xbf16, #tpu.memory_space<vmem>>, %arg6: memref<32x32xbf16, #tpu.memory_space<vmem>>, %arg7: memref<32x32xbf16, #tpu.memory_space<vmem>>) attributes {dimension_semantics = [#tpu.dimension_semantics<parallel>], iteration_bounds = array<i64: 1>, scalar_prefetch = 0 : i64, scratch_operands = 0 : i64, tpu.core_type = #tpu.core_type<tc>, window_params = [{transform_indices = @transform_0, window_bounds = array<i64: 32, 32>}, {pipeline_mode = #tpu.pipeline_mode<synchronous>, transform_indices = @transform_1, window_bounds = array<i64: 1, 32>}, {pipeline_mode = #tpu.pipeline_mode<synchronous>, transform_indices = @transform_2, window_bounds = array<i64: 1, 32>}, {pipeline_mode = #tpu.pipeline_mode<synchronous>, transform_indices = @transform_3, window_bounds = array<i64: 32, 96>}, {transform_indices = @transform_4, window_bounds = array<i64: 32, 32>}, {transform_indices = @transform_5, window_bounds = array<i64: 32, 32>}, {transform_indices = @transform_6, window_bounds = array<i64: 32, 32>}]} {
    %c0 = arith.constant 0 : index
    %c0_0 = arith.constant 0 : index
    %0 = vector.load %arg1[%c0, %c0_0] : memref<32x32xf32, #tpu.memory_space<vmem>>, vector<32x32xf32>
    %c0_1 = arith.constant 0 : index
    %c0_2 = arith.constant 0 : index
    %1 = vector.load %arg2[%c0_1, %c0_2] : memref<1x32xf32, #tpu.memory_space<vmem>>, vector<1x32xf32>
    %c0_3 = arith.constant 0 : index
    %c0_4 = arith.constant 0 : index
    %2 = vector.load %arg3[%c0_3, %c0_4] : memref<1x32xf32, #tpu.memory_space<vmem>>, vector<1x32xf32>
    %cst = arith.constant dense<0.000000e+00> : vector<32xf32>
    %3 = vector.multi_reduction <add>, %0, %cst [1] : vector<32x32xf32> to vector<32xf32>
    %4 = vector.shape_cast %3 : vector<32xf32> to vector<32x1xf32>
    %cst_5 = arith.constant 3.200000e+01 : f32
    %5 = vector.broadcast %cst_5 : f32 to vector<32x1xf32>
    %6 = arith.divf %4, %5 : vector<32x1xf32>
    %7 = vector.broadcast %6 : vector<32x1xf32> to vector<32x32xf32>
    %8 = arith.subf %0, %7 : vector<32x32xf32>
    %9 = arith.mulf %8, %8 : vector<32x32xf32>
    %cst_6 = arith.constant dense<0.000000e+00> : vector<32xf32>
    %10 = vector.multi_reduction <add>, %9, %cst_6 [1] : vector<32x32xf32> to vector<32xf32>
    %11 = vector.shape_cast %10 : vector<32xf32> to vector<32x1xf32>
    %cst_7 = arith.constant 3.200000e+01 : f32
    %12 = vector.broadcast %cst_7 : f32 to vector<32x1xf32>
    %13 = arith.divf %11, %12 : vector<32x1xf32>
    %cst_8 = arith.constant 9.99999974E-6 : f32
    %14 = vector.broadcast %cst_8 : f32 to vector<32x1xf32>
    %15 = arith.addf %13, %14 : vector<32x1xf32>
    %16 = math.rsqrt %15 : vector<32x1xf32>
    %17 = vector.broadcast %16 : vector<32x1xf32> to vector<32x32xf32>
    %18 = arith.mulf %8, %17 : vector<32x32xf32>
    %19 = vector.broadcast %1 : vector<1x32xf32> to vector<32x32xf32>
    %20 = arith.mulf %18, %19 : vector<32x32xf32>
    %21 = vector.broadcast %2 : vector<1x32xf32> to vector<32x32xf32>
    %22 = arith.addf %20, %21 : vector<32x32xf32>
    %23 = arith.truncf %22 : vector<32x32xf32> to vector<32x32xbf16>
    %c0_9 = arith.constant 0 : index
    %c0_10 = arith.constant 0 : index
    %24 = vector.load %arg4[%c0_9, %c0_10] : memref<32x96xbf16, #tpu.memory_space<vmem>>, vector<32x96xbf16>
    %cst_11 = arith.constant dense<0.000000e+00> : vector<32x96xf32>
    %25 = tpu.matmul %23, %24, %cst_11 {dimension_numbers = #tpu.dot_dimension_numbers<[1], [0], [0], [1], [0, 0, 1, 1], [], []>} : vector<32x32xbf16>, vector<32x96xbf16>, vector<32x96xf32> -> vector<32x96xf32>
    %26 = vector.extract_strided_slice %25 {offsets = [0, 0], sizes = [32, 32], strides = [1, 1]} : vector<32x96xf32> to vector<32x32xf32>
    %27 = arith.truncf %26 : vector<32x32xf32> to vector<32x32xbf16>
    %c0_12 = arith.constant 0 : index
    %c0_13 = arith.constant 0 : index
    %28 = vector.load %arg5[%c0_12, %c0_13] : memref<32x32xbf16, #tpu.memory_space<vmem>>, vector<32x32xbf16>
    tpu.vector_store %arg5[%c0_12, %c0_13], %27 {strides = array<i32>} : memref<32x32xbf16, #tpu.memory_space<vmem>>, vector<32x32xbf16>,
    %29 = vector.extract_strided_slice %25 {offsets = [0, 32], sizes = [32, 32], strides = [1, 1]} : vector<32x96xf32> to vector<32x32xf32>
    %30 = arith.truncf %29 : vector<32x32xf32> to vector<32x32xbf16>
    %c0_14 = arith.constant 0 : index
    %c0_15 = arith.constant 0 : index
    %31 = vector.load %arg6[%c0_14, %c0_15] : memref<32x32xbf16, #tpu.memory_space<vmem>>, vector<32x32xbf16>
    tpu.vector_store %arg6[%c0_14, %c0_15], %30 {strides = array<i32>} : memref<32x32xbf16, #tpu.memory_space<vmem>>, vector<32x32xbf16>,
    %32 = vector.extract_strided_slice %25 {offsets = [0, 64], sizes = [32, 32], strides = [1, 1]} : vector<32x96xf32> to vector<32x32xf32>
    %33 = arith.truncf %32 : vector<32x32xf32> to vector<32x32xbf16>
    %c0_16 = arith.constant 0 : index
    %c0_17 = arith.constant 0 : index
    %34 = vector.load %arg7[%c0_16, %c0_17] : memref<32x32xbf16, #tpu.memory_space<vmem>>, vector<32x32xbf16>
    tpu.vector_store %arg7[%c0_16, %c0_17], %33 {strides = array<i32>} : memref<32x32xbf16, #tpu.memory_space<vmem>>, vector<32x32xbf16>,
    return
  }
  func.func @transform_0(%arg0: i32) -> (i32, i32) {
    %c0_i32 = arith.constant 0 : i32
    %c0_i32_0 = arith.constant 0 : i32
    return %arg0, %c0_i32 : i32, i32
  }
  func.func @transform_1(%arg0: i32) -> (i32, i32) {
    %c0_i32 = arith.constant 0 : i32
    %c0_i32_0 = arith.constant 0 : i32
    %c0_i32_1 = arith.constant 0 : i32
    return %c0_i32, %c0_i32_0 : i32, i32
  }
  func.func @transform_2(%arg0: i32) -> (i32, i32) {
    %c0_i32 = arith.constant 0 : i32
    %c0_i32_0 = arith.constant 0 : i32
    %c0_i32_1 = arith.constant 0 : i32
    return %c0_i32, %c0_i32_0 : i32, i32
  }
  func.func @transform_3(%arg0: i32) -> (i32, i32) {
    %c0_i32 = arith.constant 0 : i32
    %c0_i32_0 = arith.constant 0 : i32
    %c0_i32_1 = arith.constant 0 : i32
    return %c0_i32, %c0_i32_0 : i32, i32
  }
  func.func @transform_4(%arg0: i32) -> (i32, i32) {
    %c0_i32 = arith.constant 0 : i32
    %c0_i32_0 = arith.constant 0 : i32
    return %arg0, %c0_i32 : i32, i32
  }
  func.func @transform_5(%arg0: i32) -> (i32, i32) {
    %c0_i32 = arith.constant 0 : i32
    %c0_i32_0 = arith.constant 0 : i32
    return %arg0, %c0_i32 : i32, i32
  }
  func.func @transform_6(%arg0: i32) -> (i32, i32) {
    %c0_i32 = arith.constant 0 : i32
    %c0_i32_0 = arith.constant 0 : i32
    return %arg0, %c0_i32 : i32, i32
  }
}

module attributes {stable_mosaic.version = 11 : i64} {
  func.func @_self_attn_kernel(%arg0: i32, %arg1: i32, %arg2: memref<1x16x32xf32, #tpu.memory_space<vmem>>, %arg3: memref<1x16x32xbf16, #tpu.memory_space<vmem>>, %arg4: memref<1x16x32xbf16, #tpu.memory_space<vmem>>, %arg5: memref<1x16x32xbf16, #tpu.memory_space<vmem>>, %arg6: memref<32x32xbf16, #tpu.memory_space<vmem>>, %arg7: memref<1x32xf32, #tpu.memory_space<vmem>>, %arg8: memref<1x16x32xf32, #tpu.memory_space<vmem>>, %arg9: memref<16x32xf32, #tpu.memory_space<vmem>>) attributes {dimension_semantics = [#tpu.dimension_semantics<parallel>, #tpu.dimension_semantics<parallel>], iteration_bounds = array<i64: 2, 1>, scalar_prefetch = 0 : i64, scratch_operands = 1 : i64, tpu.core_type = #tpu.core_type<tc>, window_params = [{transform_indices = @transform_0, window_bounds = array<i64: 1, 16, 32>}, {transform_indices = @transform_1, window_bounds = array<i64: 1, 16, 32>}, {transform_indices = @transform_2, window_bounds = array<i64: 1, 16, 32>}, {transform_indices = @transform_3, window_bounds = array<i64: 1, 16, 32>}, {pipeline_mode = #tpu.pipeline_mode<synchronous>, transform_indices = @transform_4, window_bounds = array<i64: 32, 32>}, {pipeline_mode = #tpu.pipeline_mode<synchronous>, transform_indices = @transform_5, window_bounds = array<i64: 1, 32>}, {transform_indices = @transform_6, window_bounds = array<i64: 1, 16, 32>}]} {
    %c0 = arith.constant 0 : index
    %c0_0 = arith.constant 0 : index
    %c0_1 = arith.constant 0 : index
    %0 = vector.load %arg3[%c0, %c0_0, %c0_1] : memref<1x16x32xbf16, #tpu.memory_space<vmem>>, vector<1x16x32xbf16>
    %1 = vector.shape_cast %0 : vector<1x16x32xbf16> to vector<16x32xbf16>
    %c0_2 = arith.constant 0 : index
    %c0_3 = arith.constant 0 : index
    %c0_4 = arith.constant 0 : index
    %2 = vector.load %arg4[%c0_2, %c0_3, %c0_4] : memref<1x16x32xbf16, #tpu.memory_space<vmem>>, vector<1x16x32xbf16>
    %3 = vector.shape_cast %2 : vector<1x16x32xbf16> to vector<16x32xbf16>
    %c0_5 = arith.constant 0 : index
    %c0_6 = arith.constant 0 : index
    %c0_7 = arith.constant 0 : index
    %4 = vector.load %arg5[%c0_5, %c0_6, %c0_7] : memref<1x16x32xbf16, #tpu.memory_space<vmem>>, vector<1x16x32xbf16>
    %5 = vector.shape_cast %4 : vector<1x16x32xbf16> to vector<16x32xbf16>
    %6 = vector.extract_strided_slice %1 {offsets = [0, 0], sizes = [16, 8], strides = [1, 1]} : vector<16x32xbf16> to vector<16x8xbf16>
    %7 = vector.extract_strided_slice %3 {offsets = [0, 0], sizes = [16, 8], strides = [1, 1]} : vector<16x32xbf16> to vector<16x8xbf16>
    %8 = vector.extract_strided_slice %5 {offsets = [0, 0], sizes = [16, 8], strides = [1, 1]} : vector<16x32xbf16> to vector<16x8xbf16>
    %cst = arith.constant dense<0.000000e+00> : vector<16x16xf32>
    %9 = tpu.matmul %6, %7, %cst {dimension_numbers = #tpu.dot_dimension_numbers<[1], [1], [0], [0], [0, 0, 1, 0], [], []>} : vector<16x8xbf16>, vector<16x8xbf16>, vector<16x16xf32> -> vector<16x16xf32>
    %cst_8 = arith.constant 0.353553385 : f32
    %10 = vector.broadcast %cst_8 : f32 to vector<16x16xf32>
    %11 = arith.mulf %9, %10 : vector<16x16xf32>
    %cst_9 = arith.constant dense<0xFF800000> : vector<16xf32>
    %12 = vector.multi_reduction <maximumf>, %11, %cst_9 [1] : vector<16x16xf32> to vector<16xf32>
    %13 = vector.shape_cast %12 : vector<16xf32> to vector<16x1xf32>
    %14 = vector.broadcast %13 : vector<16x1xf32> to vector<16x16xf32>
    %15 = arith.subf %11, %14 : vector<16x16xf32>
    %16 = math.exp %15 : vector<16x16xf32>
    %cst_10 = arith.constant dense<0.000000e+00> : vector<16xf32>
    %17 = vector.multi_reduction <add>, %16, %cst_10 [1] : vector<16x16xf32> to vector<16xf32>
    %18 = vector.shape_cast %17 : vector<16xf32> to vector<16x1xf32>
    %19 = tpu.reciprocal %18 {approx = true} : vector<16x1xf32> -> vector<16x1xf32>
    %20 = vector.broadcast %19 : vector<16x1xf32> to vector<16x16xf32>
    %21 = arith.mulf %16, %20 : vector<16x16xf32>
    %22 = arith.truncf %21 : vector<16x16xf32> to vector<16x16xbf16>
    %cst_11 = arith.constant dense<0.000000e+00> : vector<16x8xf32>
    %23 = tpu.matmul %22, %8, %cst_11 {dimension_numbers = #tpu.dot_dimension_numbers<[1], [0], [0], [1], [0, 0, 1, 1], [], []>} : vector<16x16xbf16>, vector<16x8xbf16>, vector<16x8xf32> -> vector<16x8xf32>
    %c0_12 = arith.constant 0 : index
    %c0_13 = arith.constant 0 : index
    %24 = vector.load %arg9[%c0_12, %c0_13] : memref<16x32xf32, #tpu.memory_space<vmem>>, vector<16x8xf32>
    tpu.vector_store %arg9[%c0_12, %c0_13], %23 {strides = array<i32>} : memref<16x32xf32, #tpu.memory_space<vmem>>, vector<16x8xf32>,
    %25 = vector.extract_strided_slice %1 {offsets = [0, 8], sizes = [16, 8], strides = [1, 1]} : vector<16x32xbf16> to vector<16x8xbf16>
    %26 = vector.extract_strided_slice %3 {offsets = [0, 8], sizes = [16, 8], strides = [1, 1]} : vector<16x32xbf16> to vector<16x8xbf16>
    %27 = vector.extract_strided_slice %5 {offsets = [0, 8], sizes = [16, 8], strides = [1, 1]} : vector<16x32xbf16> to vector<16x8xbf16>
    %cst_14 = arith.constant dense<0.000000e+00> : vector<16x16xf32>
    %28 = tpu.matmul %25, %26, %cst_14 {dimension_numbers = #tpu.dot_dimension_numbers<[1], [1], [0], [0], [0, 0, 1, 0], [], []>} : vector<16x8xbf16>, vector<16x8xbf16>, vector<16x16xf32> -> vector<16x16xf32>
    %cst_15 = arith.constant 0.353553385 : f32
    %29 = vector.broadcast %cst_15 : f32 to vector<16x16xf32>
    %30 = arith.mulf %28, %29 : vector<16x16xf32>
    %cst_16 = arith.constant dense<0xFF800000> : vector<16xf32>
    %31 = vector.multi_reduction <maximumf>, %30, %cst_16 [1] : vector<16x16xf32> to vector<16xf32>
    %32 = vector.shape_cast %31 : vector<16xf32> to vector<16x1xf32>
    %33 = vector.broadcast %32 : vector<16x1xf32> to vector<16x16xf32>
    %34 = arith.subf %30, %33 : vector<16x16xf32>
    %35 = math.exp %34 : vector<16x16xf32>
    %cst_17 = arith.constant dense<0.000000e+00> : vector<16xf32>
    %36 = vector.multi_reduction <add>, %35, %cst_17 [1] : vector<16x16xf32> to vector<16xf32>
    %37 = vector.shape_cast %36 : vector<16xf32> to vector<16x1xf32>
    %38 = tpu.reciprocal %37 {approx = true} : vector<16x1xf32> -> vector<16x1xf32>
    %39 = vector.broadcast %38 : vector<16x1xf32> to vector<16x16xf32>
    %40 = arith.mulf %35, %39 : vector<16x16xf32>
    %41 = arith.truncf %40 : vector<16x16xf32> to vector<16x16xbf16>
    %cst_18 = arith.constant dense<0.000000e+00> : vector<16x8xf32>
    %42 = tpu.matmul %41, %27, %cst_18 {dimension_numbers = #tpu.dot_dimension_numbers<[1], [0], [0], [1], [0, 0, 1, 1], [], []>} : vector<16x16xbf16>, vector<16x8xbf16>, vector<16x8xf32> -> vector<16x8xf32>
    %c0_19 = arith.constant 0 : index
    %c8 = arith.constant 8 : index
    %43 = vector.load %arg9[%c0_19, %c8] : memref<16x32xf32, #tpu.memory_space<vmem>>, vector<16x8xf32>
    tpu.vector_store %arg9[%c0_19, %c8], %42 {strides = array<i32>} : memref<16x32xf32, #tpu.memory_space<vmem>>, vector<16x8xf32>,
    %44 = vector.extract_strided_slice %1 {offsets = [0, 16], sizes = [16, 8], strides = [1, 1]} : vector<16x32xbf16> to vector<16x8xbf16>
    %45 = vector.extract_strided_slice %3 {offsets = [0, 16], sizes = [16, 8], strides = [1, 1]} : vector<16x32xbf16> to vector<16x8xbf16>
    %46 = vector.extract_strided_slice %5 {offsets = [0, 16], sizes = [16, 8], strides = [1, 1]} : vector<16x32xbf16> to vector<16x8xbf16>
    %cst_20 = arith.constant dense<0.000000e+00> : vector<16x16xf32>
    %47 = tpu.matmul %44, %45, %cst_20 {dimension_numbers = #tpu.dot_dimension_numbers<[1], [1], [0], [0], [0, 0, 1, 0], [], []>} : vector<16x8xbf16>, vector<16x8xbf16>, vector<16x16xf32> -> vector<16x16xf32>
    %cst_21 = arith.constant 0.353553385 : f32
    %48 = vector.broadcast %cst_21 : f32 to vector<16x16xf32>
    %49 = arith.mulf %47, %48 : vector<16x16xf32>
    %cst_22 = arith.constant dense<0xFF800000> : vector<16xf32>
    %50 = vector.multi_reduction <maximumf>, %49, %cst_22 [1] : vector<16x16xf32> to vector<16xf32>
    %51 = vector.shape_cast %50 : vector<16xf32> to vector<16x1xf32>
    %52 = vector.broadcast %51 : vector<16x1xf32> to vector<16x16xf32>
    %53 = arith.subf %49, %52 : vector<16x16xf32>
    %54 = math.exp %53 : vector<16x16xf32>
    %cst_23 = arith.constant dense<0.000000e+00> : vector<16xf32>
    %55 = vector.multi_reduction <add>, %54, %cst_23 [1] : vector<16x16xf32> to vector<16xf32>
    %56 = vector.shape_cast %55 : vector<16xf32> to vector<16x1xf32>
    %57 = tpu.reciprocal %56 {approx = true} : vector<16x1xf32> -> vector<16x1xf32>
    %58 = vector.broadcast %57 : vector<16x1xf32> to vector<16x16xf32>
    %59 = arith.mulf %54, %58 : vector<16x16xf32>
    %60 = arith.truncf %59 : vector<16x16xf32> to vector<16x16xbf16>
    %cst_24 = arith.constant dense<0.000000e+00> : vector<16x8xf32>
    %61 = tpu.matmul %60, %46, %cst_24 {dimension_numbers = #tpu.dot_dimension_numbers<[1], [0], [0], [1], [0, 0, 1, 1], [], []>} : vector<16x16xbf16>, vector<16x8xbf16>, vector<16x8xf32> -> vector<16x8xf32>
    %c0_25 = arith.constant 0 : index
    %c16 = arith.constant 16 : index
    %62 = vector.load %arg9[%c0_25, %c16] : memref<16x32xf32, #tpu.memory_space<vmem>>, vector<16x8xf32>
    tpu.vector_store %arg9[%c0_25, %c16], %61 {strides = array<i32>} : memref<16x32xf32, #tpu.memory_space<vmem>>, vector<16x8xf32>,
    %63 = vector.extract_strided_slice %1 {offsets = [0, 24], sizes = [16, 8], strides = [1, 1]} : vector<16x32xbf16> to vector<16x8xbf16>
    %64 = vector.extract_strided_slice %3 {offsets = [0, 24], sizes = [16, 8], strides = [1, 1]} : vector<16x32xbf16> to vector<16x8xbf16>
    %65 = vector.extract_strided_slice %5 {offsets = [0, 24], sizes = [16, 8], strides = [1, 1]} : vector<16x32xbf16> to vector<16x8xbf16>
    %cst_26 = arith.constant dense<0.000000e+00> : vector<16x16xf32>
    %66 = tpu.matmul %63, %64, %cst_26 {dimension_numbers = #tpu.dot_dimension_numbers<[1], [1], [0], [0], [0, 0, 1, 0], [], []>} : vector<16x8xbf16>, vector<16x8xbf16>, vector<16x16xf32> -> vector<16x16xf32>
    %cst_27 = arith.constant 0.353553385 : f32
    %67 = vector.broadcast %cst_27 : f32 to vector<16x16xf32>
    %68 = arith.mulf %66, %67 : vector<16x16xf32>
    %cst_28 = arith.constant dense<0xFF800000> : vector<16xf32>
    %69 = vector.multi_reduction <maximumf>, %68, %cst_28 [1] : vector<16x16xf32> to vector<16xf32>
    %70 = vector.shape_cast %69 : vector<16xf32> to vector<16x1xf32>
    %71 = vector.broadcast %70 : vector<16x1xf32> to vector<16x16xf32>
    %72 = arith.subf %68, %71 : vector<16x16xf32>
    %73 = math.exp %72 : vector<16x16xf32>
    %cst_29 = arith.constant dense<0.000000e+00> : vector<16xf32>
    %74 = vector.multi_reduction <add>, %73, %cst_29 [1] : vector<16x16xf32> to vector<16xf32>
    %75 = vector.shape_cast %74 : vector<16xf32> to vector<16x1xf32>
    %76 = tpu.reciprocal %75 {approx = true} : vector<16x1xf32> -> vector<16x1xf32>
    %77 = vector.broadcast %76 : vector<16x1xf32> to vector<16x16xf32>
    %78 = arith.mulf %73, %77 : vector<16x16xf32>
    %79 = arith.truncf %78 : vector<16x16xf32> to vector<16x16xbf16>
    %cst_30 = arith.constant dense<0.000000e+00> : vector<16x8xf32>
    %80 = tpu.matmul %79, %65, %cst_30 {dimension_numbers = #tpu.dot_dimension_numbers<[1], [0], [0], [1], [0, 0, 1, 1], [], []>} : vector<16x16xbf16>, vector<16x8xbf16>, vector<16x8xf32> -> vector<16x8xf32>
    %c0_31 = arith.constant 0 : index
    %c24 = arith.constant 24 : index
    %81 = vector.load %arg9[%c0_31, %c24] : memref<16x32xf32, #tpu.memory_space<vmem>>, vector<16x8xf32>
    tpu.vector_store %arg9[%c0_31, %c24], %80 {strides = array<i32>} : memref<16x32xf32, #tpu.memory_space<vmem>>, vector<16x8xf32>,
    %c0_32 = arith.constant 0 : index
    %c0_33 = arith.constant 0 : index
    %c0_34 = arith.constant 0 : index
    %82 = vector.load %arg2[%c0_32, %c0_33, %c0_34] : memref<1x16x32xf32, #tpu.memory_space<vmem>>, vector<1x16x32xf32>
    %83 = vector.shape_cast %82 : vector<1x16x32xf32> to vector<16x32xf32>
    %c0_35 = arith.constant 0 : index
    %c0_36 = arith.constant 0 : index
    %84 = vector.load %arg7[%c0_35, %c0_36] : memref<1x32xf32, #tpu.memory_space<vmem>>, vector<1x32xf32>
    %85 = vector.broadcast %84 : vector<1x32xf32> to vector<16x32xf32>
    %86 = arith.addf %83, %85 : vector<16x32xf32>
    %c0_37 = arith.constant 0 : index
    %c0_38 = arith.constant 0 : index
    %87 = vector.load %arg9[%c0_37, %c0_38] : memref<16x32xf32, #tpu.memory_space<vmem>>, vector<16x32xf32>
    %88 = arith.truncf %87 : vector<16x32xf32> to vector<16x32xbf16>
    %c0_39 = arith.constant 0 : index
    %c0_40 = arith.constant 0 : index
    %89 = vector.load %arg6[%c0_39, %c0_40] : memref<32x32xbf16, #tpu.memory_space<vmem>>, vector<32x32xbf16>
    %cst_41 = arith.constant dense<0.000000e+00> : vector<16x32xf32>
    %90 = tpu.matmul %88, %89, %cst_41 {dimension_numbers = #tpu.dot_dimension_numbers<[1], [0], [0], [1], [0, 0, 1, 1], [], []>} : vector<16x32xbf16>, vector<32x32xbf16>, vector<16x32xf32> -> vector<16x32xf32>
    %91 = arith.addf %86, %90 : vector<16x32xf32>
    %c0_42 = arith.constant 0 : index
    %c0_43 = arith.constant 0 : index
    %c0_44 = arith.constant 0 : index
    %92 = vector.load %arg8[%c0_42, %c0_43, %c0_44] : memref<1x16x32xf32, #tpu.memory_space<vmem>>, vector<1x16x32xf32>
    %93 = vector.shape_cast %92 : vector<1x16x32xf32> to vector<16x32xf32>
    %94 = vector.shape_cast %91 : vector<16x32xf32> to vector<1x16x32xf32>
    tpu.vector_store %arg8[%c0_42, %c0_43, %c0_44], %94 {strides = array<i32>} : memref<1x16x32xf32, #tpu.memory_space<vmem>>, vector<1x16x32xf32>,
    return
  }
  func.func @transform_0(%arg0: i32, %arg1: i32) -> (i32, i32, i32) {
    %c0_i32 = arith.constant 0 : i32
    %c0_i32_0 = arith.constant 0 : i32
    return %arg0, %arg1, %c0_i32 : i32, i32, i32
  }
  func.func @transform_1(%arg0: i32, %arg1: i32) -> (i32, i32, i32) {
    %c0_i32 = arith.constant 0 : i32
    %c0_i32_0 = arith.constant 0 : i32
    return %arg0, %arg1, %c0_i32 : i32, i32, i32
  }
  func.func @transform_2(%arg0: i32, %arg1: i32) -> (i32, i32, i32) {
    %c0_i32 = arith.constant 0 : i32
    %c0_i32_0 = arith.constant 0 : i32
    %c0_i32_1 = arith.constant 0 : i32
    return %arg0, %c0_i32, %c0_i32_0 : i32, i32, i32
  }
  func.func @transform_3(%arg0: i32, %arg1: i32) -> (i32, i32, i32) {
    %c0_i32 = arith.constant 0 : i32
    %c0_i32_0 = arith.constant 0 : i32
    %c0_i32_1 = arith.constant 0 : i32
    return %arg0, %c0_i32, %c0_i32_0 : i32, i32, i32
  }
  func.func @transform_4(%arg0: i32, %arg1: i32) -> (i32, i32) {
    %c0_i32 = arith.constant 0 : i32
    %c0_i32_0 = arith.constant 0 : i32
    %c0_i32_1 = arith.constant 0 : i32
    return %c0_i32, %c0_i32_0 : i32, i32
  }
  func.func @transform_5(%arg0: i32, %arg1: i32) -> (i32, i32) {
    %c0_i32 = arith.constant 0 : i32
    %c0_i32_0 = arith.constant 0 : i32
    %c0_i32_1 = arith.constant 0 : i32
    return %c0_i32, %c0_i32_0 : i32, i32
  }
  func.func @transform_6(%arg0: i32, %arg1: i32) -> (i32, i32, i32) {
    %c0_i32 = arith.constant 0 : i32
    %c0_i32_0 = arith.constant 0 : i32
    return %arg0, %arg1, %c0_i32 : i32, i32, i32
  }
}

module attributes {stable_mosaic.version = 11 : i64} {
  func.func @_cross_core_kernel(%arg0: i32, %arg1: i32, %arg2: memref<1x16x32xf32, #tpu.memory_space<vmem>>, %arg3: memref<1x16x32xf32, #tpu.memory_space<vmem>>, %arg4: memref<1x32xf32, #tpu.memory_space<vmem>>, %arg5: memref<1x32xf32, #tpu.memory_space<vmem>>, %arg6: memref<1x32xf32, #tpu.memory_space<vmem>>, %arg7: memref<1x32xf32, #tpu.memory_space<vmem>>, %arg8: memref<32x32xbf16, #tpu.memory_space<vmem>>, %arg9: memref<32x32xbf16, #tpu.memory_space<vmem>>, %arg10: memref<32x32xbf16, #tpu.memory_space<vmem>>, %arg11: memref<32x4xbf16, #tpu.memory_space<vmem>>, %arg12: memref<4x32xbf16, #tpu.memory_space<vmem>>, %arg13: memref<8x32xbf16, #tpu.memory_space<vmem>>, %arg14: memref<32x8xbf16, #tpu.memory_space<vmem>>, %arg15: memref<1x4x16x8xbf16, #tpu.memory_space<vmem>>) attributes {dimension_semantics = [#tpu.dimension_semantics<parallel>, #tpu.dimension_semantics<parallel>], iteration_bounds = array<i64: 2, 1>, scalar_prefetch = 0 : i64, scratch_operands = 0 : i64, tpu.core_type = #tpu.core_type<tc>, window_params = [{transform_indices = @transform_0, window_bounds = array<i64: 1, 16, 32>}, {transform_indices = @transform_1, window_bounds = array<i64: 1, 16, 32>}, {pipeline_mode = #tpu.pipeline_mode<synchronous>, transform_indices = @transform_2, window_bounds = array<i64: 1, 32>}, {pipeline_mode = #tpu.pipeline_mode<synchronous>, transform_indices = @transform_3, window_bounds = array<i64: 1, 32>}, {pipeline_mode = #tpu.pipeline_mode<synchronous>, transform_indices = @transform_4, window_bounds = array<i64: 1, 32>}, {pipeline_mode = #tpu.pipeline_mode<synchronous>, transform_indices = @transform_5, window_bounds = array<i64: 1, 32>}, {pipeline_mode = #tpu.pipeline_mode<synchronous>, transform_indices = @transform_6, window_bounds = array<i64: 32, 32>}, {pipeline_mode = #tpu.pipeline_mode<synchronous>, transform_indices = @transform_7, window_bounds = array<i64: 32, 32>}, {pipeline_mode = #tpu.pipeline_mode<synchronous>, transform_indices = @transform_8, window_bounds = array<i64: 32, 32>}, {pipeline_mode = #tpu.pipeline_mode<synchronous>, transform_indices = @transform_9, window_bounds = array<i64: 32, 4>}, {pipeline_mode = #tpu.pipeline_mode<synchronous>, transform_indices = @transform_10, window_bounds = array<i64: 4, 32>}, {pipeline_mode = #tpu.pipeline_mode<synchronous>, transform_indices = @transform_11, window_bounds = array<i64: 8, 32>}, {pipeline_mode = #tpu.pipeline_mode<synchronous>, transform_indices = @transform_12, window_bounds = array<i64: 32, 8>}, {transform_indices = @transform_13, window_bounds = array<i64: 1, 4, 16, 8>}]} {
    %c0 = arith.constant 0 : index
    %c0_0 = arith.constant 0 : index
    %c0_1 = arith.constant 0 : index
    %0 = vector.load %arg2[%c0, %c0_0, %c0_1] : memref<1x16x32xf32, #tpu.memory_space<vmem>>, vector<1x16x32xf32>
    %1 = vector.shape_cast %0 : vector<1x16x32xf32> to vector<16x32xf32>
    %c0_2 = arith.constant 0 : index
    %c0_3 = arith.constant 0 : index
    %2 = vector.load %arg4[%c0_2, %c0_3] : memref<1x32xf32, #tpu.memory_space<vmem>>, vector<1x32xf32>
    %c0_4 = arith.constant 0 : index
    %c0_5 = arith.constant 0 : index
    %3 = vector.load %arg5[%c0_4, %c0_5] : memref<1x32xf32, #tpu.memory_space<vmem>>, vector<1x32xf32>
    %cst = arith.constant dense<0.000000e+00> : vector<16xf32>
    %4 = vector.multi_reduction <add>, %1, %cst [1] : vector<16x32xf32> to vector<16xf32>
    %5 = vector.shape_cast %4 : vector<16xf32> to vector<16x1xf32>
    %cst_6 = arith.constant 3.200000e+01 : f32
    %6 = vector.broadcast %cst_6 : f32 to vector<16x1xf32>
    %7 = arith.divf %5, %6 : vector<16x1xf32>
    %8 = vector.broadcast %7 : vector<16x1xf32> to vector<16x32xf32>
    %9 = arith.subf %1, %8 : vector<16x32xf32>
    %10 = arith.mulf %9, %9 : vector<16x32xf32>
    %cst_7 = arith.constant dense<0.000000e+00> : vector<16xf32>
    %11 = vector.multi_reduction <add>, %10, %cst_7 [1] : vector<16x32xf32> to vector<16xf32>
    %12 = vector.shape_cast %11 : vector<16xf32> to vector<16x1xf32>
    %cst_8 = arith.constant 3.200000e+01 : f32
    %13 = vector.broadcast %cst_8 : f32 to vector<16x1xf32>
    %14 = arith.divf %12, %13 : vector<16x1xf32>
    %cst_9 = arith.constant 9.99999974E-6 : f32
    %15 = vector.broadcast %cst_9 : f32 to vector<16x1xf32>
    %16 = arith.addf %14, %15 : vector<16x1xf32>
    %17 = math.rsqrt %16 : vector<16x1xf32>
    %18 = vector.broadcast %17 : vector<16x1xf32> to vector<16x32xf32>
    %19 = arith.mulf %9, %18 : vector<16x32xf32>
    %20 = vector.broadcast %2 : vector<1x32xf32> to vector<16x32xf32>
    %21 = arith.mulf %19, %20 : vector<16x32xf32>
    %22 = vector.broadcast %3 : vector<1x32xf32> to vector<16x32xf32>
    %23 = arith.addf %21, %22 : vector<16x32xf32>
    %24 = arith.truncf %23 : vector<16x32xf32> to vector<16x32xbf16>
    %c0_10 = arith.constant 0 : index
    %c0_11 = arith.constant 0 : index
    %c0_12 = arith.constant 0 : index
    %25 = vector.load %arg3[%c0_10, %c0_11, %c0_12] : memref<1x16x32xf32, #tpu.memory_space<vmem>>, vector<1x16x32xf32>
    %26 = vector.shape_cast %25 : vector<1x16x32xf32> to vector<16x32xf32>
    %c0_13 = arith.constant 0 : index
    %c0_14 = arith.constant 0 : index
    %27 = vector.load %arg6[%c0_13, %c0_14] : memref<1x32xf32, #tpu.memory_space<vmem>>, vector<1x32xf32>
    %c0_15 = arith.constant 0 : index
    %c0_16 = arith.constant 0 : index
    %28 = vector.load %arg7[%c0_15, %c0_16] : memref<1x32xf32, #tpu.memory_space<vmem>>, vector<1x32xf32>
    %cst_17 = arith.constant dense<0.000000e+00> : vector<16xf32>
    %29 = vector.multi_reduction <add>, %26, %cst_17 [1] : vector<16x32xf32> to vector<16xf32>
    %30 = vector.shape_cast %29 : vector<16xf32> to vector<16x1xf32>
    %cst_18 = arith.constant 3.200000e+01 : f32
    %31 = vector.broadcast %cst_18 : f32 to vector<16x1xf32>
    %32 = arith.divf %30, %31 : vector<16x1xf32>
    %33 = vector.broadcast %32 : vector<16x1xf32> to vector<16x32xf32>
    %34 = arith.subf %26, %33 : vector<16x32xf32>
    %35 = arith.mulf %34, %34 : vector<16x32xf32>
    %cst_19 = arith.constant dense<0.000000e+00> : vector<16xf32>
    %36 = vector.multi_reduction <add>, %35, %cst_19 [1] : vector<16x32xf32> to vector<16xf32>
    %37 = vector.shape_cast %36 : vector<16xf32> to vector<16x1xf32>
    %cst_20 = arith.constant 3.200000e+01 : f32
    %38 = vector.broadcast %cst_20 : f32 to vector<16x1xf32>
    %39 = arith.divf %37, %38 : vector<16x1xf32>
    %cst_21 = arith.constant 9.99999974E-6 : f32
    %40 = vector.broadcast %cst_21 : f32 to vector<16x1xf32>
    %41 = arith.addf %39, %40 : vector<16x1xf32>
    %42 = math.rsqrt %41 : vector<16x1xf32>
    %43 = vector.broadcast %42 : vector<16x1xf32> to vector<16x32xf32>
    %44 = arith.mulf %34, %43 : vector<16x32xf32>
    %45 = vector.broadcast %27 : vector<1x32xf32> to vector<16x32xf32>
    %46 = arith.mulf %44, %45 : vector<16x32xf32>
    %47 = vector.broadcast %28 : vector<1x32xf32> to vector<16x32xf32>
    %48 = arith.addf %46, %47 : vector<16x32xf32>
    %49 = arith.truncf %48 : vector<16x32xf32> to vector<16x32xbf16>
    %c0_22 = arith.constant 0 : index
    %c0_23 = arith.constant 0 : index
    %50 = vector.load %arg8[%c0_22, %c0_23] : memref<32x32xbf16, #tpu.memory_space<vmem>>, vector<32x32xbf16>
    %cst_24 = arith.constant dense<0.000000e+00> : vector<16x32xf32>
    %51 = tpu.matmul %24, %50, %cst_24 {dimension_numbers = #tpu.dot_dimension_numbers<[1], [0], [0], [1], [0, 0, 1, 1], [], []>} : vector<16x32xbf16>, vector<32x32xbf16>, vector<16x32xf32> -> vector<16x32xf32>
    %c0_25 = arith.constant 0 : index
    %c0_26 = arith.constant 0 : index
    %52 = vector.load %arg9[%c0_25, %c0_26] : memref<32x32xbf16, #tpu.memory_space<vmem>>, vector<32x32xbf16>
    %cst_27 = arith.constant dense<0.000000e+00> : vector<16x32xf32>
    %53 = tpu.matmul %49, %52, %cst_27 {dimension_numbers = #tpu.dot_dimension_numbers<[1], [0], [0], [1], [0, 0, 1, 1], [], []>} : vector<16x32xbf16>, vector<32x32xbf16>, vector<16x32xf32> -> vector<16x32xf32>
    %c0_28 = arith.constant 0 : index
    %c0_29 = arith.constant 0 : index
    %54 = vector.load %arg10[%c0_28, %c0_29] : memref<32x32xbf16, #tpu.memory_space<vmem>>, vector<32x32xbf16>
    %cst_30 = arith.constant dense<0.000000e+00> : vector<16x32xf32>
    %55 = tpu.matmul %49, %54, %cst_30 {dimension_numbers = #tpu.dot_dimension_numbers<[1], [0], [0], [1], [0, 0, 1, 1], [], []>} : vector<16x32xbf16>, vector<32x32xbf16>, vector<16x32xf32> -> vector<16x32xf32>
    %c0_31 = arith.constant 0 : index
    %c0_32 = arith.constant 0 : index
    %56 = vector.load %arg11[%c0_31, %c0_32] : memref<32x4xbf16, #tpu.memory_space<vmem>>, vector<32x4xbf16>
    %c0_33 = arith.constant 0 : index
    %c0_34 = arith.constant 0 : index
    %57 = vector.load %arg12[%c0_33, %c0_34] : memref<4x32xbf16, #tpu.memory_space<vmem>>, vector<4x32xbf16>
    %c0_35 = arith.constant 0 : index
    %c0_36 = arith.constant 0 : index
    %58 = vector.load %arg13[%c0_35, %c0_36] : memref<8x32xbf16, #tpu.memory_space<vmem>>, vector<8x32xbf16>
    %c0_37 = arith.constant 0 : index
    %c0_38 = arith.constant 0 : index
    %59 = vector.load %arg14[%c0_37, %c0_38] : memref<32x8xbf16, #tpu.memory_space<vmem>>, vector<32x8xbf16>
    %60 = vector.extract_strided_slice %51 {offsets = [0, 0], sizes = [16, 8], strides = [1, 1]} : vector<16x32xf32> to vector<16x8xf32>
    %61 = arith.truncf %60 : vector<16x8xf32> to vector<16x8xbf16>
    %cst_39 = arith.constant dense<0.000000e+00> : vector<16x32xf32>
    %62 = tpu.matmul %61, %58, %cst_39 {dimension_numbers = #tpu.dot_dimension_numbers<[1], [0], [0], [1], [0, 0, 1, 1], [], []>} : vector<16x8xbf16>, vector<8x32xbf16>, vector<16x32xf32> -> vector<16x32xf32>
    %63 = arith.mulf %62, %53 : vector<16x32xf32>
    %64 = arith.truncf %63 : vector<16x32xf32> to vector<16x32xbf16>
    %cst_40 = arith.constant dense<0.000000e+00> : vector<16x4xf32>
    %65 = tpu.matmul %64, %56, %cst_40 {dimension_numbers = #tpu.dot_dimension_numbers<[1], [0], [0], [1], [0, 0, 1, 1], [], []>} : vector<16x32xbf16>, vector<32x4xbf16>, vector<16x4xf32> -> vector<16x4xf32>
    %cst_41 = arith.constant 0.353553385 : f32
    %66 = vector.broadcast %cst_41 : f32 to vector<16x4xf32>
    %67 = arith.mulf %65, %66 : vector<16x4xf32>
    %cst_42 = arith.constant dense<0xFF800000> : vector<16xf32>
    %68 = vector.multi_reduction <maximumf>, %67, %cst_42 [1] : vector<16x4xf32> to vector<16xf32>
    %69 = vector.shape_cast %68 : vector<16xf32> to vector<16x1xf32>
    %70 = vector.broadcast %69 : vector<16x1xf32> to vector<16x4xf32>
    %71 = arith.subf %67, %70 : vector<16x4xf32>
    %72 = math.exp %71 : vector<16x4xf32>
    %cst_43 = arith.constant dense<0.000000e+00> : vector<16xf32>
    %73 = vector.multi_reduction <add>, %72, %cst_43 [1] : vector<16x4xf32> to vector<16xf32>
    %74 = vector.shape_cast %73 : vector<16xf32> to vector<16x1xf32>
    %75 = tpu.reciprocal %74 {approx = true} : vector<16x1xf32> -> vector<16x1xf32>
    %76 = vector.broadcast %75 : vector<16x1xf32> to vector<16x4xf32>
    %77 = arith.mulf %72, %76 : vector<16x4xf32>
    %78 = arith.truncf %77 : vector<16x4xf32> to vector<16x4xbf16>
    %cst_44 = arith.constant dense<0.000000e+00> : vector<16x32xf32>
    %79 = tpu.matmul %78, %57, %cst_44 {dimension_numbers = #tpu.dot_dimension_numbers<[1], [0], [0], [1], [0, 0, 1, 1], [], []>} : vector<16x4xbf16>, vector<4x32xbf16>, vector<16x32xf32> -> vector<16x32xf32>
    %80 = arith.mulf %79, %55 : vector<16x32xf32>
    %81 = arith.truncf %80 : vector<16x32xf32> to vector<16x32xbf16>
    %cst_45 = arith.constant dense<0.000000e+00> : vector<16x8xf32>
    %82 = tpu.matmul %81, %59, %cst_45 {dimension_numbers = #tpu.dot_dimension_numbers<[1], [0], [0], [1], [0, 0, 1, 1], [], []>} : vector<16x32xbf16>, vector<32x8xbf16>, vector<16x8xf32> -> vector<16x8xf32>
    %83 = arith.truncf %82 : vector<16x8xf32> to vector<16x8xbf16>
    %c0_46 = arith.constant 0 : index
    %c0_47 = arith.constant 0 : index
    %c0_48 = arith.constant 0 : index
    %c0_49 = arith.constant 0 : index
    %84 = vector.load %arg15[%c0_46, %c0_47, %c0_48, %c0_49] : memref<1x4x16x8xbf16, #tpu.memory_space<vmem>>, vector<1x1x16x8xbf16>
    %85 = vector.shape_cast %84 : vector<1x1x16x8xbf16> to vector<16x8xbf16>
    %86 = vector.shape_cast %83 : vector<16x8xbf16> to vector<1x1x16x8xbf16>
    tpu.vector_store %arg15[%c0_46, %c0_47, %c0_48, %c0_49], %86 {strides = array<i32>} : memref<1x4x16x8xbf16, #tpu.memory_space<vmem>>, vector<1x1x16x8xbf16>,
    %87 = vector.extract_strided_slice %51 {offsets = [0, 8], sizes = [16, 8], strides = [1, 1]} : vector<16x32xf32> to vector<16x8xf32>
    %88 = arith.truncf %87 : vector<16x8xf32> to vector<16x8xbf16>
    %cst_50 = arith.constant dense<0.000000e+00> : vector<16x32xf32>
    %89 = tpu.matmul %88, %58, %cst_50 {dimension_numbers = #tpu.dot_dimension_numbers<[1], [0], [0], [1], [0, 0, 1, 1], [], []>} : vector<16x8xbf16>, vector<8x32xbf16>, vector<16x32xf32> -> vector<16x32xf32>
    %90 = arith.mulf %89, %53 : vector<16x32xf32>
    %91 = arith.truncf %90 : vector<16x32xf32> to vector<16x32xbf16>
    %cst_51 = arith.constant dense<0.000000e+00> : vector<16x4xf32>
    %92 = tpu.matmul %91, %56, %cst_51 {dimension_numbers = #tpu.dot_dimension_numbers<[1], [0], [0], [1], [0, 0, 1, 1], [], []>} : vector<16x32xbf16>, vector<32x4xbf16>, vector<16x4xf32> -> vector<16x4xf32>
    %cst_52 = arith.constant 0.353553385 : f32
    %93 = vector.broadcast %cst_52 : f32 to vector<16x4xf32>
    %94 = arith.mulf %92, %93 : vector<16x4xf32>
    %cst_53 = arith.constant dense<0xFF800000> : vector<16xf32>
    %95 = vector.multi_reduction <maximumf>, %94, %cst_53 [1] : vector<16x4xf32> to vector<16xf32>
    %96 = vector.shape_cast %95 : vector<16xf32> to vector<16x1xf32>
    %97 = vector.broadcast %96 : vector<16x1xf32> to vector<16x4xf32>
    %98 = arith.subf %94, %97 : vector<16x4xf32>
    %99 = math.exp %98 : vector<16x4xf32>
    %cst_54 = arith.constant dense<0.000000e+00> : vector<16xf32>
    %100 = vector.multi_reduction <add>, %99, %cst_54 [1] : vector<16x4xf32> to vector<16xf32>
    %101 = vector.shape_cast %100 : vector<16xf32> to vector<16x1xf32>
    %102 = tpu.reciprocal %101 {approx = true} : vector<16x1xf32> -> vector<16x1xf32>
    %103 = vector.broadcast %102 : vector<16x1xf32> to vector<16x4xf32>
    %104 = arith.mulf %99, %103 : vector<16x4xf32>
    %105 = arith.truncf %104 : vector<16x4xf32> to vector<16x4xbf16>
    %cst_55 = arith.constant dense<0.000000e+00> : vector<16x32xf32>
    %106 = tpu.matmul %105, %57, %cst_55 {dimension_numbers = #tpu.dot_dimension_numbers<[1], [0], [0], [1], [0, 0, 1, 1], [], []>} : vector<16x4xbf16>, vector<4x32xbf16>, vector<16x32xf32> -> vector<16x32xf32>
    %107 = arith.mulf %106, %55 : vector<16x32xf32>
    %108 = arith.truncf %107 : vector<16x32xf32> to vector<16x32xbf16>
    %cst_56 = arith.constant dense<0.000000e+00> : vector<16x8xf32>
    %109 = tpu.matmul %108, %59, %cst_56 {dimension_numbers = #tpu.dot_dimension_numbers<[1], [0], [0], [1], [0, 0, 1, 1], [], []>} : vector<16x32xbf16>, vector<32x8xbf16>, vector<16x8xf32> -> vector<16x8xf32>
    %110 = arith.truncf %109 : vector<16x8xf32> to vector<16x8xbf16>
    %c0_57 = arith.constant 0 : index
    %c1 = arith.constant 1 : index
    %c0_58 = arith.constant 0 : index
    %c0_59 = arith.constant 0 : index
    %111 = vector.load %arg15[%c0_57, %c1, %c0_58, %c0_59] : memref<1x4x16x8xbf16, #tpu.memory_space<vmem>>, vector<1x1x16x8xbf16>
    %112 = vector.shape_cast %111 : vector<1x1x16x8xbf16> to vector<16x8xbf16>
    %113 = vector.shape_cast %110 : vector<16x8xbf16> to vector<1x1x16x8xbf16>
    tpu.vector_store %arg15[%c0_57, %c1, %c0_58, %c0_59], %113 {strides = array<i32>} : memref<1x4x16x8xbf16, #tpu.memory_space<vmem>>, vector<1x1x16x8xbf16>,
    %114 = vector.extract_strided_slice %51 {offsets = [0, 16], sizes = [16, 8], strides = [1, 1]} : vector<16x32xf32> to vector<16x8xf32>
    %115 = arith.truncf %114 : vector<16x8xf32> to vector<16x8xbf16>
    %cst_60 = arith.constant dense<0.000000e+00> : vector<16x32xf32>
    %116 = tpu.matmul %115, %58, %cst_60 {dimension_numbers = #tpu.dot_dimension_numbers<[1], [0], [0], [1], [0, 0, 1, 1], [], []>} : vector<16x8xbf16>, vector<8x32xbf16>, vector<16x32xf32> -> vector<16x32xf32>
    %117 = arith.mulf %116, %53 : vector<16x32xf32>
    %118 = arith.truncf %117 : vector<16x32xf32> to vector<16x32xbf16>
    %cst_61 = arith.constant dense<0.000000e+00> : vector<16x4xf32>
    %119 = tpu.matmul %118, %56, %cst_61 {dimension_numbers = #tpu.dot_dimension_numbers<[1], [0], [0], [1], [0, 0, 1, 1], [], []>} : vector<16x32xbf16>, vector<32x4xbf16>, vector<16x4xf32> -> vector<16x4xf32>
    %cst_62 = arith.constant 0.353553385 : f32
    %120 = vector.broadcast %cst_62 : f32 to vector<16x4xf32>
    %121 = arith.mulf %119, %120 : vector<16x4xf32>
    %cst_63 = arith.constant dense<0xFF800000> : vector<16xf32>
    %122 = vector.multi_reduction <maximumf>, %121, %cst_63 [1] : vector<16x4xf32> to vector<16xf32>
    %123 = vector.shape_cast %122 : vector<16xf32> to vector<16x1xf32>
    %124 = vector.broadcast %123 : vector<16x1xf32> to vector<16x4xf32>
    %125 = arith.subf %121, %124 : vector<16x4xf32>
    %126 = math.exp %125 : vector<16x4xf32>
    %cst_64 = arith.constant dense<0.000000e+00> : vector<16xf32>
    %127 = vector.multi_reduction <add>, %126, %cst_64 [1] : vector<16x4xf32> to vector<16xf32>
    %128 = vector.shape_cast %127 : vector<16xf32> to vector<16x1xf32>
    %129 = tpu.reciprocal %128 {approx = true} : vector<16x1xf32> -> vector<16x1xf32>
    %130 = vector.broadcast %129 : vector<16x1xf32> to vector<16x4xf32>
    %131 = arith.mulf %126, %130 : vector<16x4xf32>
    %132 = arith.truncf %131 : vector<16x4xf32> to vector<16x4xbf16>
    %cst_65 = arith.constant dense<0.000000e+00> : vector<16x32xf32>
    %133 = tpu.matmul %132, %57, %cst_65 {dimension_numbers = #tpu.dot_dimension_numbers<[1], [0], [0], [1], [0, 0, 1, 1], [], []>} : vector<16x4xbf16>, vector<4x32xbf16>, vector<16x32xf32> -> vector<16x32xf32>
    %134 = arith.mulf %133, %55 : vector<16x32xf32>
    %135 = arith.truncf %134 : vector<16x32xf32> to vector<16x32xbf16>
    %cst_66 = arith.constant dense<0.000000e+00> : vector<16x8xf32>
    %136 = tpu.matmul %135, %59, %cst_66 {dimension_numbers = #tpu.dot_dimension_numbers<[1], [0], [0], [1], [0, 0, 1, 1], [], []>} : vector<16x32xbf16>, vector<32x8xbf16>, vector<16x8xf32> -> vector<16x8xf32>
    %137 = arith.truncf %136 : vector<16x8xf32> to vector<16x8xbf16>
    %c0_67 = arith.constant 0 : index
    %c2 = arith.constant 2 : index
    %c0_68 = arith.constant 0 : index
    %c0_69 = arith.constant 0 : index
    %138 = vector.load %arg15[%c0_67, %c2, %c0_68, %c0_69] : memref<1x4x16x8xbf16, #tpu.memory_space<vmem>>, vector<1x1x16x8xbf16>
    %139 = vector.shape_cast %138 : vector<1x1x16x8xbf16> to vector<16x8xbf16>
    %140 = vector.shape_cast %137 : vector<16x8xbf16> to vector<1x1x16x8xbf16>
    tpu.vector_store %arg15[%c0_67, %c2, %c0_68, %c0_69], %140 {strides = array<i32>} : memref<1x4x16x8xbf16, #tpu.memory_space<vmem>>, vector<1x1x16x8xbf16>,
    %141 = vector.extract_strided_slice %51 {offsets = [0, 24], sizes = [16, 8], strides = [1, 1]} : vector<16x32xf32> to vector<16x8xf32>
    %142 = arith.truncf %141 : vector<16x8xf32> to vector<16x8xbf16>
    %cst_70 = arith.constant dense<0.000000e+00> : vector<16x32xf32>
    %143 = tpu.matmul %142, %58, %cst_70 {dimension_numbers = #tpu.dot_dimension_numbers<[1], [0], [0], [1], [0, 0, 1, 1], [], []>} : vector<16x8xbf16>, vector<8x32xbf16>, vector<16x32xf32> -> vector<16x32xf32>
    %144 = arith.mulf %143, %53 : vector<16x32xf32>
    %145 = arith.truncf %144 : vector<16x32xf32> to vector<16x32xbf16>
    %cst_71 = arith.constant dense<0.000000e+00> : vector<16x4xf32>
    %146 = tpu.matmul %145, %56, %cst_71 {dimension_numbers = #tpu.dot_dimension_numbers<[1], [0], [0], [1], [0, 0, 1, 1], [], []>} : vector<16x32xbf16>, vector<32x4xbf16>, vector<16x4xf32> -> vector<16x4xf32>
    %cst_72 = arith.constant 0.353553385 : f32
    %147 = vector.broadcast %cst_72 : f32 to vector<16x4xf32>
    %148 = arith.mulf %146, %147 : vector<16x4xf32>
    %cst_73 = arith.constant dense<0xFF800000> : vector<16xf32>
    %149 = vector.multi_reduction <maximumf>, %148, %cst_73 [1] : vector<16x4xf32> to vector<16xf32>
    %150 = vector.shape_cast %149 : vector<16xf32> to vector<16x1xf32>
    %151 = vector.broadcast %150 : vector<16x1xf32> to vector<16x4xf32>
    %152 = arith.subf %148, %151 : vector<16x4xf32>
    %153 = math.exp %152 : vector<16x4xf32>
    %cst_74 = arith.constant dense<0.000000e+00> : vector<16xf32>
    %154 = vector.multi_reduction <add>, %153, %cst_74 [1] : vector<16x4xf32> to vector<16xf32>
    %155 = vector.shape_cast %154 : vector<16xf32> to vector<16x1xf32>
    %156 = tpu.reciprocal %155 {approx = true} : vector<16x1xf32> -> vector<16x1xf32>
    %157 = vector.broadcast %156 : vector<16x1xf32> to vector<16x4xf32>
    %158 = arith.mulf %153, %157 : vector<16x4xf32>
    %159 = arith.truncf %158 : vector<16x4xf32> to vector<16x4xbf16>
    %cst_75 = arith.constant dense<0.000000e+00> : vector<16x32xf32>
    %160 = tpu.matmul %159, %57, %cst_75 {dimension_numbers = #tpu.dot_dimension_numbers<[1], [0], [0], [1], [0, 0, 1, 1], [], []>} : vector<16x4xbf16>, vector<4x32xbf16>, vector<16x32xf32> -> vector<16x32xf32>
    %161 = arith.mulf %160, %55 : vector<16x32xf32>
    %162 = arith.truncf %161 : vector<16x32xf32> to vector<16x32xbf16>
    %cst_76 = arith.constant dense<0.000000e+00> : vector<16x8xf32>
    %163 = tpu.matmul %162, %59, %cst_76 {dimension_numbers = #tpu.dot_dimension_numbers<[1], [0], [0], [1], [0, 0, 1, 1], [], []>} : vector<16x32xbf16>, vector<32x8xbf16>, vector<16x8xf32> -> vector<16x8xf32>
    %164 = arith.truncf %163 : vector<16x8xf32> to vector<16x8xbf16>
    %c0_77 = arith.constant 0 : index
    %c3 = arith.constant 3 : index
    %c0_78 = arith.constant 0 : index
    %c0_79 = arith.constant 0 : index
    %165 = vector.load %arg15[%c0_77, %c3, %c0_78, %c0_79] : memref<1x4x16x8xbf16, #tpu.memory_space<vmem>>, vector<1x1x16x8xbf16>
    %166 = vector.shape_cast %165 : vector<1x1x16x8xbf16> to vector<16x8xbf16>
    %167 = vector.shape_cast %164 : vector<16x8xbf16> to vector<1x1x16x8xbf16>
    tpu.vector_store %arg15[%c0_77, %c3, %c0_78, %c0_79], %167 {strides = array<i32>} : memref<1x4x16x8xbf16, #tpu.memory_space<vmem>>, vector<1x1x16x8xbf16>,
    return
  }
  func.func @transform_0(%arg0: i32, %arg1: i32) -> (i32, i32, i32) {
    %c0_i32 = arith.constant 0 : i32
    %c0_i32_0 = arith.constant 0 : i32
    return %arg0, %arg1, %c0_i32 : i32, i32, i32
  }
  func.func @transform_1(%arg0: i32, %arg1: i32) -> (i32, i32, i32) {
    %c0_i32 = arith.constant 0 : i32
    %c0_i32_0 = arith.constant 0 : i32
    return %arg0, %arg1, %c0_i32 : i32, i32, i32
  }
  func.func @transform_2(%arg0: i32, %arg1: i32) -> (i32, i32) {
    %c0_i32 = arith.constant 0 : i32
    %c0_i32_0 = arith.constant 0 : i32
    %c0_i32_1 = arith.constant 0 : i32
    return %c0_i32, %c0_i32_0 : i32, i32
  }
  func.func @transform_3(%arg0: i32, %arg1: i32) -> (i32, i32) {
    %c0_i32 = arith.constant 0 : i32
    %c0_i32_0 = arith.constant 0 : i32
    %c0_i32_1 = arith.constant 0 : i32
    return %c0_i32, %c0_i32_0 : i32, i32
  }
  func.func @transform_4(%arg0: i32, %arg1: i32) -> (i32, i32) {
    %c0_i32 = arith.constant 0 : i32
    %c0_i32_0 = arith.constant 0 : i32
    %c0_i32_1 = arith.constant 0 : i32
    return %c0_i32, %c0_i32_0 : i32, i32
  }
  func.func @transform_5(%arg0: i32, %arg1: i32) -> (i32, i32) {
    %c0_i32 = arith.constant 0 : i32
    %c0_i32_0 = arith.constant 0 : i32
    %c0_i32_1 = arith.constant 0 : i32
    return %c0_i32, %c0_i32_0 : i32, i32
  }
  func.func @transform_6(%arg0: i32, %arg1: i32) -> (i32, i32) {
    %c0_i32 = arith.constant 0 : i32
    %c0_i32_0 = arith.constant 0 : i32
    %c0_i32_1 = arith.constant 0 : i32
    return %c0_i32, %c0_i32_0 : i32, i32
  }
  func.func @transform_7(%arg0: i32, %arg1: i32) -> (i32, i32) {
    %c0_i32 = arith.constant 0 : i32
    %c0_i32_0 = arith.constant 0 : i32
    %c0_i32_1 = arith.constant 0 : i32
    return %c0_i32, %c0_i32_0 : i32, i32
  }
  func.func @transform_8(%arg0: i32, %arg1: i32) -> (i32, i32) {
    %c0_i32 = arith.constant 0 : i32
    %c0_i32_0 = arith.constant 0 : i32
    %c0_i32_1 = arith.constant 0 : i32
    return %c0_i32, %c0_i32_0 : i32, i32
  }
  func.func @transform_9(%arg0: i32, %arg1: i32) -> (i32, i32) {
    %c0_i32 = arith.constant 0 : i32
    %c0_i32_0 = arith.constant 0 : i32
    %c0_i32_1 = arith.constant 0 : i32
    return %c0_i32, %c0_i32_0 : i32, i32
  }
  func.func @transform_10(%arg0: i32, %arg1: i32) -> (i32, i32) {
    %c0_i32 = arith.constant 0 : i32
    %c0_i32_0 = arith.constant 0 : i32
    %c0_i32_1 = arith.constant 0 : i32
    return %c0_i32, %c0_i32_0 : i32, i32
  }
  func.func @transform_11(%arg0: i32, %arg1: i32) -> (i32, i32) {
    %c0_i32 = arith.constant 0 : i32
    %c0_i32_0 = arith.constant 0 : i32
    %c0_i32_1 = arith.constant 0 : i32
    return %c0_i32, %c0_i32_0 : i32, i32
  }
  func.func @transform_12(%arg0: i32, %arg1: i32) -> (i32, i32) {
    %c0_i32 = arith.constant 0 : i32
    %c0_i32_0 = arith.constant 0 : i32
    %c0_i32_1 = arith.constant 0 : i32
    return %c0_i32, %c0_i32_0 : i32, i32
  }
  func.func @transform_13(%arg0: i32, %arg1: i32) -> (i32, i32, i32, i32) {
    %c0_i32 = arith.constant 0 : i32
    %c0_i32_0 = arith.constant 0 : i32
    %c0_i32_1 = arith.constant 0 : i32
    return %arg0, %c0_i32, %arg1, %c0_i32_0 : i32, i32, i32, i32
  }
}

module attributes {stable_mosaic.version = 11 : i64} {
  func.func @_proj_mlp_kernel(%arg0: i32, %arg1: i32, %arg2: memref<32x32xf32, #tpu.memory_space<vmem>>, %arg3: memref<32x32xbf16, #tpu.memory_space<vmem>>, %arg4: memref<32x32xbf16, #tpu.memory_space<vmem>>, %arg5: memref<1x32xf32, #tpu.memory_space<vmem>>, %arg6: memref<1x32xf32, #tpu.memory_space<vmem>>, %arg7: memref<1x32xf32, #tpu.memory_space<vmem>>, %arg8: memref<32x128xbf16, #tpu.memory_space<vmem>>, %arg9: memref<1x128xf32, #tpu.memory_space<vmem>>, %arg10: memref<128x32xbf16, #tpu.memory_space<vmem>>, %arg11: memref<1x32xf32, #tpu.memory_space<vmem>>, %arg12: memref<32x32xf32, #tpu.memory_space<vmem>>, %arg13: memref<32x32xf32, #tpu.memory_space<vmem>>, %arg14: memref<32x32xbf16, #tpu.memory_space<vmem>>, %arg15: memref<32x32xf32, #tpu.memory_space<vmem>>) attributes {dimension_semantics = [#tpu.dimension_semantics<parallel>, #tpu.dimension_semantics<arbitrary>], iteration_bounds = array<i64: 1, 1>, scalar_prefetch = 0 : i64, scratch_operands = 3 : i64, tpu.core_type = #tpu.core_type<tc>, window_params = [{transform_indices = @transform_0, window_bounds = array<i64: 32, 32>}, {transform_indices = @transform_1, window_bounds = array<i64: 32, 32>}, {pipeline_mode = #tpu.pipeline_mode<synchronous>, transform_indices = @transform_2, window_bounds = array<i64: 32, 32>}, {pipeline_mode = #tpu.pipeline_mode<synchronous>, transform_indices = @transform_3, window_bounds = array<i64: 1, 32>}, {pipeline_mode = #tpu.pipeline_mode<synchronous>, transform_indices = @transform_4, window_bounds = array<i64: 1, 32>}, {pipeline_mode = #tpu.pipeline_mode<synchronous>, transform_indices = @transform_5, window_bounds = array<i64: 1, 32>}, {transform_indices = @transform_6, window_bounds = array<i64: 32, 128>}, {transform_indices = @transform_7, window_bounds = array<i64: 1, 128>}, {transform_indices = @transform_8, window_bounds = array<i64: 128, 32>}, {pipeline_mode = #tpu.pipeline_mode<synchronous>, transform_indices = @transform_9, window_bounds = array<i64: 1, 32>}, {transform_indices = @transform_10, window_bounds = array<i64: 32, 32>}]} {
    %c0_i32 = arith.constant 0 : i32
    %0 = arith.cmpi eq, %arg1, %c0_i32 : i32
    %1 = arith.extui %0 : i1 to i32
    %c0_i32_0 = arith.constant 0 : i32
    %2 = arith.cmpi ne, %1, %c0_i32_0 : i32
    scf.if %2 {
      %c0_31 = arith.constant 0 : index
      %c0_32 = arith.constant 0 : index
      %59 = vector.load %arg2[%c0_31, %c0_32] : memref<32x32xf32, #tpu.memory_space<vmem>>, vector<32x32xf32>
      %c0_33 = arith.constant 0 : index
      %c0_34 = arith.constant 0 : index
      %60 = vector.load %arg5[%c0_33, %c0_34] : memref<1x32xf32, #tpu.memory_space<vmem>>, vector<1x32xf32>
      %61 = vector.broadcast %60 : vector<1x32xf32> to vector<32x32xf32>
      %62 = arith.addf %59, %61 : vector<32x32xf32>
      %c0_35 = arith.constant 0 : index
      %c0_36 = arith.constant 0 : index
      %63 = vector.load %arg3[%c0_35, %c0_36] : memref<32x32xbf16, #tpu.memory_space<vmem>>, vector<32x32xbf16>
      %c0_37 = arith.constant 0 : index
      %c0_38 = arith.constant 0 : index
      %64 = vector.load %arg4[%c0_37, %c0_38] : memref<32x32xbf16, #tpu.memory_space<vmem>>, vector<32x32xbf16>
      %cst_39 = arith.constant dense<0.000000e+00> : vector<32x32xf32>
      %65 = tpu.matmul %63, %64, %cst_39 {dimension_numbers = #tpu.dot_dimension_numbers<[1], [0], [0], [1], [0, 0, 1, 1], [], []>} : vector<32x32xbf16>, vector<32x32xbf16>, vector<32x32xf32> -> vector<32x32xf32>
      %66 = arith.addf %62, %65 : vector<32x32xf32>
      %c0_40 = arith.constant 0 : index
      %c0_41 = arith.constant 0 : index
      %67 = vector.load %arg13[%c0_40, %c0_41] : memref<32x32xf32, #tpu.memory_space<vmem>>, vector<32x32xf32>
      tpu.vector_store %arg13[%c0_40, %c0_41], %66 {strides = array<i32>} : memref<32x32xf32, #tpu.memory_space<vmem>>, vector<32x32xf32>,
      %c0_42 = arith.constant 0 : index
      %c0_43 = arith.constant 0 : index
      %68 = vector.load %arg6[%c0_42, %c0_43] : memref<1x32xf32, #tpu.memory_space<vmem>>, vector<1x32xf32>
      %c0_44 = arith.constant 0 : index
      %c0_45 = arith.constant 0 : index
      %69 = vector.load %arg7[%c0_44, %c0_45] : memref<1x32xf32, #tpu.memory_space<vmem>>, vector<1x32xf32>
      %cst_46 = arith.constant dense<0.000000e+00> : vector<32xf32>
      %70 = vector.multi_reduction <add>, %66, %cst_46 [1] : vector<32x32xf32> to vector<32xf32>
      %71 = vector.shape_cast %70 : vector<32xf32> to vector<32x1xf32>
      %cst_47 = arith.constant 3.200000e+01 : f32
      %72 = vector.broadcast %cst_47 : f32 to vector<32x1xf32>
      %73 = arith.divf %71, %72 : vector<32x1xf32>
      %74 = vector.broadcast %73 : vector<32x1xf32> to vector<32x32xf32>
      %75 = arith.subf %66, %74 : vector<32x32xf32>
      %76 = arith.mulf %75, %75 : vector<32x32xf32>
      %cst_48 = arith.constant dense<0.000000e+00> : vector<32xf32>
      %77 = vector.multi_reduction <add>, %76, %cst_48 [1] : vector<32x32xf32> to vector<32xf32>
      %78 = vector.shape_cast %77 : vector<32xf32> to vector<32x1xf32>
      %cst_49 = arith.constant 3.200000e+01 : f32
      %79 = vector.broadcast %cst_49 : f32 to vector<32x1xf32>
      %80 = arith.divf %78, %79 : vector<32x1xf32>
      %cst_50 = arith.constant 9.99999974E-6 : f32
      %81 = vector.broadcast %cst_50 : f32 to vector<32x1xf32>
      %82 = arith.addf %80, %81 : vector<32x1xf32>
      %83 = math.rsqrt %82 : vector<32x1xf32>
      %84 = vector.broadcast %83 : vector<32x1xf32> to vector<32x32xf32>
      %85 = arith.mulf %75, %84 : vector<32x32xf32>
      %86 = vector.broadcast %68 : vector<1x32xf32> to vector<32x32xf32>
      %87 = arith.mulf %85, %86 : vector<32x32xf32>
      %88 = vector.broadcast %69 : vector<1x32xf32> to vector<32x32xf32>
      %89 = arith.addf %87, %88 : vector<32x32xf32>
      %90 = arith.truncf %89 : vector<32x32xf32> to vector<32x32xbf16>
      %c0_51 = arith.constant 0 : index
      %c0_52 = arith.constant 0 : index
      %91 = vector.load %arg14[%c0_51, %c0_52] : memref<32x32xbf16, #tpu.memory_space<vmem>>, vector<32x32xbf16>
      tpu.vector_store %arg14[%c0_51, %c0_52], %90 {strides = array<i32>} : memref<32x32xbf16, #tpu.memory_space<vmem>>, vector<32x32xbf16>,
      %cst_53 = arith.constant 0.000000e+00 : f32
      %92 = vector.broadcast %cst_53 : f32 to vector<32x32xf32>
      %c0_54 = arith.constant 0 : index
      %c0_55 = arith.constant 0 : index
      %93 = vector.load %arg15[%c0_54, %c0_55] : memref<32x32xf32, #tpu.memory_space<vmem>>, vector<32x32xf32>
      tpu.vector_store %arg15[%c0_54, %c0_55], %92 {strides = array<i32>} : memref<32x32xf32, #tpu.memory_space<vmem>>, vector<32x32xf32>,
    } else {
    }
    %c0 = arith.constant 0 : index
    %c0_1 = arith.constant 0 : index
    %3 = vector.load %arg14[%c0, %c0_1] : memref<32x32xbf16, #tpu.memory_space<vmem>>, vector<32x32xbf16>
    %c0_2 = arith.constant 0 : index
    %c0_3 = arith.constant 0 : index
    %4 = vector.load %arg8[%c0_2, %c0_3] : memref<32x128xbf16, #tpu.memory_space<vmem>>, vector<32x128xbf16>
    %cst = arith.constant dense<0.000000e+00> : vector<32x128xf32>
    %5 = tpu.matmul %3, %4, %cst {dimension_numbers = #tpu.dot_dimension_numbers<[1], [0], [0], [1], [0, 0, 1, 1], [], []>} : vector<32x32xbf16>, vector<32x128xbf16>, vector<32x128xf32> -> vector<32x128xf32>
    %c0_4 = arith.constant 0 : index
    %c0_5 = arith.constant 0 : index
    %6 = vector.load %arg9[%c0_4, %c0_5] : memref<1x128xf32, #tpu.memory_space<vmem>>, vector<1x128xf32>
    %7 = vector.broadcast %6 : vector<1x128xf32> to vector<32x128xf32>
    %8 = arith.addf %5, %7 : vector<32x128xf32>
    %cst_6 = arith.constant 5.000000e-01 : f32
    %9 = vector.broadcast %cst_6 : f32 to vector<32x128xf32>
    %10 = arith.mulf %9, %8 : vector<32x128xf32>
    %cst_7 = arith.constant 0.707106769 : f32
    %11 = vector.broadcast %cst_7 : f32 to vector<32x128xf32>
    %12 = arith.mulf %8, %11 : vector<32x128xf32>
    %cst_8 = arith.constant 0.000000e+00 : f32
    %13 = vector.broadcast %cst_8 : f32 to vector<32x128xf32>
    %14 = arith.cmpf oge, %12, %13 : vector<32x128xf32>
    %cst_9 = arith.constant 1.000000e+00 : f32
    %cst_10 = arith.constant -1.000000e+00 : f32
    %15 = vector.broadcast %cst_9 : f32 to vector<32x128xf32>
    %16 = vector.broadcast %cst_10 : f32 to vector<32x128xf32>
    %17 = arith.select %14, %15, %16 : vector<32x128xi1>, vector<32x128xf32>
    %18 = math.absf %12 : vector<32x128xf32>
    %cst_11 = arith.constant 0.327591091 : f32
    %19 = vector.broadcast %cst_11 : f32 to vector<32x128xf32>
    %20 = arith.mulf %19, %18 : vector<32x128xf32>
    %cst_12 = arith.constant 1.000000e+00 : f32
    %21 = vector.broadcast %cst_12 : f32 to vector<32x128xf32>
    %22 = arith.addf %21, %20 : vector<32x128xf32>
    %cst_13 = arith.constant 1.000000e+00 : f32
    %23 = vector.broadcast %cst_13 : f32 to vector<32x128xf32>
    %24 = arith.divf %23, %22 : vector<32x128xf32>
    %cst_14 = arith.constant 1.06140542 : f32
    %25 = vector.broadcast %cst_14 : f32 to vector<32x128xf32>
    %26 = arith.mulf %25, %24 : vector<32x128xf32>
    %cst_15 = arith.constant -1.45315206 : f32
    %27 = vector.broadcast %cst_15 : f32 to vector<32x128xf32>
    %28 = arith.addf %26, %27 : vector<32x128xf32>
    %29 = arith.mulf %28, %24 : vector<32x128xf32>
    %cst_16 = arith.constant 1.42141378 : f32
    %30 = vector.broadcast %cst_16 : f32 to vector<32x128xf32>
    %31 = arith.addf %29, %30 : vector<32x128xf32>
    %32 = arith.mulf %31, %24 : vector<32x128xf32>
    %cst_17 = arith.constant -0.284496725 : f32
    %33 = vector.broadcast %cst_17 : f32 to vector<32x128xf32>
    %34 = arith.addf %32, %33 : vector<32x128xf32>
    %35 = arith.mulf %34, %24 : vector<32x128xf32>
    %cst_18 = arith.constant 0.254829586 : f32
    %36 = vector.broadcast %cst_18 : f32 to vector<32x128xf32>
    %37 = arith.addf %35, %36 : vector<32x128xf32>
    %38 = arith.mulf %37, %24 : vector<32x128xf32>
    %cst_19 = arith.constant 0.000000e+00 : f32
    %39 = vector.broadcast %cst_19 : f32 to vector<32x128xf32>
    %40 = arith.subf %39, %18 : vector<32x128xf32>
    %41 = arith.mulf %40, %18 : vector<32x128xf32>
    %42 = math.exp %41 : vector<32x128xf32>
    %43 = arith.mulf %38, %42 : vector<32x128xf32>
    %cst_20 = arith.constant 1.000000e+00 : f32
    %44 = vector.broadcast %cst_20 : f32 to vector<32x128xf32>
    %45 = arith.subf %44, %43 : vector<32x128xf32>
    %46 = arith.mulf %17, %45 : vector<32x128xf32>
    %cst_21 = arith.constant 1.000000e+00 : f32
    %47 = vector.broadcast %cst_21 : f32 to vector<32x128xf32>
    %48 = arith.addf %47, %46 : vector<32x128xf32>
    %49 = arith.mulf %10, %48 : vector<32x128xf32>
    %c0_22 = arith.constant 0 : index
    %c0_23 = arith.constant 0 : index
    %50 = vector.load %arg15[%c0_22, %c0_23] : memref<32x32xf32, #tpu.memory_space<vmem>>, vector<32x32xf32>
    %51 = arith.truncf %49 : vector<32x128xf32> to vector<32x128xbf16>
    %c0_24 = arith.constant 0 : index
    %c0_25 = arith.constant 0 : index
    %52 = vector.load %arg10[%c0_24, %c0_25] : memref<128x32xbf16, #tpu.memory_space<vmem>>, vector<128x32xbf16>
    %cst_26 = arith.constant dense<0.000000e+00> : vector<32x32xf32>
    %53 = tpu.matmul %51, %52, %cst_26 {dimension_numbers = #tpu.dot_dimension_numbers<[1], [0], [0], [1], [0, 0, 1, 1], [], []>} : vector<32x128xbf16>, vector<128x32xbf16>, vector<32x32xf32> -> vector<32x32xf32>
    %54 = arith.addf %50, %53 : vector<32x32xf32>
    %c0_27 = arith.constant 0 : index
    %c0_28 = arith.constant 0 : index
    %55 = vector.load %arg15[%c0_27, %c0_28] : memref<32x32xf32, #tpu.memory_space<vmem>>, vector<32x32xf32>
    tpu.vector_store %arg15[%c0_27, %c0_28], %54 {strides = array<i32>} : memref<32x32xf32, #tpu.memory_space<vmem>>, vector<32x32xf32>,
    %c0_i32_29 = arith.constant 0 : i32
    %56 = arith.cmpi eq, %arg1, %c0_i32_29 : i32
    %57 = arith.extui %56 : i1 to i32
    %c0_i32_30 = arith.constant 0 : i32
    %58 = arith.cmpi ne, %57, %c0_i32_30 : i32
    scf.if %58 {
      %c0_31 = arith.constant 0 : index
      %c0_32 = arith.constant 0 : index
      %59 = vector.load %arg13[%c0_31, %c0_32] : memref<32x32xf32, #tpu.memory_space<vmem>>, vector<32x32xf32>
      %c0_33 = arith.constant 0 : index
      %c0_34 = arith.constant 0 : index
      %60 = vector.load %arg15[%c0_33, %c0_34] : memref<32x32xf32, #tpu.memory_space<vmem>>, vector<32x32xf32>
      %61 = arith.addf %59, %60 : vector<32x32xf32>
      %c0_35 = arith.constant 0 : index
      %c0_36 = arith.constant 0 : index
      %62 = vector.load %arg11[%c0_35, %c0_36] : memref<1x32xf32, #tpu.memory_space<vmem>>, vector<1x32xf32>
      %63 = vector.broadcast %62 : vector<1x32xf32> to vector<32x32xf32>
      %64 = arith.addf %61, %63 : vector<32x32xf32>
      %c0_37 = arith.constant 0 : index
      %c0_38 = arith.constant 0 : index
      %65 = vector.load %arg12[%c0_37, %c0_38] : memref<32x32xf32, #tpu.memory_space<vmem>>, vector<32x32xf32>
      tpu.vector_store %arg12[%c0_37, %c0_38], %64 {strides = array<i32>} : memref<32x32xf32, #tpu.memory_space<vmem>>, vector<32x32xf32>,
    } else {
    }
    return
  }
  func.func @transform_0(%arg0: i32, %arg1: i32) -> (i32, i32) {
    %c0_i32 = arith.constant 0 : i32
    %c0_i32_0 = arith.constant 0 : i32
    return %arg0, %c0_i32 : i32, i32
  }
  func.func @transform_1(%arg0: i32, %arg1: i32) -> (i32, i32) {
    %c0_i32 = arith.constant 0 : i32
    %c0_i32_0 = arith.constant 0 : i32
    return %arg0, %c0_i32 : i32, i32
  }
  func.func @transform_2(%arg0: i32, %arg1: i32) -> (i32, i32) {
    %c0_i32 = arith.constant 0 : i32
    %c0_i32_0 = arith.constant 0 : i32
    %c0_i32_1 = arith.constant 0 : i32
    return %c0_i32, %c0_i32_0 : i32, i32
  }
  func.func @transform_3(%arg0: i32, %arg1: i32) -> (i32, i32) {
    %c0_i32 = arith.constant 0 : i32
    %c0_i32_0 = arith.constant 0 : i32
    %c0_i32_1 = arith.constant 0 : i32
    return %c0_i32, %c0_i32_0 : i32, i32
  }
  func.func @transform_4(%arg0: i32, %arg1: i32) -> (i32, i32) {
    %c0_i32 = arith.constant 0 : i32
    %c0_i32_0 = arith.constant 0 : i32
    %c0_i32_1 = arith.constant 0 : i32
    return %c0_i32, %c0_i32_0 : i32, i32
  }
  func.func @transform_5(%arg0: i32, %arg1: i32) -> (i32, i32) {
    %c0_i32 = arith.constant 0 : i32
    %c0_i32_0 = arith.constant 0 : i32
    %c0_i32_1 = arith.constant 0 : i32
    return %c0_i32, %c0_i32_0 : i32, i32
  }
  func.func @transform_6(%arg0: i32, %arg1: i32) -> (i32, i32) {
    %c0_i32 = arith.constant 0 : i32
    %c0_i32_0 = arith.constant 0 : i32
    return %c0_i32, %arg1 : i32, i32
  }
  func.func @transform_7(%arg0: i32, %arg1: i32) -> (i32, i32) {
    %c0_i32 = arith.constant 0 : i32
    %c0_i32_0 = arith.constant 0 : i32
    return %c0_i32, %arg1 : i32, i32
  }
  func.func @transform_8(%arg0: i32, %arg1: i32) -> (i32, i32) {
    %c0_i32 = arith.constant 0 : i32
    %c0_i32_0 = arith.constant 0 : i32
    return %arg1, %c0_i32 : i32, i32
  }
  func.func @transform_9(%arg0: i32, %arg1: i32) -> (i32, i32) {
    %c0_i32 = arith.constant 0 : i32
    %c0_i32_0 = arith.constant 0 : i32
    %c0_i32_1 = arith.constant 0 : i32
    return %c0_i32, %c0_i32_0 : i32, i32
  }
  func.func @transform_10(%arg0: i32, %arg1: i32) -> (i32, i32) {
    %c0_i32 = arith.constant 0 : i32
    %c0_i32_0 = arith.constant 0 : i32
    return %arg0, %c0_i32 : i32, i32
  }
}

module attributes {stable_mosaic.version = 11 : i64} {
  func.func @_ln_qkv_kernel(%arg0: i32, %arg1: memref<32x32xf32, #tpu.memory_space<vmem>>, %arg2: memref<1x32xf32, #tpu.memory_space<vmem>>, %arg3: memref<1x32xf32, #tpu.memory_space<vmem>>, %arg4: memref<32x96xbf16, #tpu.memory_space<vmem>>, %arg5: memref<32x32xbf16, #tpu.memory_space<vmem>>, %arg6: memref<32x32xbf16, #tpu.memory_space<vmem>>, %arg7: memref<32x32xbf16, #tpu.memory_space<vmem>>) attributes {dimension_semantics = [#tpu.dimension_semantics<parallel>], iteration_bounds = array<i64: 1>, scalar_prefetch = 0 : i64, scratch_operands = 0 : i64, tpu.core_type = #tpu.core_type<tc>, window_params = [{transform_indices = @transform_0, window_bounds = array<i64: 32, 32>}, {pipeline_mode = #tpu.pipeline_mode<synchronous>, transform_indices = @transform_1, window_bounds = array<i64: 1, 32>}, {pipeline_mode = #tpu.pipeline_mode<synchronous>, transform_indices = @transform_2, window_bounds = array<i64: 1, 32>}, {pipeline_mode = #tpu.pipeline_mode<synchronous>, transform_indices = @transform_3, window_bounds = array<i64: 32, 96>}, {transform_indices = @transform_4, window_bounds = array<i64: 32, 32>}, {transform_indices = @transform_5, window_bounds = array<i64: 32, 32>}, {transform_indices = @transform_6, window_bounds = array<i64: 32, 32>}]} {
    %c0 = arith.constant 0 : index
    %c0_0 = arith.constant 0 : index
    %0 = vector.load %arg1[%c0, %c0_0] : memref<32x32xf32, #tpu.memory_space<vmem>>, vector<32x32xf32>
    %c0_1 = arith.constant 0 : index
    %c0_2 = arith.constant 0 : index
    %1 = vector.load %arg2[%c0_1, %c0_2] : memref<1x32xf32, #tpu.memory_space<vmem>>, vector<1x32xf32>
    %c0_3 = arith.constant 0 : index
    %c0_4 = arith.constant 0 : index
    %2 = vector.load %arg3[%c0_3, %c0_4] : memref<1x32xf32, #tpu.memory_space<vmem>>, vector<1x32xf32>
    %cst = arith.constant dense<0.000000e+00> : vector<32xf32>
    %3 = vector.multi_reduction <add>, %0, %cst [1] : vector<32x32xf32> to vector<32xf32>
    %4 = vector.shape_cast %3 : vector<32xf32> to vector<32x1xf32>
    %cst_5 = arith.constant 3.200000e+01 : f32
    %5 = vector.broadcast %cst_5 : f32 to vector<32x1xf32>
    %6 = arith.divf %4, %5 : vector<32x1xf32>
    %7 = vector.broadcast %6 : vector<32x1xf32> to vector<32x32xf32>
    %8 = arith.subf %0, %7 : vector<32x32xf32>
    %9 = arith.mulf %8, %8 : vector<32x32xf32>
    %cst_6 = arith.constant dense<0.000000e+00> : vector<32xf32>
    %10 = vector.multi_reduction <add>, %9, %cst_6 [1] : vector<32x32xf32> to vector<32xf32>
    %11 = vector.shape_cast %10 : vector<32xf32> to vector<32x1xf32>
    %cst_7 = arith.constant 3.200000e+01 : f32
    %12 = vector.broadcast %cst_7 : f32 to vector<32x1xf32>
    %13 = arith.divf %11, %12 : vector<32x1xf32>
    %cst_8 = arith.constant 9.99999974E-6 : f32
    %14 = vector.broadcast %cst_8 : f32 to vector<32x1xf32>
    %15 = arith.addf %13, %14 : vector<32x1xf32>
    %16 = math.rsqrt %15 : vector<32x1xf32>
    %17 = vector.broadcast %16 : vector<32x1xf32> to vector<32x32xf32>
    %18 = arith.mulf %8, %17 : vector<32x32xf32>
    %19 = vector.broadcast %1 : vector<1x32xf32> to vector<32x32xf32>
    %20 = arith.mulf %18, %19 : vector<32x32xf32>
    %21 = vector.broadcast %2 : vector<1x32xf32> to vector<32x32xf32>
    %22 = arith.addf %20, %21 : vector<32x32xf32>
    %23 = arith.truncf %22 : vector<32x32xf32> to vector<32x32xbf16>
    %c0_9 = arith.constant 0 : index
    %c0_10 = arith.constant 0 : index
    %24 = vector.load %arg4[%c0_9, %c0_10] : memref<32x96xbf16, #tpu.memory_space<vmem>>, vector<32x96xbf16>
    %cst_11 = arith.constant dense<0.000000e+00> : vector<32x96xf32>
    %25 = tpu.matmul %23, %24, %cst_11 {dimension_numbers = #tpu.dot_dimension_numbers<[1], [0], [0], [1], [0, 0, 1, 1], [], []>} : vector<32x32xbf16>, vector<32x96xbf16>, vector<32x96xf32> -> vector<32x96xf32>
    %26 = vector.extract_strided_slice %25 {offsets = [0, 0], sizes = [32, 32], strides = [1, 1]} : vector<32x96xf32> to vector<32x32xf32>
    %27 = arith.truncf %26 : vector<32x32xf32> to vector<32x32xbf16>
    %c0_12 = arith.constant 0 : index
    %c0_13 = arith.constant 0 : index
    %28 = vector.load %arg5[%c0_12, %c0_13] : memref<32x32xbf16, #tpu.memory_space<vmem>>, vector<32x32xbf16>
    tpu.vector_store %arg5[%c0_12, %c0_13], %27 {strides = array<i32>} : memref<32x32xbf16, #tpu.memory_space<vmem>>, vector<32x32xbf16>,
    %29 = vector.extract_strided_slice %25 {offsets = [0, 32], sizes = [32, 32], strides = [1, 1]} : vector<32x96xf32> to vector<32x32xf32>
    %30 = arith.truncf %29 : vector<32x32xf32> to vector<32x32xbf16>
    %c0_14 = arith.constant 0 : index
    %c0_15 = arith.constant 0 : index
    %31 = vector.load %arg6[%c0_14, %c0_15] : memref<32x32xbf16, #tpu.memory_space<vmem>>, vector<32x32xbf16>
    tpu.vector_store %arg6[%c0_14, %c0_15], %30 {strides = array<i32>} : memref<32x32xbf16, #tpu.memory_space<vmem>>, vector<32x32xbf16>,
    %32 = vector.extract_strided_slice %25 {offsets = [0, 64], sizes = [32, 32], strides = [1, 1]} : vector<32x96xf32> to vector<32x32xf32>
    %33 = arith.truncf %32 : vector<32x32xf32> to vector<32x32xbf16>
    %c0_16 = arith.constant 0 : index
    %c0_17 = arith.constant 0 : index
    %34 = vector.load %arg7[%c0_16, %c0_17] : memref<32x32xbf16, #tpu.memory_space<vmem>>, vector<32x32xbf16>
    tpu.vector_store %arg7[%c0_16, %c0_17], %33 {strides = array<i32>} : memref<32x32xbf16, #tpu.memory_space<vmem>>, vector<32x32xbf16>,
    return
  }
  func.func @transform_0(%arg0: i32) -> (i32, i32) {
    %c0_i32 = arith.constant 0 : i32
    %c0_i32_0 = arith.constant 0 : i32
    return %arg0, %c0_i32 : i32, i32
  }
  func.func @transform_1(%arg0: i32) -> (i32, i32) {
    %c0_i32 = arith.constant 0 : i32
    %c0_i32_0 = arith.constant 0 : i32
    %c0_i32_1 = arith.constant 0 : i32
    return %c0_i32, %c0_i32_0 : i32, i32
  }
  func.func @transform_2(%arg0: i32) -> (i32, i32) {
    %c0_i32 = arith.constant 0 : i32
    %c0_i32_0 = arith.constant 0 : i32
    %c0_i32_1 = arith.constant 0 : i32
    return %c0_i32, %c0_i32_0 : i32, i32
  }
  func.func @transform_3(%arg0: i32) -> (i32, i32) {
    %c0_i32 = arith.constant 0 : i32
    %c0_i32_0 = arith.constant 0 : i32
    %c0_i32_1 = arith.constant 0 : i32
    return %c0_i32, %c0_i32_0 : i32, i32
  }
  func.func @transform_4(%arg0: i32) -> (i32, i32) {
    %c0_i32 = arith.constant 0 : i32
    %c0_i32_0 = arith.constant 0 : i32
    return %arg0, %c0_i32 : i32, i32
  }
  func.func @transform_5(%arg0: i32) -> (i32, i32) {
    %c0_i32 = arith.constant 0 : i32
    %c0_i32_0 = arith.constant 0 : i32
    return %arg0, %c0_i32 : i32, i32
  }
  func.func @transform_6(%arg0: i32) -> (i32, i32) {
    %c0_i32 = arith.constant 0 : i32
    %c0_i32_0 = arith.constant 0 : i32
    return %arg0, %c0_i32 : i32, i32
  }
}

module attributes {stable_mosaic.version = 11 : i64} {
  func.func @_self_attn_kernel(%arg0: i32, %arg1: i32, %arg2: memref<1x16x32xf32, #tpu.memory_space<vmem>>, %arg3: memref<1x16x32xbf16, #tpu.memory_space<vmem>>, %arg4: memref<1x16x32xbf16, #tpu.memory_space<vmem>>, %arg5: memref<1x16x32xbf16, #tpu.memory_space<vmem>>, %arg6: memref<32x32xbf16, #tpu.memory_space<vmem>>, %arg7: memref<1x32xf32, #tpu.memory_space<vmem>>, %arg8: memref<1x16x32xf32, #tpu.memory_space<vmem>>, %arg9: memref<16x32xf32, #tpu.memory_space<vmem>>) attributes {dimension_semantics = [#tpu.dimension_semantics<parallel>, #tpu.dimension_semantics<parallel>], iteration_bounds = array<i64: 2, 1>, scalar_prefetch = 0 : i64, scratch_operands = 1 : i64, tpu.core_type = #tpu.core_type<tc>, window_params = [{transform_indices = @transform_0, window_bounds = array<i64: 1, 16, 32>}, {transform_indices = @transform_1, window_bounds = array<i64: 1, 16, 32>}, {transform_indices = @transform_2, window_bounds = array<i64: 1, 16, 32>}, {transform_indices = @transform_3, window_bounds = array<i64: 1, 16, 32>}, {pipeline_mode = #tpu.pipeline_mode<synchronous>, transform_indices = @transform_4, window_bounds = array<i64: 32, 32>}, {pipeline_mode = #tpu.pipeline_mode<synchronous>, transform_indices = @transform_5, window_bounds = array<i64: 1, 32>}, {transform_indices = @transform_6, window_bounds = array<i64: 1, 16, 32>}]} {
    %c0 = arith.constant 0 : index
    %c0_0 = arith.constant 0 : index
    %c0_1 = arith.constant 0 : index
    %0 = vector.load %arg3[%c0, %c0_0, %c0_1] : memref<1x16x32xbf16, #tpu.memory_space<vmem>>, vector<1x16x32xbf16>
    %1 = vector.shape_cast %0 : vector<1x16x32xbf16> to vector<16x32xbf16>
    %c0_2 = arith.constant 0 : index
    %c0_3 = arith.constant 0 : index
    %c0_4 = arith.constant 0 : index
    %2 = vector.load %arg4[%c0_2, %c0_3, %c0_4] : memref<1x16x32xbf16, #tpu.memory_space<vmem>>, vector<1x16x32xbf16>
    %3 = vector.shape_cast %2 : vector<1x16x32xbf16> to vector<16x32xbf16>
    %c0_5 = arith.constant 0 : index
    %c0_6 = arith.constant 0 : index
    %c0_7 = arith.constant 0 : index
    %4 = vector.load %arg5[%c0_5, %c0_6, %c0_7] : memref<1x16x32xbf16, #tpu.memory_space<vmem>>, vector<1x16x32xbf16>
    %5 = vector.shape_cast %4 : vector<1x16x32xbf16> to vector<16x32xbf16>
    %6 = vector.extract_strided_slice %1 {offsets = [0, 0], sizes = [16, 8], strides = [1, 1]} : vector<16x32xbf16> to vector<16x8xbf16>
    %7 = vector.extract_strided_slice %3 {offsets = [0, 0], sizes = [16, 8], strides = [1, 1]} : vector<16x32xbf16> to vector<16x8xbf16>
    %8 = vector.extract_strided_slice %5 {offsets = [0, 0], sizes = [16, 8], strides = [1, 1]} : vector<16x32xbf16> to vector<16x8xbf16>
    %cst = arith.constant dense<0.000000e+00> : vector<16x16xf32>
    %9 = tpu.matmul %6, %7, %cst {dimension_numbers = #tpu.dot_dimension_numbers<[1], [1], [0], [0], [0, 0, 1, 0], [], []>} : vector<16x8xbf16>, vector<16x8xbf16>, vector<16x16xf32> -> vector<16x16xf32>
    %cst_8 = arith.constant 0.353553385 : f32
    %10 = vector.broadcast %cst_8 : f32 to vector<16x16xf32>
    %11 = arith.mulf %9, %10 : vector<16x16xf32>
    %cst_9 = arith.constant dense<0xFF800000> : vector<16xf32>
    %12 = vector.multi_reduction <maximumf>, %11, %cst_9 [1] : vector<16x16xf32> to vector<16xf32>
    %13 = vector.shape_cast %12 : vector<16xf32> to vector<16x1xf32>
    %14 = vector.broadcast %13 : vector<16x1xf32> to vector<16x16xf32>
    %15 = arith.subf %11, %14 : vector<16x16xf32>
    %16 = math.exp %15 : vector<16x16xf32>
    %cst_10 = arith.constant dense<0.000000e+00> : vector<16xf32>
    %17 = vector.multi_reduction <add>, %16, %cst_10 [1] : vector<16x16xf32> to vector<16xf32>
    %18 = vector.shape_cast %17 : vector<16xf32> to vector<16x1xf32>
    %19 = tpu.reciprocal %18 {approx = true} : vector<16x1xf32> -> vector<16x1xf32>
    %20 = vector.broadcast %19 : vector<16x1xf32> to vector<16x16xf32>
    %21 = arith.mulf %16, %20 : vector<16x16xf32>
    %22 = arith.truncf %21 : vector<16x16xf32> to vector<16x16xbf16>
    %cst_11 = arith.constant dense<0.000000e+00> : vector<16x8xf32>
    %23 = tpu.matmul %22, %8, %cst_11 {dimension_numbers = #tpu.dot_dimension_numbers<[1], [0], [0], [1], [0, 0, 1, 1], [], []>} : vector<16x16xbf16>, vector<16x8xbf16>, vector<16x8xf32> -> vector<16x8xf32>
    %c0_12 = arith.constant 0 : index
    %c0_13 = arith.constant 0 : index
    %24 = vector.load %arg9[%c0_12, %c0_13] : memref<16x32xf32, #tpu.memory_space<vmem>>, vector<16x8xf32>
    tpu.vector_store %arg9[%c0_12, %c0_13], %23 {strides = array<i32>} : memref<16x32xf32, #tpu.memory_space<vmem>>, vector<16x8xf32>,
    %25 = vector.extract_strided_slice %1 {offsets = [0, 8], sizes = [16, 8], strides = [1, 1]} : vector<16x32xbf16> to vector<16x8xbf16>
    %26 = vector.extract_strided_slice %3 {offsets = [0, 8], sizes = [16, 8], strides = [1, 1]} : vector<16x32xbf16> to vector<16x8xbf16>
    %27 = vector.extract_strided_slice %5 {offsets = [0, 8], sizes = [16, 8], strides = [1, 1]} : vector<16x32xbf16> to vector<16x8xbf16>
    %cst_14 = arith.constant dense<0.000000e+00> : vector<16x16xf32>
    %28 = tpu.matmul %25, %26, %cst_14 {dimension_numbers = #tpu.dot_dimension_numbers<[1], [1], [0], [0], [0, 0, 1, 0], [], []>} : vector<16x8xbf16>, vector<16x8xbf16>, vector<16x16xf32> -> vector<16x16xf32>
    %cst_15 = arith.constant 0.353553385 : f32
    %29 = vector.broadcast %cst_15 : f32 to vector<16x16xf32>
    %30 = arith.mulf %28, %29 : vector<16x16xf32>
    %cst_16 = arith.constant dense<0xFF800000> : vector<16xf32>
    %31 = vector.multi_reduction <maximumf>, %30, %cst_16 [1] : vector<16x16xf32> to vector<16xf32>
    %32 = vector.shape_cast %31 : vector<16xf32> to vector<16x1xf32>
    %33 = vector.broadcast %32 : vector<16x1xf32> to vector<16x16xf32>
    %34 = arith.subf %30, %33 : vector<16x16xf32>
    %35 = math.exp %34 : vector<16x16xf32>
    %cst_17 = arith.constant dense<0.000000e+00> : vector<16xf32>
    %36 = vector.multi_reduction <add>, %35, %cst_17 [1] : vector<16x16xf32> to vector<16xf32>
    %37 = vector.shape_cast %36 : vector<16xf32> to vector<16x1xf32>
    %38 = tpu.reciprocal %37 {approx = true} : vector<16x1xf32> -> vector<16x1xf32>
    %39 = vector.broadcast %38 : vector<16x1xf32> to vector<16x16xf32>
    %40 = arith.mulf %35, %39 : vector<16x16xf32>
    %41 = arith.truncf %40 : vector<16x16xf32> to vector<16x16xbf16>
    %cst_18 = arith.constant dense<0.000000e+00> : vector<16x8xf32>
    %42 = tpu.matmul %41, %27, %cst_18 {dimension_numbers = #tpu.dot_dimension_numbers<[1], [0], [0], [1], [0, 0, 1, 1], [], []>} : vector<16x16xbf16>, vector<16x8xbf16>, vector<16x8xf32> -> vector<16x8xf32>
    %c0_19 = arith.constant 0 : index
    %c8 = arith.constant 8 : index
    %43 = vector.load %arg9[%c0_19, %c8] : memref<16x32xf32, #tpu.memory_space<vmem>>, vector<16x8xf32>
    tpu.vector_store %arg9[%c0_19, %c8], %42 {strides = array<i32>} : memref<16x32xf32, #tpu.memory_space<vmem>>, vector<16x8xf32>,
    %44 = vector.extract_strided_slice %1 {offsets = [0, 16], sizes = [16, 8], strides = [1, 1]} : vector<16x32xbf16> to vector<16x8xbf16>
    %45 = vector.extract_strided_slice %3 {offsets = [0, 16], sizes = [16, 8], strides = [1, 1]} : vector<16x32xbf16> to vector<16x8xbf16>
    %46 = vector.extract_strided_slice %5 {offsets = [0, 16], sizes = [16, 8], strides = [1, 1]} : vector<16x32xbf16> to vector<16x8xbf16>
    %cst_20 = arith.constant dense<0.000000e+00> : vector<16x16xf32>
    %47 = tpu.matmul %44, %45, %cst_20 {dimension_numbers = #tpu.dot_dimension_numbers<[1], [1], [0], [0], [0, 0, 1, 0], [], []>} : vector<16x8xbf16>, vector<16x8xbf16>, vector<16x16xf32> -> vector<16x16xf32>
    %cst_21 = arith.constant 0.353553385 : f32
    %48 = vector.broadcast %cst_21 : f32 to vector<16x16xf32>
    %49 = arith.mulf %47, %48 : vector<16x16xf32>
    %cst_22 = arith.constant dense<0xFF800000> : vector<16xf32>
    %50 = vector.multi_reduction <maximumf>, %49, %cst_22 [1] : vector<16x16xf32> to vector<16xf32>
    %51 = vector.shape_cast %50 : vector<16xf32> to vector<16x1xf32>
    %52 = vector.broadcast %51 : vector<16x1xf32> to vector<16x16xf32>
    %53 = arith.subf %49, %52 : vector<16x16xf32>
    %54 = math.exp %53 : vector<16x16xf32>
    %cst_23 = arith.constant dense<0.000000e+00> : vector<16xf32>
    %55 = vector.multi_reduction <add>, %54, %cst_23 [1] : vector<16x16xf32> to vector<16xf32>
    %56 = vector.shape_cast %55 : vector<16xf32> to vector<16x1xf32>
    %57 = tpu.reciprocal %56 {approx = true} : vector<16x1xf32> -> vector<16x1xf32>
    %58 = vector.broadcast %57 : vector<16x1xf32> to vector<16x16xf32>
    %59 = arith.mulf %54, %58 : vector<16x16xf32>
    %60 = arith.truncf %59 : vector<16x16xf32> to vector<16x16xbf16>
    %cst_24 = arith.constant dense<0.000000e+00> : vector<16x8xf32>
    %61 = tpu.matmul %60, %46, %cst_24 {dimension_numbers = #tpu.dot_dimension_numbers<[1], [0], [0], [1], [0, 0, 1, 1], [], []>} : vector<16x16xbf16>, vector<16x8xbf16>, vector<16x8xf32> -> vector<16x8xf32>
    %c0_25 = arith.constant 0 : index
    %c16 = arith.constant 16 : index
    %62 = vector.load %arg9[%c0_25, %c16] : memref<16x32xf32, #tpu.memory_space<vmem>>, vector<16x8xf32>
    tpu.vector_store %arg9[%c0_25, %c16], %61 {strides = array<i32>} : memref<16x32xf32, #tpu.memory_space<vmem>>, vector<16x8xf32>,
    %63 = vector.extract_strided_slice %1 {offsets = [0, 24], sizes = [16, 8], strides = [1, 1]} : vector<16x32xbf16> to vector<16x8xbf16>
    %64 = vector.extract_strided_slice %3 {offsets = [0, 24], sizes = [16, 8], strides = [1, 1]} : vector<16x32xbf16> to vector<16x8xbf16>
    %65 = vector.extract_strided_slice %5 {offsets = [0, 24], sizes = [16, 8], strides = [1, 1]} : vector<16x32xbf16> to vector<16x8xbf16>
    %cst_26 = arith.constant dense<0.000000e+00> : vector<16x16xf32>
    %66 = tpu.matmul %63, %64, %cst_26 {dimension_numbers = #tpu.dot_dimension_numbers<[1], [1], [0], [0], [0, 0, 1, 0], [], []>} : vector<16x8xbf16>, vector<16x8xbf16>, vector<16x16xf32> -> vector<16x16xf32>
    %cst_27 = arith.constant 0.353553385 : f32
    %67 = vector.broadcast %cst_27 : f32 to vector<16x16xf32>
    %68 = arith.mulf %66, %67 : vector<16x16xf32>
    %cst_28 = arith.constant dense<0xFF800000> : vector<16xf32>
    %69 = vector.multi_reduction <maximumf>, %68, %cst_28 [1] : vector<16x16xf32> to vector<16xf32>
    %70 = vector.shape_cast %69 : vector<16xf32> to vector<16x1xf32>
    %71 = vector.broadcast %70 : vector<16x1xf32> to vector<16x16xf32>
    %72 = arith.subf %68, %71 : vector<16x16xf32>
    %73 = math.exp %72 : vector<16x16xf32>
    %cst_29 = arith.constant dense<0.000000e+00> : vector<16xf32>
    %74 = vector.multi_reduction <add>, %73, %cst_29 [1] : vector<16x16xf32> to vector<16xf32>
    %75 = vector.shape_cast %74 : vector<16xf32> to vector<16x1xf32>
    %76 = tpu.reciprocal %75 {approx = true} : vector<16x1xf32> -> vector<16x1xf32>
    %77 = vector.broadcast %76 : vector<16x1xf32> to vector<16x16xf32>
    %78 = arith.mulf %73, %77 : vector<16x16xf32>
    %79 = arith.truncf %78 : vector<16x16xf32> to vector<16x16xbf16>
    %cst_30 = arith.constant dense<0.000000e+00> : vector<16x8xf32>
    %80 = tpu.matmul %79, %65, %cst_30 {dimension_numbers = #tpu.dot_dimension_numbers<[1], [0], [0], [1], [0, 0, 1, 1], [], []>} : vector<16x16xbf16>, vector<16x8xbf16>, vector<16x8xf32> -> vector<16x8xf32>
    %c0_31 = arith.constant 0 : index
    %c24 = arith.constant 24 : index
    %81 = vector.load %arg9[%c0_31, %c24] : memref<16x32xf32, #tpu.memory_space<vmem>>, vector<16x8xf32>
    tpu.vector_store %arg9[%c0_31, %c24], %80 {strides = array<i32>} : memref<16x32xf32, #tpu.memory_space<vmem>>, vector<16x8xf32>,
    %c0_32 = arith.constant 0 : index
    %c0_33 = arith.constant 0 : index
    %c0_34 = arith.constant 0 : index
    %82 = vector.load %arg2[%c0_32, %c0_33, %c0_34] : memref<1x16x32xf32, #tpu.memory_space<vmem>>, vector<1x16x32xf32>
    %83 = vector.shape_cast %82 : vector<1x16x32xf32> to vector<16x32xf32>
    %c0_35 = arith.constant 0 : index
    %c0_36 = arith.constant 0 : index
    %84 = vector.load %arg7[%c0_35, %c0_36] : memref<1x32xf32, #tpu.memory_space<vmem>>, vector<1x32xf32>
    %85 = vector.broadcast %84 : vector<1x32xf32> to vector<16x32xf32>
    %86 = arith.addf %83, %85 : vector<16x32xf32>
    %c0_37 = arith.constant 0 : index
    %c0_38 = arith.constant 0 : index
    %87 = vector.load %arg9[%c0_37, %c0_38] : memref<16x32xf32, #tpu.memory_space<vmem>>, vector<16x32xf32>
    %88 = arith.truncf %87 : vector<16x32xf32> to vector<16x32xbf16>
    %c0_39 = arith.constant 0 : index
    %c0_40 = arith.constant 0 : index
    %89 = vector.load %arg6[%c0_39, %c0_40] : memref<32x32xbf16, #tpu.memory_space<vmem>>, vector<32x32xbf16>
    %cst_41 = arith.constant dense<0.000000e+00> : vector<16x32xf32>
    %90 = tpu.matmul %88, %89, %cst_41 {dimension_numbers = #tpu.dot_dimension_numbers<[1], [0], [0], [1], [0, 0, 1, 1], [], []>} : vector<16x32xbf16>, vector<32x32xbf16>, vector<16x32xf32> -> vector<16x32xf32>
    %91 = arith.addf %86, %90 : vector<16x32xf32>
    %c0_42 = arith.constant 0 : index
    %c0_43 = arith.constant 0 : index
    %c0_44 = arith.constant 0 : index
    %92 = vector.load %arg8[%c0_42, %c0_43, %c0_44] : memref<1x16x32xf32, #tpu.memory_space<vmem>>, vector<1x16x32xf32>
    %93 = vector.shape_cast %92 : vector<1x16x32xf32> to vector<16x32xf32>
    %94 = vector.shape_cast %91 : vector<16x32xf32> to vector<1x16x32xf32>
    tpu.vector_store %arg8[%c0_42, %c0_43, %c0_44], %94 {strides = array<i32>} : memref<1x16x32xf32, #tpu.memory_space<vmem>>, vector<1x16x32xf32>,
    return
  }
  func.func @transform_0(%arg0: i32, %arg1: i32) -> (i32, i32, i32) {
    %c0_i32 = arith.constant 0 : i32
    %c0_i32_0 = arith.constant 0 : i32
    return %arg0, %arg1, %c0_i32 : i32, i32, i32
  }
  func.func @transform_1(%arg0: i32, %arg1: i32) -> (i32, i32, i32) {
    %c0_i32 = arith.constant 0 : i32
    %c0_i32_0 = arith.constant 0 : i32
    return %arg0, %arg1, %c0_i32 : i32, i32, i32
  }
  func.func @transform_2(%arg0: i32, %arg1: i32) -> (i32, i32, i32) {
    %c0_i32 = arith.constant 0 : i32
    %c0_i32_0 = arith.constant 0 : i32
    %c0_i32_1 = arith.constant 0 : i32
    return %arg0, %c0_i32, %c0_i32_0 : i32, i32, i32
  }
  func.func @transform_3(%arg0: i32, %arg1: i32) -> (i32, i32, i32) {
    %c0_i32 = arith.constant 0 : i32
    %c0_i32_0 = arith.constant 0 : i32
    %c0_i32_1 = arith.constant 0 : i32
    return %arg0, %c0_i32, %c0_i32_0 : i32, i32, i32
  }
  func.func @transform_4(%arg0: i32, %arg1: i32) -> (i32, i32) {
    %c0_i32 = arith.constant 0 : i32
    %c0_i32_0 = arith.constant 0 : i32
    %c0_i32_1 = arith.constant 0 : i32
    return %c0_i32, %c0_i32_0 : i32, i32
  }
  func.func @transform_5(%arg0: i32, %arg1: i32) -> (i32, i32) {
    %c0_i32 = arith.constant 0 : i32
    %c0_i32_0 = arith.constant 0 : i32
    %c0_i32_1 = arith.constant 0 : i32
    return %c0_i32, %c0_i32_0 : i32, i32
  }
  func.func @transform_6(%arg0: i32, %arg1: i32) -> (i32, i32, i32) {
    %c0_i32 = arith.constant 0 : i32
    %c0_i32_0 = arith.constant 0 : i32
    return %arg0, %arg1, %c0_i32 : i32, i32, i32
  }
}

module attributes {stable_mosaic.version = 11 : i64} {
  func.func @_cross_core_kernel(%arg0: i32, %arg1: i32, %arg2: memref<1x16x32xf32, #tpu.memory_space<vmem>>, %arg3: memref<1x16x32xf32, #tpu.memory_space<vmem>>, %arg4: memref<1x32xf32, #tpu.memory_space<vmem>>, %arg5: memref<1x32xf32, #tpu.memory_space<vmem>>, %arg6: memref<1x32xf32, #tpu.memory_space<vmem>>, %arg7: memref<1x32xf32, #tpu.memory_space<vmem>>, %arg8: memref<32x32xbf16, #tpu.memory_space<vmem>>, %arg9: memref<32x32xbf16, #tpu.memory_space<vmem>>, %arg10: memref<32x32xbf16, #tpu.memory_space<vmem>>, %arg11: memref<32x4xbf16, #tpu.memory_space<vmem>>, %arg12: memref<4x32xbf16, #tpu.memory_space<vmem>>, %arg13: memref<8x32xbf16, #tpu.memory_space<vmem>>, %arg14: memref<32x8xbf16, #tpu.memory_space<vmem>>, %arg15: memref<1x4x16x8xbf16, #tpu.memory_space<vmem>>) attributes {dimension_semantics = [#tpu.dimension_semantics<parallel>, #tpu.dimension_semantics<parallel>], iteration_bounds = array<i64: 2, 1>, scalar_prefetch = 0 : i64, scratch_operands = 0 : i64, tpu.core_type = #tpu.core_type<tc>, window_params = [{transform_indices = @transform_0, window_bounds = array<i64: 1, 16, 32>}, {transform_indices = @transform_1, window_bounds = array<i64: 1, 16, 32>}, {pipeline_mode = #tpu.pipeline_mode<synchronous>, transform_indices = @transform_2, window_bounds = array<i64: 1, 32>}, {pipeline_mode = #tpu.pipeline_mode<synchronous>, transform_indices = @transform_3, window_bounds = array<i64: 1, 32>}, {pipeline_mode = #tpu.pipeline_mode<synchronous>, transform_indices = @transform_4, window_bounds = array<i64: 1, 32>}, {pipeline_mode = #tpu.pipeline_mode<synchronous>, transform_indices = @transform_5, window_bounds = array<i64: 1, 32>}, {pipeline_mode = #tpu.pipeline_mode<synchronous>, transform_indices = @transform_6, window_bounds = array<i64: 32, 32>}, {pipeline_mode = #tpu.pipeline_mode<synchronous>, transform_indices = @transform_7, window_bounds = array<i64: 32, 32>}, {pipeline_mode = #tpu.pipeline_mode<synchronous>, transform_indices = @transform_8, window_bounds = array<i64: 32, 32>}, {pipeline_mode = #tpu.pipeline_mode<synchronous>, transform_indices = @transform_9, window_bounds = array<i64: 32, 4>}, {pipeline_mode = #tpu.pipeline_mode<synchronous>, transform_indices = @transform_10, window_bounds = array<i64: 4, 32>}, {pipeline_mode = #tpu.pipeline_mode<synchronous>, transform_indices = @transform_11, window_bounds = array<i64: 8, 32>}, {pipeline_mode = #tpu.pipeline_mode<synchronous>, transform_indices = @transform_12, window_bounds = array<i64: 32, 8>}, {transform_indices = @transform_13, window_bounds = array<i64: 1, 4, 16, 8>}]} {
    %c0 = arith.constant 0 : index
    %c0_0 = arith.constant 0 : index
    %c0_1 = arith.constant 0 : index
    %0 = vector.load %arg2[%c0, %c0_0, %c0_1] : memref<1x16x32xf32, #tpu.memory_space<vmem>>, vector<1x16x32xf32>
    %1 = vector.shape_cast %0 : vector<1x16x32xf32> to vector<16x32xf32>
    %c0_2 = arith.constant 0 : index
    %c0_3 = arith.constant 0 : index
    %2 = vector.load %arg4[%c0_2, %c0_3] : memref<1x32xf32, #tpu.memory_space<vmem>>, vector<1x32xf32>
    %c0_4 = arith.constant 0 : index
    %c0_5 = arith.constant 0 : index
    %3 = vector.load %arg5[%c0_4, %c0_5] : memref<1x32xf32, #tpu.memory_space<vmem>>, vector<1x32xf32>
    %cst = arith.constant dense<0.000000e+00> : vector<16xf32>
    %4 = vector.multi_reduction <add>, %1, %cst [1] : vector<16x32xf32> to vector<16xf32>
    %5 = vector.shape_cast %4 : vector<16xf32> to vector<16x1xf32>
    %cst_6 = arith.constant 3.200000e+01 : f32
    %6 = vector.broadcast %cst_6 : f32 to vector<16x1xf32>
    %7 = arith.divf %5, %6 : vector<16x1xf32>
    %8 = vector.broadcast %7 : vector<16x1xf32> to vector<16x32xf32>
    %9 = arith.subf %1, %8 : vector<16x32xf32>
    %10 = arith.mulf %9, %9 : vector<16x32xf32>
    %cst_7 = arith.constant dense<0.000000e+00> : vector<16xf32>
    %11 = vector.multi_reduction <add>, %10, %cst_7 [1] : vector<16x32xf32> to vector<16xf32>
    %12 = vector.shape_cast %11 : vector<16xf32> to vector<16x1xf32>
    %cst_8 = arith.constant 3.200000e+01 : f32
    %13 = vector.broadcast %cst_8 : f32 to vector<16x1xf32>
    %14 = arith.divf %12, %13 : vector<16x1xf32>
    %cst_9 = arith.constant 9.99999974E-6 : f32
    %15 = vector.broadcast %cst_9 : f32 to vector<16x1xf32>
    %16 = arith.addf %14, %15 : vector<16x1xf32>
    %17 = math.rsqrt %16 : vector<16x1xf32>
    %18 = vector.broadcast %17 : vector<16x1xf32> to vector<16x32xf32>
    %19 = arith.mulf %9, %18 : vector<16x32xf32>
    %20 = vector.broadcast %2 : vector<1x32xf32> to vector<16x32xf32>
    %21 = arith.mulf %19, %20 : vector<16x32xf32>
    %22 = vector.broadcast %3 : vector<1x32xf32> to vector<16x32xf32>
    %23 = arith.addf %21, %22 : vector<16x32xf32>
    %24 = arith.truncf %23 : vector<16x32xf32> to vector<16x32xbf16>
    %c0_10 = arith.constant 0 : index
    %c0_11 = arith.constant 0 : index
    %c0_12 = arith.constant 0 : index
    %25 = vector.load %arg3[%c0_10, %c0_11, %c0_12] : memref<1x16x32xf32, #tpu.memory_space<vmem>>, vector<1x16x32xf32>
    %26 = vector.shape_cast %25 : vector<1x16x32xf32> to vector<16x32xf32>
    %c0_13 = arith.constant 0 : index
    %c0_14 = arith.constant 0 : index
    %27 = vector.load %arg6[%c0_13, %c0_14] : memref<1x32xf32, #tpu.memory_space<vmem>>, vector<1x32xf32>
    %c0_15 = arith.constant 0 : index
    %c0_16 = arith.constant 0 : index
    %28 = vector.load %arg7[%c0_15, %c0_16] : memref<1x32xf32, #tpu.memory_space<vmem>>, vector<1x32xf32>
    %cst_17 = arith.constant dense<0.000000e+00> : vector<16xf32>
    %29 = vector.multi_reduction <add>, %26, %cst_17 [1] : vector<16x32xf32> to vector<16xf32>
    %30 = vector.shape_cast %29 : vector<16xf32> to vector<16x1xf32>
    %cst_18 = arith.constant 3.200000e+01 : f32
    %31 = vector.broadcast %cst_18 : f32 to vector<16x1xf32>
    %32 = arith.divf %30, %31 : vector<16x1xf32>
    %33 = vector.broadcast %32 : vector<16x1xf32> to vector<16x32xf32>
    %34 = arith.subf %26, %33 : vector<16x32xf32>
    %35 = arith.mulf %34, %34 : vector<16x32xf32>
    %cst_19 = arith.constant dense<0.000000e+00> : vector<16xf32>
    %36 = vector.multi_reduction <add>, %35, %cst_19 [1] : vector<16x32xf32> to vector<16xf32>
    %37 = vector.shape_cast %36 : vector<16xf32> to vector<16x1xf32>
    %cst_20 = arith.constant 3.200000e+01 : f32
    %38 = vector.broadcast %cst_20 : f32 to vector<16x1xf32>
    %39 = arith.divf %37, %38 : vector<16x1xf32>
    %cst_21 = arith.constant 9.99999974E-6 : f32
    %40 = vector.broadcast %cst_21 : f32 to vector<16x1xf32>
    %41 = arith.addf %39, %40 : vector<16x1xf32>
    %42 = math.rsqrt %41 : vector<16x1xf32>
    %43 = vector.broadcast %42 : vector<16x1xf32> to vector<16x32xf32>
    %44 = arith.mulf %34, %43 : vector<16x32xf32>
    %45 = vector.broadcast %27 : vector<1x32xf32> to vector<16x32xf32>
    %46 = arith.mulf %44, %45 : vector<16x32xf32>
    %47 = vector.broadcast %28 : vector<1x32xf32> to vector<16x32xf32>
    %48 = arith.addf %46, %47 : vector<16x32xf32>
    %49 = arith.truncf %48 : vector<16x32xf32> to vector<16x32xbf16>
    %c0_22 = arith.constant 0 : index
    %c0_23 = arith.constant 0 : index
    %50 = vector.load %arg8[%c0_22, %c0_23] : memref<32x32xbf16, #tpu.memory_space<vmem>>, vector<32x32xbf16>
    %cst_24 = arith.constant dense<0.000000e+00> : vector<16x32xf32>
    %51 = tpu.matmul %24, %50, %cst_24 {dimension_numbers = #tpu.dot_dimension_numbers<[1], [0], [0], [1], [0, 0, 1, 1], [], []>} : vector<16x32xbf16>, vector<32x32xbf16>, vector<16x32xf32> -> vector<16x32xf32>
    %c0_25 = arith.constant 0 : index
    %c0_26 = arith.constant 0 : index
    %52 = vector.load %arg9[%c0_25, %c0_26] : memref<32x32xbf16, #tpu.memory_space<vmem>>, vector<32x32xbf16>
    %cst_27 = arith.constant dense<0.000000e+00> : vector<16x32xf32>
    %53 = tpu.matmul %49, %52, %cst_27 {dimension_numbers = #tpu.dot_dimension_numbers<[1], [0], [0], [1], [0, 0, 1, 1], [], []>} : vector<16x32xbf16>, vector<32x32xbf16>, vector<16x32xf32> -> vector<16x32xf32>
    %c0_28 = arith.constant 0 : index
    %c0_29 = arith.constant 0 : index
    %54 = vector.load %arg10[%c0_28, %c0_29] : memref<32x32xbf16, #tpu.memory_space<vmem>>, vector<32x32xbf16>
    %cst_30 = arith.constant dense<0.000000e+00> : vector<16x32xf32>
    %55 = tpu.matmul %49, %54, %cst_30 {dimension_numbers = #tpu.dot_dimension_numbers<[1], [0], [0], [1], [0, 0, 1, 1], [], []>} : vector<16x32xbf16>, vector<32x32xbf16>, vector<16x32xf32> -> vector<16x32xf32>
    %c0_31 = arith.constant 0 : index
    %c0_32 = arith.constant 0 : index
    %56 = vector.load %arg11[%c0_31, %c0_32] : memref<32x4xbf16, #tpu.memory_space<vmem>>, vector<32x4xbf16>
    %c0_33 = arith.constant 0 : index
    %c0_34 = arith.constant 0 : index
    %57 = vector.load %arg12[%c0_33, %c0_34] : memref<4x32xbf16, #tpu.memory_space<vmem>>, vector<4x32xbf16>
    %c0_35 = arith.constant 0 : index
    %c0_36 = arith.constant 0 : index
    %58 = vector.load %arg13[%c0_35, %c0_36] : memref<8x32xbf16, #tpu.memory_space<vmem>>, vector<8x32xbf16>
    %c0_37 = arith.constant 0 : index
    %c0_38 = arith.constant 0 : index
    %59 = vector.load %arg14[%c0_37, %c0_38] : memref<32x8xbf16, #tpu.memory_space<vmem>>, vector<32x8xbf16>
    %60 = vector.extract_strided_slice %51 {offsets = [0, 0], sizes = [16, 8], strides = [1, 1]} : vector<16x32xf32> to vector<16x8xf32>
    %61 = arith.truncf %60 : vector<16x8xf32> to vector<16x8xbf16>
    %cst_39 = arith.constant dense<0.000000e+00> : vector<16x32xf32>
    %62 = tpu.matmul %61, %58, %cst_39 {dimension_numbers = #tpu.dot_dimension_numbers<[1], [0], [0], [1], [0, 0, 1, 1], [], []>} : vector<16x8xbf16>, vector<8x32xbf16>, vector<16x32xf32> -> vector<16x32xf32>
    %63 = arith.mulf %62, %53 : vector<16x32xf32>
    %64 = arith.truncf %63 : vector<16x32xf32> to vector<16x32xbf16>
    %cst_40 = arith.constant dense<0.000000e+00> : vector<16x4xf32>
    %65 = tpu.matmul %64, %56, %cst_40 {dimension_numbers = #tpu.dot_dimension_numbers<[1], [0], [0], [1], [0, 0, 1, 1], [], []>} : vector<16x32xbf16>, vector<32x4xbf16>, vector<16x4xf32> -> vector<16x4xf32>
    %cst_41 = arith.constant 0.353553385 : f32
    %66 = vector.broadcast %cst_41 : f32 to vector<16x4xf32>
    %67 = arith.mulf %65, %66 : vector<16x4xf32>
    %cst_42 = arith.constant dense<0xFF800000> : vector<16xf32>
    %68 = vector.multi_reduction <maximumf>, %67, %cst_42 [1] : vector<16x4xf32> to vector<16xf32>
    %69 = vector.shape_cast %68 : vector<16xf32> to vector<16x1xf32>
    %70 = vector.broadcast %69 : vector<16x1xf32> to vector<16x4xf32>
    %71 = arith.subf %67, %70 : vector<16x4xf32>
    %72 = math.exp %71 : vector<16x4xf32>
    %cst_43 = arith.constant dense<0.000000e+00> : vector<16xf32>
    %73 = vector.multi_reduction <add>, %72, %cst_43 [1] : vector<16x4xf32> to vector<16xf32>
    %74 = vector.shape_cast %73 : vector<16xf32> to vector<16x1xf32>
    %75 = tpu.reciprocal %74 {approx = true} : vector<16x1xf32> -> vector<16x1xf32>
    %76 = vector.broadcast %75 : vector<16x1xf32> to vector<16x4xf32>
    %77 = arith.mulf %72, %76 : vector<16x4xf32>
    %78 = arith.truncf %77 : vector<16x4xf32> to vector<16x4xbf16>
    %cst_44 = arith.constant dense<0.000000e+00> : vector<16x32xf32>
    %79 = tpu.matmul %78, %57, %cst_44 {dimension_numbers = #tpu.dot_dimension_numbers<[1], [0], [0], [1], [0, 0, 1, 1], [], []>} : vector<16x4xbf16>, vector<4x32xbf16>, vector<16x32xf32> -> vector<16x32xf32>
    %80 = arith.mulf %79, %55 : vector<16x32xf32>
    %81 = arith.truncf %80 : vector<16x32xf32> to vector<16x32xbf16>
    %cst_45 = arith.constant dense<0.000000e+00> : vector<16x8xf32>
    %82 = tpu.matmul %81, %59, %cst_45 {dimension_numbers = #tpu.dot_dimension_numbers<[1], [0], [0], [1], [0, 0, 1, 1], [], []>} : vector<16x32xbf16>, vector<32x8xbf16>, vector<16x8xf32> -> vector<16x8xf32>
    %83 = arith.truncf %82 : vector<16x8xf32> to vector<16x8xbf16>
    %c0_46 = arith.constant 0 : index
    %c0_47 = arith.constant 0 : index
    %c0_48 = arith.constant 0 : index
    %c0_49 = arith.constant 0 : index
    %84 = vector.load %arg15[%c0_46, %c0_47, %c0_48, %c0_49] : memref<1x4x16x8xbf16, #tpu.memory_space<vmem>>, vector<1x1x16x8xbf16>
    %85 = vector.shape_cast %84 : vector<1x1x16x8xbf16> to vector<16x8xbf16>
    %86 = vector.shape_cast %83 : vector<16x8xbf16> to vector<1x1x16x8xbf16>
    tpu.vector_store %arg15[%c0_46, %c0_47, %c0_48, %c0_49], %86 {strides = array<i32>} : memref<1x4x16x8xbf16, #tpu.memory_space<vmem>>, vector<1x1x16x8xbf16>,
    %87 = vector.extract_strided_slice %51 {offsets = [0, 8], sizes = [16, 8], strides = [1, 1]} : vector<16x32xf32> to vector<16x8xf32>
    %88 = arith.truncf %87 : vector<16x8xf32> to vector<16x8xbf16>
    %cst_50 = arith.constant dense<0.000000e+00> : vector<16x32xf32>
    %89 = tpu.matmul %88, %58, %cst_50 {dimension_numbers = #tpu.dot_dimension_numbers<[1], [0], [0], [1], [0, 0, 1, 1], [], []>} : vector<16x8xbf16>, vector<8x32xbf16>, vector<16x32xf32> -> vector<16x32xf32>
    %90 = arith.mulf %89, %53 : vector<16x32xf32>
    %91 = arith.truncf %90 : vector<16x32xf32> to vector<16x32xbf16>
    %cst_51 = arith.constant dense<0.000000e+00> : vector<16x4xf32>
    %92 = tpu.matmul %91, %56, %cst_51 {dimension_numbers = #tpu.dot_dimension_numbers<[1], [0], [0], [1], [0, 0, 1, 1], [], []>} : vector<16x32xbf16>, vector<32x4xbf16>, vector<16x4xf32> -> vector<16x4xf32>
    %cst_52 = arith.constant 0.353553385 : f32
    %93 = vector.broadcast %cst_52 : f32 to vector<16x4xf32>
    %94 = arith.mulf %92, %93 : vector<16x4xf32>
    %cst_53 = arith.constant dense<0xFF800000> : vector<16xf32>
    %95 = vector.multi_reduction <maximumf>, %94, %cst_53 [1] : vector<16x4xf32> to vector<16xf32>
    %96 = vector.shape_cast %95 : vector<16xf32> to vector<16x1xf32>
    %97 = vector.broadcast %96 : vector<16x1xf32> to vector<16x4xf32>
    %98 = arith.subf %94, %97 : vector<16x4xf32>
    %99 = math.exp %98 : vector<16x4xf32>
    %cst_54 = arith.constant dense<0.000000e+00> : vector<16xf32>
    %100 = vector.multi_reduction <add>, %99, %cst_54 [1] : vector<16x4xf32> to vector<16xf32>
    %101 = vector.shape_cast %100 : vector<16xf32> to vector<16x1xf32>
    %102 = tpu.reciprocal %101 {approx = true} : vector<16x1xf32> -> vector<16x1xf32>
    %103 = vector.broadcast %102 : vector<16x1xf32> to vector<16x4xf32>
    %104 = arith.mulf %99, %103 : vector<16x4xf32>
    %105 = arith.truncf %104 : vector<16x4xf32> to vector<16x4xbf16>
    %cst_55 = arith.constant dense<0.000000e+00> : vector<16x32xf32>
    %106 = tpu.matmul %105, %57, %cst_55 {dimension_numbers = #tpu.dot_dimension_numbers<[1], [0], [0], [1], [0, 0, 1, 1], [], []>} : vector<16x4xbf16>, vector<4x32xbf16>, vector<16x32xf32> -> vector<16x32xf32>
    %107 = arith.mulf %106, %55 : vector<16x32xf32>
    %108 = arith.truncf %107 : vector<16x32xf32> to vector<16x32xbf16>
    %cst_56 = arith.constant dense<0.000000e+00> : vector<16x8xf32>
    %109 = tpu.matmul %108, %59, %cst_56 {dimension_numbers = #tpu.dot_dimension_numbers<[1], [0], [0], [1], [0, 0, 1, 1], [], []>} : vector<16x32xbf16>, vector<32x8xbf16>, vector<16x8xf32> -> vector<16x8xf32>
    %110 = arith.truncf %109 : vector<16x8xf32> to vector<16x8xbf16>
    %c0_57 = arith.constant 0 : index
    %c1 = arith.constant 1 : index
    %c0_58 = arith.constant 0 : index
    %c0_59 = arith.constant 0 : index
    %111 = vector.load %arg15[%c0_57, %c1, %c0_58, %c0_59] : memref<1x4x16x8xbf16, #tpu.memory_space<vmem>>, vector<1x1x16x8xbf16>
    %112 = vector.shape_cast %111 : vector<1x1x16x8xbf16> to vector<16x8xbf16>
    %113 = vector.shape_cast %110 : vector<16x8xbf16> to vector<1x1x16x8xbf16>
    tpu.vector_store %arg15[%c0_57, %c1, %c0_58, %c0_59], %113 {strides = array<i32>} : memref<1x4x16x8xbf16, #tpu.memory_space<vmem>>, vector<1x1x16x8xbf16>,
    %114 = vector.extract_strided_slice %51 {offsets = [0, 16], sizes = [16, 8], strides = [1, 1]} : vector<16x32xf32> to vector<16x8xf32>
    %115 = arith.truncf %114 : vector<16x8xf32> to vector<16x8xbf16>
    %cst_60 = arith.constant dense<0.000000e+00> : vector<16x32xf32>
    %116 = tpu.matmul %115, %58, %cst_60 {dimension_numbers = #tpu.dot_dimension_numbers<[1], [0], [0], [1], [0, 0, 1, 1], [], []>} : vector<16x8xbf16>, vector<8x32xbf16>, vector<16x32xf32> -> vector<16x32xf32>
    %117 = arith.mulf %116, %53 : vector<16x32xf32>
    %118 = arith.truncf %117 : vector<16x32xf32> to vector<16x32xbf16>
    %cst_61 = arith.constant dense<0.000000e+00> : vector<16x4xf32>
    %119 = tpu.matmul %118, %56, %cst_61 {dimension_numbers = #tpu.dot_dimension_numbers<[1], [0], [0], [1], [0, 0, 1, 1], [], []>} : vector<16x32xbf16>, vector<32x4xbf16>, vector<16x4xf32> -> vector<16x4xf32>
    %cst_62 = arith.constant 0.353553385 : f32
    %120 = vector.broadcast %cst_62 : f32 to vector<16x4xf32>
    %121 = arith.mulf %119, %120 : vector<16x4xf32>
    %cst_63 = arith.constant dense<0xFF800000> : vector<16xf32>
    %122 = vector.multi_reduction <maximumf>, %121, %cst_63 [1] : vector<16x4xf32> to vector<16xf32>
    %123 = vector.shape_cast %122 : vector<16xf32> to vector<16x1xf32>
    %124 = vector.broadcast %123 : vector<16x1xf32> to vector<16x4xf32>
    %125 = arith.subf %121, %124 : vector<16x4xf32>
    %126 = math.exp %125 : vector<16x4xf32>
    %cst_64 = arith.constant dense<0.000000e+00> : vector<16xf32>
    %127 = vector.multi_reduction <add>, %126, %cst_64 [1] : vector<16x4xf32> to vector<16xf32>
    %128 = vector.shape_cast %127 : vector<16xf32> to vector<16x1xf32>
    %129 = tpu.reciprocal %128 {approx = true} : vector<16x1xf32> -> vector<16x1xf32>
    %130 = vector.broadcast %129 : vector<16x1xf32> to vector<16x4xf32>
    %131 = arith.mulf %126, %130 : vector<16x4xf32>
    %132 = arith.truncf %131 : vector<16x4xf32> to vector<16x4xbf16>
    %cst_65 = arith.constant dense<0.000000e+00> : vector<16x32xf32>
    %133 = tpu.matmul %132, %57, %cst_65 {dimension_numbers = #tpu.dot_dimension_numbers<[1], [0], [0], [1], [0, 0, 1, 1], [], []>} : vector<16x4xbf16>, vector<4x32xbf16>, vector<16x32xf32> -> vector<16x32xf32>
    %134 = arith.mulf %133, %55 : vector<16x32xf32>
    %135 = arith.truncf %134 : vector<16x32xf32> to vector<16x32xbf16>
    %cst_66 = arith.constant dense<0.000000e+00> : vector<16x8xf32>
    %136 = tpu.matmul %135, %59, %cst_66 {dimension_numbers = #tpu.dot_dimension_numbers<[1], [0], [0], [1], [0, 0, 1, 1], [], []>} : vector<16x32xbf16>, vector<32x8xbf16>, vector<16x8xf32> -> vector<16x8xf32>
    %137 = arith.truncf %136 : vector<16x8xf32> to vector<16x8xbf16>
    %c0_67 = arith.constant 0 : index
    %c2 = arith.constant 2 : index
    %c0_68 = arith.constant 0 : index
    %c0_69 = arith.constant 0 : index
    %138 = vector.load %arg15[%c0_67, %c2, %c0_68, %c0_69] : memref<1x4x16x8xbf16, #tpu.memory_space<vmem>>, vector<1x1x16x8xbf16>
    %139 = vector.shape_cast %138 : vector<1x1x16x8xbf16> to vector<16x8xbf16>
    %140 = vector.shape_cast %137 : vector<16x8xbf16> to vector<1x1x16x8xbf16>
    tpu.vector_store %arg15[%c0_67, %c2, %c0_68, %c0_69], %140 {strides = array<i32>} : memref<1x4x16x8xbf16, #tpu.memory_space<vmem>>, vector<1x1x16x8xbf16>,
    %141 = vector.extract_strided_slice %51 {offsets = [0, 24], sizes = [16, 8], strides = [1, 1]} : vector<16x32xf32> to vector<16x8xf32>
    %142 = arith.truncf %141 : vector<16x8xf32> to vector<16x8xbf16>
    %cst_70 = arith.constant dense<0.000000e+00> : vector<16x32xf32>
    %143 = tpu.matmul %142, %58, %cst_70 {dimension_numbers = #tpu.dot_dimension_numbers<[1], [0], [0], [1], [0, 0, 1, 1], [], []>} : vector<16x8xbf16>, vector<8x32xbf16>, vector<16x32xf32> -> vector<16x32xf32>
    %144 = arith.mulf %143, %53 : vector<16x32xf32>
    %145 = arith.truncf %144 : vector<16x32xf32> to vector<16x32xbf16>
    %cst_71 = arith.constant dense<0.000000e+00> : vector<16x4xf32>
    %146 = tpu.matmul %145, %56, %cst_71 {dimension_numbers = #tpu.dot_dimension_numbers<[1], [0], [0], [1], [0, 0, 1, 1], [], []>} : vector<16x32xbf16>, vector<32x4xbf16>, vector<16x4xf32> -> vector<16x4xf32>
    %cst_72 = arith.constant 0.353553385 : f32
    %147 = vector.broadcast %cst_72 : f32 to vector<16x4xf32>
    %148 = arith.mulf %146, %147 : vector<16x4xf32>
    %cst_73 = arith.constant dense<0xFF800000> : vector<16xf32>
    %149 = vector.multi_reduction <maximumf>, %148, %cst_73 [1] : vector<16x4xf32> to vector<16xf32>
    %150 = vector.shape_cast %149 : vector<16xf32> to vector<16x1xf32>
    %151 = vector.broadcast %150 : vector<16x1xf32> to vector<16x4xf32>
    %152 = arith.subf %148, %151 : vector<16x4xf32>
    %153 = math.exp %152 : vector<16x4xf32>
    %cst_74 = arith.constant dense<0.000000e+00> : vector<16xf32>
    %154 = vector.multi_reduction <add>, %153, %cst_74 [1] : vector<16x4xf32> to vector<16xf32>
    %155 = vector.shape_cast %154 : vector<16xf32> to vector<16x1xf32>
    %156 = tpu.reciprocal %155 {approx = true} : vector<16x1xf32> -> vector<16x1xf32>
    %157 = vector.broadcast %156 : vector<16x1xf32> to vector<16x4xf32>
    %158 = arith.mulf %153, %157 : vector<16x4xf32>
    %159 = arith.truncf %158 : vector<16x4xf32> to vector<16x4xbf16>
    %cst_75 = arith.constant dense<0.000000e+00> : vector<16x32xf32>
    %160 = tpu.matmul %159, %57, %cst_75 {dimension_numbers = #tpu.dot_dimension_numbers<[1], [0], [0], [1], [0, 0, 1, 1], [], []>} : vector<16x4xbf16>, vector<4x32xbf16>, vector<16x32xf32> -> vector<16x32xf32>
    %161 = arith.mulf %160, %55 : vector<16x32xf32>
    %162 = arith.truncf %161 : vector<16x32xf32> to vector<16x32xbf16>
    %cst_76 = arith.constant dense<0.000000e+00> : vector<16x8xf32>
    %163 = tpu.matmul %162, %59, %cst_76 {dimension_numbers = #tpu.dot_dimension_numbers<[1], [0], [0], [1], [0, 0, 1, 1], [], []>} : vector<16x32xbf16>, vector<32x8xbf16>, vector<16x8xf32> -> vector<16x8xf32>
    %164 = arith.truncf %163 : vector<16x8xf32> to vector<16x8xbf16>
    %c0_77 = arith.constant 0 : index
    %c3 = arith.constant 3 : index
    %c0_78 = arith.constant 0 : index
    %c0_79 = arith.constant 0 : index
    %165 = vector.load %arg15[%c0_77, %c3, %c0_78, %c0_79] : memref<1x4x16x8xbf16, #tpu.memory_space<vmem>>, vector<1x1x16x8xbf16>
    %166 = vector.shape_cast %165 : vector<1x1x16x8xbf16> to vector<16x8xbf16>
    %167 = vector.shape_cast %164 : vector<16x8xbf16> to vector<1x1x16x8xbf16>
    tpu.vector_store %arg15[%c0_77, %c3, %c0_78, %c0_79], %167 {strides = array<i32>} : memref<1x4x16x8xbf16, #tpu.memory_space<vmem>>, vector<1x1x16x8xbf16>,
    return
  }
  func.func @transform_0(%arg0: i32, %arg1: i32) -> (i32, i32, i32) {
    %c0_i32 = arith.constant 0 : i32
    %c0_i32_0 = arith.constant 0 : i32
    return %arg0, %arg1, %c0_i32 : i32, i32, i32
  }
  func.func @transform_1(%arg0: i32, %arg1: i32) -> (i32, i32, i32) {
    %c0_i32 = arith.constant 0 : i32
    %c0_i32_0 = arith.constant 0 : i32
    return %arg0, %arg1, %c0_i32 : i32, i32, i32
  }
  func.func @transform_2(%arg0: i32, %arg1: i32) -> (i32, i32) {
    %c0_i32 = arith.constant 0 : i32
    %c0_i32_0 = arith.constant 0 : i32
    %c0_i32_1 = arith.constant 0 : i32
    return %c0_i32, %c0_i32_0 : i32, i32
  }
  func.func @transform_3(%arg0: i32, %arg1: i32) -> (i32, i32) {
    %c0_i32 = arith.constant 0 : i32
    %c0_i32_0 = arith.constant 0 : i32
    %c0_i32_1 = arith.constant 0 : i32
    return %c0_i32, %c0_i32_0 : i32, i32
  }
  func.func @transform_4(%arg0: i32, %arg1: i32) -> (i32, i32) {
    %c0_i32 = arith.constant 0 : i32
    %c0_i32_0 = arith.constant 0 : i32
    %c0_i32_1 = arith.constant 0 : i32
    return %c0_i32, %c0_i32_0 : i32, i32
  }
  func.func @transform_5(%arg0: i32, %arg1: i32) -> (i32, i32) {
    %c0_i32 = arith.constant 0 : i32
    %c0_i32_0 = arith.constant 0 : i32
    %c0_i32_1 = arith.constant 0 : i32
    return %c0_i32, %c0_i32_0 : i32, i32
  }
  func.func @transform_6(%arg0: i32, %arg1: i32) -> (i32, i32) {
    %c0_i32 = arith.constant 0 : i32
    %c0_i32_0 = arith.constant 0 : i32
    %c0_i32_1 = arith.constant 0 : i32
    return %c0_i32, %c0_i32_0 : i32, i32
  }
  func.func @transform_7(%arg0: i32, %arg1: i32) -> (i32, i32) {
    %c0_i32 = arith.constant 0 : i32
    %c0_i32_0 = arith.constant 0 : i32
    %c0_i32_1 = arith.constant 0 : i32
    return %c0_i32, %c0_i32_0 : i32, i32
  }
  func.func @transform_8(%arg0: i32, %arg1: i32) -> (i32, i32) {
    %c0_i32 = arith.constant 0 : i32
    %c0_i32_0 = arith.constant 0 : i32
    %c0_i32_1 = arith.constant 0 : i32
    return %c0_i32, %c0_i32_0 : i32, i32
  }
  func.func @transform_9(%arg0: i32, %arg1: i32) -> (i32, i32) {
    %c0_i32 = arith.constant 0 : i32
    %c0_i32_0 = arith.constant 0 : i32
    %c0_i32_1 = arith.constant 0 : i32
    return %c0_i32, %c0_i32_0 : i32, i32
  }
  func.func @transform_10(%arg0: i32, %arg1: i32) -> (i32, i32) {
    %c0_i32 = arith.constant 0 : i32
    %c0_i32_0 = arith.constant 0 : i32
    %c0_i32_1 = arith.constant 0 : i32
    return %c0_i32, %c0_i32_0 : i32, i32
  }
  func.func @transform_11(%arg0: i32, %arg1: i32) -> (i32, i32) {
    %c0_i32 = arith.constant 0 : i32
    %c0_i32_0 = arith.constant 0 : i32
    %c0_i32_1 = arith.constant 0 : i32
    return %c0_i32, %c0_i32_0 : i32, i32
  }
  func.func @transform_12(%arg0: i32, %arg1: i32) -> (i32, i32) {
    %c0_i32 = arith.constant 0 : i32
    %c0_i32_0 = arith.constant 0 : i32
    %c0_i32_1 = arith.constant 0 : i32
    return %c0_i32, %c0_i32_0 : i32, i32
  }
  func.func @transform_13(%arg0: i32, %arg1: i32) -> (i32, i32, i32, i32) {
    %c0_i32 = arith.constant 0 : i32
    %c0_i32_0 = arith.constant 0 : i32
    %c0_i32_1 = arith.constant 0 : i32
    return %arg0, %c0_i32, %arg1, %c0_i32_0 : i32, i32, i32, i32
  }
}

module attributes {stable_mosaic.version = 11 : i64} {
  func.func @_proj_mlp_kernel(%arg0: i32, %arg1: i32, %arg2: memref<32x32xf32, #tpu.memory_space<vmem>>, %arg3: memref<32x32xbf16, #tpu.memory_space<vmem>>, %arg4: memref<32x32xbf16, #tpu.memory_space<vmem>>, %arg5: memref<1x32xf32, #tpu.memory_space<vmem>>, %arg6: memref<1x32xf32, #tpu.memory_space<vmem>>, %arg7: memref<1x32xf32, #tpu.memory_space<vmem>>, %arg8: memref<32x128xbf16, #tpu.memory_space<vmem>>, %arg9: memref<1x128xf32, #tpu.memory_space<vmem>>, %arg10: memref<128x32xbf16, #tpu.memory_space<vmem>>, %arg11: memref<1x32xf32, #tpu.memory_space<vmem>>, %arg12: memref<32x32xf32, #tpu.memory_space<vmem>>, %arg13: memref<32x32xf32, #tpu.memory_space<vmem>>, %arg14: memref<32x32xbf16, #tpu.memory_space<vmem>>, %arg15: memref<32x32xf32, #tpu.memory_space<vmem>>) attributes {dimension_semantics = [#tpu.dimension_semantics<parallel>, #tpu.dimension_semantics<arbitrary>], iteration_bounds = array<i64: 1, 1>, scalar_prefetch = 0 : i64, scratch_operands = 3 : i64, tpu.core_type = #tpu.core_type<tc>, window_params = [{transform_indices = @transform_0, window_bounds = array<i64: 32, 32>}, {transform_indices = @transform_1, window_bounds = array<i64: 32, 32>}, {pipeline_mode = #tpu.pipeline_mode<synchronous>, transform_indices = @transform_2, window_bounds = array<i64: 32, 32>}, {pipeline_mode = #tpu.pipeline_mode<synchronous>, transform_indices = @transform_3, window_bounds = array<i64: 1, 32>}, {pipeline_mode = #tpu.pipeline_mode<synchronous>, transform_indices = @transform_4, window_bounds = array<i64: 1, 32>}, {pipeline_mode = #tpu.pipeline_mode<synchronous>, transform_indices = @transform_5, window_bounds = array<i64: 1, 32>}, {transform_indices = @transform_6, window_bounds = array<i64: 32, 128>}, {transform_indices = @transform_7, window_bounds = array<i64: 1, 128>}, {transform_indices = @transform_8, window_bounds = array<i64: 128, 32>}, {pipeline_mode = #tpu.pipeline_mode<synchronous>, transform_indices = @transform_9, window_bounds = array<i64: 1, 32>}, {transform_indices = @transform_10, window_bounds = array<i64: 32, 32>}]} {
    %c0_i32 = arith.constant 0 : i32
    %0 = arith.cmpi eq, %arg1, %c0_i32 : i32
    %1 = arith.extui %0 : i1 to i32
    %c0_i32_0 = arith.constant 0 : i32
    %2 = arith.cmpi ne, %1, %c0_i32_0 : i32
    scf.if %2 {
      %c0_31 = arith.constant 0 : index
      %c0_32 = arith.constant 0 : index
      %59 = vector.load %arg2[%c0_31, %c0_32] : memref<32x32xf32, #tpu.memory_space<vmem>>, vector<32x32xf32>
      %c0_33 = arith.constant 0 : index
      %c0_34 = arith.constant 0 : index
      %60 = vector.load %arg5[%c0_33, %c0_34] : memref<1x32xf32, #tpu.memory_space<vmem>>, vector<1x32xf32>
      %61 = vector.broadcast %60 : vector<1x32xf32> to vector<32x32xf32>
      %62 = arith.addf %59, %61 : vector<32x32xf32>
      %c0_35 = arith.constant 0 : index
      %c0_36 = arith.constant 0 : index
      %63 = vector.load %arg3[%c0_35, %c0_36] : memref<32x32xbf16, #tpu.memory_space<vmem>>, vector<32x32xbf16>
      %c0_37 = arith.constant 0 : index
      %c0_38 = arith.constant 0 : index
      %64 = vector.load %arg4[%c0_37, %c0_38] : memref<32x32xbf16, #tpu.memory_space<vmem>>, vector<32x32xbf16>
      %cst_39 = arith.constant dense<0.000000e+00> : vector<32x32xf32>
      %65 = tpu.matmul %63, %64, %cst_39 {dimension_numbers = #tpu.dot_dimension_numbers<[1], [0], [0], [1], [0, 0, 1, 1], [], []>} : vector<32x32xbf16>, vector<32x32xbf16>, vector<32x32xf32> -> vector<32x32xf32>
      %66 = arith.addf %62, %65 : vector<32x32xf32>
      %c0_40 = arith.constant 0 : index
      %c0_41 = arith.constant 0 : index
      %67 = vector.load %arg13[%c0_40, %c0_41] : memref<32x32xf32, #tpu.memory_space<vmem>>, vector<32x32xf32>
      tpu.vector_store %arg13[%c0_40, %c0_41], %66 {strides = array<i32>} : memref<32x32xf32, #tpu.memory_space<vmem>>, vector<32x32xf32>,
      %c0_42 = arith.constant 0 : index
      %c0_43 = arith.constant 0 : index
      %68 = vector.load %arg6[%c0_42, %c0_43] : memref<1x32xf32, #tpu.memory_space<vmem>>, vector<1x32xf32>
      %c0_44 = arith.constant 0 : index
      %c0_45 = arith.constant 0 : index
      %69 = vector.load %arg7[%c0_44, %c0_45] : memref<1x32xf32, #tpu.memory_space<vmem>>, vector<1x32xf32>
      %cst_46 = arith.constant dense<0.000000e+00> : vector<32xf32>
      %70 = vector.multi_reduction <add>, %66, %cst_46 [1] : vector<32x32xf32> to vector<32xf32>
      %71 = vector.shape_cast %70 : vector<32xf32> to vector<32x1xf32>
      %cst_47 = arith.constant 3.200000e+01 : f32
      %72 = vector.broadcast %cst_47 : f32 to vector<32x1xf32>
      %73 = arith.divf %71, %72 : vector<32x1xf32>
      %74 = vector.broadcast %73 : vector<32x1xf32> to vector<32x32xf32>
      %75 = arith.subf %66, %74 : vector<32x32xf32>
      %76 = arith.mulf %75, %75 : vector<32x32xf32>
      %cst_48 = arith.constant dense<0.000000e+00> : vector<32xf32>
      %77 = vector.multi_reduction <add>, %76, %cst_48 [1] : vector<32x32xf32> to vector<32xf32>
      %78 = vector.shape_cast %77 : vector<32xf32> to vector<32x1xf32>
      %cst_49 = arith.constant 3.200000e+01 : f32
      %79 = vector.broadcast %cst_49 : f32 to vector<32x1xf32>
      %80 = arith.divf %78, %79 : vector<32x1xf32>
      %cst_50 = arith.constant 9.99999974E-6 : f32
      %81 = vector.broadcast %cst_50 : f32 to vector<32x1xf32>
      %82 = arith.addf %80, %81 : vector<32x1xf32>
      %83 = math.rsqrt %82 : vector<32x1xf32>
      %84 = vector.broadcast %83 : vector<32x1xf32> to vector<32x32xf32>
      %85 = arith.mulf %75, %84 : vector<32x32xf32>
      %86 = vector.broadcast %68 : vector<1x32xf32> to vector<32x32xf32>
      %87 = arith.mulf %85, %86 : vector<32x32xf32>
      %88 = vector.broadcast %69 : vector<1x32xf32> to vector<32x32xf32>
      %89 = arith.addf %87, %88 : vector<32x32xf32>
      %90 = arith.truncf %89 : vector<32x32xf32> to vector<32x32xbf16>
      %c0_51 = arith.constant 0 : index
      %c0_52 = arith.constant 0 : index
      %91 = vector.load %arg14[%c0_51, %c0_52] : memref<32x32xbf16, #tpu.memory_space<vmem>>, vector<32x32xbf16>
      tpu.vector_store %arg14[%c0_51, %c0_52], %90 {strides = array<i32>} : memref<32x32xbf16, #tpu.memory_space<vmem>>, vector<32x32xbf16>,
      %cst_53 = arith.constant 0.000000e+00 : f32
      %92 = vector.broadcast %cst_53 : f32 to vector<32x32xf32>
      %c0_54 = arith.constant 0 : index
      %c0_55 = arith.constant 0 : index
      %93 = vector.load %arg15[%c0_54, %c0_55] : memref<32x32xf32, #tpu.memory_space<vmem>>, vector<32x32xf32>
      tpu.vector_store %arg15[%c0_54, %c0_55], %92 {strides = array<i32>} : memref<32x32xf32, #tpu.memory_space<vmem>>, vector<32x32xf32>,
    } else {
    }
    %c0 = arith.constant 0 : index
    %c0_1 = arith.constant 0 : index
    %3 = vector.load %arg14[%c0, %c0_1] : memref<32x32xbf16, #tpu.memory_space<vmem>>, vector<32x32xbf16>
    %c0_2 = arith.constant 0 : index
    %c0_3 = arith.constant 0 : index
    %4 = vector.load %arg8[%c0_2, %c0_3] : memref<32x128xbf16, #tpu.memory_space<vmem>>, vector<32x128xbf16>
    %cst = arith.constant dense<0.000000e+00> : vector<32x128xf32>
    %5 = tpu.matmul %3, %4, %cst {dimension_numbers = #tpu.dot_dimension_numbers<[1], [0], [0], [1], [0, 0, 1, 1], [], []>} : vector<32x32xbf16>, vector<32x128xbf16>, vector<32x128xf32> -> vector<32x128xf32>
    %c0_4 = arith.constant 0 : index
    %c0_5 = arith.constant 0 : index
    %6 = vector.load %arg9[%c0_4, %c0_5] : memref<1x128xf32, #tpu.memory_space<vmem>>, vector<1x128xf32>
    %7 = vector.broadcast %6 : vector<1x128xf32> to vector<32x128xf32>
    %8 = arith.addf %5, %7 : vector<32x128xf32>
    %cst_6 = arith.constant 5.000000e-01 : f32
    %9 = vector.broadcast %cst_6 : f32 to vector<32x128xf32>
    %10 = arith.mulf %9, %8 : vector<32x128xf32>
    %cst_7 = arith.constant 0.707106769 : f32
    %11 = vector.broadcast %cst_7 : f32 to vector<32x128xf32>
    %12 = arith.mulf %8, %11 : vector<32x128xf32>
    %cst_8 = arith.constant 0.000000e+00 : f32
    %13 = vector.broadcast %cst_8 : f32 to vector<32x128xf32>
    %14 = arith.cmpf oge, %12, %13 : vector<32x128xf32>
    %cst_9 = arith.constant 1.000000e+00 : f32
    %cst_10 = arith.constant -1.000000e+00 : f32
    %15 = vector.broadcast %cst_9 : f32 to vector<32x128xf32>
    %16 = vector.broadcast %cst_10 : f32 to vector<32x128xf32>
    %17 = arith.select %14, %15, %16 : vector<32x128xi1>, vector<32x128xf32>
    %18 = math.absf %12 : vector<32x128xf32>
    %cst_11 = arith.constant 0.327591091 : f32
    %19 = vector.broadcast %cst_11 : f32 to vector<32x128xf32>
    %20 = arith.mulf %19, %18 : vector<32x128xf32>
    %cst_12 = arith.constant 1.000000e+00 : f32
    %21 = vector.broadcast %cst_12 : f32 to vector<32x128xf32>
    %22 = arith.addf %21, %20 : vector<32x128xf32>
    %cst_13 = arith.constant 1.000000e+00 : f32
    %23 = vector.broadcast %cst_13 : f32 to vector<32x128xf32>
    %24 = arith.divf %23, %22 : vector<32x128xf32>
    %cst_14 = arith.constant 1.06140542 : f32
    %25 = vector.broadcast %cst_14 : f32 to vector<32x128xf32>
    %26 = arith.mulf %25, %24 : vector<32x128xf32>
    %cst_15 = arith.constant -1.45315206 : f32
    %27 = vector.broadcast %cst_15 : f32 to vector<32x128xf32>
    %28 = arith.addf %26, %27 : vector<32x128xf32>
    %29 = arith.mulf %28, %24 : vector<32x128xf32>
    %cst_16 = arith.constant 1.42141378 : f32
    %30 = vector.broadcast %cst_16 : f32 to vector<32x128xf32>
    %31 = arith.addf %29, %30 : vector<32x128xf32>
    %32 = arith.mulf %31, %24 : vector<32x128xf32>
    %cst_17 = arith.constant -0.284496725 : f32
    %33 = vector.broadcast %cst_17 : f32 to vector<32x128xf32>
    %34 = arith.addf %32, %33 : vector<32x128xf32>
    %35 = arith.mulf %34, %24 : vector<32x128xf32>
    %cst_18 = arith.constant 0.254829586 : f32
    %36 = vector.broadcast %cst_18 : f32 to vector<32x128xf32>
    %37 = arith.addf %35, %36 : vector<32x128xf32>
    %38 = arith.mulf %37, %24 : vector<32x128xf32>
    %cst_19 = arith.constant 0.000000e+00 : f32
    %39 = vector.broadcast %cst_19 : f32 to vector<32x128xf32>
    %40 = arith.subf %39, %18 : vector<32x128xf32>
    %41 = arith.mulf %40, %18 : vector<32x128xf32>
    %42 = math.exp %41 : vector<32x128xf32>
    %43 = arith.mulf %38, %42 : vector<32x128xf32>
    %cst_20 = arith.constant 1.000000e+00 : f32
    %44 = vector.broadcast %cst_20 : f32 to vector<32x128xf32>
    %45 = arith.subf %44, %43 : vector<32x128xf32>
    %46 = arith.mulf %17, %45 : vector<32x128xf32>
    %cst_21 = arith.constant 1.000000e+00 : f32
    %47 = vector.broadcast %cst_21 : f32 to vector<32x128xf32>
    %48 = arith.addf %47, %46 : vector<32x128xf32>
    %49 = arith.mulf %10, %48 : vector<32x128xf32>
    %c0_22 = arith.constant 0 : index
    %c0_23 = arith.constant 0 : index
    %50 = vector.load %arg15[%c0_22, %c0_23] : memref<32x32xf32, #tpu.memory_space<vmem>>, vector<32x32xf32>
    %51 = arith.truncf %49 : vector<32x128xf32> to vector<32x128xbf16>
    %c0_24 = arith.constant 0 : index
    %c0_25 = arith.constant 0 : index
    %52 = vector.load %arg10[%c0_24, %c0_25] : memref<128x32xbf16, #tpu.memory_space<vmem>>, vector<128x32xbf16>
    %cst_26 = arith.constant dense<0.000000e+00> : vector<32x32xf32>
    %53 = tpu.matmul %51, %52, %cst_26 {dimension_numbers = #tpu.dot_dimension_numbers<[1], [0], [0], [1], [0, 0, 1, 1], [], []>} : vector<32x128xbf16>, vector<128x32xbf16>, vector<32x32xf32> -> vector<32x32xf32>
    %54 = arith.addf %50, %53 : vector<32x32xf32>
    %c0_27 = arith.constant 0 : index
    %c0_28 = arith.constant 0 : index
    %55 = vector.load %arg15[%c0_27, %c0_28] : memref<32x32xf32, #tpu.memory_space<vmem>>, vector<32x32xf32>
    tpu.vector_store %arg15[%c0_27, %c0_28], %54 {strides = array<i32>} : memref<32x32xf32, #tpu.memory_space<vmem>>, vector<32x32xf32>,
    %c0_i32_29 = arith.constant 0 : i32
    %56 = arith.cmpi eq, %arg1, %c0_i32_29 : i32
    %57 = arith.extui %56 : i1 to i32
    %c0_i32_30 = arith.constant 0 : i32
    %58 = arith.cmpi ne, %57, %c0_i32_30 : i32
    scf.if %58 {
      %c0_31 = arith.constant 0 : index
      %c0_32 = arith.constant 0 : index
      %59 = vector.load %arg13[%c0_31, %c0_32] : memref<32x32xf32, #tpu.memory_space<vmem>>, vector<32x32xf32>
      %c0_33 = arith.constant 0 : index
      %c0_34 = arith.constant 0 : index
      %60 = vector.load %arg15[%c0_33, %c0_34] : memref<32x32xf32, #tpu.memory_space<vmem>>, vector<32x32xf32>
      %61 = arith.addf %59, %60 : vector<32x32xf32>
      %c0_35 = arith.constant 0 : index
      %c0_36 = arith.constant 0 : index
      %62 = vector.load %arg11[%c0_35, %c0_36] : memref<1x32xf32, #tpu.memory_space<vmem>>, vector<1x32xf32>
      %63 = vector.broadcast %62 : vector<1x32xf32> to vector<32x32xf32>
      %64 = arith.addf %61, %63 : vector<32x32xf32>
      %c0_37 = arith.constant 0 : index
      %c0_38 = arith.constant 0 : index
      %65 = vector.load %arg12[%c0_37, %c0_38] : memref<32x32xf32, #tpu.memory_space<vmem>>, vector<32x32xf32>
      tpu.vector_store %arg12[%c0_37, %c0_38], %64 {strides = array<i32>} : memref<32x32xf32, #tpu.memory_space<vmem>>, vector<32x32xf32>,
    } else {
    }
    return
  }
  func.func @transform_0(%arg0: i32, %arg1: i32) -> (i32, i32) {
    %c0_i32 = arith.constant 0 : i32
    %c0_i32_0 = arith.constant 0 : i32
    return %arg0, %c0_i32 : i32, i32
  }
  func.func @transform_1(%arg0: i32, %arg1: i32) -> (i32, i32) {
    %c0_i32 = arith.constant 0 : i32
    %c0_i32_0 = arith.constant 0 : i32
    return %arg0, %c0_i32 : i32, i32
  }
  func.func @transform_2(%arg0: i32, %arg1: i32) -> (i32, i32) {
    %c0_i32 = arith.constant 0 : i32
    %c0_i32_0 = arith.constant 0 : i32
    %c0_i32_1 = arith.constant 0 : i32
    return %c0_i32, %c0_i32_0 : i32, i32
  }
  func.func @transform_3(%arg0: i32, %arg1: i32) -> (i32, i32) {
    %c0_i32 = arith.constant 0 : i32
    %c0_i32_0 = arith.constant 0 : i32
    %c0_i32_1 = arith.constant 0 : i32
    return %c0_i32, %c0_i32_0 : i32, i32
  }
  func.func @transform_4(%arg0: i32, %arg1: i32) -> (i32, i32) {
    %c0_i32 = arith.constant 0 : i32
    %c0_i32_0 = arith.constant 0 : i32
    %c0_i32_1 = arith.constant 0 : i32
    return %c0_i32, %c0_i32_0 : i32, i32
  }
  func.func @transform_5(%arg0: i32, %arg1: i32) -> (i32, i32) {
    %c0_i32 = arith.constant 0 : i32
    %c0_i32_0 = arith.constant 0 : i32
    %c0_i32_1 = arith.constant 0 : i32
    return %c0_i32, %c0_i32_0 : i32, i32
  }
  func.func @transform_6(%arg0: i32, %arg1: i32) -> (i32, i32) {
    %c0_i32 = arith.constant 0 : i32
    %c0_i32_0 = arith.constant 0 : i32
    return %c0_i32, %arg1 : i32, i32
  }
  func.func @transform_7(%arg0: i32, %arg1: i32) -> (i32, i32) {
    %c0_i32 = arith.constant 0 : i32
    %c0_i32_0 = arith.constant 0 : i32
    return %c0_i32, %arg1 : i32, i32
  }
  func.func @transform_8(%arg0: i32, %arg1: i32) -> (i32, i32) {
    %c0_i32 = arith.constant 0 : i32
    %c0_i32_0 = arith.constant 0 : i32
    return %arg1, %c0_i32 : i32, i32
  }
  func.func @transform_9(%arg0: i32, %arg1: i32) -> (i32, i32) {
    %c0_i32 = arith.constant 0 : i32
    %c0_i32_0 = arith.constant 0 : i32
    %c0_i32_1 = arith.constant 0 : i32
    return %c0_i32, %c0_i32_0 : i32, i32
  }
  func.func @transform_10(%arg0: i32, %arg1: i32) -> (i32, i32) {
    %c0_i32 = arith.constant 0 : i32
    %c0_i32_0 = arith.constant 0 : i32
    return %arg0, %c0_i32 : i32, i32
  }
}

</mosaic_0001>

<bundles_post_ra>
// kernel: decoder_forward.4
= control target key start
LH: loop header
LB: loop body
LE: loop exit
PB: predicated region body
PF: predicated region fallthrough
CT: control target
= control target key end

     0   :  { %12 = vsyncpa [#allocation3], 0  ;;  %s729_s0 = inlined_call_operand.hbm [shape: f32[32,32], index: 0, kind: input, shape index: {}]   ;;  %s730_s1 = inlined_call_operand.hbm [shape: f32[1,32], index: 1, kind: input, shape index: {}]   ;;  %s731_s2 = inlined_call_operand.hbm [shape: f32[1,32], index: 2, kind: input, shape index: {}]   ;;  %s732_s3 = inlined_call_operand.hbm [shape: bf16[32,96], index: 3, kind: input, shape index: {}]   ;;  %s733_s4 = inlined_call_operand.hbm [shape: bf16[32,32], index: 4, kind: output, shape index: {0}]   ;;  %s734_s5 = inlined_call_operand.hbm [shape: bf16[32,32], index: 5, kind: output, shape index: {1}]   ;;  %s735_s6 = inlined_call_operand.hbm [shape: bf16[32,32], index: 6, kind: output, shape index: {2}]  }
   0x1   :  { %13 = vsyncpa [#allocation6], 0 }
   0x2   :  { %14 = vsyncpa [#allocation9], 0 }
   0x3   :  { %15 = vsyncpa [#allocation4], 0 }
   0x4   :  { %16 = vsyncpa [#allocation12], 0  ;;  %s542_s21 = smov [#allocation5]   ;;  %s543_s23 = smov [#allocation2]  }
   0x5   :  { %s35_s22 = sshll.u32 %s542_s21, 4  ;;  %s22_s24 = sshll.u32 %s543_s23, 4  ;;  %s36_s22 = int_to_ptr.vmem [resolvable:$true] %s35_s22  ;;  %s589_s24 = int_to_ptr.vmem [resolvable:$true] %s22_s24 }
   0x6   :  { %s378_s27 = scalar_lea.hbm %s730_s1, 16 }
   0x7   :  { %p379_p0 = scmp.ne.s32.totalorder %s730_s1, %s378_s27  ;;  %p382_p1 = scmp.lt.u32.totalorder %s378_s27, %s730_s1 }
   0x9   :  { %p384_p2 = pnand %p382_p1, %p379_p0 }
   0xb   :  { %387 = shalt.err (!%p384_p2)
}
   0xc   :  { %s388_s8 = scalar_lea.vmem %s36_s22, 16  ;;  %s392_s9 = scalar_lea.vmem %s36_s22, 32 }
   0xd   :  { %p389_p3 = scmp.ne.s32.totalorder %s36_s22, %s388_s8  ;;  %p393_p4 = scmp.lt.s32.totalorder %s36_s22, %s36_s22 }
   0xe   :  { %p394_p5 = scmp.lt.s32.totalorder %s392_s9, %s388_s8 }
  0x10   :  { %p395_p6 = por %p394_p5, %p393_p4 }
  0x12   :  { %p396_p7 = pnand %p395_p6, %p389_p3 }
  0x14   :  { %399 = shalt.err (!%p396_p7)
}
  0x15   :  { %38 = dma.hbm_to_vmem [thread:$0]  %s730_s1, 16, %s36_s22, [#allocation6]  }
  0x16   :  { %s400_s14 = scalar_lea.hbm %s729_s0, 512 }
  0x17   :  { %p401_p8 = scmp.ne.s32.totalorder %s729_s0, %s400_s14  ;;  %p404_p9 = scmp.lt.u32.totalorder %s400_s14, %s729_s0 }
  0x19   :  { %p406_p10 = pnand %p404_p9, %p401_p8 }
  0x1b   :  { %409 = shalt.err (!%p406_p10)
}
  0x1c   :  { %s410_s19 = scalar_lea.vmem %s589_s24, 512  ;;  %p415_p12 = scmp.lt.s32.totalorder %s589_s24, %s589_s24 }
  0x1d   :  { %p411_p11 = scmp.ne.s32.totalorder %s589_s24, %s410_s19  ;;  %p416_p13 = scmp.lt.s32.totalorder %s410_s19, %s410_s19 }
  0x1f   :  { %p417_p0 = por %p416_p13, %p415_p12 }
  0x21   :  { %p418_p1 = pnand %p417_p0, %p411_p11 }
  0x23   :  { %421 = shalt.err (!%p418_p1)
}
  0x24   :  { %s544_s1 = smov 128   ;;  %s545_s20 = smov 8  }
  0x25   :  { %28 = dma.hbm_to_vmem [thread:$0]  %s729_s0, 512, %s589_s24, [#allocation3], %s544_s1, %s544_s1, %s545_s20  }
  0x26   :  { %s546_s23 = smov [#allocation7]   ;;  %s547_s26 = smov [#allocation8]  }
  0x27   :  { %s45_s25 = sshll.u32 %s546_s23, 4  ;;  %s54_s27 = sshll.u32 %s547_s26, 4  ;;  %s46_s25 = int_to_ptr.vmem [resolvable:$true] %s45_s25  ;;  %s620_s27 = int_to_ptr.vmem [resolvable:$true] %s54_s27 }
  0x28   :  { %s422_s30 = scalar_lea.hbm %s731_s2, 16 }
  0x29   :  { %p423_p2 = scmp.ne.s32.totalorder %s731_s2, %s422_s30  ;;  %p426_p3 = scmp.lt.u32.totalorder %s422_s30, %s731_s2 }
  0x2b   :  { %p428_p4 = pnand %p426_p3, %p423_p2 }
  0x2d   :  { %431 = shalt.err (!%p428_p4)
}
  0x2e   :  { %s432_s0 = scalar_lea.vmem %s46_s25, 16  ;;  %s436_s24 = scalar_lea.vmem %s46_s25, 32 }
  0x2f   :  { %p433_p5 = scmp.ne.s32.totalorder %s46_s25, %s432_s0  ;;  %p437_p6 = scmp.lt.s32.totalorder %s46_s25, %s46_s25 }
  0x30   :  { %p438_p7 = scmp.lt.s32.totalorder %s436_s24, %s432_s0 }
  0x32   :  { %p439_p8 = por %p438_p7, %p437_p6 }
  0x34   :  { %p440_p9 = pnand %p439_p8, %p433_p5 }
  0x36   :  { %443 = shalt.err (!%p440_p9)
}
  0x37   :  { %48 = dma.hbm_to_vmem [thread:$0]  %s731_s2, 16, %s46_s25, [#allocation6]  }
  0x38   :  { %s444_s15 = scalar_lea.hbm %s732_s3, 256 }
  0x39   :  { %p445_p10 = scmp.ne.s32.totalorder %s732_s3, %s444_s15  ;;  %p448_p11 = scmp.lt.u32.totalorder %s444_s15, %s732_s3 }
  0x3b   :  { %p450_p12 = pnand %p448_p11, %p445_p10 }
  0x3d   :  { %453 = shalt.err (!%p450_p12)
}
  0x3e   :  { %s454_s1 = scalar_lea.vmem %s620_s27, 256  ;;  %p459_p0 = scmp.lt.s32.totalorder %s620_s27, %s620_s27 }
  0x3f   :  { %p455_p13 = scmp.ne.s32.totalorder %s620_s27, %s454_s1  ;;  %p460_p1 = scmp.lt.s32.totalorder %s454_s1, %s454_s1 }
  0x41   :  { %p461_p2 = por %p460_p1, %p459_p0 }
  0x43   :  { %p462_p3 = pnand %p461_p2, %p455_p13 }
  0x45   :  { %465 = shalt.err (!%p462_p3)
}
  0x46   :  { %s548_s2 = smov 64   ;;  %s549_s20 = smov 4  }
  0x47   :  { %60 = dma.hbm_to_vmem [thread:$0]  %s732_s3, 256, %s620_s27, [#allocation9], %s548_s2, %s548_s2, %s549_s20  }
  0x48   :  { %532 = dma.done.wait [#allocation3], 512  }
  0x49   :  { %533 = vsyncadd [#allocation3], 4294966784 }
  0x4a   :  { %534 = dma.done.wait [#allocation6], 32  }
  0x4b   :  { %535 = vsyncadd [#allocation6], 4294967264 }
  0x4c   :  { %536 = dma.done.wait [#allocation9], 256  }
  0x4d   :  { %537 = vsyncadd [#allocation9], 4294967040  ;;  %vm80_vm0 = vcmask 261120   ;;  %v74_v0 = vld [vmem:[#allocation2] sm:$0xff]  ;;  %v76_v1 = vld [vmem:[#allocation2 + $0x10] sm:$0xff]  ;;  %vm243_vm1 = vcmask 257024  }
  0x4e   :  { %v75_v2 = vld [vmem:[#allocation2 + $0x8] sm:$0xff]  ;;  %v81_v3 = vsel %vm80_vm0, %v74_v0, 0.0  ;;  %v87_v4 = vsel %vm80_vm0, %v76_v1, 0.0  ;;  %v77_v5 = vld [vmem:[#allocation2 + $0x18] sm:$0xff]  ;;  %v330_v44 = vld [vmem:[#allocation5] ss:$0 sm:$0xff] }
  0x4f   :  { %82 = vadd.xlane.f32.xlu0 %v81_v3  ;;  %88 = vadd.xlane.f32.xlu1 %v87_v4  ;;  %v84_v6 = vsel %vm80_vm0, %v75_v2, 0.0  ;;  %v90_v7 = vsel %vm80_vm0, %v77_v5, 0.0  ;;  %v368_v28 = vld [vmem:[#allocation8] sm:$0xff]   ;;  %v369_v29 = vld [vmem:[#allocation8 + $0x8] sm:$0xff]   ;;  %v331_v50 = vld [vmem:[#allocation7] ss:$0 sm:$0xff] }
  0x50   :  { %348 = vmatprep.subr.bf16.mxu0 %v368_v28  ;;  %s550_s3 = smov 96   ;;  %s551_s23 = smov [#allocation10]  }
  0x51   :  { %349 = vmatpush3.bf16.msra.mxu0 %v368_v28  ;;  %s285_s25 = sshll.u32 %s551_s23, 4  ;;  %s286_s25 = int_to_ptr.vmem [resolvable:$true] %s285_s25 }
  0x52   :  { %350 = vmatprep.subr.bf16.mxu0 %v369_v29  ;;  %s466_s26 = scalar_lea.vmem %s286_s25, 256  ;;  %p471_p5 = scmp.lt.s32.totalorder %s286_s25, %s286_s25 }
  0x53   :  { %85 = vadd.xlane.f32.xlu0 %v84_v6  ;;  %91 = vadd.xlane.f32.xlu1 %v90_v7  ;;  %p467_p4 = scmp.ne.s32.totalorder %s286_s25, %s466_s26  ;;  %p472_p6 = scmp.lt.s32.totalorder %s466_s26, %s466_s26 }
  0x55   :  { %351 = vmatpush3.bf16.msra.mxu0 %v369_v29  ;;  %p473_p7 = por %p472_p6, %p471_p5 }
  0x57   :  { %p474_p8 = pnand %p473_p7, %p467_p4 }
  0xdc   :  { %v83_v8 = vpop.xlane.xlu0 %82  ;;  %v89_v9 = vpop.xlane.xlu1 %88 }
  0xdd   :  { %v94_v10 = vmul.f32 0.03125, %v83_v8  ;;  %v96_v11 = vmul.f32 0.03125, %v89_v9 }
  0xdf   :  { %v98_v12 = vsub.f32 %v74_v0, %v94_v10  ;;  %v100_v13 = vsub.f32 %v76_v1, %v96_v11 }
  0xe0   :  { %v86_v14 = vpop.xlane.xlu0 %85  ;;  %v92_v15 = vpop.xlane.xlu1 %91 }
  0xe1   :  { %v95_v16 = vmul.f32 0.03125, %v86_v14  ;;  %v97_v17 = vmul.f32 0.03125, %v92_v15  ;;  %v102_v18 = vmul.f32 %v98_v12, %v98_v12  ;;  %v104_v19 = vmul.f32 %v100_v13, %v100_v13 }
  0xe3   :  { %v99_v20 = vsub.f32 %v75_v2, %v95_v16  ;;  %v101_v21 = vsub.f32 %v77_v5, %v97_v17  ;;  %v106_v22 = vsel %vm80_vm0, %v102_v18, 0.0  ;;  %v112_v23 = vsel %vm80_vm0, %v104_v19, 0.0 }
  0xe4   :  { %107 = vadd.xlane.f32.xlu0 %v106_v22 }
  0xe5   :  { %v103_v24 = vmul.f32 %v99_v20, %v99_v20  ;;  %v105_v25 = vmul.f32 %v101_v21, %v101_v21 }
  0xe7   :  { %v109_v26 = vsel %vm80_vm0, %v103_v24, 0.0  ;;  %v115_v27 = vsel %vm80_vm0, %v105_v25, 0.0 }
  0xe8   :  { %113 = vadd.xlane.f32.xlu0 %v112_v23  ;;  %110 = vadd.xlane.f32.xlu1 %v109_v26 }
  0xec   :  { %116 = vadd.xlane.f32.xlu1 %v115_v27 }
 0x171   :  { %v108_v30 = vpop.xlane.xlu0 %107 }
 0x172   :  { %v118_v31 = vmul.f32 0.03125, %v108_v30 }
 0x174   :  { %v122_v32 = vadd.f32 1e-05, %v118_v31 }
 0x175   :  { %v111_v33 = vpop.xlane.xlu1 %110  ;;  %v114_v34 = vpop.xlane.xlu0 %113 }
 0x176   :  { %370 = vrsqrt.f32 %v122_v32  ;;  %v119_v35 = vmul.f32 0.03125, %v111_v33  ;;  %v120_v36 = vmul.f32 0.03125, %v114_v34 }
 0x178   :  { %v123_v37 = vadd.f32 1e-05, %v119_v35  ;;  %v124_v38 = vadd.f32 1e-05, %v120_v36 }
 0x179   :  { %v117_v39 = vpop.xlane.xlu1 %116 }
 0x17a   :  { %372 = vrsqrt.f32 %v123_v37  ;;  %v121_v40 = vmul.f32 0.03125, %v117_v39 }
 0x17b   :  { %374 = vrsqrt.f32 %v124_v38 }
 0x17c   :  { %v125_v41 = vadd.f32 1e-05, %v121_v40 }
 0x17e   :  { %376 = vrsqrt.f32 %v125_v41 }
 0x180   :  { %v371_v42 = vpop.eup %370 }
 0x181   :  { %v130_v43 = vmul.f32 %v371_v42, %v98_v12 }
 0x183   :  { %v140_v48 = vmul.f32 %v330_v44, %v130_v43 }
 0x184   :  { %v373_v45 = vpop.eup %372 }
 0x185   :  { %v375_v46 = vpop.eup %374  ;;  %v131_v47 = vmul.f32 %v373_v45, %v99_v20  ;;  %v150_v54 = vadd.f32 %v331_v50, %v140_v48 }
 0x186   :  { %v132_v49 = vmul.f32 %v375_v46, %v100_v13 }
 0x187   :  { %v141_v51 = vmul.f32 %v330_v44, %v131_v47 }
 0x188   :  { %v377_v52 = vpop.eup %376  ;;  %v142_v56 = vmul.f32 %v330_v44, %v132_v49 }
 0x189   :  { %v133_v53 = vmul.f32 %v377_v52, %v101_v21  ;;  %v151_v55 = vadd.f32 %v331_v50, %v141_v51 }
 0x18a   :  { %v152_v59 = vadd.f32 %v331_v50, %v142_v56 }
 0x18b   :  { %v154_v57 = vpack.c.bf16 %v151_v55, %v150_v54  ;;  %v143_v58 = vmul.f32 %v330_v44, %v133_v53 }
 0x18d   :  { %352 = vmatprep.mubr.msk.bf16.mxu0 %vm80_vm0, %v154_v57  ;;  %v153_v60 = vadd.f32 %v331_v50, %v143_v58 }
 0x18f   :  { %v155_v61 = vpack.c.bf16 %v153_v60, %v152_v59 }
 0x191   :  { %353 = vmatmul.mubr.msk.bf16.vlgmr.msra.gmra.mrb[0].mxu0 %vm80_vm0, %v155_v61 }
 0x264   :  { %v354_v62 = vpop.f32.mrb[0].mxu0 }
 0x265   :  { %v342_v63 = vpack.c.bf16 %v354_v62, %v354_v62  ;;  %v212_v0 = vpop.f32.mrb[1].mxu0 }
 0x266   :  { %v340_v1 = vpack.c.bf16 %v212_v0, %v212_v0  ;;  %v355_v2 = vpop.f32.mrb[2].mxu0 }
 0x267   :  { %246 = vst.msk [vmem:[#allocation10 + $0x8] sm:$0xf] %vm243_vm1, %v342_v63  ;;  %v343_v3 = vpack.c.bf16 %v355_v2, %v355_v2  ;;  %252 = vrot.lane.b32.xlu1 %v342_v63, %s550_s3  ;;  %v215_v4 = vpop.f32.mrb[3].mxu0 }
 0x268   :  { %244 = vst.msk [vmem:[#allocation10] sm:$0xf] %vm243_vm1, %v340_v1  ;;  %v341_v5 = vpack.c.bf16 %v215_v4, %v215_v4  ;;  %248 = vrot.lane.b32.xlu0 %v340_v1, %s550_s3 }
 0x269   :  { %247 = vst.msk [vmem:[#allocation10 + $0xc] sm:$0xf] %vm243_vm1, %v343_v3 }
 0x26a   :  { %245 = vst.msk [vmem:[#allocation10 + $0x4] sm:$0xf] %vm243_vm1, %v341_v5 }
 0x26b   :  { %254 = vrot.lane.b32.xlu1 %v343_v3, %s550_s3 }
 0x26c   :  { %264 = vrot.lane.b32.xlu0 %v340_v1, %s548_s2 }
 0x26d   :  { %477 = shalt.err (!%p474_p8)
}
 0x26e   :  { %s478_s29 = scalar_lea.hbm %s733_s4, 256 }
 0x26f   :  { %p479_p9 = scmp.ne.s32.totalorder %s733_s4, %s478_s29  ;;  %p482_p10 = scmp.lt.u32.totalorder %s478_s29, %s733_s4 }
 0x271   :  { %p484_p11 = pnand %p482_p10, %p479_p9 }
 0x273   :  { %487 = shalt.err (!%p484_p11)
}
 0x274   :  { %291 = dma.vmem_to_hbm [thread:$0]  %s286_s25, 256, %s733_s4, [#allocation4], %s548_s2, %s548_s2, %s549_s20  }
 0x275   :  { %250 = vrot.lane.b32.xlu1 %v341_v5, %s550_s3  ;;  %268 = vrot.lane.b32.xlu0 %v342_v63, %s548_s2  ;;  %s552_s24 = smov [#allocation11]  }
 0x276   :  { %s297_s11 = sshll.u32 %s552_s24, 4  ;;  %s298_s11 = int_to_ptr.vmem [resolvable:$true] %s297_s11 }
 0x277   :  { %s488_s4 = scalar_lea.vmem %s298_s11, 256  ;;  %p493_p13 = scmp.lt.s32.totalorder %s298_s11, %s298_s11 }
 0x278   :  { %p489_p12 = scmp.ne.s32.totalorder %s298_s11, %s488_s4  ;;  %p494_p0 = scmp.lt.s32.totalorder %s488_s4, %s488_s4 }
 0x279   :  { %266 = vrot.lane.b32.xlu1 %v341_v5, %s548_s2 }
 0x27a   :  { %p495_p1 = por %p494_p0, %p493_p13 }
 0x27c   :  { %p496_p2 = pnand %p495_p1, %p489_p12 }
 0x27d   :  { %270 = vrot.lane.b32.xlu1 %v343_v3, %s548_s2 }
 0x2d9   :  { %v253_v6 = vpop.permute.xlu1 %252 }
 0x2da   :  { %262 = vst.msk [vmem:[#allocation11 + $0x8] sm:$0xf] %vm243_vm1, %v253_v6  ;;  %v249_v7 = vpop.permute.xlu0 %248 }
 0x2db   :  { %260 = vst.msk [vmem:[#allocation11] sm:$0xf] %vm243_vm1, %v249_v7 }
 0x2dd   :  { %v255_v8 = vpop.permute.xlu1 %254 }
 0x2de   :  { %263 = vst.msk [vmem:[#allocation11 + $0xc] sm:$0xf] %vm243_vm1, %v255_v8  ;;  %v265_v9 = vpop.permute.xlu0 %264 }
 0x2df   :  { %276 = vst.msk [vmem:[#allocation13] sm:$0xf] %vm243_vm1, %v265_v9 }
 0x2e7   :  { %v251_v10 = vpop.permute.xlu1 %250  ;;  %v269_v11 = vpop.permute.xlu0 %268 }
 0x2e8   :  { %261 = vst.msk [vmem:[#allocation11 + $0x4] sm:$0xf] %vm243_vm1, %v251_v10  ;;  %278 = vst.msk [vmem:[#allocation13 + $0x8] sm:$0xf] %vm243_vm1, %v269_v11 }
 0x2e9   :  { %499 = shalt.err (!%p496_p2)
}
 0x2ea   :  { %s500_s14 = scalar_lea.hbm %s734_s5, 256 }
 0x2eb   :  { %p501_p3 = scmp.ne.s32.totalorder %s734_s5, %s500_s14  ;;  %p504_p4 = scmp.lt.u32.totalorder %s500_s14, %s734_s5 }
 0x2ed   :  { %p506_p5 = pnand %p504_p4, %p501_p3 }
 0x2ef   :  { %509 = shalt.err (!%p506_p5)
}
 0x2f0   :  { %303 = dma.vmem_to_hbm [thread:$0]  %s298_s11, 256, %s734_s5, [#allocation12], %s548_s2, %s548_s2, %s549_s20   ;;  %v267_v12 = vpop.permute.xlu1 %266 }
 0x2f1   :  { %s553_s21 = smov [#allocation13]   ;;  %277 = vst.msk [vmem:[#allocation13 + $0x4] sm:$0xf] %vm243_vm1, %v267_v12 }
 0x2f2   :  { %s309_s22 = sshll.u32 %s553_s21, 4  ;;  %s310_s22 = int_to_ptr.vmem [resolvable:$true] %s309_s22 }
 0x2f3   :  { %s510_s3 = scalar_lea.vmem %s310_s22, 256  ;;  %p515_p7 = scmp.lt.s32.totalorder %s310_s22, %s310_s22 }
 0x2f4   :  { %v271_v13 = vpop.permute.xlu1 %270  ;;  %p511_p6 = scmp.ne.s32.totalorder %s310_s22, %s510_s3  ;;  %p516_p8 = scmp.lt.s32.totalorder %s510_s3, %s510_s3 }
 0x2f5   :  { %279 = vst.msk [vmem:[#allocation13 + $0xc] sm:$0xf] %vm243_vm1, %v271_v13 }
 0x2f6   :  { %p517_p9 = por %p516_p8, %p515_p7 }
 0x2f8   :  { %p518_p10 = pnand %p517_p9, %p511_p6 }
 0x2fa   :  { %521 = shalt.err (!%p518_p10)
}
 0x2fb   :  { %s522_s5 = scalar_lea.hbm %s735_s6, 256 }
 0x2fc   :  { %p523_p11 = scmp.ne.s32.totalorder %s735_s6, %s522_s5  ;;  %p526_p12 = scmp.lt.u32.totalorder %s522_s5, %s735_s6 }
 0x2fe   :  { %p528_p13 = pnand %p526_p12, %p523_p11 }
 0x300   :  { %531 = shalt.err (!%p528_p13)
}
 0x301   :  { %315 = dma.vmem_to_hbm [thread:$0]  %s310_s22, 256, %s735_s6, [#allocation12], %s548_s2, %s548_s2, %s549_s20  }
 0x302   :  { %538 = dma.done.wait [#allocation4], 256  }
 0x303   :  { %539 = vsyncadd [#allocation4], 4294967040 }
 0x304   :  { %540 = dma.done.wait [#allocation12], 512  }
 0x305   :  { %541 = vsyncadd [#allocation12], 4294966784 }
 0x306   :  { %325 = vsyncpa [#allocation3], 1 }
 0x307   :  { %326 = vsyncpa [#allocation6], 1 }
 0x308   :  { %327 = vsyncpa [#allocation9], 1 }
 0x309   :  { %328 = vsyncpa [#allocation4], 1 }
 0x30a   :  { %329 = vsyncpa [#allocation12], 1 }

// kernel: decoder_forward.5
= control target key start
LH: loop header
LB: loop body
LE: loop exit
PB: predicated region body
PF: predicated region fallthrough
CT: control target
= control target key end

     0   :  { %s2348_s0 = inlined_call_operand.hbm [shape: f32[2,16,32], index: 0, kind: input, shape index: {}]   ;;  %s2349_s1 = inlined_call_operand.hbm [shape: bf16[2,16,32], index: 1, kind: input, shape index: {}]   ;;  %s2350_s2 = inlined_call_operand.hbm [shape: bf16[2,16,32], index: 2, kind: input, shape index: {}]   ;;  %s2351_s3 = inlined_call_operand.hbm [shape: bf16[2,16,32], index: 3, kind: input, shape index: {}]   ;;  %s2352_s4 = inlined_call_operand.hbm [shape: bf16[32,32], index: 4, kind: input, shape index: {}]   ;;  %s2353_s5 = inlined_call_operand.hbm [shape: f32[1,32], index: 5, kind: input, shape index: {}]   ;;  %s2354_s6 = inlined_call_operand.hbm [shape: f32[2,16,32], index: 6, kind: output, shape index: {}]  }
   0x1   :  { %2378 = sst [smem:[#allocation28_spill]] %s2349_s1 }
   0x2   :  { %2379 = sst [smem:[#allocation29_spill]] %s2352_s4 }
   0x3   :  { %2380 = sst [smem:[#allocation30_spill]] %s2354_s6 }
   0x4   :  { %11 = vsyncpa [#allocation4], 0 }
   0x5   :  { %13 = vsyncpa [#allocation4 + $0x1], 0 }
   0x6   :  { %14 = vsyncpa [#allocation7], 0 }
   0x7   :  { %16 = vsyncpa [#allocation7 + $0x1], 0 }
   0x8   :  { %17 = vsyncpa [#allocation10], 0 }
   0x9   :  { %19 = vsyncpa [#allocation10 + $0x1], 0 }
   0xa   :  { %20 = vsyncpa [#allocation13], 0 }
   0xb   :  { %21 = vsyncpa [#allocation5], 0 }
   0xc   :  { %23 = vsyncpa [#allocation5 + $0x1], 0  ;;  %s1859_s21 = smov 0   ;;  %s1861_s22 = smov 0  }
   0xd   :  { %s1863_s23 = smov 0   ;;  %s1865_s24 = smov 0  }
   0xe   :  { %s1867_s25 = smov 0   ;;  %s1869_s26 = smov 0  }
   0xf LB: > { %2381 = sst [smem:[#allocation21_spill]] %s1782_s21  ;;  %s1890_s27 = sadd.s32 4294967295, %s1802_s26   ;;  %s1802_s26 = sphi %s1869_s26, %s29_s26   ;;  %s1798_s25 = sphi %s1867_s25, %s2429_s25   ;;  %s1794_s24 = sphi %s1865_s24, %s2428_s24   ;;  %s1790_s23 = sphi %s1863_s23, %s2424_s23   ;;  %s1786_s22 = sphi %s1861_s22, %s2427_s22   ;;  %s1782_s21 = sphi %s1859_s21, %s2426_s21  }
  0x10   : > { %2382 = sst [smem:[#allocation22_spill]] %s1790_s23  ;;  %s1255_s28 = sadd.s32 4294967294, %s1802_s26  }
  0x11   : > { %2383 = sst [smem:[#allocation23_spill]] %s1794_s24  ;;  %p57_p0 = scmp.ne.s32.totalorder %s1790_s23, %s1786_s22 }
  0x12   : > { %p58_p1 = scmp.eq.s32.totalorder %s1802_s26, 0  ;;  %p63_p2 = scmp.ne.s32.totalorder %s1786_s22, %s1782_s21 }
  0x13   : > { %p2355_p3 = scmp.eq.s32.totalorder %s1890_s27, 0  ;;  %p211_p4 = scmp.eq.s32.totalorder %s1890_s27, 1 }
  0x14   : > { %p1901_p5 = por %p58_p1, %p57_p0  ;;  %p217_p6 = scmp.eq.s32.totalorder %s1255_s28, 1 }
  0x15   : > { %p1907_p7 = por %p2355_p3, %p63_p2  ;;  %p1911_p8 = por %p211_p4, %p57_p0 }
  0x16   : > { %p1915_p9 = por %p217_p6, %p63_p2  ;;  %p1256_p10 = scmp.ge.s32.totalorder %s1802_s26, 1 }
  0x17   : > { %s2385_s7 = scalar_select %p1907_p7, 1, 0 }
  0x18   : > { %s2386_s8 = scalar_select %p1911_p8, 1, 0 }
  0x19   : > { %s2388_s9 = scalar_select %p1915_p9, 1, 0 }
  0x1a   : > { %2387 = sst [smem:[#allocation24_spill]] %s2386_s8  ;;  %p224_p11 = scmp.lt.s32.totalorder %s1802_s26, 3 }
  0x1b   : > { %2389 = sst [smem:[#allocation25_spill]] %s2388_s9  ;;  %s1804_s11 = smov [#allocation11]  }
  0x1c   : > { %p1921_p12 = pnand %p1256_p10, %p224_p11  ;;  %s236_s12 = sshll.u32 %s1804_s11, 4  ;;  %s1925_s12 = int_to_ptr.vmem [resolvable:$true] %s236_s12 }
  0x1d   : > { %s41_s14 = sadd.s32 1, %s1798_s25  ;;  %s1939_s15 = sand.u32 1, %s1790_s23  }
  0x1e   : > { %s2390_s10 = scalar_select %p1921_p12, 1, 0 }
  0x1f   : > { %p1398_p13 = pneg %p1921_p12  ;;  %p1941_p4 = scmp.ge.s32.totalorder %s41_s14, 2 }
  0x20   : > { %s2393_s4 = sld [smem:[#allocation29_spill]] }
  0x21   : > { %p1933_p2 = pnand %p1398_p13, %p2355_p3 }
  0x23   : > { %s2391_s13 = scalar_select %p1933_p2, 1, 0 }
  0x24   : > { %p2367_p10 = pneg %p1933_p2 }
  0x26   : > { %s1528_s19 = scalar_lea.hbm %s2393_s4, 256 }
  0x27   : > { %p1529_p6 = scmp.ne.s32.totalorder %s2393_s4, %s1528_s19  ;;  %p1535_p0 = scmp.lt.u32.totalorder %s1528_s19, %s2393_s4 }
  0x29   : > { %p1531_p11 = pnand %p2367_p10, %p1529_p6 }
  0x2b   : > { %p1532_p13 = pneg %p1531_p11 }
  0x2d   : > { %p1537_p3 = pnand %p1535_p0, %p1532_p13 }
  0x2f   : > { %1540 = shalt.err (!%p1537_p3)
}
  0x30   : > { %s1541_s17 = scalar_lea.vmem %s1925_s12, 256  ;;  %p1549_p7 = scmp.lt.s32.totalorder %s1925_s12, %s1925_s12 }
  0x31   : > { %p1542_p1 = scmp.ne.s32.totalorder %s1925_s12, %s1541_s17  ;;  %p1550_p6 = scmp.lt.s32.totalorder %s1541_s17, %s1541_s17 }
  0x33   : > { %p1544_p9 = pnand %p1542_p1, %p2367_p10  ;;  %p1551_p11 = por %p1550_p6, %p1549_p7 }
  0x35   : > { %p1545_p8 = pneg %p1544_p9 }
  0x37   : > { %p1552_p12 = pnand %p1551_p11, %p1545_p8 }
  0x39   : > { %1555 = shalt.err (!%p1552_p12)
}
  0x3a   : > { %s2361_s29 = smov 64   ;;  %s2363_s18 = smov 4  }
  0x3b   : > { %1401 = dma.hbm_to_vmem [thread:$0]  (!%p1933_p2), %s2393_s4, 256, %s1925_s12, [#allocation10], %s2361_s29, %s2361_s29, %s2363_s18  }
  0x3c   : > { %s2431_s14 = smov (%p1941_p4, %s41_s14), 0  ;;  %p2395_p3 = scmp.lt.s32.totalorder %s1802_s26, 2 }
  0x3d   : > { %2394 = sst [smem:[#allocation26_spill]] %s2431_s14  ;;  %s2366_s11 = sand.u32 1, %s1802_s26  }
  0x3e   : > { %p1983_p7 = pnand %p2395_p3, %p1901_p5  ;;  %s45_s17 = ssub.s32 %s1798_s25, %s2431_s14 }
  0x3f   : > { %p48_p8 = scmp.eq.s32.totalorder %s45_s17, 0  ;;  %s1991_s9 = sshll.u32 %s1939_s15, 3 }
  0x40   : > { %s2396_s28 = scalar_select %p1983_p7, 1, 0 }
  0x41   : > { %s1994_s21 = sshll.u32 %s1798_s25, 7  ;;  %s2397_s12 = sadd.s32 1, %s1790_s23 }
  0x42   : > { %s1999_s16 = scalar_select %p48_p8, %s1790_s23, %s2397_s12  }
  0x43   : > { %s2399_s1 = sld [smem:[#allocation28_spill]]  ;;  %s288_s29 = scalar_lea.vmem [#allocation6], %s1991_s9 }
  0x44   : > { %2398 = sst [smem:[#allocation27_spill]] %s1999_s16  ;;  %s297_s17 = sshll.u32 %s288_s29, 4  ;;  %s2008_s17 = int_to_ptr.vmem [resolvable:$true] %s297_s17 }
  0x45   : > { %s2012_s18 = scalar_lea.sflag [#allocation7], %s2366_s11  ;;  %p2018_p9 = pneg %p1983_p7 }
  0x47   : > { %s2400_s12 = scalar_select %p2018_p9, 1, 0 }
  0x49   : > { %s2005_s20 = scalar_lea.hbm %s2399_s1, %s1994_s21  ;;  %s1561_s29 = scalar_lea.hbm %s2399_s1, 256 }
  0x4a   : > { %s1556_s4 = scalar_lea.hbm %s2005_s20, 128  ;;  %p1562_p1 = scmp.lt.u32.totalorder %s2005_s20, %s2399_s1 }
  0x4b   : > { %p1557_p5 = scmp.ne.s32.totalorder %s2005_s20, %s1556_s4  ;;  %p1563_p4 = scmp.lt.u32.totalorder %s1561_s29, %s1556_s4 }
  0x4c   : > { %p1565_p6 = scmp.lt.u32.totalorder %s1556_s4, %s2005_s20 }
  0x4d   : > { %p1559_p12 = pnand %p2018_p9, %p1557_p5  ;;  %p1564_p13 = por %p1563_p4, %p1562_p1 }
  0x4f   : > { %p1560_p0 = pneg %p1559_p12  ;;  %p1566_p11 = por %p1565_p6, %p1564_p13 }
  0x51   : > { %p1567_p3 = pnand %p1566_p11, %p1560_p0 }
  0x53   : > { %1570 = shalt.err (!%p1567_p3)
}
  0x54   : > { %s1571_s11 = scalar_lea.vmem %s2008_s17, 128  ;;  %s1807_s30 = smov [#allocation6]  }
  0x55   : > { %p1572_p8 = scmp.ne.s32.totalorder %s2008_s17, %s1571_s11  ;;  %s1576_s19 = sshll.u32 %s1807_s30, 4  ;;  %s1577_s19 = int_to_ptr.vmem [resolvable:$false] %s1576_s19 }
  0x56   : > { %s1578_s14 = scalar_lea.vmem %s1577_s19, 256  ;;  %p1579_p10 = scmp.lt.s32.totalorder %s2008_s17, %s1577_s19 }
  0x57   : > { %p1574_p5 = pnand %p1572_p8, %p2018_p9  ;;  %p1580_p2 = scmp.lt.s32.totalorder %s1578_s14, %s1571_s11 }
  0x59   : > { %p1575_p12 = pneg %p1574_p5  ;;  %p1581_p1 = por %p1580_p2, %p1579_p10 }
  0x5b   : > { %p1582_p4 = pnand %p1581_p1, %p1575_p12 }
  0x5d   : > { %1585 = shalt.err (!%p1582_p4)
}
  0x5e   : > { %s2401_s4 = smov 4   ;;  %s2402_s16 = smov 64  }
  0x5f   : > { %1411 = dma.hbm_to_vmem [thread:$0]  (!%p1983_p7), %s2005_s20, 128, %s2008_s17, %s2012_s18, %s2402_s16, %s2402_s16, %s2401_s4  }
  0x60   : > { %s1808_s29 = smov [#allocation12]   ;;  %s1260_s1 = sshll.u32 %s1939_s15, 4 }
  0x61   : > { %s250_s30 = sshll.u32 %s1808_s29, 4  ;;  %s1586_s14 = scalar_lea.hbm %s2353_s5, 16  ;;  %s251_s30 = int_to_ptr.vmem [resolvable:$true] %s250_s30 }
  0x62   : > { %p1587_p2 = scmp.ne.s32.totalorder %s2353_s5, %s1586_s14  ;;  %p2403_p10 = scmp.ne.s32.totalorder %s2391_s13, 0 }
  0x63   : > { %p1593_p11 = scmp.lt.u32.totalorder %s1586_s14, %s2353_s5 }
  0x64   : > { %p2404_p0 = pneg %p2403_p10 }
  0x66   : > { %p1589_p13 = pnand %p1587_p2, %p2404_p0 }
  0x68   : > { %p1590_p6 = pneg %p1589_p13 }
  0x6a   : > { %p1595_p3 = pnand %p1593_p11, %p1590_p6 }
  0x6c   : > { %1598 = shalt.err (!%p1595_p3)
}
  0x6d   : > { %s1599_s20 = scalar_lea.vmem %s251_s30, 16  ;;  %p2405_p5 = pmov %p2404_p0 }
  0x6e   : > { %p1600_p8 = scmp.ne.s32.totalorder %s251_s30, %s1599_s20  ;;  %s1606_s17 = scalar_lea.vmem %s251_s30, 32 }
  0x6f   : > { %p1607_p4 = scmp.lt.s32.totalorder %s251_s30, %s251_s30  ;;  %p1608_p7 = scmp.lt.s32.totalorder %s1606_s17, %s1599_s20 }
  0x70   : > { %p1602_p12 = pnand %p1600_p8, %p2405_p5 }
  0x71   : > { %p1609_p9 = por %p1608_p7, %p1607_p4 }
  0x72   : > { %p1603_p1 = pneg %p1602_p12 }
  0x74   : > { %p1610_p0 = pnand %p1609_p9, %p1603_p1 }
  0x76   : > { %1613 = shalt.err (!%p1610_p0)
}
  0x77   : > { %1404 = dma.hbm_to_vmem [thread:$0]  (!%p2403_p10), %s2353_s5, 16, %s251_s30, [#allocation13]  }
  0x78   : > { %s1300_s24 = sshll.u32 %s1798_s25, 8  ;;  %s265_s11 = scalar_lea.vmem [#allocation3], %s1260_s1 }
  0x79   : > { %s2070_s19 = scalar_lea.hbm %s2348_s0, %s1300_s24  ;;  %s274_s14 = sshll.u32 %s265_s11, 4  ;;  %s2072_s14 = int_to_ptr.vmem [resolvable:$true] %s274_s14 }
  0x7a   : > { %s262_s13 = scalar_lea.sflag [#allocation4], %s1939_s15  ;;  %s1614_s20 = scalar_lea.hbm %s2070_s19, 256 }
  0x7b   : > { %p1615_p7 = scmp.ne.s32.totalorder %s2070_s19, %s1614_s20  ;;  %p2406_p9 = scmp.ne.s32.totalorder %s2400_s12, 0 }
  0x7c   : > { %s1619_s6 = scalar_lea.hbm %s2348_s0, 512  ;;  %p1620_p13 = scmp.lt.u32.totalorder %s2070_s19, %s2348_s0 }
  0x7d   : > { %p1617_p2 = pnand %p1615_p7, %p2406_p9  ;;  %p1621_p6 = scmp.lt.u32.totalorder %s1619_s6, %s1614_s20 }
  0x7e   : > { %p1623_p3 = scmp.lt.u32.totalorder %s1614_s20, %s2070_s19 }
  0x7f   : > { %p1618_p10 = pneg %p1617_p2  ;;  %p1622_p11 = por %p1621_p6, %p1620_p13 }
  0x81   : > { %p1624_p8 = por %p1623_p3, %p1622_p11 }
  0x83   : > { %p1625_p5 = pnand %p1624_p8, %p1618_p10 }
  0x85   : > { %1628 = shalt.err (!%p1625_p5)
}
  0x86   : > { %s1629_s1 = scalar_lea.vmem %s2072_s14, 256  ;;  %s1809_s8 = smov [#allocation3]  }
  0x87   : > { %p1630_p12 = scmp.ne.s32.totalorder %s2072_s14, %s1629_s1  ;;  %s1634_s29 = sshll.u32 %s1809_s8, 4  ;;  %s1635_s29 = int_to_ptr.vmem [resolvable:$false] %s1634_s29 }
  0x88   : > { %s1636_s11 = scalar_lea.vmem %s1635_s29, 512  ;;  %p1637_p0 = scmp.lt.s32.totalorder %s2072_s14, %s1635_s29 }
  0x89   : > { %p1632_p1 = pnand %p1630_p12, %p2406_p9  ;;  %p1638_p7 = scmp.lt.s32.totalorder %s1636_s11, %s1629_s1 }
  0x8b   : > { %p1633_p4 = pneg %p1632_p1  ;;  %p1639_p2 = por %p1638_p7, %p1637_p0 }
  0x8d   : > { %p1640_p13 = pnand %p1639_p2, %p1633_p4 }
  0x8f   : > { %1643 = shalt.err (!%p1640_p13)
}
  0x90   : > { %s1810_s20 = smov 128   ;;  %s1811_s30 = smov 8  }
  0x91   : > { %p2407_p10 = scmp.ne.s32.totalorder %s2396_s28, 0  ;;  %s2102_s23 = scalar_lea.hbm %s2350_s2, %s1994_s21 }
  0x92   : > { %s311_s24 = scalar_lea.vmem [#allocation8], %s1991_s9  ;;  %s1644_s8 = scalar_lea.hbm %s2102_s23, 128 }
  0x93   : > { %1408 = dma.hbm_to_vmem [thread:$0]  (!%p2407_p10), %s2070_s19, 256, %s2072_s14, %s262_s13, %s1810_s20, %s1810_s20, %s1811_s30  }
  0x94   : > { %s318_s1 = sshll.u32 %s311_s24, 4  ;;  %p1645_p6 = scmp.ne.s32.totalorder %s2102_s23, %s1644_s8  ;;  %s2105_s1 = int_to_ptr.vmem [resolvable:$true] %s318_s1 }
  0x95   : > { %s1649_s14 = scalar_lea.hbm %s2350_s2, 256  ;;  %p1650_p8 = scmp.lt.u32.totalorder %s2102_s23, %s2350_s2 }
  0x96   : > { %p1647_p11 = pnand %p1645_p6, %p2406_p9  ;;  %p1651_p5 = scmp.lt.u32.totalorder %s1649_s14, %s1644_s8 }
  0x97   : > { %p1653_p1 = scmp.lt.u32.totalorder %s1644_s8, %s2102_s23 }
  0x98   : > { %p1648_p3 = pneg %p1647_p11  ;;  %p1652_p12 = por %p1651_p5, %p1650_p8 }
  0x9a   : > { %p1654_p4 = por %p1653_p1, %p1652_p12 }
  0x9c   : > { %p1655_p0 = pnand %p1654_p4, %p1648_p3 }
  0x9e   : > { %1658 = shalt.err (!%p1655_p0)
}
  0x9f   : > { %s1659_s11 = scalar_lea.vmem %s2105_s1, 128  ;;  %s1812_s20 = smov [#allocation8]  }
  0xa0   : > { %p1660_p7 = scmp.ne.s32.totalorder %s2105_s1, %s1659_s11  ;;  %s1664_s30 = sshll.u32 %s1812_s20, 4  ;;  %s1665_s30 = int_to_ptr.vmem [resolvable:$false] %s1664_s30 }
  0xa1   : > { %s1666_s17 = scalar_lea.vmem %s1665_s30, 256  ;;  %p1667_p6 = scmp.lt.s32.totalorder %s2105_s1, %s1665_s30 }
  0xa2   : > { %p1662_p2 = pnand %p1660_p7, %p2406_p9  ;;  %p1668_p11 = scmp.lt.s32.totalorder %s1666_s17, %s1659_s11 }
  0xa4   : > { %p1663_p13 = pneg %p1662_p2  ;;  %p1669_p8 = por %p1668_p11, %p1667_p6 }
  0xa6   : > { %p1670_p5 = pnand %p1669_p8, %p1663_p13 }
  0xa8   : > { %1673 = shalt.err (!%p1670_p5)
}
  0xa9   : > { %1414 = dma.hbm_to_vmem [thread:$0]  (!%p2407_p10), %s2102_s23, 128, %s2105_s1, %s2012_s18, %s2402_s16, %s2402_s16, %s2401_s4  }
  0xaa   : > { %s2136_s8 = scalar_lea.hbm %s2351_s3, %s1994_s21  ;;  %s332_s15 = scalar_lea.vmem [#allocation9], %s1991_s9 }
  0xab   : > { %s339_s19 = sshll.u32 %s332_s15, 4  ;;  %s2408_s14 = sand.u32 1, %s1802_s26   ;;  %s2139_s19 = int_to_ptr.vmem [resolvable:$true] %s339_s19 }
  0xac   : > { %s2143_s13 = scalar_lea.sflag [#allocation10], %s2408_s14  ;;  %s1674_s29 = scalar_lea.hbm %s2136_s8, 128 }
  0xad   : > { %p1675_p3 = scmp.ne.s32.totalorder %s2136_s8, %s1674_s29  ;;  %s1679_s21 = scalar_lea.hbm %s2351_s3, 256 }
  0xae   : > { %p1680_p4 = scmp.lt.u32.totalorder %s2136_s8, %s2351_s3  ;;  %p1681_p0 = scmp.lt.u32.totalorder %s1679_s21, %s1674_s29 }
  0xaf   : > { %p1677_p12 = pnand %p1675_p3, %p2406_p9  ;;  %p1683_p2 = scmp.lt.u32.totalorder %s1674_s29, %s2136_s8 }
  0xb0   : > { %p1682_p7 = por %p1681_p0, %p1680_p4 }
  0xb1   : > { %p1678_p1 = pneg %p1677_p12 }
  0xb2   : > { %p1684_p13 = por %p1683_p2, %p1682_p7 }
  0xb4   : > { %p1685_p6 = pnand %p1684_p13, %p1678_p1 }
  0xb6   : > { %1688 = shalt.err (!%p1685_p6)
}
  0xb7   : > { %s1689_s9 = scalar_lea.vmem %s2139_s19, 128  ;;  %s1813_s20 = smov [#allocation9]  }
  0xb8   : > { %p1690_p11 = scmp.ne.s32.totalorder %s2139_s19, %s1689_s9  ;;  %s1694_s30 = sshll.u32 %s1813_s20, 4  ;;  %s1695_s30 = int_to_ptr.vmem [resolvable:$false] %s1694_s30 }
  0xb9   : > { %s1696_s17 = scalar_lea.vmem %s1695_s30, 256  ;;  %p1697_p3 = scmp.lt.s32.totalorder %s2139_s19, %s1695_s30 }
  0xba   : > { %p1692_p8 = pnand %p1690_p11, %p2406_p9  ;;  %p1698_p12 = scmp.lt.s32.totalorder %s1696_s17, %s1689_s9 }
  0xbc   : > { %p1693_p5 = pneg %p1692_p8  ;;  %p1699_p4 = por %p1698_p12, %p1697_p3 }
  0xbe   : > { %p1700_p0 = pnand %p1699_p4, %p1693_p5 }
  0xc0   : > { %1703 = shalt.err (!%p1700_p0)
}
  0xc1   : > { %1417 = dma.hbm_to_vmem [thread:$0]  (!%p2407_p10), %s2136_s8, 128, %s2139_s19, %s2143_s13, %s2402_s16, %s2402_s16, %s2401_s4  }
  0xc2   : > { %p2409_p9 = scmp.ne.s32.totalorder %s2390_s10, 0 }
  0xc3   : > { %s2173_s12 = sand.u32 (!%p2409_p9), 1, %s1786_s22   ;;  %p2410_p1 = scmp.ne.s32.totalorder (!%p2409_p9), %s2385_s7, 0 }
  0xc4   : > { %351 = sbr.rel (%p2409_p9) target bundleno = 1934 (0x78e), region = 44  ;;  %s1273_s6 = sshll.u32 (!%p2409_p9), %s2173_s12, 4 }
  0xc5   : > { %s354_s24 = scalar_lea.sflag (!%p2409_p9), [#allocation4], %s2173_s12  ;;  %s2179_s28 = scalar_lea.vmem (!%p2409_p9), [#allocation3], %s1273_s6 }
  0xcb   : > { %1757 = dma.done.wait (%p2410_p1), %s354_s24, 256  }
  0xcc   : > { %1759 = vsyncadd (%p2410_p1), %s354_s24, 4294967040  ;;  %s362_s10 = sand.u32 1, %s1890_s27   ;;  %s2187_s4 = sshll.u32 %s2173_s12, 3 }
  0xcd   : > { %s363_s16 = scalar_lea.sflag [#allocation7], %s362_s10  ;;  %s366_s8 = scalar_lea.vmem [#allocation6], %s2187_s4 }
  0xce   : > { %1761 = dma.done.wait (%p2410_p1), %s363_s16, 256  }
  0xcf   : > { %1763 = vsyncadd (%p2410_p1), %s363_s16, 4294967040  ;;  %s375_s15 = scalar_lea.vmem [#allocation8], %s2187_s4  ;;  %s381_s19 = scalar_lea.sflag [#allocation10], %s362_s10 }
  0xd0   : > { %s384_s14 = scalar_lea.vmem [#allocation9], %s2187_s4 }
  0xd1   : > { %1765 = dma.done.wait (%p2410_p1), %s381_s19, 128  }
  0xd2   : > { %1767 = vsyncadd (%p2410_p1), %s381_s19, 4294967168  ;;  %p2411_p10 = scmp.eq.s32.totalorder %s1890_s27, 0 }
  0xd4   : > { %1769 = dma.done.wait (%p2411_p10), [#allocation10], 256   ;;  %p2412_p7 = pmov %p2411_p10 }
  0xd6   : > { %1771 = vsyncadd (%p2412_p7), [#allocation10], 4294967040  ;;  %p2413_p2 = pmov %p2412_p7 }
  0xd8   : > { %1773 = dma.done.wait (%p2413_p2), [#allocation13], 16   ;;  %p2414_p13 = pmov %p2413_p2 }
  0xd9   : > { %v1814_v0 = vmov 0.0   ;;  %vm1815_vm0 = vmmov 0   ;;  %vm456_vm1 = vcmask 64512   ;;  %v1491_v1 = vld [vmem:[%s375_s15] sm:$0xff]   ;;  %v1492_v3 = vld [vmem:[%s366_s8] sm:$0xff]   ;;  %vm506_vm2 = vcmask 130048  }
  0xda   : > { %1775 = vsyncadd (%p2414_p13), [#allocation13], 4294967280  ;;  %1324 = vmatprep.subr.bf16.mxu0 %v1814_v0  ;;  %1326 = vmatprep.mubr.msk.bf16.mxu0 %vm1815_vm0, %v1814_v0  ;;  %v461_v2 = vsel %vm456_vm1, %v1491_v1, 0  ;;  %s1816_s27 = smov 120   ;;  %s1817_s7 = smov 104   ;;  %v2227_v22 = vld [vmem:[%s384_s14] sm:$0xff]  }
  0xdb   : > { %1330 = vmatprep.subr.bf16.mxu1 %v1814_v0  ;;  %1332 = vmatprep.mubr.msk.bf16.mxu1 %vm1815_vm0, %v1814_v0  ;;  %s1818_s13 = smov 112   ;;  %s1819_s29 = smov 8   ;;  %vm713_vm3 = vcmask 130112   ;;  %vm847_vm4 = vcmask 195712   ;;  %vm981_vm5 = vcmask 261312   ;;  %vm1014_vm6 = vcmask 261120  }
  0xdc   : > { %1325 = vmatpush3.bf16.xpose.msra.mxu0 %v461_v2  ;;  %1331 = vmatpush3.bf16.msra.mxu1 %v2227_v22  ;;  %s1820_s18 = smov 16   ;;  %s1821_s23 = smov 24  }
  0xdd   : > { %1342 = vmatprep.subr.bf16.mxu0 %v1814_v0  ;;  %1336 = vmatprep.subr.bf16.mxu1 %v1814_v0  ;;  %s2415_s21 = sld [smem:[#allocation23_spill]]  ;;  %s435_s1 = scalar_lea.vmem [#allocation14], %s1273_s6 }
  0xde   : > { %s1079_s11 = sshll.u32 %s435_s1, 4  ;;  %s2416_s9 = sld [smem:[#allocation24_spill]]  ;;  %s2291_s11 = int_to_ptr.vmem [resolvable:$true] %s1079_s11 }
  0xdf   : > { %s2417_s6 = sld [smem:[#allocation30_spill]]  ;;  %s1704_s10 = scalar_lea.vmem %s2291_s11, 256 }
  0xe0   : > { %p1705_p6 = scmp.ne.s32.totalorder %s2291_s11, %s1704_s10  ;;  %s1822_s4 = smov [#allocation14]  }
  0xe1   : > { %s1708_s16 = sshll.u32 %s1822_s4, 4  ;;  %s1709_s16 = int_to_ptr.vmem [resolvable:$false] %s1708_s16 }
  0xe2   : > { %s1710_s8 = scalar_lea.vmem %s1709_s16, 512  ;;  %p1711_p3 = scmp.lt.s32.totalorder %s2291_s11, %s1709_s16 }
  0xe3   : > { %1327 = vmatmul.mubr.msk.bf16.vlgmr.msra.gmra.mrb[0].mxu0 %vm456_vm1, %v1492_v3  ;;  %s1304_s20 = sshll.u32 %s2415_s21, 8  ;;  %p1712_p12 = scmp.lt.s32.totalorder %s1710_s8, %s1704_s10 }
  0xe4   : > { %1344 = vmatprep.mubr.msk.bf16.mxu0 %vm1815_vm0, %v1814_v0  ;;  %p2418_p11 = scmp.ne.s32.totalorder %s2416_s9, 0 }
  0xe5   : > { %s2297_s24 = scalar_lea.hbm %s2417_s6, %s1304_s20  ;;  %p1713_p4 = por %p1712_p12, %p1711_p3 }
  0xe6   : > { %p1706_p8 = pnand %p1705_p6, %p2418_p11 }
  0xe8   : > { %p1707_p5 = pneg %p1706_p8 }
  0xea   : > { %p1714_p0 = pnand %p1713_p4, %p1707_p5 }
 0x1b6   : > { %v497_v4 = vpop.f32.mrb[0].mxu0 }
 0x1b7   : > { %v504_v5 = vmul.f32 0.35355338, %v497_v4  ;;  %v1328_v6 = vpop.f32.mrb[1].mxu0 }
 0x1b8   : > { %v500_v7 = vpop.f32.mrb[2].mxu0 }
 0x1b9   : > { %v505_v8 = vmul.f32 0.35355338, %v500_v7  ;;  %v1329_v9 = vpop.f32.mrb[3].mxu0  ;;  %v507_v10 = vsel %vm506_vm2, %v504_v5, -inf }
 0x1ba   : > { %508 = vmax.xlane.f32.xlu0 %v507_v10 }
 0x1bb   : > { %v510_v11 = vsel %vm506_vm2, %v505_v8, -inf }
 0x1be   : > { %511 = vmax.xlane.f32.xlu0 %v510_v11 }
 0x1d4   : > { %584 = vrot.lane.b32.xlu0 %v1491_v1, %s1816_s27 }
 0x1d8   : > { %852 = vrot.lane.b32.xlu0 %v1491_v1, %s1817_s7 }
 0x247   : > { %v509_v12 = vpop.xlane.xlu0 %508 }
 0x248   : > { %v513_v13 = vsub.f32 %v504_v5, %v509_v12 }
 0x24a   : > { %v515_v14 = vmul.f32 1.442695, %v513_v13 }
 0x24b   : > { %v512_v15 = vpop.xlane.xlu0 %511 }
 0x24c   : > { %1496 = vpow2.f32 %v515_v14  ;;  %v514_v16 = vsub.f32 %v505_v8, %v512_v15 }
 0x24e   : > { %v517_v17 = vmul.f32 1.442695, %v514_v16 }
 0x24f   : > { %v585_v27 = vpop.permute.xlu0 %584 }
 0x250   : > { %1498 = vpow2.f32 %v517_v17  ;;  %v590_v31 = vsel %vm456_vm1, %v585_v27, 0 }
 0x253   : > { %v853_v35 = vpop.permute.xlu0 %852 }
 0x254   : > { %v858_v37 = vsel %vm456_vm1, %v853_v35, 0 }
 0x256   : > { %v1497_v18 = vpop.eup %1496 }
 0x257   : > { %v519_v19 = vsel %vm506_vm2, %v1497_v18, 0.0 }
 0x258   : > { %520 = vadd.xlane.f32.xlu1 %v519_v19 }
 0x25a   : > { %v1499_v20 = vpop.eup %1498 }
 0x25b   : > { %v522_v21 = vsel %vm506_vm2, %v1499_v20, 0.0 }
 0x25c   : > { %523 = vadd.xlane.f32.xlu1 %v522_v21 }
 0x26d   : > { %582 = vrot.lane.b32.xlu1 %v1492_v3, %s1816_s27 }
 0x271   : > { %718 = vrot.lane.b32.xlu1 %v1491_v1, %s1818_s13 }
 0x275   : > { %716 = vrot.lane.b32.xlu1 %v1492_v3, %s1818_s13 }
 0x279   : > { %850 = vrot.lane.b32.xlu1 %v1492_v3, %s1817_s7 }
 0x2e5   : > { %v521_v23 = vpop.xlane.xlu1 %520 }
 0x2e6   : > { %1500 = vrcp.f32 %v521_v23 }
 0x2e9   : > { %v524_v24 = vpop.xlane.xlu1 %523 }
 0x2ea   : > { %1502 = vrcp.f32 %v524_v24 }
 0x2ed   : > { %v583_v30 = vpop.permute.xlu1 %582 }
 0x2f0   : > { %v1501_v25 = vpop.eup %1500 }
 0x2f1   : > { %v527_v28 = vmul.f32 %v1501_v25, %v1497_v18  ;;  %v719_v33 = vpop.permute.xlu1 %718 }
 0x2f2   : > { %v724_v34 = vsel %vm456_vm1, %v719_v33, 0 }
 0x2f4   : > { %v1503_v26 = vpop.eup %1502 }
 0x2f5   : > { %v528_v29 = vmul.f32 %v1503_v26, %v1499_v20  ;;  %v717_v36 = vpop.permute.xlu1 %716 }
 0x2f7   : > { %v529_v32 = vpack.c.bf16 %v528_v29, %v527_v28 }
 0x2f9   : > { %1333 = vmatmul.mubr.msk.bf16.vlgmr.msra.gmra.mrb[0].mxu1 %vm506_vm2, %v529_v32  ;;  %v851_v38 = vpop.permute.xlu1 %850 }
 0x2fa   : > { %1337 = vmatpush3.bf16.xpose.msra.mxu1 %v590_v31  ;;  %1338 = vmatprep.mubr.msk.bf16.mxu1 %vm1815_vm0, %v1814_v0 }
 0x2fb   : > { %1348 = vmatprep.subr.bf16.mxu1 %v1814_v0 }
 0x301   : > { %1339 = vmatmul.mubr.msk.bf16.vlgmr.msra.gmra.mrb[4].mxu1 %vm456_vm1, %v583_v30 }
 0x302   : > { %1349 = vmatpush3.bf16.xpose.msra.mxu1 %v724_v34  ;;  %1350 = vmatprep.mubr.msk.bf16.mxu1 %vm1815_vm0, %v1814_v0 }
 0x303   : > { %1360 = vmatprep.subr.bf16.mxu1 %v1814_v0 }
 0x309   : > { %1351 = vmatmul.mubr.msk.bf16.vlgmr.msra.gmra.mrb[8].mxu1 %vm456_vm1, %v717_v36 }
 0x30a   : > { %1361 = vmatpush3.bf16.xpose.msra.mxu1 %v858_v37  ;;  %1362 = vmatprep.mubr.msk.bf16.mxu1 %vm1815_vm0, %v1814_v0 }
 0x30b   : > { %1372 = vmatprep.subr.bf16.mxu1 %v1814_v0 }
 0x311   : > { %1363 = vmatmul.mubr.msk.bf16.vlgmr.msra.gmra.mrb[12].mxu1 %vm456_vm1, %v851_v38 }
 0x312   : > { %1376 = vmatprep.mubr.msk.bf16.mxu1 %vm1815_vm0, %v1814_v0 }
 0x3cc   : > { %v573_v39 = vpop.f32.mrb[0].mxu1 }
 0x3cd   : > { %580 = vst.msk [vmem:[#allocation2] sm:$0xff] %vm456_vm1, %v573_v39  ;;  %v1334_v40 = vpop.f32.mrb[1].mxu1 }
 0x3ce   : > { %v576_v41 = vpop.f32.mrb[2].mxu1 }
 0x3cf   : > { %581 = vst.msk [vmem:[#allocation2 + $0x8] sm:$0xff] %vm456_vm1, %v576_v41  ;;  %v1335_v42 = vpop.f32.mrb[3].mxu1 }
 0x3d4   : > { %v626_v43 = vpop.f32.mrb[4].mxu1 }
 0x3d5   : > { %v633_v44 = vmul.f32 0.35355338, %v626_v43  ;;  %v1340_v45 = vpop.f32.mrb[5].mxu1 }
 0x3d6   : > { %v629_v46 = vpop.f32.mrb[6].mxu1 }
 0x3d7   : > { %v634_v47 = vmul.f32 0.35355338, %v629_v46  ;;  %v1341_v48 = vpop.f32.mrb[7].mxu1  ;;  %v635_v49 = vsel %vm506_vm2, %v633_v44, -inf }
 0x3d8   : > { %636 = vmax.xlane.f32.xlu0 %v635_v49 }
 0x3d9   : > { %v638_v50 = vsel %vm506_vm2, %v634_v47, -inf }
 0x3da   : > { %639 = vmax.xlane.f32.xlu1 %v638_v50 }
 0x3dc   : > { %v760_v51 = vpop.f32.mrb[8].mxu1 }
 0x3dd   : > { %v767_v52 = vmul.f32 0.35355338, %v760_v51  ;;  %v1352_v53 = vpop.f32.mrb[9].mxu1 }
 0x3de   : > { %v763_v54 = vpop.f32.mrb[10].mxu1 }
 0x3df   : > { %v768_v55 = vmul.f32 0.35355338, %v763_v54  ;;  %v1353_v56 = vpop.f32.mrb[11].mxu1  ;;  %v769_v57 = vsel %vm506_vm2, %v767_v52, -inf }
 0x3e0   : > { %770 = vmax.xlane.f32.xlu0 %v769_v57 }
 0x3e1   : > { %v772_v58 = vsel %vm506_vm2, %v768_v55, -inf }
 0x3e4   : > { %773 = vmax.xlane.f32.xlu0 %v772_v58  ;;  %v894_v59 = vpop.f32.mrb[12].mxu1 }
 0x3e5   : > { %v901_v60 = vmul.f32 0.35355338, %v894_v59  ;;  %v1364_v61 = vpop.f32.mrb[13].mxu1 }
 0x3e6   : > { %v897_v62 = vpop.f32.mrb[14].mxu1 }
 0x3e7   : > { %v902_v63 = vmul.f32 0.35355338, %v897_v62  ;;  %v903_v1 = vsel %vm506_vm2, %v901_v60, -inf  ;;  %v1365_v2 = vpop.f32.mrb[15].mxu1 }
 0x3e8   : > { %904 = vmax.xlane.f32.xlu0 %v903_v1 }
 0x3e9   : > { %v906_v3 = vsel %vm506_vm2, %v902_v63, -inf }
 0x3ea   : > { %907 = vmax.xlane.f32.xlu1 %v906_v3  ;;  %v1494_v3 = vld [vmem:[#allocation11] sm:$0xff]  }
 0x3eb   : > { %1373 = vmatpush3.bf16.msra.mxu1 %v1494_v3 }
 0x3ec   : > { %1374 = vmatprep.subr.bf16.mxu1 %v1814_v0 }
 0x465   : > { %v637_v4 = vpop.xlane.xlu0 %636 }
 0x466   : > { %v641_v5 = vsub.f32 %v633_v44, %v637_v4  ;;  %v1495_v4 = vld [vmem:[#allocation11 + $0x8] sm:$0xff]  }
 0x467   : > { %v640_v6 = vpop.xlane.xlu1 %639  ;;  %1375 = vmatpush3.bf16.msra.mxu1 %v1495_v4 }
 0x468   : > { %v643_v7 = vmul.f32 1.442695, %v641_v5  ;;  %v642_v8 = vsub.f32 %v634_v47, %v640_v6 }
 0x46a   : > { %1504 = vpow2.f32 %v643_v7  ;;  %v645_v9 = vmul.f32 1.442695, %v642_v8 }
 0x46c   : > { %1506 = vpow2.f32 %v645_v9 }
 0x46d   : > { %v771_v10 = vpop.xlane.xlu0 %770 }
 0x46e   : > { %v775_v11 = vsub.f32 %v767_v52, %v771_v10 }
 0x470   : > { %v777_v12 = vmul.f32 1.442695, %v775_v11 }
 0x471   : > { %v774_v13 = vpop.xlane.xlu0 %773 }
 0x472   : > { %1508 = vpow2.f32 %v777_v12  ;;  %v776_v14 = vsub.f32 %v768_v55, %v774_v13 }
 0x474   : > { %v1505_v15 = vpop.eup %1504  ;;  %v779_v16 = vmul.f32 1.442695, %v776_v14 }
 0x475   : > { %v905_v17 = vpop.xlane.xlu0 %904  ;;  %v647_v18 = vsel %vm506_vm2, %v1505_v15, 0.0 }
 0x476   : > { %v1507_v19 = vpop.eup %1506  ;;  %1510 = vpow2.f32 %v779_v16  ;;  %v909_v20 = vsub.f32 %v901_v60, %v905_v17  ;;  %648 = vadd.xlane.f32.xlu0 %v647_v18  ;;  %v984_v17 = vld [vmem:[%s2179_s28] sm:$0xff] }
 0x477   : > { %v650_v21 = vsel %vm506_vm2, %v1507_v19, 0.0  ;;  %v908_v30 = vpop.xlane.xlu1 %907  ;;  %v1291_v18 = vld [vmem:[#allocation12] ss:$0 sm:$0xff] }
 0x478   : > { %v911_v23 = vmul.f32 1.442695, %v909_v20  ;;  %651 = vadd.xlane.f32.xlu1 %v650_v21  ;;  %v910_v31 = vsub.f32 %v902_v63, %v908_v30  ;;  %v993_v20 = vadd.f32 %v1291_v18, %v984_v17 }
 0x47a   : > { %1512 = vpow2.f32 %v911_v23  ;;  %v913_v32 = vmul.f32 1.442695, %v910_v31 }
 0x47c   : > { %v1509_v24 = vpop.eup %1508  ;;  %1514 = vpow2.f32 %v913_v32 }
 0x47d   : > { %v781_v25 = vsel %vm506_vm2, %v1509_v24, 0.0 }
 0x47e   : > { %782 = vadd.xlane.f32.xlu0 %v781_v25 }
 0x480   : > { %v1511_v26 = vpop.eup %1510 }
 0x481   : > { %v784_v27 = vsel %vm506_vm2, %v1511_v26, 0.0 }
 0x482   : > { %785 = vadd.xlane.f32.xlu1 %v784_v27 }
 0x484   : > { %v1513_v28 = vpop.eup %1512 }
 0x485   : > { %v915_v29 = vsel %vm506_vm2, %v1513_v28, 0.0 }
 0x486   : > { %916 = vadd.xlane.f32.xlu0 %v915_v29  ;;  %v1515_v33 = vpop.eup %1514 }
 0x487   : > { %v918_v34 = vsel %vm506_vm2, %v1515_v33, 0.0 }
 0x493   : > { %792 = vrot.lane.b32.xlu1 %v2227_v22, %s1818_s13 }
 0x49c   : > { %658 = vrot.lane.b32.xlu0 %v2227_v22, %s1816_s27 }
 0x4b7   : > { %919 = vadd.xlane.f32.xlu1 %v918_v34 }
 0x4c8   : > { %926 = vrot.lane.b32.xlu1 %v2227_v22, %s1817_s7 }
 0x503   : > { %v649_v36 = vpop.xlane.xlu0 %648 }
 0x505   : > { %v652_v35 = vpop.xlane.xlu1 %651 }
 0x506   : > { %1516 = vrcp.f32 %v652_v35 }
 0x507   : > { %1518 = vrcp.f32 %v649_v36 }
 0x50b   : > { %v783_v37 = vpop.xlane.xlu0 %782 }
 0x50f   : > { %v786_v38 = vpop.xlane.xlu1 %785 }
 0x510   : > { %1520 = vrcp.f32 %v786_v38  ;;  %v1517_v39 = vpop.eup %1516 }
 0x511   : > { %1522 = vrcp.f32 %v783_v37  ;;  %v1519_v41 = vpop.eup %1518  ;;  %v656_v42 = vmul.f32 %v1517_v39, %v1507_v19  ;;  %v985_v19 = vld [vmem:[%s2179_s28 + $0x8] sm:$0xff]  ;;  %s1064_s28 = scalar_lea.sflag [#allocation5], %s2173_s12 }
 0x512   : > { %v655_v43 = vmul.f32 %v1519_v41, %v1505_v15  ;;  %v994_v21 = vadd.f32 %v1291_v18, %v985_v19 }
 0x513   : > { %v917_v40 = vpop.xlane.xlu0 %916  ;;  %v793_v22 = vpop.permute.xlu1 %792 }
 0x514   : > { %v657_v45 = vpack.c.bf16 %v656_v42, %v655_v43  ;;  %1524 = vrcp.f32 %v917_v40 }
 0x517   : > { %v659_v44 = vpop.permute.xlu0 %658 }
 0x518   : > { %1343 = vmatpush3.bf16.msra.mxu0 %v659_v44 }
 0x519   : > { %1354 = vmatprep.subr.bf16.mxu0 %v1814_v0 }
 0x51a   : > { %v1521_v46 = vpop.eup %1520 }
 0x51b   : > { %1345 = vmatmul.mubr.msk.bf16.vlgmr.msra.gmra.mrb[4].mxu0 %vm506_vm2, %v657_v45  ;;  %v1523_v47 = vpop.eup %1522  ;;  %v790_v48 = vmul.f32 %v1521_v46, %v1511_v26 }
 0x51c   : > { %1355 = vmatpush3.bf16.msra.mxu0 %v793_v22  ;;  %1356 = vmatprep.mubr.msk.bf16.mxu0 %vm1815_vm0, %v1814_v0  ;;  %v789_v49 = vmul.f32 %v1523_v47, %v1509_v24 }
 0x51d   : > { %1366 = vmatprep.subr.bf16.mxu0 %v1814_v0 }
 0x51e   : > { %v791_v50 = vpack.c.bf16 %v790_v48, %v789_v49  ;;  %v1525_v53 = vpop.eup %1524 }
 0x51f   : > { %v923_v55 = vmul.f32 %v1525_v53, %v1513_v28 }
 0x523   : > { %1357 = vmatmul.mubr.msk.bf16.vlgmr.msra.gmra.mrb[8].mxu0 %vm506_vm2, %v791_v50 }
 0x524   : > { %1368 = vmatprep.mubr.msk.bf16.mxu0 %vm1815_vm0, %v1814_v0 }
 0x544   : > { %v920_v51 = vpop.xlane.xlu1 %919 }
 0x545   : > { %1526 = vrcp.f32 %v920_v51 }
 0x548   : > { %v927_v52 = vpop.permute.xlu1 %926 }
 0x549   : > { %1367 = vmatpush3.bf16.msra.mxu0 %v927_v52 }
 0x54f   : > { %v1527_v54 = vpop.eup %1526 }
 0x550   : > { %v924_v56 = vmul.f32 %v1527_v54, %v1515_v33 }
 0x552   : > { %v925_v57 = vpack.c.bf16 %v924_v56, %v923_v55 }
 0x554   : > { %1369 = vmatmul.mubr.msk.bf16.vlgmr.msra.gmra.mrb[12].mxu0 %vm506_vm2, %v925_v57 }
 0x5ee   : > { %v698_v58 = vpop.f32.mrb[4].mxu0 }
 0x5ef   : > { %707 = vrot.lane.b32.xlu1 %v698_v58, %s1819_s29  ;;  %v1346_v59 = vpop.f32.mrb[5].mxu0 }
 0x5f0   : > { %v701_v60 = vpop.f32.mrb[6].mxu0 }
 0x5f1   : > { %709 = vrot.lane.b32.xlu0 %v701_v60, %s1819_s29  ;;  %v1347_v61 = vpop.f32.mrb[7].mxu0 }
 0x5f6   : > { %v832_v62 = vpop.f32.mrb[8].mxu0 }
 0x5f7   : > { %841 = vrot.lane.b32.xlu1 %v832_v62, %s1820_s18  ;;  %v1358_v63 = vpop.f32.mrb[9].mxu0 }
 0x5f8   : > { %v835_v1 = vpop.f32.mrb[10].mxu0 }
 0x5f9   : > { %843 = vrot.lane.b32.xlu0 %v835_v1, %s1820_s18  ;;  %v1359_v2 = vpop.f32.mrb[11].mxu0 }
 0x627   : > { %v966_v5 = vpop.f32.mrb[12].mxu0 }
 0x628   : > { %975 = vrot.lane.b32.xlu1 %v966_v5, %s1821_s23  ;;  %v1370_v6 = vpop.f32.mrb[13].mxu0 }
 0x629   : > { %v969_v7 = vpop.f32.mrb[14].mxu0 }
 0x62a   : > { %977 = vrot.lane.b32.xlu0 %v969_v7, %s1821_s23  ;;  %v1371_v8 = vpop.f32.mrb[15].mxu0 }
 0x661   : > { %v708_v9 = vpop.permute.xlu1 %707 }
 0x662   : > { %714 = vst.msk [vmem:[#allocation2] sm:$0xff] %vm713_vm3, %v708_v9 }
 0x663   : > { %v710_v10 = vpop.permute.xlu0 %709 }
 0x664   : > { %715 = vst.msk [vmem:[#allocation2 + $0x8] sm:$0xff] %vm713_vm3, %v710_v10 }
 0x669   : > { %v842_v11 = vpop.permute.xlu1 %841 }
 0x66a   : > { %848 = vst.msk [vmem:[#allocation2] sm:$0xff] %vm847_vm4, %v842_v11 }
 0x66b   : > { %v844_v12 = vpop.permute.xlu0 %843 }
 0x66c   : > { %849 = vst.msk [vmem:[#allocation2 + $0x8] sm:$0xff] %vm847_vm4, %v844_v12 }
 0x69a   : > { %v976_v0 = vpop.permute.xlu1 %975 }
 0x69b   : > { %982 = vst.msk [vmem:[#allocation2] sm:$0xff] %vm981_vm5, %v976_v0 }
 0x69c   : > { %v978_v13 = vpop.permute.xlu0 %977 }
 0x69d   : > { %983 = vst.msk [vmem:[#allocation2 + $0x8] sm:$0xff] %vm981_vm5, %v978_v13 }
 0x6a2   : > { %v995_v14 = vld [vmem:[#allocation2] sm:$0xff] }
 0x6a4   : > { %v996_v15 = vld [vmem:[#allocation2 + $0x8] sm:$0xff] }
 0x6a5   : > { %v997_v16 = vpack.c.bf16 %v996_v15, %v995_v14 }
 0x6a7   : > { %1377 = vmatmul.mubr.msk.bf16.vlgmr.msra.gmra.mrb[16].mxu1 %vm1014_vm6, %v997_v16 }
 0x77a   : > { %v1052_v23 = vpop.f32.mrb[16].mxu1 }
 0x77b   : > { %v1059_v24 = vadd.f32 %v1052_v23, %v993_v20  ;;  %v1378_v25 = vpop.f32.mrb[17].mxu1 }
 0x77c   : > { %v1055_v26 = vpop.f32.mrb[18].mxu1 }
 0x77d   : > { %1061 = vst.msk [vmem:[%s435_s1] sm:$0xff] %vm1014_vm6, %v1059_v24  ;;  %v1060_v27 = vadd.f32 %v1055_v26, %v994_v21  ;;  %v1379_v28 = vpop.f32.mrb[19].mxu1 }
 0x77f   : > { %1062 = vst.msk [vmem:[%s435_s1 + $0x8] sm:$0xff] %vm1014_vm6, %v1060_v27 }
 0x780   : > { %1717 = shalt.err (!%p1714_p0)
}
 0x781   : > { %s1718_s15 = scalar_lea.hbm %s2297_s24, 256  ;;  %s1722_s27 = scalar_lea.hbm %s2417_s6, 512 }
 0x782   : > { %p1719_p9 = scmp.ne.s32.totalorder %s2297_s24, %s1718_s15  ;;  %p1723_p7 = scmp.lt.u32.totalorder %s2297_s24, %s2417_s6 }
 0x783   : > { %p1724_p2 = scmp.lt.u32.totalorder %s1722_s27, %s1718_s15  ;;  %p1726_p6 = scmp.lt.u32.totalorder %s1718_s15, %s2297_s24 }
 0x784   : > { %p1720_p1 = pnand %p1719_p9, %p2418_p11 }
 0x785   : > { %p1725_p13 = por %p1724_p2, %p1723_p7 }
 0x786   : > { %p1721_p10 = pneg %p1720_p1 }
 0x787   : > { %p1727_p8 = por %p1726_p6, %p1725_p13 }
 0x789   : > { %p1728_p5 = pnand %p1727_p8, %p1721_p10 }
 0x78b   : > { %1731 = shalt.err (!%p1728_p5)
}
 0x78c   : > { %s1823_s18 = smov 128  }
 0x78d   : > { %1396 = dma.vmem_to_hbm [thread:$0]  (%p2418_p11), %s2291_s11, 256, %s2297_s24, %s1064_s28, %s1823_s18, %s1823_s18, %s1819_s29  }
 0x78e PF: > { %s2419_s23 = sld [smem:[#allocation21_spill]]  ;;  %s2420_s21 = sld [smem:[#allocation25_spill]] }
 0x78f   : > { %p2422_p12 = scmp.ge.s32.totalorder %s1802_s26, 2 }
 0x794   : > { %s1094_s1 = sand.u32 1, %s2419_s23   ;;  %p2421_p3 = scmp.ne.s32.totalorder %s2420_s21, 0 }
 0x795   : > { %s1095_s20 = scalar_lea.sflag [#allocation5], %s1094_s1 }
 0x796   : > { %p1419_p4 = pnand %p2422_p12, %p2421_p3 }
 0x798   : > { %1777 = dma.done.wait (!%p1419_p4), %s1095_s20, 256  }
 0x799   : > { %1779 = vsyncadd (!%p1419_p4), %s1095_s20, 4294967040  ;;  %s29_s26 = sadd.s32 1, %s1802_s26   ;;  %s2423_s9 = sld [smem:[#allocation22_spill]] }
 0x79a   : > { %p26_p0 = scmp.ge.s32.totalorder %s29_s26, 4   ;;  %s2424_s23 = sld [smem:[#allocation27_spill]] }
 0x79b   : > { %s2425_s12 = sld [smem:[#allocation26_spill]]  ;;  %s2426_s21 = smov %s1786_s22 }
 0x79c   : > { %s2428_s24 = smov %s1798_s25  ;;  %28 = sbr.rel (!%p26_p0) target bundleno = 15 (0xf), region = 134 }
 0x79f   : > { %s2427_s22 = smov %s2423_s9 }
 0x7a1   : > { %s2429_s25 = smov %s2425_s12 }
 0x7a3   :  { %1100 = vsyncpa [#allocation4], 1 }
 0x7a4   :  { %1102 = vsyncpa [#allocation4 + $0x1], 1 }
 0x7a5   :  { %1103 = vsyncpa [#allocation7], 1 }
 0x7a6   :  { %1105 = vsyncpa [#allocation7 + $0x1], 1 }
 0x7a7   :  { %1106 = vsyncpa [#allocation10], 1 }
 0x7a8   :  { %1108 = vsyncpa [#allocation10 + $0x1], 1 }
 0x7a9   :  { %1109 = vsyncpa [#allocation13], 1 }
 0x7aa   :  { %1110 = vsyncpa [#allocation5], 1 }
 0x7ab   :  { %1112 = vsyncpa [#allocation5 + $0x1], 1 }

// kernel: decoder_forward.6
= control target key start
LH: loop header
LB: loop body
LE: loop exit
PB: predicated region body
PF: predicated region fallthrough
CT: control target
= control target key end

     0   :  { %s3911_s0 = inlined_call_operand.hbm [shape: f32[2,16,32], index: 0, kind: input, shape index: {}]   ;;  %s3912_s1 = inlined_call_operand.hbm [shape: f32[2,16,32], index: 1, kind: input, shape index: {}]   ;;  %s3913_s2 = inlined_call_operand.hbm [shape: f32[1,32], index: 2, kind: input, shape index: {}]   ;;  %s3914_s3 = inlined_call_operand.hbm [shape: f32[1,32], index: 3, kind: input, shape index: {}]   ;;  %s3915_s4 = inlined_call_operand.hbm [shape: f32[1,32], index: 4, kind: input, shape index: {}]   ;;  %s3916_s5 = inlined_call_operand.hbm [shape: f32[1,32], index: 5, kind: input, shape index: {}]   ;;  %s3917_s6 = inlined_call_operand.hbm [shape: bf16[32,32], index: 6, kind: input, shape index: {}]   ;;  %s3918_s7 = inlined_call_operand.hbm [shape: bf16[32,32], index: 7, kind: input, shape index: {}]   ;;  %s3919_s8 = inlined_call_operand.hbm [shape: bf16[32,32], index: 8, kind: input, shape index: {}]   ;;  %s3920_s9 = inlined_call_operand.hbm [shape: bf16[32,4], index: 9, kind: input, shape index: {}]   ;;  %s3921_s10 = inlined_call_operand.hbm [shape: bf16[4,32], index: 10, kind: input, shape index: {}]   ;;  %s3922_s11 = inlined_call_operand.hbm [shape: bf16[8,32], index: 11, kind: input, shape index: {}]   ;;  %s3923_s12 = inlined_call_operand.hbm [shape: bf16[32,8], index: 12, kind: input, shape index: {}]   ;;  %s3924_s13 = inlined_call_operand.hbm [shape: bf16[2,4,16,8], index: 13, kind: output, shape index: {}]  }
   0x1   :  { %3934 = sst [smem:[#allocation35_spill]] %s3911_s0 }
   0x2   :  { %3935 = sst [smem:[#allocation36_spill]] %s3912_s1 }
   0x3   :  { %3936 = sst [smem:[#allocation37_spill]] %s3913_s2 }
   0x4   :  { %3937 = sst [smem:[#allocation38_spill]] %s3914_s3 }
   0x5   :  { %3938 = sst [smem:[#allocation39_spill]] %s3915_s4 }
   0x6   :  { %3939 = sst [smem:[#allocation40_spill]] %s3916_s5 }
   0x7   :  { %3940 = sst [smem:[#allocation41_spill]] %s3917_s6 }
   0x8   :  { %3941 = sst [smem:[#allocation42_spill]] %s3918_s7 }
   0x9   :  { %3942 = sst [smem:[#allocation43_spill]] %s3919_s8 }
   0xa   :  { %3943 = sst [smem:[#allocation44_spill]] %s3920_s9 }
   0xb   :  { %3944 = sst [smem:[#allocation45_spill]] %s3924_s13 }
   0xc   :  { %18 = vsyncpa [#allocation3], 0 }
   0xd   :  { %20 = vsyncpa [#allocation3 + $0x1], 0 }
   0xe   :  { %21 = vsyncpa [#allocation6], 0 }
   0xf   :  { %23 = vsyncpa [#allocation6 + $0x1], 0 }
  0x10   :  { %24 = vsyncpa [#allocation9], 0 }
  0x11   :  { %25 = vsyncpa [#allocation12], 0 }
  0x12   :  { %26 = vsyncpa [#allocation15], 0 }
  0x13   :  { %27 = vsyncpa [#allocation18], 0 }
  0x14   :  { %28 = vsyncpa [#allocation21], 0 }
  0x15   :  { %29 = vsyncpa [#allocation4], 0 }
  0x16   :  { %31 = vsyncpa [#allocation4 + $0x1], 0  ;;  %s3200_s25 = smov 0   ;;  %s3202_s26 = smov 0  }
  0x17   :  { %s3204_s27 = smov 0   ;;  %s3206_s28 = smov 0  }
  0x18   :  { %s3208_s29 = smov 0   ;;  %s3210_s30 = smov 0  }
  0x19 LB: > { %3945 = sst [smem:[#allocation33_spill]] %s3095_s28  ;;  %s3231_s14 = sadd.s32 4294967295, %s3103_s30   ;;  %s3103_s30 = sphi %s3210_s30, %s37_s30   ;;  %s3099_s29 = sphi %s3208_s29, %s3990_s29   ;;  %s3095_s28 = sphi %s3206_s28, %s3989_s28   ;;  %s3091_s27 = sphi %s3204_s27, %s3988_s27   ;;  %s3087_s26 = sphi %s3202_s26, %s3987_s26   ;;  %s3083_s25 = sphi %s3200_s25, %s3986_s25  }
  0x1a   : > { %p2104_p0 = scmp.ge.s32.totalorder %s3103_s30, 1  ;;  %p3927_p1 = scmp.eq.s32.totalorder %s3231_s14, 0 }
  0x1b   : > { %p369_p2 = scmp.lt.s32.totalorder %s3103_s30, 3  ;;  %s3105_s16 = smov [#allocation7]  }
  0x1c   : > { %s382_s17 = sshll.u32 %s3105_s16, 4  ;;  %s3106_s18 = smov [#allocation8]   ;;  %s383_s17 = int_to_ptr.vmem [resolvable:$true] %s382_s17 }
  0x1d   : > { %p3236_p3 = pnand %p2104_p0, %p369_p2  ;;  %s393_s19 = sshll.u32 %s3106_s18, 4  ;;  %s3249_s19 = int_to_ptr.vmem [resolvable:$true] %s393_s19 }
  0x1e   : > { %s3107_s21 = smov [#allocation11]   ;;  %s3949_s2 = sld [smem:[#allocation37_spill]] }
  0x1f   : > { %s3946_s15 = scalar_select %p3236_p3, 1, 0 }
  0x20   : > { %p2436_p5 = pneg %p3236_p3  ;;  %s415_s22 = sshll.u32 %s3107_s21, 4  ;;  %s3251_s22 = int_to_ptr.vmem [resolvable:$true] %s415_s22 }
  0x21   : > { %3947 = sst [smem:[#allocation34_spill]] %s3946_s15 }
  0x22   : > { %p3245_p6 = pnand %p2436_p5, %p3927_p1 }
  0x24   : > { %s2625_s16 = scalar_lea.hbm %s3949_s2, 16  ;;  %p3261_p8 = pneg %p3245_p6 }
  0x25   : > { %p2626_p7 = scmp.ne.s32.totalorder %s3949_s2, %s2625_s16  ;;  %p2632_p11 = scmp.lt.u32.totalorder %s2625_s16, %s3949_s2 }
  0x27   : > { %p2628_p9 = pnand %p3261_p8, %p2626_p7 }
  0x29   : > { %p2629_p10 = pneg %p2628_p9 }
  0x2b   : > { %p2634_p12 = pnand %p2632_p11, %p2629_p10 }
  0x2d   : > { %2637 = shalt.err (!%p2634_p12)
}
  0x2e   : > { %s2638_s23 = scalar_lea.vmem %s383_s17, 16  ;;  %s2645_s13 = scalar_lea.vmem %s383_s17, 32 }
  0x2f   : > { %p2639_p13 = scmp.ne.s32.totalorder %s383_s17, %s2638_s23  ;;  %p2646_p5 = scmp.lt.s32.totalorder %s383_s17, %s383_s17 }
  0x30   : > { %p2647_p4 = scmp.lt.s32.totalorder %s2645_s13, %s2638_s23 }
  0x31   : > { %p2641_p0 = pnand %p2639_p13, %p3261_p8 }
  0x32   : > { %p2648_p1 = por %p2647_p4, %p2646_p5 }
  0x33   : > { %p2642_p2 = pneg %p2641_p0 }
  0x35   : > { %p2649_p3 = pnand %p2648_p1, %p2642_p2 }
  0x37   : > { %2652 = shalt.err (!%p2649_p3)
}
  0x38   : > { %2439 = dma.hbm_to_vmem [thread:$0]  (!%p3245_p6), %s3949_s2, 16, %s383_s17, [#allocation6]  }
  0x39   : > { %s3951_s3 = sld [smem:[#allocation38_spill]] }
  0x3f   : > { %s2653_s21 = scalar_lea.hbm %s3951_s3, 16 }
  0x40   : > { %p2654_p7 = scmp.ne.s32.totalorder %s3951_s3, %s2653_s21  ;;  %p2660_p1 = scmp.lt.u32.totalorder %s2653_s21, %s3951_s3 }
  0x42   : > { %p2656_p9 = pnand %p2654_p7, %p3261_p8 }
  0x44   : > { %p2657_p4 = pneg %p2656_p9 }
  0x46   : > { %p2662_p3 = pnand %p2660_p1, %p2657_p4 }
  0x48   : > { %2665 = shalt.err (!%p2662_p3)
}
  0x49   : > { %s2666_s17 = scalar_lea.vmem %s3249_s19, 16  ;;  %s2673_s0 = scalar_lea.vmem %s3249_s19, 32 }
  0x4a   : > { %p2667_p10 = scmp.ne.s32.totalorder %s3249_s19, %s2666_s17  ;;  %p2674_p13 = scmp.lt.s32.totalorder %s3249_s19, %s3249_s19 }
  0x4b   : > { %p2675_p0 = scmp.lt.s32.totalorder %s2673_s0, %s2666_s17 }
  0x4c   : > { %p2669_p11 = pnand %p2667_p10, %p3261_p8 }
  0x4d   : > { %p2676_p2 = por %p2675_p0, %p2674_p13 }
  0x4e   : > { %p2670_p12 = pneg %p2669_p11 }
  0x50   : > { %p2677_p5 = pnand %p2676_p2, %p2670_p12 }
  0x52   : > { %2680 = shalt.err (!%p2677_p5)
}
  0x53   : > { %2442 = dma.hbm_to_vmem [thread:$0]  (!%p3245_p6), %s3951_s3, 16, %s3249_s19, [#allocation9]  }
  0x54   : > { %s3952_s5 = sld [smem:[#allocation40_spill]] }
  0x5a   : > { %s2681_s16 = scalar_lea.hbm %s3952_s5, 16 }
  0x5b   : > { %p2682_p7 = scmp.ne.s32.totalorder %s3952_s5, %s2681_s16  ;;  %p2688_p1 = scmp.lt.u32.totalorder %s2681_s16, %s3952_s5 }
  0x5d   : > { %p2684_p9 = pnand %p2682_p7, %p3261_p8 }
  0x5f   : > { %p2685_p4 = pneg %p2684_p9 }
  0x61   : > { %p2690_p3 = pnand %p2688_p1, %p2685_p4 }
  0x63   : > { %2693 = shalt.err (!%p2690_p3)
}
  0x64   : > { %s2694_s19 = scalar_lea.vmem %s3251_s22, 16  ;;  %s2701_s0 = scalar_lea.vmem %s3251_s22, 32 }
  0x65   : > { %p2695_p10 = scmp.ne.s32.totalorder %s3251_s22, %s2694_s19  ;;  %p2702_p13 = scmp.lt.s32.totalorder %s3251_s22, %s3251_s22 }
  0x66   : > { %p2703_p0 = scmp.lt.s32.totalorder %s2701_s0, %s2694_s19 }
  0x67   : > { %p2697_p11 = pnand %p2695_p10, %p3261_p8 }
  0x68   : > { %p2704_p2 = por %p2703_p0, %p2702_p13 }
  0x69   : > { %p2698_p12 = pneg %p2697_p11 }
  0x6b   : > { %p2705_p5 = pnand %p2704_p2, %p2698_p12 }
  0x6d   : > { %2708 = shalt.err (!%p2705_p5)
}
  0x6e   : > { %2448 = dma.hbm_to_vmem [thread:$0]  (!%p3245_p6), %s3952_s5, 16, %s3251_s22, [#allocation12]  }
  0x6f   : > { %s3108_s24 = smov [#allocation14]   ;;  %s3109_s16 = smov [#allocation17]  }
  0x70   : > { %s438_s15 = sshll.u32 %s3108_s24, 4  ;;  %s464_s21 = sshll.u32 %s3109_s16, 4  ;;  %s439_s15 = int_to_ptr.vmem [resolvable:$true] %s438_s15  ;;  %s465_s21 = int_to_ptr.vmem [resolvable:$true] %s464_s21 }
  0x71   : > { %s3953_s7 = sld [smem:[#allocation42_spill]] }
  0x77   : > { %s2709_s17 = scalar_lea.hbm %s3953_s7, 256 }
  0x78   : > { %p2710_p7 = scmp.ne.s32.totalorder %s3953_s7, %s2709_s17  ;;  %p2716_p1 = scmp.lt.u32.totalorder %s2709_s17, %s3953_s7 }
  0x7a   : > { %p2712_p9 = pnand %p2710_p7, %p3261_p8 }
  0x7c   : > { %p2713_p4 = pneg %p2712_p9 }
  0x7e   : > { %p2718_p3 = pnand %p2716_p1, %p2713_p4 }
  0x80   : > { %2721 = shalt.err (!%p2718_p3)
}
  0x81   : > { %s2722_s22 = scalar_lea.vmem %s439_s15, 256  ;;  %p2730_p13 = scmp.lt.s32.totalorder %s439_s15, %s439_s15 }
  0x82   : > { %p2723_p10 = scmp.ne.s32.totalorder %s439_s15, %s2722_s22  ;;  %p2731_p0 = scmp.lt.s32.totalorder %s2722_s22, %s2722_s22 }
  0x84   : > { %p2725_p11 = pnand %p2723_p10, %p3261_p8  ;;  %p2732_p2 = por %p2731_p0, %p2730_p13 }
  0x86   : > { %p2726_p12 = pneg %p2725_p11 }
  0x88   : > { %p2733_p5 = pnand %p2732_p2, %p2726_p12 }
  0x8a   : > { %2736 = shalt.err (!%p2733_p5)
}
  0x8b   : > { %s3110_s28 = smov 64   ;;  %s3111_s24 = smov 4  }
  0x8c   : > { %2454 = dma.hbm_to_vmem [thread:$0]  (!%p3245_p6), %s3953_s7, 256, %s439_s15, [#allocation15], %s3110_s28, %s3110_s28, %s3111_s24  }
  0x8d   : > { %s3954_s9 = sld [smem:[#allocation44_spill]] }
  0x93   : > { %s2737_s17 = scalar_lea.hbm %s3954_s9, 256 }
  0x94   : > { %p2738_p7 = scmp.ne.s32.totalorder %s3954_s9, %s2737_s17  ;;  %p2744_p1 = scmp.lt.u32.totalorder %s2737_s17, %s3954_s9 }
  0x96   : > { %p2740_p9 = pnand %p2738_p7, %p3261_p8 }
  0x98   : > { %p2741_p4 = pneg %p2740_p9 }
  0x9a   : > { %p2746_p3 = pnand %p2744_p1, %p2741_p4 }
  0x9c   : > { %2749 = shalt.err (!%p2746_p3)
}
  0x9d   : > { %s2750_s2 = scalar_lea.vmem %s465_s21, 256  ;;  %p2758_p13 = scmp.lt.s32.totalorder %s465_s21, %s465_s21 }
  0x9e   : > { %p2751_p10 = scmp.ne.s32.totalorder %s465_s21, %s2750_s2  ;;  %p2759_p0 = scmp.lt.s32.totalorder %s2750_s2, %s2750_s2 }
  0xa0   : > { %p2753_p11 = pnand %p2751_p10, %p3261_p8  ;;  %p2760_p2 = por %p2759_p0, %p2758_p13 }
  0xa2   : > { %p2754_p12 = pneg %p2753_p11 }
  0xa4   : > { %p2761_p5 = pnand %p2760_p2, %p2754_p12 }
  0xa6   : > { %2764 = shalt.err (!%p2761_p5)
}
  0xa7   : > { %2460 = dma.hbm_to_vmem [thread:$0]  (!%p3245_p6), %s3954_s9, 256, %s465_s21, [#allocation18], %s3110_s28, %s3110_s28, %s3111_s24  }
  0xa8   : > { %s3112_s23 = smov [#allocation20]   ;;  %s3113_s17 = smov [#allocation10]  }
  0xa9   : > { %s489_s13 = sshll.u32 %s3112_s23, 4  ;;  %s404_s19 = sshll.u32 %s3113_s17, 4  ;;  %s490_s13 = int_to_ptr.vmem [resolvable:$true] %s489_s13  ;;  %s405_s19 = int_to_ptr.vmem [resolvable:$true] %s404_s19 }
  0xaa   : > { %s2765_s22 = scalar_lea.hbm %s3922_s11, 64 }
  0xab   : > { %p2766_p7 = scmp.ne.s32.totalorder %s3922_s11, %s2765_s22  ;;  %p2772_p1 = scmp.lt.u32.totalorder %s2765_s22, %s3922_s11 }
  0xad   : > { %p2768_p9 = pnand %p2766_p7, %p3261_p8 }
  0xaf   : > { %p2769_p4 = pneg %p2768_p9 }
  0xb1   : > { %p2774_p3 = pnand %p2772_p1, %p2769_p4 }
  0xb3   : > { %2777 = shalt.err (!%p2774_p3)
}
  0xb4   : > { %s2778_s21 = scalar_lea.vmem %s490_s13, 64  ;;  %p2786_p13 = scmp.lt.s32.totalorder %s490_s13, %s490_s13 }
  0xb5   : > { %p2779_p10 = scmp.ne.s32.totalorder %s490_s13, %s2778_s21  ;;  %p2787_p0 = scmp.lt.s32.totalorder %s2778_s21, %s2778_s21 }
  0xb7   : > { %p2781_p11 = pnand %p2779_p10, %p3261_p8  ;;  %p2788_p2 = por %p2787_p0, %p2786_p13 }
  0xb9   : > { %p2782_p12 = pneg %p2781_p11 }
  0xbb   : > { %p2789_p5 = pnand %p2788_p2, %p2782_p12 }
  0xbd   : > { %2792 = shalt.err (!%p2789_p5)
}
  0xbe   : > { %2466 = dma.hbm_to_vmem [thread:$0]  (!%p3245_p6), %s3922_s11, 64, %s490_s13, [#allocation21]  }
  0xbf   : > { %s3955_s4 = sld [smem:[#allocation39_spill]] }
  0xc5   : > { %s2793_s17 = scalar_lea.hbm %s3955_s4, 16 }
  0xc6   : > { %p2794_p7 = scmp.ne.s32.totalorder %s3955_s4, %s2793_s17  ;;  %p2800_p1 = scmp.lt.u32.totalorder %s2793_s17, %s3955_s4 }
  0xc8   : > { %p2796_p9 = pnand %p2794_p7, %p3261_p8 }
  0xca   : > { %p2797_p4 = pneg %p2796_p9 }
  0xcc   : > { %p2802_p3 = pnand %p2800_p1, %p2797_p4 }
  0xce   : > { %2805 = shalt.err (!%p2802_p3)
}
  0xcf   : > { %s2806_s15 = scalar_lea.vmem %s405_s19, 16  ;;  %s2813_s13 = scalar_lea.vmem %s405_s19, 32 }
  0xd0   : > { %p2807_p10 = scmp.ne.s32.totalorder %s405_s19, %s2806_s15  ;;  %p2814_p13 = scmp.lt.s32.totalorder %s405_s19, %s405_s19 }
  0xd1   : > { %p2815_p0 = scmp.lt.s32.totalorder %s2813_s13, %s2806_s15 }
  0xd2   : > { %p2809_p11 = pnand %p2807_p10, %p3261_p8 }
  0xd3   : > { %p2816_p2 = por %p2815_p0, %p2814_p13 }
  0xd4   : > { %p2810_p12 = pneg %p2809_p11 }
  0xd6   : > { %p2817_p5 = pnand %p2816_p2, %p2810_p12 }
  0xd8   : > { %2820 = shalt.err (!%p2817_p5)
}
  0xd9   : > { %2445 = dma.hbm_to_vmem [thread:$0]  (!%p3245_p6), %s3955_s4, 16, %s405_s19, [#allocation9]  }
  0xda   : > { %s3114_s16 = smov [#allocation13]   ;;  %s3115_s23 = smov [#allocation16]  }
  0xdb   : > { %s425_s5 = sshll.u32 %s3114_s16, 4  ;;  %s451_s17 = sshll.u32 %s3115_s23, 4  ;;  %s426_s5 = int_to_ptr.vmem [resolvable:$true] %s425_s5  ;;  %s452_s17 = int_to_ptr.vmem [resolvable:$true] %s451_s17 }
  0xdc   : > { %s3956_s6 = sld [smem:[#allocation41_spill]] }
  0xe2   : > { %s2821_s22 = scalar_lea.hbm %s3956_s6, 256 }
  0xe3   : > { %p2822_p7 = scmp.ne.s32.totalorder %s3956_s6, %s2821_s22  ;;  %p2828_p1 = scmp.lt.u32.totalorder %s2821_s22, %s3956_s6 }
  0xe5   : > { %p2824_p9 = pnand %p2822_p7, %p3261_p8 }
  0xe7   : > { %p2825_p4 = pneg %p2824_p9 }
  0xe9   : > { %p2830_p3 = pnand %p2828_p1, %p2825_p4 }
  0xeb   : > { %2833 = shalt.err (!%p2830_p3)
}
  0xec   : > { %s2834_s19 = scalar_lea.vmem %s426_s5, 256  ;;  %p2842_p13 = scmp.lt.s32.totalorder %s426_s5, %s426_s5 }
  0xed   : > { %p2835_p10 = scmp.ne.s32.totalorder %s426_s5, %s2834_s19  ;;  %p2843_p0 = scmp.lt.s32.totalorder %s2834_s19, %s2834_s19 }
  0xef   : > { %p2837_p11 = pnand %p2835_p10, %p3261_p8  ;;  %p2844_p2 = por %p2843_p0, %p2842_p13 }
  0xf1   : > { %p2838_p12 = pneg %p2837_p11 }
  0xf3   : > { %p2845_p5 = pnand %p2844_p2, %p2838_p12 }
  0xf5   : > { %2848 = shalt.err (!%p2845_p5)
}
  0xf6   : > { %2451 = dma.hbm_to_vmem [thread:$0]  (!%p3245_p6), %s3956_s6, 256, %s426_s5, [#allocation12], %s3110_s28, %s3110_s28, %s3111_s24  }
  0xf7   : > { %s3957_s8 = sld [smem:[#allocation43_spill]] }
  0xfd   : > { %s2849_s1 = scalar_lea.hbm %s3957_s8, 256 }
  0xfe   : > { %p2850_p7 = scmp.ne.s32.totalorder %s3957_s8, %s2849_s1  ;;  %p2856_p1 = scmp.lt.u32.totalorder %s2849_s1, %s3957_s8 }
 0x100   : > { %p2852_p9 = pnand %p2850_p7, %p3261_p8 }
 0x102   : > { %p2853_p4 = pneg %p2852_p9 }
 0x104   : > { %p2858_p3 = pnand %p2856_p1, %p2853_p4 }
 0x106   : > { %2861 = shalt.err (!%p2858_p3)
}
 0x107   : > { %s2862_s21 = scalar_lea.vmem %s452_s17, 256  ;;  %p2870_p13 = scmp.lt.s32.totalorder %s452_s17, %s452_s17 }
 0x108   : > { %p2863_p10 = scmp.ne.s32.totalorder %s452_s17, %s2862_s21  ;;  %p2871_p0 = scmp.lt.s32.totalorder %s2862_s21, %s2862_s21 }
 0x10a   : > { %p2865_p11 = pnand %p2863_p10, %p3261_p8  ;;  %p2872_p2 = por %p2871_p0, %p2870_p13 }
 0x10c   : > { %p2866_p12 = pneg %p2865_p11 }
 0x10e   : > { %p2873_p5 = pnand %p2872_p2, %p2866_p12 }
 0x110   : > { %2876 = shalt.err (!%p2873_p5)
}
 0x111   : > { %2457 = dma.hbm_to_vmem [thread:$0]  (!%p3245_p6), %s3957_s8, 256, %s452_s17, [#allocation15], %s3110_s28, %s3110_s28, %s3111_s24  }
 0x112   : > { %s3116_s3 = smov [#allocation19]   ;;  %s3117_s23 = smov [#allocation22]  }
 0x113   : > { %s478_s16 = sshll.u32 %s3116_s3, 4  ;;  %s499_s0 = sshll.u32 %s3117_s23, 4  ;;  %s479_s16 = int_to_ptr.vmem [resolvable:$true] %s478_s16  ;;  %s500_s0 = int_to_ptr.vmem [resolvable:$true] %s499_s0 }
 0x114   : > { %s2877_s2 = scalar_lea.hbm %s3921_s10, 32 }
 0x115   : > { %p2878_p7 = scmp.ne.s32.totalorder %s3921_s10, %s2877_s2  ;;  %p2884_p1 = scmp.lt.u32.totalorder %s2877_s2, %s3921_s10 }
 0x117   : > { %p2880_p9 = pnand %p2878_p7, %p3261_p8 }
 0x119   : > { %p2881_p4 = pneg %p2880_p9 }
 0x11b   : > { %p2886_p3 = pnand %p2884_p1, %p2881_p4 }
 0x11d   : > { %2889 = shalt.err (!%p2886_p3)
}
 0x11e   : > { %s2890_s17 = scalar_lea.vmem %s479_s16, 32  ;;  %p2898_p13 = scmp.lt.s32.totalorder %s479_s16, %s479_s16 }
 0x11f   : > { %p2891_p10 = scmp.ne.s32.totalorder %s479_s16, %s2890_s17  ;;  %p2899_p0 = scmp.lt.s32.totalorder %s2890_s17, %s2890_s17 }
 0x121   : > { %p2893_p11 = pnand %p2891_p10, %p3261_p8  ;;  %p2900_p2 = por %p2899_p0, %p2898_p13 }
 0x123   : > { %p2894_p12 = pneg %p2893_p11 }
 0x125   : > { %p2901_p5 = pnand %p2900_p2, %p2894_p12 }
 0x127   : > { %2904 = shalt.err (!%p2901_p5)
}
 0x128   : > { %2463 = dma.hbm_to_vmem [thread:$0]  (!%p3245_p6), %s3921_s10, 32, %s479_s16, [#allocation18]  }
 0x129   : > { %s2905_s22 = scalar_lea.hbm %s3923_s12, 256 }
 0x12a   : > { %p2906_p7 = scmp.ne.s32.totalorder %s3923_s12, %s2905_s22  ;;  %p2912_p1 = scmp.lt.u32.totalorder %s2905_s22, %s3923_s12 }
 0x12c   : > { %p2908_p9 = pnand %p2906_p7, %p3261_p8 }
 0x12e   : > { %p2909_p4 = pneg %p2908_p9 }
 0x130   : > { %p2914_p3 = pnand %p2912_p1, %p2909_p4 }
 0x132   : > { %2917 = shalt.err (!%p2914_p3)
}
 0x133   : > { %s2918_s5 = scalar_lea.vmem %s500_s0, 256  ;;  %p2926_p13 = scmp.lt.s32.totalorder %s500_s0, %s500_s0 }
 0x134   : > { %p2919_p10 = scmp.ne.s32.totalorder %s500_s0, %s2918_s5  ;;  %p2927_p0 = scmp.lt.s32.totalorder %s2918_s5, %s2918_s5 }
 0x136   : > { %p2921_p11 = pnand %p2919_p10, %p3261_p8  ;;  %p2928_p2 = por %p2927_p0, %p2926_p13 }
 0x138   : > { %p2922_p12 = pneg %p2921_p11 }
 0x13a   : > { %p2929_p5 = pnand %p2928_p2, %p2922_p12 }
 0x13c   : > { %2932 = shalt.err (!%p2929_p5)
}
 0x13d   : > { %2469 = dma.hbm_to_vmem [thread:$0]  (!%p3245_p6), %s3923_s12, 256, %s500_s0, [#allocation21], %s3110_s28, %s3110_s28, %s3111_s24  }
 0x13e   : > { %s2103_s20 = sadd.s32 4294967294, %s3103_s30   ;;  %s49_s18 = sadd.s32 1, %s3099_s29 }
 0x13f   : > { %s58_s19 = sadd.s32 1, %s3091_s27  ;;  %p51_p8 = scmp.ge.s32.totalorder %s49_s18, 2 }
 0x140   : > { %p65_p7 = scmp.ne.s32.totalorder %s3091_s27, %s3087_s26  ;;  %p66_p9 = scmp.eq.s32.totalorder %s3103_s30, 0 }
 0x141   : > { %p71_p4 = scmp.ne.s32.totalorder %s3087_s26, %s3083_s25  ;;  %s3992_s18 = smov (%p51_p8, %s49_s18), 0 }
 0x142   : > { %p3494_p1 = por %p66_p9, %p65_p7  ;;  %p3959_p6 = scmp.eq.s32.totalorder %s3231_s14, 0 }
 0x143   : > { %s53_s24 = ssub.s32 %s3099_s29, %s3992_s18  ;;  %p356_p10 = scmp.eq.s32.totalorder %s3231_s14, 1 }
 0x144   : > { %p3500_p3 = por %p3959_p6, %p71_p4  ;;  %p56_p11 = scmp.eq.s32.totalorder %s53_s24, 0 }
 0x145   : > { %p362_p12 = scmp.eq.s32.totalorder %s2103_s20, 1  ;;  %p3507_p13 = por %p356_p10, %p65_p7 }
 0x146   : > { %p2492_p0 = scmp.lt.s32.totalorder %s3103_s30, 2  ;;  %s513_s22 = sand.u32 1, %s3091_s27  }
 0x147   : > { %s3961_s0 = scalar_select %p3507_p13, 1, 0 }
 0x148   : > { %s3513_s23 = scalar_select %p56_p11, %s3091_s27, %s58_s19  }
 0x149   : > { %p3515_p2 = por %p362_p12, %p71_p4  ;;  %s3520_s2 = sshll.u32 %s513_s22, 4 }
 0x14a   : > { %s3931_s15 = sshll.u32 %s3099_s29, 8  ;;  %s3963_s5 = sld [smem:[#allocation35_spill]] }
 0x14b   : > { %s3962_s1 = scalar_select %p3515_p2, 1, 0 }
 0x14c   : > { %s517_s17 = scalar_lea.vmem [#allocation2], %s3520_s2  ;;  %p3535_p5 = pnand %p2492_p0, %p3494_p1 }
 0x14d   : > { %s526_s20 = sshll.u32 %s517_s17, 4  ;;  %s3539_s24 = scalar_lea.sflag [#allocation3], %s513_s22  ;;  %s3531_s20 = int_to_ptr.vmem [resolvable:$true] %s526_s20 }
 0x14e   : > { %p2935_p7 = pneg %p3535_p5 }
 0x150   : > { %s3528_s16 = scalar_lea.hbm %s3963_s5, %s3931_s15  ;;  %s2938_s3 = scalar_lea.hbm %s3963_s5, 512 }
 0x151   : > { %s2933_s13 = scalar_lea.hbm %s3528_s16, 256  ;;  %p2939_p1 = scmp.lt.u32.totalorder %s3528_s16, %s3963_s5 }
 0x152   : > { %p2934_p8 = scmp.ne.s32.totalorder %s3528_s16, %s2933_s13  ;;  %p2940_p6 = scmp.lt.u32.totalorder %s2938_s3, %s2933_s13 }
 0x153   : > { %p2942_p11 = scmp.lt.u32.totalorder %s2933_s13, %s3528_s16 }
 0x154   : > { %p2936_p9 = pnand %p2935_p7, %p2934_p8  ;;  %p2941_p10 = por %p2940_p6, %p2939_p1 }
 0x156   : > { %p2937_p4 = pneg %p2936_p9  ;;  %p2943_p12 = por %p2942_p11, %p2941_p10 }
 0x158   : > { %p2944_p0 = pnand %p2943_p12, %p2937_p4 }
 0x15a   : > { %2947 = shalt.err (!%p2944_p0)
}
 0x15b   : > { %s2948_s22 = scalar_lea.vmem %s3531_s20, 256  ;;  %s3118_s21 = smov [#allocation2]  }
 0x15c   : > { %p2949_p8 = scmp.ne.s32.totalorder %s3531_s20, %s2948_s22  ;;  %s2953_s17 = sshll.u32 %s3118_s21, 4  ;;  %s2954_s17 = int_to_ptr.vmem [resolvable:$false] %s2953_s17 }
 0x15d   : > { %s2955_s4 = scalar_lea.vmem %s2954_s17, 512  ;;  %p2956_p13 = scmp.lt.s32.totalorder %s3531_s20, %s2954_s17 }
 0x15e   : > { %p2951_p9 = pnand %p2949_p8, %p2935_p7  ;;  %p2957_p1 = scmp.lt.s32.totalorder %s2955_s4, %s2948_s22 }
 0x160   : > { %p2952_p2 = pneg %p2951_p9  ;;  %p2958_p6 = por %p2957_p1, %p2956_p13 }
 0x162   : > { %p2959_p10 = pnand %p2958_p6, %p2952_p2 }
 0x164   : > { %2962 = shalt.err (!%p2959_p10)
}
 0x165   : > { %s3119_s15 = smov 128   ;;  %s3120_s13 = smov 8  }
 0x166   : > { %2473 = dma.hbm_to_vmem [thread:$0]  (!%p3535_p5), %s3528_s16, 256, %s3531_s20, %s3539_s24, %s3119_s15, %s3119_s15, %s3120_s13  }
 0x167   : > { %s3965_s3 = sshll.u32 %s3099_s29, 8  ;;  %s3966_s17 = sld [smem:[#allocation36_spill]] }
 0x168   : > { %s540_s5 = scalar_lea.vmem [#allocation5], %s3520_s2  ;;  %s536_s7 = sand.u32 1, %s3103_s30  }
 0x169   : > { %s549_s6 = sshll.u32 %s540_s5, 4  ;;  %s3581_s8 = scalar_lea.sflag [#allocation6], %s536_s7  ;;  %s3578_s6 = int_to_ptr.vmem [resolvable:$true] %s549_s6 }
 0x16d   : > { %s3575_s4 = scalar_lea.hbm %s3966_s17, %s3965_s3  ;;  %s2968_s24 = scalar_lea.hbm %s3966_s17, 512 }
 0x16e   : > { %s2963_s9 = scalar_lea.hbm %s3575_s4, 256  ;;  %p2969_p11 = scmp.lt.u32.totalorder %s3575_s4, %s3966_s17 }
 0x16f   : > { %p2964_p13 = scmp.ne.s32.totalorder %s3575_s4, %s2963_s9  ;;  %p2970_p12 = scmp.lt.u32.totalorder %s2968_s24, %s2963_s9 }
 0x170   : > { %p2972_p8 = scmp.lt.u32.totalorder %s2963_s9, %s3575_s4 }
 0x171   : > { %p2966_p2 = pnand %p2964_p13, %p2935_p7  ;;  %p2971_p0 = por %p2970_p12, %p2969_p11 }
 0x173   : > { %p2967_p4 = pneg %p2966_p2  ;;  %p2973_p9 = por %p2972_p8, %p2971_p0 }
 0x175   : > { %p2974_p1 = pnand %p2973_p9, %p2967_p4 }
 0x177   : > { %2977 = shalt.err (!%p2974_p1)
}
 0x178   : > { %s2978_s7 = scalar_lea.vmem %s3578_s6, 256  ;;  %s3121_s2 = smov [#allocation5]  }
 0x179   : > { %p2979_p6 = scmp.ne.s32.totalorder %s3578_s6, %s2978_s7  ;;  %s2983_s5 = sshll.u32 %s3121_s2, 4  ;;  %s2984_s5 = int_to_ptr.vmem [resolvable:$false] %s2983_s5 }
 0x17a   : > { %s2985_s21 = scalar_lea.vmem %s2984_s5, 512  ;;  %p2986_p2 = scmp.lt.s32.totalorder %s3578_s6, %s2984_s5 }
 0x17b   : > { %p2981_p10 = pnand %p2979_p6, %p2935_p7  ;;  %p2987_p11 = scmp.lt.s32.totalorder %s2985_s21, %s2978_s7 }
 0x17d   : > { %p2982_p13 = pneg %p2981_p10  ;;  %p2988_p12 = por %p2987_p11, %p2986_p2 }
 0x17f   : > { %p2989_p0 = pnand %p2988_p12, %p2982_p13 }
 0x181   : > { %2992 = shalt.err (!%p2989_p0)
}
 0x182   : > { %2476 = dma.hbm_to_vmem [thread:$0]  (!%p3535_p5), %s3575_s4, 256, %s3578_s6, %s3581_s8, %s3119_s15, %s3119_s15, %s3120_s13  }
 0x183   : > { %s3967_s9 = sld [smem:[#allocation34_spill]] }
 0x189   : > { %p3968_p7 = scmp.ne.s32.totalorder %s3967_s9, 0 }
 0x18a   : > { %s3613_s16 = sand.u32 (!%p3968_p7), 1, %s3087_s26  }
 0x18b   : > { %561 = sbr.rel (%p3968_p7) target bundleno = 4440 (0x1158), region = 72  ;;  %s2124_s20 = sshll.u32 (!%p3968_p7), %s3613_s16, 4 }
 0x18c   : > { %s564_s24 = scalar_lea.sflag (!%p3968_p7), [#allocation3], %s3613_s16  ;;  %s567_s3 = scalar_lea.vmem (!%p3968_p7), [#allocation2], %s2124_s20 }
 0x192   : > { %3046 = dma.done.wait (%p3500_p3), %s564_s24, 256  }
 0x193   : > { %3048 = vsyncadd (%p3500_p3), %s564_s24, 4294967040  ;;  %s572_s6 = sand.u32 1, %s3231_s14   ;;  %s3622_s19 = scalar_lea.vmem [#allocation5], %s2124_s20 }
 0x194   : > { %s573_s8 = scalar_lea.sflag [#allocation6], %s572_s6 }
 0x195   : > { %3050 = dma.done.wait (%p3500_p3), %s573_s8, 256  }
 0x196   : > { %3052 = vsyncadd (%p3500_p3), %s573_s8, 4294967040  ;;  %p3969_p5 = scmp.eq.s32.totalorder %s3231_s14, 0 }
 0x198   : > { %3054 = dma.done.wait (%p3969_p5), [#allocation6], 16   ;;  %p3970_p4 = pmov %p3969_p5 }
 0x19a   : > { %3056 = vsyncadd (%p3970_p4), [#allocation6], 4294967280  ;;  %p3971_p8 = pmov %p3970_p4 }
 0x19b   : > { %p3972_p9 = pmov %p3970_p4 }
 0x19c   : > { %3058 = dma.done.wait (%p3971_p8), [#allocation9], 32  }
 0x19d   : > { %3060 = vsyncadd (%p3972_p9), [#allocation9], 4294967264  ;;  %p3973_p1 = pmov %p3970_p4 }
 0x19f   : > { %3062 = dma.done.wait (%p3973_p1), [#allocation12], 272   ;;  %p3974_p6 = pmov %p3973_p1 }
 0x1a0   : > { %p3975_p3 = pmov %p3973_p1 }
 0x1a1   : > { %3064 = vsyncadd (%p3974_p6), [#allocation12], 4294967024 }
 0x1a2   : > { %3066 = dma.done.wait (%p3975_p3), [#allocation15], 512   ;;  %p3976_p10 = pmov %p3973_p1 }
 0x1a3   : > { %p3977_p13 = pmov %p3973_p1 }
 0x1a4   : > { %3068 = vsyncadd (%p3976_p10), [#allocation15], 4294966784 }
 0x1a5   : > { %3070 = dma.done.wait (%p3977_p13), [#allocation18], 288   ;;  %p3978_p2 = pmov %p3973_p1 }
 0x1a6   : > { %p3979_p11 = pmov %p3973_p1 }
 0x1a7   : > { %3072 = vsyncadd (%p3978_p2), [#allocation18], 4294967008 }
 0x1a8   : > { %3074 = dma.done.wait (%p3979_p11), [#allocation21], 320   ;;  %p3980_p12 = pmov %p3973_p1 }
 0x1a9   : > { %vm676_vm0 = vcmask 261120   ;;  %v672_v0 = vld [vmem:[%s567_s3] sm:$0xff]  ;;  %v673_v1 = vld [vmem:[%s567_s3 + $0x8] sm:$0xff]  ;;  %v3122_v24 = vmov 0.0   ;;  %vm3123_vm1 = vmmov 0   ;;  %vm960_vm2 = vcmask 1043456  }
 0x1aa   : > { %3076 = vsyncadd (%p3980_p12), [#allocation21], 4294966976  ;;  %v721_v2 = vld [vmem:[%s3622_s19] sm:$0xff]  ;;  %v677_v3 = vsel %vm676_vm0, %v672_v0, 0.0  ;;  %v680_v4 = vsel %vm676_vm0, %v673_v1, 0.0  ;;  %v722_v17 = vld [vmem:[%s3622_s19 + $0x8] sm:$0xff]  ;;  %2250 = vmatprep.subr.bf16.mxu0 %v3122_v24  ;;  %2258 = vmatprep.subr.bf16.mxu1 %v3122_v24 }
 0x1ab   : > { %v725_v5 = vsel %vm676_vm0, %v721_v2, 0.0  ;;  %678 = vadd.xlane.f32.xlu0 %v677_v3  ;;  %v728_v20 = vsel %vm676_vm0, %v722_v17, 0.0  ;;  %v2575_v23 = vld [vmem:[#allocation13] sm:$0xff]   ;;  %v2576_v25 = vld [vmem:[#allocation13 + $0x8] sm:$0xff]   ;;  %2254 = vmatprep.mubr.msk.bf16.mxu0 %vm3123_vm1, %v3122_v24  ;;  %v2138_v39 = vld [vmem:[#allocation7] ss:$0 sm:$0xff] }
 0x1ac   : > { %2251 = vmatpush3.bf16.msra.mxu0 %v2575_v23  ;;  %2262 = vmatprep.mubr.msk.bf16.mxu1 %vm3123_vm1, %v3122_v24  ;;  %v2139_v43 = vld [vmem:[#allocation8] ss:$0 sm:$0xff]  ;;  %v2577_v48 = vld [vmem:[#allocation14] sm:$0xff]   ;;  %v2578_v49 = vld [vmem:[#allocation16] sm:$0xff]   ;;  %vm956_vm3 = vcmask 64512   ;;  %vm1066_vm4 = vcmask 31744  }
 0x1ad   : > { %2252 = vmatprep.subr.bf16.mxu0 %v3122_v24  ;;  %2259 = vmatpush3.bf16.msra.mxu1 %v2577_v48  ;;  %v2579_v50 = vld [vmem:[#allocation14 + $0x8] sm:$0xff]   ;;  %v2580_v51 = vld [vmem:[#allocation16 + $0x8] sm:$0xff]   ;;  %s3124_s14 = smov 120   ;;  %v949_v48 = vld [vmem:[#allocation19] sm:$0x3]  ;;  %vm1093_vm5 = vcmask 1041408  }
 0x1ae   : > { %2260 = vmatprep.subr.bf16.mxu1 %v3122_v24  ;;  %v2140_v60 = vld [vmem:[#allocation10] ss:$0 sm:$0xff]  ;;  %s2137_s28 = sshll.u32 %s3613_s16, 5  ;;  %vm1205_vm6 = vcmask 60416   ;;  %s3125_s13 = smov 112  }
 0x1af   : > { %681 = vadd.xlane.f32.xlu0 %v680_v4  ;;  %s3765_s15 = scalar_lea.vmem [#allocation23], %s2137_s28  ;;  %s3126_s4 = smov 104  }
 0x1b0   : > { %2253 = vmatpush3.bf16.msra.mxu0 %v2576_v25  ;;  %s3981_s22 = sld [smem:[#allocation33_spill]]  ;;  %s1885_s2 = sshll.u32 %s3765_s15, 4  ;;  %s3858_s2 = int_to_ptr.vmem [resolvable:$true] %s1885_s2 }
 0x1b1   : > { %2266 = vmatprep.subr.bf16.mxu0 %v3122_v24  ;;  %2261 = vmatpush3.bf16.msra.mxu1 %v2579_v50  ;;  %v3728_v50 = vld [vmem:[#allocation22] sm:$0xff]   ;;  %s3982_s9 = sld [smem:[#allocation45_spill]]  ;;  %s1870_s24 = scalar_lea.sflag [#allocation4], %s3613_s16 }
 0x1b2   : > { %2274 = vmatprep.subr.bf16.mxu1 %v3122_v24  ;;  %s2993_s3 = scalar_lea.vmem %s3858_s2, 512  ;;  %p3983_p7 = scmp.ne.s32.totalorder %s3961_s0, 0 }
 0x1b3   : > { %726 = vadd.xlane.f32.xlu0 %v725_v5  ;;  %p2994_p0 = scmp.ne.s32.totalorder %s3858_s2, %s2993_s3  ;;  %s3127_s6 = smov [#allocation23]  }
 0x1b4   : > { %s2997_s8 = sshll.u32 %s3127_s6, 4  ;;  %s2998_s8 = int_to_ptr.vmem [resolvable:$false] %s2997_s8 }
 0x1b5   : > { %p2995_p5 = pnand %p2994_p0, %p3983_p7  ;;  %s2999_s19 = scalar_lea.vmem %s2998_s8, 1024 }
 0x1b6   : > { %s2200_s7 = sshll.u32 %s3981_s22, 9  ;;  %p3000_p8 = scmp.lt.s32.totalorder %s3858_s2, %s2998_s8 }
 0x1b7   : > { %s3856_s20 = scalar_lea.hbm %s3982_s9, %s2200_s7  ;;  %p2996_p4 = pneg %p2995_p5 }
 0x1b8   : > { %p3001_p9 = scmp.lt.s32.totalorder %s2999_s19, %s2993_s3 }
 0x1ba   : > { %p3002_p1 = por %p3001_p9, %p3000_p8 }
 0x1bc   : > { %p3003_p6 = pnand %p3002_p1, %p2996_p4 }
 0x238   : > { %v679_v6 = vpop.xlane.xlu0 %678 }
 0x239   : > { %v684_v7 = vmul.f32 0.03125, %v679_v6 }
 0x23b   : > { %v686_v8 = vsub.f32 %v672_v0, %v684_v7  ;;  %v2141_v0 = vld [vmem:[#allocation11] ss:$0 sm:$0xff] }
 0x23c   : > { %v682_v9 = vpop.xlane.xlu0 %681 }
 0x23d   : > { %v685_v10 = vmul.f32 0.03125, %v682_v9  ;;  %v688_v11 = vmul.f32 %v686_v8, %v686_v8 }
 0x23f   : > { %v687_v12 = vsub.f32 %v673_v1, %v685_v10  ;;  %v690_v13 = vsel %vm676_vm0, %v688_v11, 0.0 }
 0x240   : > { %691 = vadd.xlane.f32.xlu1 %v690_v13  ;;  %v727_v14 = vpop.xlane.xlu0 %726  ;;  %v3702_v13 = vld [vmem:[#allocation17 + $0x8] sm:$0xff]  }
 0x241   : > { %v689_v15 = vmul.f32 %v687_v12, %v687_v12  ;;  %v731_v16 = vmul.f32 0.03125, %v727_v14 }
 0x243   : > { %v693_v18 = vsel %vm676_vm0, %v689_v15, 0.0  ;;  %v3659_v19 = vsub.f32 %v721_v2, %v731_v16  ;;  %v950_v2 = vld [vmem:[#allocation20] sm:$0xf] }
 0x244   : > { %694 = vadd.xlane.f32.xlu1 %v693_v18  ;;  %v3682_v6 = vsel %vm960_vm2, %v950_v2, 0 }
 0x245   : > { %v735_v21 = vmul.f32 %v3659_v19, %v3659_v19 }
 0x247   : > { %v737_v22 = vsel %vm676_vm0, %v735_v21, 0.0 }
 0x248   : > { %729 = vadd.xlane.f32.xlu1 %v728_v20  ;;  %738 = vadd.xlane.f32.xlu0 %v737_v22 }
 0x2cd   : > { %v692_v26 = vpop.xlane.xlu1 %691 }
 0x2ce   : > { %v696_v27 = vmul.f32 0.03125, %v692_v26 }
 0x2d0   : > { %v698_v28 = vadd.f32 1e-05, %v696_v27 }
 0x2d1   : > { %v695_v29 = vpop.xlane.xlu1 %694 }
 0x2d2   : > { %2585 = vrsqrt.f32 %v698_v28  ;;  %v697_v30 = vmul.f32 0.03125, %v695_v29 }
 0x2d4   : > { %v699_v31 = vadd.f32 1e-05, %v697_v30 }
 0x2d5   : > { %v730_v32 = vpop.xlane.xlu1 %729  ;;  %v739_v52 = vpop.xlane.xlu0 %738 }
 0x2d6   : > { %2587 = vrsqrt.f32 %v699_v31  ;;  %v732_v33 = vmul.f32 0.03125, %v730_v32  ;;  %v743_v53 = vmul.f32 0.03125, %v739_v52 }
 0x2d8   : > { %v734_v34 = vsub.f32 %v722_v17, %v732_v33  ;;  %v745_v54 = vadd.f32 1e-05, %v743_v53 }
 0x2da   : > { %v736_v35 = vmul.f32 %v734_v34, %v734_v34  ;;  %2589 = vrsqrt.f32 %v745_v54 }
 0x2dc   : > { %v2586_v36 = vpop.eup %2585  ;;  %v740_v37 = vsel %vm676_vm0, %v736_v35, 0.0 }
 0x2dd   : > { %v702_v38 = vmul.f32 %v2586_v36, %v686_v8  ;;  %741 = vadd.xlane.f32.xlu1 %v740_v37 }
 0x2df   : > { %v710_v42 = vmul.f32 %v2138_v39, %v702_v38 }
 0x2e0   : > { %v2588_v40 = vpop.eup %2587 }
 0x2e1   : > { %v703_v41 = vmul.f32 %v2588_v40, %v687_v12  ;;  %v718_v45 = vadd.f32 %v2139_v43, %v710_v42  ;;  %v3698_v12 = vld [vmem:[#allocation17] sm:$0xff]  }
 0x2e3   : > { %v711_v44 = vmul.f32 %v2138_v39, %v703_v41 }
 0x2e4   : > { %v2590_v58 = vpop.eup %2589 }
 0x2e5   : > { %v719_v46 = vadd.f32 %v2139_v43, %v711_v44  ;;  %v749_v59 = vmul.f32 %v2590_v58, %v3659_v19 }
 0x2e7   : > { %v720_v47 = vpack.c.bf16 %v719_v46, %v718_v45  ;;  %v757_v63 = vmul.f32 %v2140_v60, %v749_v59  ;;  %v3742_v59 = vld [vmem:[#allocation22 + $0x8] sm:$0xff]  }
 0x2e9   : > { %2255 = vmatmul.mubr.msk.bf16.vlgmr.msra.gmra.mrb[0].mxu0 %vm676_vm0, %v720_v47  ;;  %v765_v3 = vadd.f32 %v2141_v0, %v757_v63 }
 0x2ea   : > { %2270 = vmatprep.mubr.msk.bf16.mxu0 %vm3123_vm1, %v3122_v24  ;;  %2267 = vmatpush3.bf16.msra.mxu0 %v2578_v49  ;;  %v3724_v49 = vsel %vm1093_vm5, %v949_v48, 0 }
 0x2eb   : > { %2268 = vmatprep.subr.bf16.mxu0 %v3122_v24 }
 0x2ee   : > { %2269 = vmatpush3.bf16.msra.mxu0 %v2580_v51 }
 0x2ef   : > { %2280 = vmatprep.subr.bf16.mxu0 %v3122_v24 }
 0x36a   : > { %v742_v55 = vpop.xlane.xlu1 %741 }
 0x36b   : > { %v744_v56 = vmul.f32 0.03125, %v742_v55 }
 0x36d   : > { %v746_v57 = vadd.f32 1e-05, %v744_v56 }
 0x36f   : > { %2591 = vrsqrt.f32 %v746_v57 }
 0x379   : > { %v2592_v61 = vpop.eup %2591 }
 0x37a   : > { %v750_v62 = vmul.f32 %v2592_v61, %v734_v34 }
 0x37c   : > { %v758_v1 = vmul.f32 %v2140_v60, %v750_v62 }
 0x37e   : > { %v766_v4 = vadd.f32 %v2141_v0, %v758_v1 }
 0x380   : > { %v767_v5 = vpack.c.bf16 %v766_v4, %v765_v3 }
 0x382   : > { %2263 = vmatmul.mubr.msk.bf16.vlgmr.msra.gmra.mrb[0].mxu1 %vm676_vm0, %v767_v5  ;;  %2271 = vmatmul.mubr.msk.bf16.vlgmr.msra.gmra.mrb[4].mxu0 %vm676_vm0, %v767_v5 }
 0x383   : > { %2275 = vmatpush3.bf16.msra.mxu1 %v3682_v6  ;;  %2276 = vmatprep.mubr.msk.bf16.mxu1 %vm3123_vm1, %v3122_v24 }
 0x384   : > { %2284 = vmatprep.mubr.msk.bf16.mxu0 %vm3123_vm1, %v3122_v24  ;;  %2288 = vmatprep.subr.bf16.mxu1 %v3122_v24 }
 0x385   : > { %2281 = vmatpush3.bf16.msra.mxu0 %v3698_v12 }
 0x386   : > { %2282 = vmatprep.subr.bf16.mxu0 %v3122_v24 }
 0x389   : > { %2283 = vmatpush3.bf16.msra.mxu0 %v3702_v13 }
 0x38a   : > { %2294 = vmatprep.subr.bf16.mxu0 %v3122_v24 }
 0x3bc   : > { %v821_v7 = vpop.f32.mrb[0].mxu0 }
 0x3bd   : > { %v2256_v8 = vpop.f32.mrb[1].mxu0 }
 0x3be   : > { %v824_v9 = vpop.f32.mrb[2].mxu0 }
 0x3bf   : > { %v3692_v10 = vpack.c.bf16 %v824_v9, %v821_v7  ;;  %v2257_v11 = vpop.f32.mrb[3].mxu0 }
 0x3c1   : > { %2277 = vmatmul.mubr.msk.bf16.vlgmr.msra.gmra.mrb[4].mxu1 %vm956_vm3, %v3692_v10 }
 0x3c2   : > { %2290 = vmatprep.mubr.msk.bf16.mxu1 %vm3123_vm1, %v3122_v24  ;;  %2289 = vmatpush3.bf16.msra.mxu1 %v3724_v49 }
 0x3c3   : > { %2302 = vmatprep.subr.bf16.mxu1 %v3122_v24 }
 0x455   : > { %v3706_v14 = vpop.f32.mrb[0].mxu1  ;;  %v3708_v15 = vpop.f32.mrb[4].mxu0 }
 0x456   : > { %v2264_v16 = vpop.f32.mrb[1].mxu1  ;;  %v2272_v17 = vpop.f32.mrb[5].mxu0 }
 0x457   : > { %v3710_v18 = vpop.f32.mrb[2].mxu1  ;;  %v3712_v19 = vpop.f32.mrb[6].mxu0 }
 0x458   : > { %v2265_v20 = vpop.f32.mrb[3].mxu1  ;;  %v2273_v21 = vpop.f32.mrb[7].mxu0 }
 0x494   : > { %v998_v22 = vpop.f32.mrb[4].mxu1 }
 0x495   : > { %v1005_v23 = vmul.f32 %v998_v22, %v3706_v14  ;;  %v2278_v25 = vpop.f32.mrb[5].mxu1 }
 0x496   : > { %v1001_v26 = vpop.f32.mrb[6].mxu1 }
 0x497   : > { %v1006_v27 = vmul.f32 %v1001_v26, %v3710_v18  ;;  %v2279_v28 = vpop.f32.mrb[7].mxu1 }
 0x499   : > { %v1007_v29 = vpack.c.bf16 %v1006_v27, %v1005_v23 }
 0x49b   : > { %2285 = vmatmul.mubr.msk.bf16.vlgmr.msra.gmra.mrb[8].mxu0 %vm676_vm0, %v1007_v29 }
 0x49c   : > { %2298 = vmatprep.mubr.msk.bf16.mxu0 %vm3123_vm1, %v3122_v24  ;;  %2295 = vmatpush3.bf16.msra.mxu0 %v3728_v50 }
 0x49d   : > { %2296 = vmatprep.subr.bf16.mxu0 %v3122_v24 }
 0x4a0   : > { %2297 = vmatpush3.bf16.msra.mxu0 %v3742_v59 }
 0x4a1   : > { %2308 = vmatprep.subr.bf16.mxu0 %v3122_v24 }
 0x56e   : > { %v1057_v30 = vpop.f32.mrb[8].mxu0 }
 0x56f   : > { %v1064_v31 = vmul.f32 0.35355338, %v1057_v30  ;;  %v2286_v32 = vpop.f32.mrb[9].mxu0 }
 0x570   : > { %v1060_v33 = vpop.f32.mrb[10].mxu0 }
 0x571   : > { %v1065_v34 = vmul.f32 0.35355338, %v1060_v33  ;;  %v2287_v35 = vpop.f32.mrb[11].mxu0  ;;  %v1067_v36 = vsel %vm1066_vm4, %v1064_v31, -inf }
 0x572   : > { %1068 = vmax.xlane.f32.xlu0 %v1067_v36 }
 0x573   : > { %v1070_v37 = vsel %vm1066_vm4, %v1065_v34, -inf }
 0x574   : > { %1071 = vmax.xlane.f32.xlu1 %v1070_v37 }
 0x5ff   : > { %v1069_v38 = vpop.xlane.xlu0 %1068 }
 0x600   : > { %v1073_v39 = vsub.f32 %v1064_v31, %v1069_v38 }
 0x601   : > { %v1072_v40 = vpop.xlane.xlu1 %1071 }
 0x602   : > { %v1075_v41 = vmul.f32 1.442695, %v1073_v39  ;;  %v1074_v42 = vsub.f32 %v1065_v34, %v1072_v40 }
 0x604   : > { %2593 = vpow2.f32 %v1075_v41  ;;  %v1077_v43 = vmul.f32 1.442695, %v1074_v42 }
 0x606   : > { %2595 = vpow2.f32 %v1077_v43 }
 0x60e   : > { %v2594_v44 = vpop.eup %2593 }
 0x60f   : > { %v1079_v45 = vsel %vm1066_vm4, %v2594_v44, 0.0 }
 0x610   : > { %v2596_v46 = vpop.eup %2595  ;;  %1080 = vadd.xlane.f32.xlu0 %v1079_v45 }
 0x611   : > { %v1082_v47 = vsel %vm1066_vm4, %v2596_v46, 0.0 }
 0x612   : > { %1083 = vadd.xlane.f32.xlu1 %v1082_v47 }
 0x626   : > { %1209 = vrot.lane.b32.xlu0 %v3692_v10, %s3124_s14 }
 0x69d   : > { %v1081_v51 = vpop.xlane.xlu0 %1080 }
 0x69e   : > { %2597 = vrcp.f32 %v1081_v51 }
 0x69f   : > { %v1084_v52 = vpop.xlane.xlu1 %1083 }
 0x6a0   : > { %2599 = vrcp.f32 %v1084_v52 }
 0x6a1   : > { %v1210_v58 = vpop.permute.xlu0 %1209 }
 0x6a8   : > { %v2598_v53 = vpop.eup %2597 }
 0x6a9   : > { %v1087_v55 = vmul.f32 %v2598_v53, %v2594_v44 }
 0x6aa   : > { %v2600_v54 = vpop.eup %2599 }
 0x6ab   : > { %v1088_v56 = vmul.f32 %v2600_v54, %v2596_v46 }
 0x6ad   : > { %v1089_v57 = vpack.c.bf16 %v1088_v56, %v1087_v55 }
 0x6af   : > { %2291 = vmatmul.mubr.msk.bf16.vlgmr.msra.gmra.mrb[8].mxu1 %vm1066_vm4, %v1089_v57 }
 0x6b0   : > { %2303 = vmatpush3.bf16.msra.mxu1 %v3682_v6  ;;  %2304 = vmatprep.mubr.msk.bf16.mxu1 %vm3123_vm1, %v3122_v24 }
 0x6b1   : > { %2316 = vmatprep.subr.bf16.mxu1 %v3122_v24 }
 0x6b7   : > { %2305 = vmatmul.mubr.msk.bf16.vlgmr.msra.gmra.mrb[12].mxu1 %vm956_vm3, %v1210_v58 }
 0x6b8   : > { %2317 = vmatpush3.bf16.msra.mxu1 %v3724_v49  ;;  %2318 = vmatprep.mubr.msk.bf16.mxu1 %vm3123_vm1, %v3122_v24 }
 0x6b9   : > { %2330 = vmatprep.subr.bf16.mxu1 %v3122_v24 }
 0x782   : > { %v1131_v60 = vpop.f32.mrb[8].mxu1 }
 0x783   : > { %v1138_v61 = vmul.f32 %v1131_v60, %v3708_v15  ;;  %v2292_v62 = vpop.f32.mrb[9].mxu1 }
 0x784   : > { %v1134_v63 = vpop.f32.mrb[10].mxu1 }
 0x785   : > { %v1139_v0 = vmul.f32 %v1134_v63, %v3712_v19  ;;  %v2293_v1 = vpop.f32.mrb[11].mxu1 }
 0x787   : > { %v1140_v2 = vpack.c.bf16 %v1139_v0, %v1138_v61 }
 0x789   : > { %2299 = vmatmul.mubr.msk.bf16.vlgmr.msra.gmra.mrb[12].mxu0 %vm676_vm0, %v1140_v2 }
 0x78a   : > { %2309 = vmatpush3.bf16.msra.mxu0 %v3698_v12  ;;  %v1248_v3 = vpop.f32.mrb[12].mxu1  ;;  %2312 = vmatprep.mubr.msk.bf16.mxu0 %vm3123_vm1, %v3122_v24 }
 0x78b   : > { %v1255_v4 = vmul.f32 %v1248_v3, %v3706_v14  ;;  %v2306_v5 = vpop.f32.mrb[13].mxu1  ;;  %2310 = vmatprep.subr.bf16.mxu0 %v3122_v24 }
 0x78c   : > { %v1251_v7 = vpop.f32.mrb[14].mxu1 }
 0x78d   : > { %v1256_v8 = vmul.f32 %v1251_v7, %v3710_v18  ;;  %v2307_v9 = vpop.f32.mrb[15].mxu1 }
 0x78e   : > { %2311 = vmatpush3.bf16.msra.mxu0 %v3702_v13 }
 0x78f   : > { %v1257_v11 = vpack.c.bf16 %v1256_v8, %v1255_v4  ;;  %2322 = vmatprep.subr.bf16.mxu0 %v3122_v24 }
 0x791   : > { %2313 = vmatmul.mubr.msk.bf16.vlgmr.msra.gmra.mrb[16].mxu0 %vm676_vm0, %v1257_v11 }
 0x792   : > { %2323 = vmatpush3.bf16.msra.mxu0 %v3728_v50  ;;  %2326 = vmatprep.mubr.msk.bf16.mxu0 %vm3123_vm1, %v3122_v24 }
 0x793   : > { %2324 = vmatprep.subr.bf16.mxu0 %v3122_v24 }
 0x796   : > { %2325 = vmatpush3.bf16.msra.mxu0 %v3742_v59 }
 0x797   : > { %2336 = vmatprep.subr.bf16.mxu0 %v3122_v24 }
 0x85c   : > { %v1190_v16 = vpop.f32.mrb[12].mxu0 }
 0x85d   : > { %v2192_v17 = vpack.c.bf16 %v1190_v16, %v1190_v16  ;;  %v2300_v20 = vpop.f32.mrb[13].mxu0 }
 0x85e   : > { %v1193_v21 = vpop.f32.mrb[14].mxu0 }
 0x85f   : > { %1206 = vst.msk [vmem:[%s3765_s15] sm:$0xf] %vm1205_vm6, %v2192_v17  ;;  %v2193_v22 = vpack.c.bf16 %v1193_v21, %v1193_v21  ;;  %v2301_v23 = vpop.f32.mrb[15].mxu0 }
 0x861   : > { %1207 = vst.msk [vmem:[%s3765_s15 + $0x4] sm:$0xf] %vm1205_vm6, %v2193_v22 }
 0x864   : > { %v1295_v25 = vpop.f32.mrb[16].mxu0 }
 0x865   : > { %v1302_v26 = vmul.f32 0.35355338, %v1295_v25  ;;  %v2314_v27 = vpop.f32.mrb[17].mxu0 }
 0x866   : > { %v1298_v28 = vpop.f32.mrb[18].mxu0 }
 0x867   : > { %v1303_v29 = vmul.f32 0.35355338, %v1298_v28  ;;  %v2315_v30 = vpop.f32.mrb[19].mxu0  ;;  %v1304_v31 = vsel %vm1066_vm4, %v1302_v26, -inf }
 0x868   : > { %1305 = vmax.xlane.f32.xlu1 %v1304_v31 }
 0x869   : > { %v1307_v32 = vsel %vm1066_vm4, %v1303_v29, -inf }
 0x86c   : > { %1308 = vmax.xlane.f32.xlu1 %v1307_v32 }
 0x8f5   : > { %v1306_v33 = vpop.xlane.xlu1 %1305 }
 0x8f6   : > { %v1310_v34 = vsub.f32 %v1302_v26, %v1306_v33 }
 0x8f8   : > { %v1312_v35 = vmul.f32 1.442695, %v1310_v34 }
 0x8f9   : > { %v1309_v36 = vpop.xlane.xlu1 %1308 }
 0x8fa   : > { %2601 = vpow2.f32 %v1312_v35  ;;  %v1311_v37 = vsub.f32 %v1303_v29, %v1309_v36 }
 0x8fc   : > { %v1314_v38 = vmul.f32 1.442695, %v1311_v37 }
 0x8fe   : > { %2603 = vpow2.f32 %v1314_v38 }
 0x904   : > { %v2602_v39 = vpop.eup %2601 }
 0x905   : > { %v1316_v40 = vsel %vm1066_vm4, %v2602_v39, 0.0 }
 0x906   : > { %1317 = vadd.xlane.f32.xlu1 %v1316_v40 }
 0x908   : > { %v2604_v41 = vpop.eup %2603 }
 0x909   : > { %v1319_v42 = vsel %vm1066_vm4, %v2604_v41, 0.0 }
 0x90a   : > { %1320 = vadd.xlane.f32.xlu1 %v1319_v42 }
 0x91b   : > { %1429 = vrot.lane.b32.xlu1 %v3692_v10, %s3125_s13 }
 0x993   : > { %v1318_v43 = vpop.xlane.xlu1 %1317 }
 0x994   : > { %2605 = vrcp.f32 %v1318_v43 }
 0x997   : > { %v1321_v44 = vpop.xlane.xlu1 %1320 }
 0x998   : > { %2607 = vrcp.f32 %v1321_v44 }
 0x99b   : > { %v1430_v52 = vpop.permute.xlu1 %1429 }
 0x99e   : > { %v2606_v45 = vpop.eup %2605 }
 0x99f   : > { %v1324_v47 = vmul.f32 %v2606_v45, %v2602_v39 }
 0x9a2   : > { %v2608_v46 = vpop.eup %2607 }
 0x9a3   : > { %v1325_v48 = vmul.f32 %v2608_v46, %v2604_v41 }
 0x9a5   : > { %v1326_v51 = vpack.c.bf16 %v1325_v48, %v1324_v47 }
 0x9a7   : > { %2319 = vmatmul.mubr.msk.bf16.vlgmr.msra.gmra.mrb[16].mxu1 %vm1066_vm4, %v1326_v51 }
 0x9a8   : > { %2331 = vmatpush3.bf16.msra.mxu1 %v3682_v6  ;;  %2332 = vmatprep.mubr.msk.bf16.mxu1 %vm3123_vm1, %v3122_v24 }
 0x9a9   : > { %2344 = vmatprep.subr.bf16.mxu1 %v3122_v24 }
 0x9af   : > { %2333 = vmatmul.mubr.msk.bf16.vlgmr.msra.gmra.mrb[20].mxu1 %vm956_vm3, %v1430_v52 }
 0x9b0   : > { %2345 = vmatpush3.bf16.msra.mxu1 %v3724_v49  ;;  %2346 = vmatprep.mubr.msk.bf16.mxu1 %vm3123_vm1, %v3122_v24 }
 0x9b1   : > { %2358 = vmatprep.subr.bf16.mxu1 %v3122_v24 }
 0xa7a   : > { %v1364_v53 = vpop.f32.mrb[16].mxu1 }
 0xa7b   : > { %v1371_v54 = vmul.f32 %v1364_v53, %v3708_v15  ;;  %v2320_v55 = vpop.f32.mrb[17].mxu1 }
 0xa7c   : > { %v1367_v56 = vpop.f32.mrb[18].mxu1 }
 0xa7d   : > { %v1372_v57 = vmul.f32 %v1367_v56, %v3712_v19  ;;  %v2321_v58 = vpop.f32.mrb[19].mxu1 }
 0xa7f   : > { %v1373_v60 = vpack.c.bf16 %v1372_v57, %v1371_v54 }
 0xa81   : > { %2327 = vmatmul.mubr.msk.bf16.vlgmr.msra.gmra.mrb[20].mxu0 %vm676_vm0, %v1373_v60 }
 0xa82   : > { %2337 = vmatpush3.bf16.msra.mxu0 %v3698_v12  ;;  %v1468_v61 = vpop.f32.mrb[20].mxu1  ;;  %2340 = vmatprep.mubr.msk.bf16.mxu0 %vm3123_vm1, %v3122_v24 }
 0xa83   : > { %v1475_v62 = vmul.f32 %v1468_v61, %v3706_v14  ;;  %v2334_v63 = vpop.f32.mrb[21].mxu1  ;;  %2338 = vmatprep.subr.bf16.mxu0 %v3122_v24 }
 0xa84   : > { %v1471_v0 = vpop.f32.mrb[22].mxu1 }
 0xa85   : > { %v1476_v1 = vmul.f32 %v1471_v0, %v3710_v18  ;;  %v2335_v2 = vpop.f32.mrb[23].mxu1 }
 0xa86   : > { %2339 = vmatpush3.bf16.msra.mxu0 %v3702_v13 }
 0xa87   : > { %v1477_v3 = vpack.c.bf16 %v1476_v1, %v1475_v62  ;;  %2350 = vmatprep.subr.bf16.mxu0 %v3122_v24 }
 0xa89   : > { %2341 = vmatmul.mubr.msk.bf16.vlgmr.msra.gmra.mrb[24].mxu0 %vm676_vm0, %v1477_v3 }
 0xa8a   : > { %2351 = vmatpush3.bf16.msra.mxu0 %v3728_v50  ;;  %2354 = vmatprep.mubr.msk.bf16.mxu0 %vm3123_vm1, %v3122_v24 }
 0xa8b   : > { %2352 = vmatprep.subr.bf16.mxu0 %v3122_v24 }
 0xa8e   : > { %2353 = vmatpush3.bf16.msra.mxu0 %v3742_v59 }
 0xa8f   : > { %2364 = vmatprep.subr.bf16.mxu0 %v3122_v24 }
 0xb54   : > { %v1411_v4 = vpop.f32.mrb[20].mxu0 }
 0xb55   : > { %v2194_v5 = vpack.c.bf16 %v1411_v4, %v1411_v4  ;;  %v2328_v7 = vpop.f32.mrb[21].mxu0 }
 0xb56   : > { %v1414_v8 = vpop.f32.mrb[22].mxu0 }
 0xb57   : > { %2167 = vst.msk [vmem:[%s3765_s15 + $0x8] sm:$0xf] %vm1205_vm6, %v2194_v5  ;;  %v2195_v9 = vpack.c.bf16 %v1414_v8, %v1414_v8  ;;  %v2329_v11 = vpop.f32.mrb[23].mxu0 }
 0xb59   : > { %2168 = vst.msk [vmem:[%s3765_s15 + $0xc] sm:$0xf] %vm1205_vm6, %v2195_v9 }
 0xb5c   : > { %v1515_v16 = vpop.f32.mrb[24].mxu0 }
 0xb5d   : > { %v1522_v17 = vmul.f32 0.35355338, %v1515_v16  ;;  %v2342_v20 = vpop.f32.mrb[25].mxu0 }
 0xb5e   : > { %v1518_v21 = vpop.f32.mrb[26].mxu0 }
 0xb5f   : > { %v1523_v22 = vmul.f32 0.35355338, %v1518_v21  ;;  %v2343_v23 = vpop.f32.mrb[27].mxu0  ;;  %v1524_v25 = vsel %vm1066_vm4, %v1522_v17, -inf }
 0xb60   : > { %1525 = vmax.xlane.f32.xlu0 %v1524_v25 }
 0xb61   : > { %v1527_v26 = vsel %vm1066_vm4, %v1523_v22, -inf }
 0xb62   : > { %1528 = vmax.xlane.f32.xlu1 %v1527_v26 }
 0xbed   : > { %v1526_v27 = vpop.xlane.xlu0 %1525 }
 0xbee   : > { %v1530_v28 = vsub.f32 %v1522_v17, %v1526_v27 }
 0xbef   : > { %v1529_v29 = vpop.xlane.xlu1 %1528 }
 0xbf0   : > { %v1532_v30 = vmul.f32 1.442695, %v1530_v28  ;;  %v1531_v31 = vsub.f32 %v1523_v22, %v1529_v29 }
 0xbf2   : > { %2609 = vpow2.f32 %v1532_v30  ;;  %v1534_v32 = vmul.f32 1.442695, %v1531_v31 }
 0xbf4   : > { %2611 = vpow2.f32 %v1534_v32 }
 0xbfc   : > { %v2610_v33 = vpop.eup %2609 }
 0xbfd   : > { %v1536_v34 = vsel %vm1066_vm4, %v2610_v33, 0.0 }
 0xbfe   : > { %v2612_v35 = vpop.eup %2611  ;;  %1537 = vadd.xlane.f32.xlu0 %v1536_v34 }
 0xbff   : > { %v1539_v36 = vsel %vm1066_vm4, %v2612_v35, 0.0 }
 0xc02   : > { %1540 = vadd.xlane.f32.xlu0 %v1539_v36 }
 0xc18   : > { %1649 = vrot.lane.b32.xlu0 %v3692_v10, %s3126_s4 }
 0xc8b   : > { %v1538_v37 = vpop.xlane.xlu0 %1537 }
 0xc8c   : > { %2613 = vrcp.f32 %v1538_v37 }
 0xc8f   : > { %v1541_v38 = vpop.xlane.xlu0 %1540 }
 0xc90   : > { %2615 = vrcp.f32 %v1541_v38 }
 0xc93   : > { %v1650_v44 = vpop.permute.xlu0 %1649 }
 0xc96   : > { %v2614_v39 = vpop.eup %2613 }
 0xc97   : > { %v1544_v41 = vmul.f32 %v2614_v39, %v2610_v33 }
 0xc9a   : > { %v2616_v40 = vpop.eup %2615 }
 0xc9b   : > { %v1545_v42 = vmul.f32 %v2616_v40, %v2612_v35 }
 0xc9d   : > { %v1546_v43 = vpack.c.bf16 %v1545_v42, %v1544_v41 }
 0xc9f   : > { %2347 = vmatmul.mubr.msk.bf16.vlgmr.msra.gmra.mrb[24].mxu1 %vm1066_vm4, %v1546_v43 }
 0xca0   : > { %2359 = vmatpush3.bf16.msra.mxu1 %v3682_v6  ;;  %2360 = vmatprep.mubr.msk.bf16.mxu1 %vm3123_vm1, %v3122_v24 }
 0xca1   : > { %2372 = vmatprep.subr.bf16.mxu1 %v3122_v24 }
 0xca7   : > { %2361 = vmatmul.mubr.msk.bf16.vlgmr.msra.gmra.mrb[28].mxu1 %vm956_vm3, %v1650_v44 }
 0xca8   : > { %2373 = vmatpush3.bf16.msra.mxu1 %v3724_v49  ;;  %2374 = vmatprep.mubr.msk.bf16.mxu1 %vm3123_vm1, %v3122_v24 }
 0xd72   : > { %v1584_v10 = vpop.f32.mrb[24].mxu1 }
 0xd73   : > { %v1591_v45 = vmul.f32 %v1584_v10, %v3708_v15  ;;  %v2348_v46 = vpop.f32.mrb[25].mxu1 }
 0xd74   : > { %v1587_v47 = vpop.f32.mrb[26].mxu1 }
 0xd75   : > { %v1592_v6 = vmul.f32 %v1587_v47, %v3712_v19  ;;  %v2349_v48 = vpop.f32.mrb[27].mxu1 }
 0xd77   : > { %v1593_v51 = vpack.c.bf16 %v1592_v6, %v1591_v45 }
 0xd79   : > { %2355 = vmatmul.mubr.msk.bf16.vlgmr.msra.gmra.mrb[28].mxu0 %vm676_vm0, %v1593_v51 }
 0xd7a   : > { %2365 = vmatpush3.bf16.msra.mxu0 %v3698_v12  ;;  %v1688_v52 = vpop.f32.mrb[28].mxu1  ;;  %2368 = vmatprep.mubr.msk.bf16.mxu0 %vm3123_vm1, %v3122_v24 }
 0xd7b   : > { %v1695_v49 = vmul.f32 %v1688_v52, %v3706_v14  ;;  %v2362_v53 = vpop.f32.mrb[29].mxu1  ;;  %2366 = vmatprep.subr.bf16.mxu0 %v3122_v24 }
 0xd7c   : > { %v1691_v54 = vpop.f32.mrb[30].mxu1 }
 0xd7d   : > { %v1696_v55 = vmul.f32 %v1691_v54, %v3710_v18  ;;  %v2363_v56 = vpop.f32.mrb[31].mxu1 }
 0xd7e   : > { %2367 = vmatpush3.bf16.msra.mxu0 %v3702_v13 }
 0xd7f   : > { %v1697_v57 = vpack.c.bf16 %v1696_v55, %v1695_v49  ;;  %2378 = vmatprep.subr.bf16.mxu0 %v3122_v24 }
 0xd81   : > { %2369 = vmatmul.mubr.msk.bf16.vlgmr.msra.gmra.mrb[32].mxu0 %vm676_vm0, %v1697_v57 }
 0xd82   : > { %2379 = vmatpush3.bf16.msra.mxu0 %v3728_v50  ;;  %2382 = vmatprep.mubr.msk.bf16.mxu0 %vm3123_vm1, %v3122_v24 }
 0xd83   : > { %2380 = vmatprep.subr.bf16.mxu0 %v3122_v24 }
 0xd86   : > { %2381 = vmatpush3.bf16.msra.mxu0 %v3742_v59 }
 0xe4c   : > { %v1631_v12 = vpop.f32.mrb[28].mxu0 }
 0xe4d   : > { %v2196_v14 = vpack.c.bf16 %v1631_v12, %v1631_v12  ;;  %v2356_v18 = vpop.f32.mrb[29].mxu0 }
 0xe4e   : > { %v1634_v58 = vpop.f32.mrb[30].mxu0 }
 0xe4f   : > { %2175 = vst.msk [vmem:[%s3765_s15 + $0x10] sm:$0xf] %vm1205_vm6, %v2196_v14  ;;  %v2197_v13 = vpack.c.bf16 %v1634_v58, %v1634_v58  ;;  %v2357_v60 = vpop.f32.mrb[31].mxu0 }
 0xe51   : > { %2176 = vst.msk [vmem:[%s3765_s15 + $0x14] sm:$0xf] %vm1205_vm6, %v2197_v13 }
 0xe54   : > { %v1735_v61 = vpop.f32.mrb[32].mxu0 }
 0xe55   : > { %v1742_v62 = vmul.f32 0.35355338, %v1735_v61  ;;  %v2370_v50 = vpop.f32.mrb[33].mxu0 }
 0xe56   : > { %v1738_v63 = vpop.f32.mrb[34].mxu0 }
 0xe57   : > { %v1743_v0 = vmul.f32 0.35355338, %v1738_v63  ;;  %v2371_v1 = vpop.f32.mrb[35].mxu0  ;;  %v1744_v24 = vsel %vm1066_vm4, %v1742_v62, -inf }
 0xe58   : > { %1745 = vmax.xlane.f32.xlu1 %v1744_v24 }
 0xe59   : > { %v1747_v59 = vsel %vm1066_vm4, %v1743_v0, -inf }
 0xe5c   : > { %1748 = vmax.xlane.f32.xlu1 %v1747_v59 }
 0xee5   : > { %v1746_v2 = vpop.xlane.xlu1 %1745 }
 0xee6   : > { %v1750_v3 = vsub.f32 %v1742_v62, %v1746_v2 }
 0xee8   : > { %v1752_v4 = vmul.f32 1.442695, %v1750_v3 }
 0xee9   : > { %v1749_v5 = vpop.xlane.xlu1 %1748 }
 0xeea   : > { %2617 = vpow2.f32 %v1752_v4  ;;  %v1751_v7 = vsub.f32 %v1743_v0, %v1749_v5 }
 0xeec   : > { %v1754_v8 = vmul.f32 1.442695, %v1751_v7 }
 0xeee   : > { %2619 = vpow2.f32 %v1754_v8 }
 0xef4   : > { %v2618_v9 = vpop.eup %2617 }
 0xef5   : > { %v1756_v11 = vsel %vm1066_vm4, %v2618_v9, 0.0 }
 0xef6   : > { %1757 = vadd.xlane.f32.xlu1 %v1756_v11 }
 0xef8   : > { %v2620_v16 = vpop.eup %2619 }
 0xef9   : > { %v1759_v17 = vsel %vm1066_vm4, %v2620_v16, 0.0 }
 0xefa   : > { %1760 = vadd.xlane.f32.xlu1 %v1759_v17 }
 0xf83   : > { %v1758_v20 = vpop.xlane.xlu1 %1757 }
 0xf84   : > { %2621 = vrcp.f32 %v1758_v20 }
 0xf87   : > { %v1761_v21 = vpop.xlane.xlu1 %1760 }
 0xf88   : > { %2623 = vrcp.f32 %v1761_v21 }
 0xf8e   : > { %v2622_v22 = vpop.eup %2621 }
 0xf8f   : > { %v1764_v25 = vmul.f32 %v2622_v22, %v2618_v9 }
 0xf92   : > { %v2624_v23 = vpop.eup %2623 }
 0xf93   : > { %v1765_v26 = vmul.f32 %v2624_v23, %v2620_v16 }
 0xf95   : > { %v1766_v27 = vpack.c.bf16 %v1765_v26, %v1764_v25 }
 0xf97   : > { %2375 = vmatmul.mubr.msk.bf16.vlgmr.msra.gmra.mrb[32].mxu1 %vm1066_vm4, %v1766_v27 }
0x106a   : > { %v1804_v28 = vpop.f32.mrb[32].mxu1 }
0x106b   : > { %v1811_v29 = vmul.f32 %v1804_v28, %v3708_v15  ;;  %v2376_v30 = vpop.f32.mrb[33].mxu1 }
0x106c   : > { %v1807_v31 = vpop.f32.mrb[34].mxu1 }
0x106d   : > { %v1812_v32 = vmul.f32 %v1807_v31, %v3712_v19  ;;  %v2377_v33 = vpop.f32.mrb[35].mxu1 }
0x106f   : > { %v1813_v34 = vpack.c.bf16 %v1812_v32, %v1811_v29 }
0x1071   : > { %2383 = vmatmul.mubr.msk.bf16.vlgmr.msra.gmra.mrb[36].mxu0 %vm676_vm0, %v1813_v34 }
0x1144   : > { %v1851_v35 = vpop.f32.mrb[36].mxu0 }
0x1145   : > { %v2198_v36 = vpack.c.bf16 %v1851_v35, %v1851_v35  ;;  %v2384_v37 = vpop.f32.mrb[37].mxu0 }
0x1146   : > { %v1854_v38 = vpop.f32.mrb[38].mxu0 }
0x1147   : > { %2183 = vst.msk [vmem:[%s3765_s15 + $0x18] sm:$0xf] %vm1205_vm6, %v2198_v36  ;;  %v2199_v15 = vpack.c.bf16 %v1854_v38, %v1854_v38  ;;  %v2385_v19 = vpop.f32.mrb[39].mxu0 }
0x1149   : > { %2184 = vst.msk [vmem:[%s3765_s15 + $0x1c] sm:$0xf] %vm1205_vm6, %v2199_v15 }
0x114a   : > { %3006 = shalt.err (!%p3003_p6)
}
0x114b   : > { %s3007_s14 = scalar_lea.hbm %s3856_s20, 512  ;;  %s3011_s13 = scalar_lea.hbm %s3982_s9, 1024 }
0x114c   : > { %p3008_p3 = scmp.ne.s32.totalorder %s3856_s20, %s3007_s14  ;;  %p3012_p2 = scmp.lt.u32.totalorder %s3856_s20, %s3982_s9 }
0x114d   : > { %p3013_p11 = scmp.lt.u32.totalorder %s3011_s13, %s3007_s14  ;;  %p3015_p0 = scmp.lt.u32.totalorder %s3007_s14, %s3856_s20 }
0x114e   : > { %p3009_p10 = pnand %p3008_p3, %p3983_p7 }
0x114f   : > { %p3014_p12 = por %p3013_p11, %p3012_p2 }
0x1150   : > { %p3010_p13 = pneg %p3009_p10 }
0x1151   : > { %p3016_p5 = por %p3015_p0, %p3014_p12 }
0x1153   : > { %p3017_p4 = pnand %p3016_p5, %p3010_p13 }
0x1155   : > { %3020 = shalt.err (!%p3017_p4)
}
0x1156   : > { %s3128_s7 = smov 64   ;;  %s3129_s5 = smov 4  }
0x1157   : > { %2434 = dma.vmem_to_hbm [thread:$0]  (%p3983_p7), %s3858_s2, 512, %s3856_s20, %s1870_s24, %s3128_s7, %s3128_s7, %s3129_s5  }
0x1158 PF: > { %s1900_s21 = sand.u32 1, %s3083_s25   ;;  %p3984_p8 = scmp.ne.s32.totalorder %s3962_s1, 0 }
0x1159   : > { %p3985_p9 = scmp.ge.s32.totalorder %s3103_s30, 2  ;;  %s1901_s3 = scalar_lea.sflag [#allocation4], %s1900_s21 }
0x115b   : > { %p2478_p1 = pnand %p3985_p9, %p3984_p8 }
0x115d   : > { %3078 = dma.done.wait (!%p2478_p1), %s1901_s3, 512  }
0x115e   : > { %3080 = vsyncadd (!%p2478_p1), %s1901_s3, 4294966784  ;;  %s37_s30 = sadd.s32 1, %s3103_s30   ;;  %s3986_s25 = smov %s3087_s26 }
0x115f   : > { %p34_p6 = scmp.ge.s32.totalorder %s37_s30, 4   ;;  %s3987_s26 = smov %s3091_s27 }
0x1160   : > { %s3988_s27 = smov %s3513_s23  ;;  %s3989_s28 = smov %s3099_s29 }
0x1161   : > { %s3990_s29 = smov %s3992_s18  ;;  %36 = sbr.rel (!%p34_p6) target bundleno = 25 (0x19), region = 177 }
0x1168   :  { %1906 = vsyncpa [#allocation3], 1 }
0x1169   :  { %1908 = vsyncpa [#allocation3 + $0x1], 1 }
0x116a   :  { %1909 = vsyncpa [#allocation6], 1 }
0x116b   :  { %1911 = vsyncpa [#allocation6 + $0x1], 1 }
0x116c   :  { %1912 = vsyncpa [#allocation9], 1 }
0x116d   :  { %1913 = vsyncpa [#allocation12], 1 }
0x116e   :  { %1914 = vsyncpa [#allocation15], 1 }
0x116f   :  { %1915 = vsyncpa [#allocation18], 1 }
0x1170   :  { %1916 = vsyncpa [#allocation21], 1 }
0x1171   :  { %1917 = vsyncpa [#allocation4], 1 }
0x1172   :  { %1919 = vsyncpa [#allocation4 + $0x1], 1 }

// kernel: decoder_forward.7
= control target key start
LH: loop header
LB: loop body
LE: loop exit
PB: predicated region body
PF: predicated region fallthrough
CT: control target
= control target key end

     0   :  { %15 = vsyncpa [#allocation6], 0  ;;  %s1399_s0 = inlined_call_operand.hbm [shape: f32[32,32], index: 0, kind: input, shape index: {}]   ;;  %s1400_s1 = inlined_call_operand.hbm [shape: bf16[32,32], index: 1, kind: input, shape index: {}]   ;;  %s1401_s2 = inlined_call_operand.hbm [shape: bf16[32,32], index: 2, kind: input, shape index: {}]   ;;  %s1402_s3 = inlined_call_operand.hbm [shape: f32[1,32], index: 3, kind: input, shape index: {}]   ;;  %s1403_s4 = inlined_call_operand.hbm [shape: f32[1,32], index: 4, kind: input, shape index: {}]   ;;  %s1404_s5 = inlined_call_operand.hbm [shape: f32[1,32], index: 5, kind: input, shape index: {}]   ;;  %s1405_s6 = inlined_call_operand.hbm [shape: bf16[32,128], index: 6, kind: input, shape index: {}]   ;;  %s1406_s7 = inlined_call_operand.hbm [shape: f32[1,128], index: 7, kind: input, shape index: {}]   ;;  %s1407_s8 = inlined_call_operand.hbm [shape: bf16[128,32], index: 8, kind: input, shape index: {}]   ;;  %s1408_s9 = inlined_call_operand.hbm [shape: f32[1,32], index: 9, kind: input, shape index: {}]   ;;  %s1409_s10 = inlined_call_operand.hbm [shape: f32[32,32], index: 10, kind: output, shape index: {}]  }
   0x1   :  { %16 = vsyncpa [#allocation9], 0 }
   0x2   :  { %17 = vsyncpa [#allocation12], 0 }
   0x3   :  { %18 = vsyncpa [#allocation15], 0 }
   0x4   :  { %19 = vsyncpa [#allocation18], 0 }
   0x5   :  { %20 = vsyncpa [#allocation21], 0 }
   0x6   :  { %21 = vsyncpa [#allocation7], 0  ;;  %s1115_s13 = smov [#allocation8]   ;;  %s859_s17 = scalar_lea.hbm %s1400_s1, 256 }
   0x7   :  { %s39_s14 = sshll.u32 %s1115_s13, 4  ;;  %p860_p0 = scmp.ne.s32.totalorder %s1400_s1, %s859_s17  ;;  %s40_s14 = int_to_ptr.vmem [resolvable:$true] %s39_s14 }
   0x8   :  { %p863_p1 = scmp.lt.u32.totalorder %s859_s17, %s1400_s1 }
   0xa   :  { %p865_p2 = pnand %p863_p1, %p860_p0 }
   0xc   :  { %868 = shalt.err (!%p865_p2)
}
   0xd   :  { %s869_s22 = scalar_lea.vmem %s40_s14, 256  ;;  %p874_p4 = scmp.lt.s32.totalorder %s40_s14, %s40_s14 }
   0xe   :  { %p870_p3 = scmp.ne.s32.totalorder %s40_s14, %s869_s22  ;;  %p875_p5 = scmp.lt.s32.totalorder %s869_s22, %s869_s22 }
  0x10   :  { %p876_p6 = por %p875_p5, %p874_p4 }
  0x12   :  { %p877_p7 = pnand %p876_p6, %p870_p3 }
  0x14   :  { %880 = shalt.err (!%p877_p7)
}
  0x15   :  { %s1116_s23 = smov 64   ;;  %s1117_s24 = smov 4  }
  0x16   :  { %45 = dma.hbm_to_vmem [thread:$0]  %s1400_s1, 256, %s40_s14, [#allocation9], %s1116_s23, %s1116_s23, %s1117_s24  }
  0x17   :  { %s1118_s27 = smov [#allocation11]   ;;  %s1119_s29 = smov [#allocation14]  }
  0x18   :  { %s64_s28 = sshll.u32 %s1118_s27, 4  ;;  %s84_s30 = sshll.u32 %s1119_s29, 4  ;;  %s65_s28 = int_to_ptr.vmem [resolvable:$true] %s64_s28  ;;  %s85_s30 = int_to_ptr.vmem [resolvable:$true] %s84_s30 }
  0x19   :  { %s881_s13 = scalar_lea.hbm %s1402_s3, 16 }
  0x1a   :  { %p882_p8 = scmp.ne.s32.totalorder %s1402_s3, %s881_s13  ;;  %p885_p9 = scmp.lt.u32.totalorder %s881_s13, %s1402_s3 }
  0x1c   :  { %p887_p10 = pnand %p885_p9, %p882_p8 }
  0x1e   :  { %890 = shalt.err (!%p887_p10)
}
  0x1f   :  { %s891_s1 = scalar_lea.vmem %s65_s28, 16  ;;  %s895_s14 = scalar_lea.vmem %s65_s28, 32 }
  0x20   :  { %p892_p11 = scmp.ne.s32.totalorder %s65_s28, %s891_s1  ;;  %p896_p12 = scmp.lt.s32.totalorder %s65_s28, %s65_s28 }
  0x21   :  { %p897_p13 = scmp.lt.s32.totalorder %s895_s14, %s891_s1 }
  0x23   :  { %p898_p0 = por %p897_p13, %p896_p12 }
  0x25   :  { %p899_p1 = pnand %p898_p0, %p892_p11 }
  0x27   :  { %902 = shalt.err (!%p899_p1)
}
  0x28   :  { %67 = dma.hbm_to_vmem [thread:$0]  %s1402_s3, 16, %s65_s28, [#allocation12]  }
  0x29   :  { %s903_s25 = scalar_lea.hbm %s1404_s5, 16 }
  0x2a   :  { %p904_p2 = scmp.ne.s32.totalorder %s1404_s5, %s903_s25  ;;  %p907_p3 = scmp.lt.u32.totalorder %s903_s25, %s1404_s5 }
  0x2c   :  { %p909_p4 = pnand %p907_p3, %p904_p2 }
  0x2e   :  { %912 = shalt.err (!%p909_p4)
}
  0x2f   :  { %s913_s12 = scalar_lea.vmem %s85_s30, 16  ;;  %s917_s13 = scalar_lea.vmem %s85_s30, 32 }
  0x30   :  { %p914_p5 = scmp.ne.s32.totalorder %s85_s30, %s913_s12  ;;  %p918_p6 = scmp.lt.s32.totalorder %s85_s30, %s85_s30 }
  0x31   :  { %p919_p7 = scmp.lt.s32.totalorder %s917_s13, %s913_s12 }
  0x33   :  { %p920_p8 = por %p919_p7, %p918_p6 }
  0x35   :  { %p921_p9 = pnand %p920_p8, %p914_p5 }
  0x37   :  { %924 = shalt.err (!%p921_p9)
}
  0x38   :  { %87 = dma.hbm_to_vmem [thread:$0]  %s1404_s5, 16, %s85_s30, [#allocation15]  }
  0x39   :  { %s1120_s15 = smov [#allocation17]   ;;  %s1121_s17 = smov [#allocation5]  }
  0x3a   :  { %s106_s16 = sshll.u32 %s1120_s15, 4  ;;  %s27_s18 = sshll.u32 %s1121_s17, 4  ;;  %s107_s16 = int_to_ptr.vmem [resolvable:$true] %s106_s16  ;;  %s28_s18 = int_to_ptr.vmem [resolvable:$true] %s27_s18 }
  0x3b   :  { %s925_s19 = scalar_lea.hbm %s1406_s7, 16 }
  0x3c   :  { %p926_p10 = scmp.ne.s32.totalorder %s1406_s7, %s925_s19  ;;  %p929_p11 = scmp.lt.u32.totalorder %s925_s19, %s1406_s7 }
  0x3e   :  { %p931_p12 = pnand %p929_p11, %p926_p10 }
  0x40   :  { %934 = shalt.err (!%p931_p12)
}
  0x41   :  { %s935_s5 = scalar_lea.vmem %s107_s16, 16  ;;  %s939_s30 = scalar_lea.vmem %s107_s16, 32 }
  0x42   :  { %p936_p13 = scmp.ne.s32.totalorder %s107_s16, %s935_s5  ;;  %p940_p0 = scmp.lt.s32.totalorder %s107_s16, %s107_s16 }
  0x43   :  { %p941_p1 = scmp.lt.s32.totalorder %s939_s30, %s935_s5 }
  0x45   :  { %p942_p2 = por %p941_p1, %p940_p0 }
  0x47   :  { %p943_p3 = pnand %p942_p2, %p936_p13 }
  0x49   :  { %946 = shalt.err (!%p943_p3)
}
  0x4a   :  { %109 = dma.hbm_to_vmem [thread:$0]  %s1406_s7, 16, %s107_s16, [#allocation18]  }
  0x4b   :  { %s947_s12 = scalar_lea.hbm %s1399_s0, 512 }
  0x4c   :  { %p948_p4 = scmp.ne.s32.totalorder %s1399_s0, %s947_s12  ;;  %p951_p5 = scmp.lt.u32.totalorder %s947_s12, %s1399_s0 }
  0x4e   :  { %p953_p6 = pnand %p951_p5, %p948_p4 }
  0x50   :  { %956 = shalt.err (!%p953_p6)
}
  0x51   :  { %s957_s17 = scalar_lea.vmem %s28_s18, 512  ;;  %p962_p8 = scmp.lt.s32.totalorder %s28_s18, %s28_s18 }
  0x52   :  { %p958_p7 = scmp.ne.s32.totalorder %s28_s18, %s957_s17  ;;  %p963_p9 = scmp.lt.s32.totalorder %s957_s17, %s957_s17 }
  0x54   :  { %p964_p10 = por %p963_p9, %p962_p8 }
  0x56   :  { %p965_p11 = pnand %p964_p10, %p958_p7 }
  0x58   :  { %968 = shalt.err (!%p965_p11)
}
  0x59   :  { %s1122_s7 = smov 128   ;;  %s1123_s16 = smov 8  }
  0x5a   :  { %33 = dma.hbm_to_vmem [thread:$0]  %s1399_s0, 512, %s28_s18, [#allocation6], %s1122_s7, %s1122_s7, %s1123_s16  }
  0x5b   :  { %s1124_s19 = smov [#allocation10]   ;;  %s1125_s21 = smov [#allocation13]  }
  0x5c   :  { %s51_s20 = sshll.u32 %s1124_s19, 4  ;;  %s74_s22 = sshll.u32 %s1125_s21, 4  ;;  %s52_s20 = int_to_ptr.vmem [resolvable:$true] %s51_s20  ;;  %s75_s22 = int_to_ptr.vmem [resolvable:$true] %s74_s22 }
  0x5d   :  { %s969_s30 = scalar_lea.hbm %s1401_s2, 256 }
  0x5e   :  { %p970_p12 = scmp.ne.s32.totalorder %s1401_s2, %s969_s30  ;;  %p973_p13 = scmp.lt.u32.totalorder %s969_s30, %s1401_s2 }
  0x60   :  { %p975_p0 = pnand %p973_p13, %p970_p12 }
  0x62   :  { %978 = shalt.err (!%p975_p0)
}
  0x63   :  { %s979_s0 = scalar_lea.vmem %s52_s20, 256  ;;  %p984_p2 = scmp.lt.s32.totalorder %s52_s20, %s52_s20 }
  0x64   :  { %p980_p1 = scmp.ne.s32.totalorder %s52_s20, %s979_s0  ;;  %p985_p3 = scmp.lt.s32.totalorder %s979_s0, %s979_s0 }
  0x66   :  { %p986_p4 = por %p985_p3, %p984_p2 }
  0x68   :  { %p987_p5 = pnand %p986_p4, %p980_p1 }
  0x6a   :  { %990 = shalt.err (!%p987_p5)
}
  0x6b   :  { %57 = dma.hbm_to_vmem [thread:$0]  %s1401_s2, 256, %s52_s20, [#allocation9], %s1116_s23, %s1116_s23, %s1117_s24  }
  0x6c   :  { %s991_s28 = scalar_lea.hbm %s1403_s4, 16 }
  0x6d   :  { %p992_p6 = scmp.ne.s32.totalorder %s1403_s4, %s991_s28  ;;  %p995_p7 = scmp.lt.u32.totalorder %s991_s28, %s1403_s4 }
  0x6f   :  { %p997_p8 = pnand %p995_p7, %p992_p6 }
  0x71   :  { %1000 = shalt.err (!%p997_p8)
}
  0x72   :  { %s1001_s19 = scalar_lea.vmem %s75_s22, 16  ;;  %s1005_s21 = scalar_lea.vmem %s75_s22, 32 }
  0x73   :  { %p1002_p9 = scmp.ne.s32.totalorder %s75_s22, %s1001_s19  ;;  %p1006_p10 = scmp.lt.s32.totalorder %s75_s22, %s75_s22 }
  0x74   :  { %p1007_p11 = scmp.lt.s32.totalorder %s1005_s21, %s1001_s19 }
  0x76   :  { %p1008_p12 = por %p1007_p11, %p1006_p10 }
  0x78   :  { %p1009_p13 = pnand %p1008_p12, %p1002_p9 }
  0x7a   :  { %1012 = shalt.err (!%p1009_p13)
}
  0x7b   :  { %77 = dma.hbm_to_vmem [thread:$0]  %s1403_s4, 16, %s75_s22, [#allocation12]  }
  0x7c   :  { %s1126_s25 = smov [#allocation16]   ;;  %s1127_s30 = smov [#allocation19]  }
  0x7d   :  { %s93_s5 = sshll.u32 %s1126_s25, 4  ;;  %s115_s26 = sshll.u32 %s1127_s30, 4  ;;  %s94_s5 = int_to_ptr.vmem [resolvable:$true] %s93_s5  ;;  %s116_s26 = int_to_ptr.vmem [resolvable:$true] %s115_s26 }
  0x7e   :  { %s1013_s11 = scalar_lea.hbm %s1405_s6, 256 }
  0x7f   :  { %p1014_p0 = scmp.ne.s32.totalorder %s1405_s6, %s1013_s11  ;;  %p1017_p1 = scmp.lt.u32.totalorder %s1013_s11, %s1405_s6 }
  0x81   :  { %p1019_p2 = pnand %p1017_p1, %p1014_p0 }
  0x83   :  { %1022 = shalt.err (!%p1019_p2)
}
  0x84   :  { %s1023_s4 = scalar_lea.vmem %s94_s5, 256  ;;  %p1028_p4 = scmp.lt.s32.totalorder %s94_s5, %s94_s5 }
  0x85   :  { %p1024_p3 = scmp.ne.s32.totalorder %s94_s5, %s1023_s4  ;;  %p1029_p5 = scmp.lt.s32.totalorder %s1023_s4, %s1023_s4 }
  0x87   :  { %p1030_p6 = por %p1029_p5, %p1028_p4 }
  0x89   :  { %p1031_p7 = pnand %p1030_p6, %p1024_p3 }
  0x8b   :  { %1034 = shalt.err (!%p1031_p7)
}
  0x8c   :  { %99 = dma.hbm_to_vmem [thread:$0]  %s1405_s6, 256, %s94_s5, [#allocation15], %s1116_s23, %s1116_s23, %s1117_s24  }
  0x8d   :  { %s1035_s17 = scalar_lea.hbm %s1407_s8, 1024 }
  0x8e   :  { %p1036_p8 = scmp.ne.s32.totalorder %s1407_s8, %s1035_s17  ;;  %p1039_p9 = scmp.lt.u32.totalorder %s1035_s17, %s1407_s8 }
  0x90   :  { %p1041_p10 = pnand %p1039_p9, %p1036_p8 }
  0x92   :  { %1044 = shalt.err (!%p1041_p10)
}
  0x93   :  { %s1045_s2 = scalar_lea.vmem %s116_s26, 1024  ;;  %p1050_p12 = scmp.lt.s32.totalorder %s116_s26, %s116_s26 }
  0x94   :  { %p1046_p11 = scmp.ne.s32.totalorder %s116_s26, %s1045_s2  ;;  %p1051_p13 = scmp.lt.s32.totalorder %s1045_s2, %s1045_s2 }
  0x96   :  { %p1052_p0 = por %p1051_p13, %p1050_p12 }
  0x98   :  { %p1053_p1 = pnand %p1052_p0, %p1046_p11 }
  0x9a   :  { %1056 = shalt.err (!%p1053_p1)
}
  0x9b   :  { %121 = dma.hbm_to_vmem [thread:$0]  %s1407_s8, 1024, %s116_s26, [#allocation18], %s1116_s23, %s1116_s23, %s1117_s24  }
  0x9c   :  { %s1128_s25 = smov [#allocation20]   ;;  %s1057_s29 = scalar_lea.hbm %s1408_s9, 16 }
  0x9d   :  { %s128_s5 = sshll.u32 %s1128_s25, 4  ;;  %p1058_p2 = scmp.ne.s32.totalorder %s1408_s9, %s1057_s29  ;;  %s129_s5 = int_to_ptr.vmem [resolvable:$true] %s128_s5 }
  0x9e   :  { %p1061_p3 = scmp.lt.u32.totalorder %s1057_s29, %s1408_s9 }
  0xa0   :  { %p1063_p4 = pnand %p1061_p3, %p1058_p2 }
  0xa2   :  { %1066 = shalt.err (!%p1063_p4)
}
  0xa3   :  { %s1067_s13 = scalar_lea.vmem %s129_s5, 16  ;;  %s1071_s8 = scalar_lea.vmem %s129_s5, 32 }
  0xa4   :  { %p1068_p5 = scmp.ne.s32.totalorder %s129_s5, %s1067_s13  ;;  %p1072_p6 = scmp.lt.s32.totalorder %s129_s5, %s129_s5 }
  0xa5   :  { %p1073_p7 = scmp.lt.s32.totalorder %s1071_s8, %s1067_s13 }
  0xa7   :  { %p1074_p8 = por %p1073_p7, %p1072_p6 }
  0xa9   :  { %p1075_p9 = pnand %p1074_p8, %p1068_p5 }
  0xab   :  { %1078 = shalt.err (!%p1075_p9)
}
  0xac   :  { %131 = dma.hbm_to_vmem [thread:$0]  %s1408_s9, 16, %s129_s5, [#allocation21]  }
  0xad   :  { %1101 = dma.done.wait [#allocation6], 512  }
  0xae   :  { %1102 = vsyncadd [#allocation6], 4294966784 }
  0xaf   :  { %1103 = dma.done.wait [#allocation9], 512  }
  0xb0   :  { %1104 = vsyncadd [#allocation9], 4294966784 }
  0xb1   :  { %1105 = dma.done.wait [#allocation12], 32  }
  0xb2   :  { %1106 = vsyncadd [#allocation12], 4294967264 }
  0xb3   :  { %1107 = dma.done.wait [#allocation15], 272  }
  0xb4   :  { %1108 = vsyncadd [#allocation15], 4294967024 }
  0xb5   :  { %1109 = dma.done.wait [#allocation18], 1040  }
  0xb6   :  { %1110 = vsyncadd [#allocation18], 4294966256 }
  0xb7   :  { %1111 = dma.done.wait [#allocation21], 16  }
  0xb8   :  { %1112 = vsyncadd [#allocation21], 4294967280  ;;  %v821_v0 = vld [vmem:[#allocation10] sm:$0xff]   ;;  %v822_v1 = vld [vmem:[#allocation10 + $0x8] sm:$0xff]   ;;  %vm212_vm0 = vcmask 261120   ;;  %s1131_s9 = smov [#allocation22]  }
  0xb9   :  { %768 = vmatprep.subr.bf16.mxu1 %v821_v0  ;;  %v823_v2 = vld [vmem:[#allocation8] sm:$0xff]   ;;  %v824_v3 = vld [vmem:[#allocation8 + $0x8] sm:$0xff]   ;;  %v169_v4 = vld [vmem:[#allocation5 + $0x10] sm:$0xff]  ;;  %s710_s26 = sshll.u32 %s1131_s9, 4  ;;  %s711_s26 = int_to_ptr.vmem [resolvable:$true] %s710_s26 }
  0xba   :  { %769 = vmatpush3.bf16.msra.mxu1 %v821_v0  ;;  %772 = vmatprep.mubr.msk.bf16.mxu1 %vm212_vm0, %v823_v2  ;;  %v727_v5 = vld [vmem:[#allocation11] ss:$0 sm:$0xff]  ;;  %v170_v7 = vld [vmem:[#allocation5 + $0x18] sm:$0xff]  ;;  %v168_v9 = vld [vmem:[#allocation5 + $0x8] sm:$0xff]  ;;  %s1079_s4 = scalar_lea.vmem %s711_s26, 512  ;;  %p1084_p11 = scmp.lt.s32.totalorder %s711_s26, %s711_s26 }
  0xbb   :  { %770 = vmatprep.subr.bf16.mxu1 %v822_v1  ;;  %v167_v6 = vld [vmem:[#allocation5] sm:$0xff]  ;;  %v180_v8 = vadd.f32 %v727_v5, %v169_v4  ;;  %v181_v11 = vadd.f32 %v727_v5, %v170_v7  ;;  %v179_v13 = vadd.f32 %v727_v5, %v168_v9  ;;  %v826_v46 = vld [vmem:[#allocation16 + $0x8] sm:$0xff]   ;;  %p1080_p10 = scmp.ne.s32.totalorder %s711_s26, %s1079_s4  ;;  %p1085_p12 = scmp.lt.s32.totalorder %s1079_s4, %s1079_s4 }
  0xbc   :  { %v178_v10 = vadd.f32 %v727_v5, %v167_v6  ;;  %v825_v45 = vld [vmem:[#allocation16] sm:$0xff]   ;;  %v734_v61 = vld [vmem:[#allocation13] ss:$0 sm:$0xff]  ;;  %v735_v2 = vld [vmem:[#allocation14] ss:$0 sm:$0xff] }
  0xbd   :  { %p1086_p13 = por %p1085_p12, %p1084_p11 }
  0xbe   :  { %771 = vmatpush3.bf16.msra.mxu1 %v822_v1 }
  0xbf   :  { %776 = vmatprep.subr.bf16.mxu1 %v825_v45  ;;  %p1087_p0 = pnand %p1086_p13, %p1080_p10 }
  0xc1   :  { %773 = vmatmul.mubr.msk.bf16.vlgmr.msra.gmra.mrb[0].mxu1 %vm212_vm0, %v824_v3 }
  0xc2   :  { %777 = vmatpush3.bf16.msra.mxu1 %v825_v45 }
  0xc3   :  { %778 = vmatprep.subr.bf16.mxu1 %v826_v46 }
  0xc6   :  { %779 = vmatpush3.bf16.msra.mxu1 %v826_v46 }
 0x194   :  { %v774_v12 = vpop.f32.mrb[0].mxu1 }
 0x195   :  { %v270_v14 = vadd.f32 %v774_v12, %v180_v8  ;;  %v253_v15 = vpop.f32.mrb[1].mxu1 }
 0x196   :  { %v268_v16 = vadd.f32 %v253_v15, %v178_v10  ;;  %v775_v17 = vpop.f32.mrb[2].mxu1 }
 0x197   :  { %274 = vst.msk [vmem:[#allocation2 + $0x10] sm:$0xff] %vm212_vm0, %v270_v14  ;;  %v271_v18 = vadd.f32 %v775_v17, %v181_v11  ;;  %v256_v19 = vpop.f32.mrb[3].mxu1  ;;  %v284_v20 = vsel %vm212_vm0, %v270_v14, 0.0  ;;  %v827_v17 = vld [vmem:[#allocation19] sm:$0xff]  }
 0x198   :  { %272 = vst.msk [vmem:[#allocation2] sm:$0xff] %vm212_vm0, %v268_v16  ;;  %v269_v21 = vadd.f32 %v256_v19, %v179_v13  ;;  %285 = vadd.xlane.f32.xlu1 %v284_v20  ;;  %v278_v22 = vsel %vm212_vm0, %v268_v16, 0.0  ;;  %784 = vmatprep.subr.bf16.mxu0 %v827_v17  ;;  %v829_v19 = vld [vmem:[#allocation19 + $0x10] sm:$0xff]   ;;  %v830_v20 = vld [vmem:[#allocation19 + $0x18] sm:$0xff]  }
 0x199   :  { %275 = vst.msk [vmem:[#allocation2 + $0x18] sm:$0xff] %vm212_vm0, %v271_v18  ;;  %279 = vadd.xlane.f32.xlu0 %v278_v22  ;;  %v287_v23 = vsel %vm212_vm0, %v271_v18, 0.0  ;;  %785 = vmatpush3.bf16.msra.mxu0 %v827_v17  ;;  %v832_v22 = vld [vmem:[#allocation19 + $0x28] sm:$0xff]  }
 0x19a   :  { %273 = vst.msk [vmem:[#allocation2 + $0x8] sm:$0xff] %vm212_vm0, %v269_v21  ;;  %v281_v24 = vsel %vm212_vm0, %v269_v21, 0.0 }
 0x19c   :  { %288 = vadd.xlane.f32.xlu1 %v287_v23  ;;  %v833_v23 = vld [vmem:[#allocation19 + $0x30] sm:$0xff]  }
 0x19d   :  { %282 = vadd.xlane.f32.xlu0 %v281_v24  ;;  %v834_v24 = vld [vmem:[#allocation19 + $0x38] sm:$0xff]  }
 0x225   :  { %v286_v25 = vpop.xlane.xlu1 %285 }
 0x226   :  { %v293_v26 = vmul.f32 0.03125, %v286_v25  ;;  %v280_v27 = vpop.xlane.xlu0 %279  ;;  %v1129_v25 = vmov 0.0  }
 0x227   :  { %v291_v28 = vmul.f32 0.03125, %v280_v27  ;;  %357 = vst.msk [vmem:[#allocation4 + $0x10] sm:$0xff] %vm212_vm0, %v1129_v25  ;;  %355 = vst.msk [vmem:[#allocation4] sm:$0xff] %vm212_vm0, %v1129_v25 }
 0x228   :  { %v297_v29 = vsub.f32 %v270_v14, %v293_v26  ;;  %356 = vst.msk [vmem:[#allocation4 + $0x8] sm:$0xff] %vm212_vm0, %v1129_v25  ;;  %358 = vst.msk [vmem:[#allocation4 + $0x18] sm:$0xff] %vm212_vm0, %v1129_v25  ;;  %v736_v26 = vld [vmem:[#allocation17] ss:$0 sm:$0xff] }
 0x229   :  { %v295_v30 = vsub.f32 %v268_v16, %v291_v28  ;;  %v289_v31 = vpop.xlane.xlu1 %288 }
 0x22a   :  { %v294_v32 = vmul.f32 0.03125, %v289_v31  ;;  %v283_v33 = vpop.xlane.xlu0 %282  ;;  %v301_v39 = vmul.f32 %v297_v29, %v297_v29 }
 0x22b   :  { %v292_v34 = vmul.f32 0.03125, %v283_v33  ;;  %v299_v35 = vmul.f32 %v295_v30, %v295_v30 }
 0x22c   :  { %v298_v36 = vsub.f32 %v271_v18, %v294_v32  ;;  %v309_v41 = vsel %vm212_vm0, %v301_v39, 0.0  ;;  %v828_v18 = vld [vmem:[#allocation19 + $0x8] sm:$0xff]  }
 0x22d   :  { %v296_v37 = vsub.f32 %v269_v21, %v292_v34  ;;  %v303_v38 = vsel %vm212_vm0, %v299_v35, 0.0  ;;  %786 = vmatprep.subr.bf16.mxu0 %v828_v18  ;;  %v831_v21 = vld [vmem:[#allocation19 + $0x20] sm:$0xff]  }
 0x22e   :  { %304 = vadd.xlane.f32.xlu0 %v303_v38  ;;  %v302_v43 = vmul.f32 %v298_v36, %v298_v36  ;;  %787 = vmatpush3.bf16.msra.mxu0 %v828_v18 }
 0x22f   :  { %v300_v40 = vmul.f32 %v296_v37, %v296_v37  ;;  %788 = vmatprep.subr.bf16.mxu0 %v829_v19 }
 0x230   :  { %v312_v44 = vsel %vm212_vm0, %v302_v43, 0.0 }
 0x231   :  { %v306_v42 = vsel %vm212_vm0, %v300_v40, 0.0 }
 0x232   :  { %310 = vadd.xlane.f32.xlu0 %v309_v41  ;;  %307 = vadd.xlane.f32.xlu1 %v306_v42 }
 0x233   :  { %789 = vmatpush3.bf16.msra.mxu0 %v829_v19 }
 0x234   :  { %790 = vmatprep.subr.bf16.mxu0 %v830_v20 }
 0x236   :  { %313 = vadd.xlane.f32.xlu1 %v312_v44 }
 0x237   :  { %791 = vmatpush3.bf16.msra.mxu0 %v830_v20 }
 0x238   :  { %792 = vmatprep.subr.bf16.mxu0 %v831_v21 }
 0x23b   :  { %793 = vmatpush3.bf16.msra.mxu0 %v831_v21 }
 0x23c   :  { %794 = vmatprep.subr.bf16.mxu0 %v832_v22 }
 0x23f   :  { %795 = vmatpush3.bf16.msra.mxu0 %v832_v22 }
 0x240   :  { %796 = vmatprep.subr.bf16.mxu0 %v833_v23 }
 0x243   :  { %797 = vmatpush3.bf16.msra.mxu0 %v833_v23 }
 0x244   :  { %798 = vmatprep.subr.bf16.mxu0 %v834_v24 }
 0x247   :  { %799 = vmatpush3.bf16.msra.mxu0 %v834_v24 }
 0x2bb   :  { %v305_v47 = vpop.xlane.xlu0 %304 }
 0x2bc   :  { %v315_v48 = vmul.f32 0.03125, %v305_v47 }
 0x2be   :  { %v319_v49 = vadd.f32 1e-05, %v315_v48 }
 0x2bf   :  { %v308_v50 = vpop.xlane.xlu1 %307  ;;  %v311_v51 = vpop.xlane.xlu0 %310 }
 0x2c0   :  { %835 = vrsqrt.f32 %v319_v49  ;;  %v316_v52 = vmul.f32 0.03125, %v308_v50  ;;  %v317_v53 = vmul.f32 0.03125, %v311_v51 }
 0x2c2   :  { %v320_v54 = vadd.f32 1e-05, %v316_v52  ;;  %v321_v55 = vadd.f32 1e-05, %v317_v53 }
 0x2c3   :  { %v314_v56 = vpop.xlane.xlu1 %313 }
 0x2c4   :  { %837 = vrsqrt.f32 %v320_v54  ;;  %v318_v57 = vmul.f32 0.03125, %v314_v56 }
 0x2c5   :  { %839 = vrsqrt.f32 %v321_v55 }
 0x2c6   :  { %v322_v58 = vadd.f32 1e-05, %v318_v57 }
 0x2c8   :  { %841 = vrsqrt.f32 %v322_v58 }
 0x2ca   :  { %v836_v59 = vpop.eup %835 }
 0x2cb   :  { %v327_v60 = vmul.f32 %v836_v59, %v295_v30 }
 0x2cd   :  { %v337_v0 = vmul.f32 %v734_v61, %v327_v60 }
 0x2ce   :  { %v838_v62 = vpop.eup %837 }
 0x2cf   :  { %v840_v63 = vpop.eup %839  ;;  %v328_v1 = vmul.f32 %v838_v62, %v296_v37  ;;  %v347_v6 = vadd.f32 %v735_v2, %v337_v0 }
 0x2d0   :  { %v329_v3 = vmul.f32 %v840_v63, %v297_v29 }
 0x2d1   :  { %v338_v4 = vmul.f32 %v734_v61, %v328_v1 }
 0x2d2   :  { %v842_v5 = vpop.eup %841  ;;  %v339_v8 = vmul.f32 %v734_v61, %v329_v3 }
 0x2d3   :  { %v348_v7 = vadd.f32 %v735_v2, %v338_v4  ;;  %v330_v9 = vmul.f32 %v842_v5, %v298_v36 }
 0x2d4   :  { %v349_v12 = vadd.f32 %v735_v2, %v339_v8 }
 0x2d5   :  { %v351_v10 = vpack.c.bf16 %v348_v7, %v347_v6  ;;  %v340_v11 = vmul.f32 %v734_v61, %v330_v9 }
 0x2d7   :  { %353 = vst.msk [vmem:[#allocation3] sm:$0xff] %vm212_vm0, %v351_v10  ;;  %v350_v13 = vadd.f32 %v735_v2, %v340_v11 }
 0x2d9   :  { %v352_v14 = vpack.c.bf16 %v350_v13, %v349_v12 }
 0x2db   :  { %354 = vst.msk [vmem:[#allocation3 + $0x8] sm:$0xff] %vm212_vm0, %v352_v14 }
 0x2de   :  { %v359_v15 = vld [vmem:[#allocation3] sm:$0xff] }
 0x2df   :  { %780 = vmatprep.mubr.msk.bf16.mxu1 %vm212_vm0, %v359_v15 }
 0x2e2   :  { %v360_v16 = vld [vmem:[#allocation3 + $0x8] sm:$0xff] }
 0x2e3   :  { %781 = vmatmul.mubr.msk.bf16.vlgmr.msra.gmra.mrb[4].mxu1 %vm212_vm0, %v360_v16 }
 0x3b6   :  { %v782_v27 = vpop.f32.mrb[4].mxu1 }
 0x3b7   :  { %v1344_v28 = vadd.f32 %v782_v27, %v736_v26  ;;  %v425_v29 = vpop.f32.mrb[5].mxu1 }
 0x3b8   :  { %v1346_v30 = vadd.f32 %v736_v26, %v425_v29  ;;  %v783_v31 = vpop.f32.mrb[6].mxu1 }
 0x3b9   :  { %v1349_v32 = vmul.f32 0.70710677, %v1344_v28  ;;  %v1351_v33 = vadd.f32 %v783_v31, %v736_v26  ;;  %v428_v34 = vpop.f32.mrb[7].mxu1 }
 0x3ba   :  { %v1354_v35 = vmul.f32 0.70710677, %v1346_v30  ;;  %v1356_v36 = vadd.f32 %v736_v26, %v428_v34 }
 0x3bb   :  { %v458_v37 = vand.u32 2147483647, %v1349_v32  ;;  %v1360_v38 = vmul.f32 0.70710677, %v1351_v33  ;;  %vm450_vm1 = vcmp.ge.f32.partialorder %v1349_v32, 0.0 }
 0x3bc   :  { %v456_v39 = vand.u32 2147483647, %v1354_v35  ;;  %v1365_v43 = vmul.f32 0.70710677, %v1356_v36  ;;  %vm448_vm2 = vcmp.ge.f32.partialorder %v1354_v35, 0.0 }
 0x3bd   :  { %v462_v40 = vmul.f32 0.3275911, %v458_v37  ;;  %v459_v41 = vand.u32 2147483647, %v1360_v38  ;;  %v514_v51 = vsub.f32 0.0, %v458_v37  ;;  %vm451_vm3 = vcmp.ge.f32.partialorder %v1360_v38, 0.0 }
 0x3be   :  { %v460_v42 = vmul.f32 0.3275911, %v456_v39  ;;  %v457_v47 = vand.u32 2147483647, %v1365_v43  ;;  %v512_v52 = vsub.f32 0.0, %v456_v39  ;;  %vm449_vm4 = vcmp.ge.f32.partialorder %v1365_v43, 0.0 }
 0x3bf   :  { %v466_v44 = vadd.f32 1.0, %v462_v40  ;;  %v463_v45 = vmul.f32 0.3275911, %v459_v41  ;;  %v518_v54 = vmul.f32 %v514_v51, %v458_v37  ;;  %v515_v55 = vsub.f32 0.0, %v459_v41 }
 0x3c0   :  { %v464_v46 = vadd.f32 1.0, %v460_v42  ;;  %v461_v49 = vmul.f32 0.3275911, %v457_v47  ;;  %v516_v58 = vmul.f32 %v512_v52, %v456_v39  ;;  %v513_v59 = vsub.f32 0.0, %v457_v47 }
 0x3c1   :  { %843 = vrcp.f32 %v466_v44  ;;  %v467_v48 = vadd.f32 1.0, %v463_v45  ;;  %v524_v63 = vmul.f32 1.442695, %v518_v54  ;;  %v519_v0 = vmul.f32 %v515_v55, %v459_v41 }
 0x3c2   :  { %845 = vrcp.f32 %v464_v46  ;;  %v465_v50 = vadd.f32 1.0, %v461_v49  ;;  %v520_v3 = vmul.f32 1.442695, %v516_v58  ;;  %v517_v6 = vmul.f32 %v513_v59, %v457_v47 }
 0x3c3   :  { %847 = vrcp.f32 %v467_v48  ;;  %v526_v11 = vmul.f32 1.442695, %v519_v0  ;;  %v1130_v52 = vmov -1.0   ;;  %v441_v43 = vmul.f32 0.5, %v1356_v36 }
 0x3c4   :  { %849 = vrcp.f32 %v465_v50  ;;  %v522_v16 = vmul.f32 1.442695, %v517_v6  ;;  %v454_v54 = vsel %vm450_vm1, 1.0, %v1130_v52  ;;  %v452_v32 = vsel %vm448_vm2, 1.0, %v1130_v52 }
 0x3c5   :  { %851 = vpow2.f32 %v524_v63  ;;  %v455_v63 = vsel %vm451_vm3, 1.0, %v1130_v52 }
 0x3c6   :  { %853 = vpow2.f32 %v520_v3  ;;  %v443_v3 = vmul.f32 0.5, %v1351_v33  ;;  %v551_v33 = vld [vmem:[#allocation4 + $0x18] sm:$0xff] }
 0x3c7   :  { %855 = vpow2.f32 %v526_v11 }
 0x3c8   :  { %857 = vpow2.f32 %v522_v16 }
 0x3cb   :  { %v844_v53 = vpop.eup %843 }
 0x3cc   :  { %v846_v56 = vpop.eup %845  ;;  %v478_v57 = vmul.f32 1.0614054, %v844_v53 }
 0x3cd   :  { %v476_v60 = vmul.f32 1.0614054, %v846_v56  ;;  %v848_v62 = vpop.eup %847 }
 0x3ce   :  { %v482_v61 = vadd.f32 -1.4531521, %v478_v57  ;;  %v479_v4 = vmul.f32 1.0614054, %v848_v62  ;;  %v850_v5 = vpop.eup %849 }
 0x3cf   :  { %v480_v1 = vadd.f32 -1.4531521, %v476_v60  ;;  %v477_v10 = vmul.f32 1.0614054, %v850_v5  ;;  %v852_v40 = vpop.eup %851 }
 0x3d0   :  { %v486_v2 = vmul.f32 %v844_v53, %v482_v61  ;;  %v483_v9 = vadd.f32 -1.4531521, %v479_v4  ;;  %v854_v42 = vpop.eup %853 }
 0x3d1   :  { %v484_v7 = vmul.f32 %v846_v56, %v480_v1  ;;  %v481_v15 = vadd.f32 -1.4531521, %v477_v10  ;;  %v856_v51 = vpop.eup %855  ;;  %v442_v1 = vmul.f32 0.5, %v1344_v28  ;;  %v550_v28 = vld [vmem:[#allocation4 + $0x10] sm:$0xff] }
 0x3d2   :  { %v490_v8 = vadd.f32 1.4214138, %v486_v2  ;;  %v487_v14 = vmul.f32 %v848_v62, %v483_v9  ;;  %v858_v58 = vpop.eup %857  ;;  %v453_v2 = vsel %vm449_vm4, 1.0, %v1130_v52 }
 0x3d3   :  { %v488_v12 = vadd.f32 1.4214138, %v484_v7  ;;  %v485_v20 = vmul.f32 %v850_v5, %v481_v15 }
 0x3d4   :  { %v494_v13 = vmul.f32 %v844_v53, %v490_v8  ;;  %v491_v19 = vadd.f32 1.4214138, %v487_v14  ;;  %v548_v14 = vld [vmem:[#allocation4] sm:$0xff] }
 0x3d5   :  { %v492_v17 = vmul.f32 %v846_v56, %v488_v12  ;;  %v489_v24 = vadd.f32 1.4214138, %v485_v20 }
 0x3d6   :  { %v498_v18 = vadd.f32 -0.28449672, %v494_v13  ;;  %v495_v23 = vmul.f32 %v848_v62, %v491_v19 }
 0x3d7   :  { %v496_v21 = vadd.f32 -0.28449672, %v492_v17  ;;  %v493_v29 = vmul.f32 %v850_v5, %v489_v24  ;;  %v749_v24 = vld [vmem:[#allocation20] ss:$0 sm:$0xff] }
 0x3d8   :  { %v502_v22 = vmul.f32 %v844_v53, %v498_v18  ;;  %v499_v27 = vadd.f32 -0.28449672, %v495_v23  ;;  %v549_v18 = vld [vmem:[#allocation4 + $0x8] sm:$0xff] }
 0x3d9   :  { %v500_v25 = vmul.f32 %v846_v56, %v496_v21  ;;  %v497_v39 = vadd.f32 -0.28449672, %v493_v29  ;;  %v681_v29 = vld [vmem:[#allocation2 + $0x18] sm:$0xff] }
 0x3da   :  { %v506_v26 = vadd.f32 0.2548296, %v502_v22  ;;  %v503_v37 = vmul.f32 %v848_v62, %v499_v27  ;;  %v680_v22 = vld [vmem:[#allocation2 + $0x10] sm:$0xff] }
 0x3db   :  { %v504_v31 = vadd.f32 0.2548296, %v500_v25  ;;  %v501_v46 = vmul.f32 %v850_v5, %v497_v39  ;;  %v678_v25 = vld [vmem:[#allocation2] sm:$0xff] }
 0x3dc   :  { %v510_v34 = vmul.f32 %v844_v53, %v506_v26  ;;  %v507_v45 = vadd.f32 0.2548296, %v503_v37  ;;  %v679_v37 = vld [vmem:[#allocation2 + $0x8] sm:$0xff] }
 0x3dd   :  { %v508_v41 = vmul.f32 %v846_v56, %v504_v31  ;;  %v505_v50 = vadd.f32 0.2548296, %v501_v46 }
 0x3de   :  { %v530_v44 = vmul.f32 %v852_v40, %v510_v34  ;;  %v511_v49 = vmul.f32 %v848_v62, %v507_v45 }
 0x3df   :  { %v528_v47 = vmul.f32 %v854_v42, %v508_v41  ;;  %v509_v57 = vmul.f32 %v850_v5, %v505_v50  ;;  %v440_v5 = vmul.f32 0.5, %v1346_v30 }
 0x3e0   :  { %v534_v48 = vsub.f32 1.0, %v530_v44  ;;  %v531_v56 = vmul.f32 %v856_v51, %v511_v49 }
 0x3e1   :  { %v532_v53 = vsub.f32 1.0, %v528_v47  ;;  %v529_v60 = vmul.f32 %v858_v58, %v509_v57 }
 0x3e2   :  { %v538_v55 = vmul.f32 %v534_v48, %v454_v54  ;;  %v535_v59 = vsub.f32 1.0, %v531_v56 }
 0x3e3   :  { %v536_v61 = vmul.f32 %v532_v53, %v452_v32  ;;  %v533_v0 = vsub.f32 1.0, %v529_v60 }
 0x3e4   :  { %v542_v35 = vadd.f32 1.0, %v538_v55  ;;  %v539_v62 = vmul.f32 %v535_v59, %v455_v63 }
 0x3e5   :  { %v537_v38 = vmul.f32 %v533_v0, %v453_v2  ;;  %v540_v6 = vadd.f32 1.0, %v536_v61 }
 0x3e6   :  { %v543_v4 = vadd.f32 1.0, %v539_v62  ;;  %v546_v7 = vmul.f32 %v542_v35, %v442_v1 }
 0x3e7   :  { %v541_v9 = vadd.f32 1.0, %v537_v38  ;;  %v544_v10 = vmul.f32 %v540_v6, %v440_v5 }
 0x3e8   :  { %v547_v8 = vmul.f32 %v543_v4, %v443_v3 }
 0x3e9   :  { %v545_v11 = vmul.f32 %v541_v9, %v441_v43 }
 0x3ea   :  { %v553_v12 = vpack.c.bf16 %v547_v8, %v546_v7 }
 0x3eb   :  { %v552_v13 = vpack.c.bf16 %v545_v11, %v544_v10 }
 0x3ed   :  { %800 = vmatprep.mubr.bf16.mxu0 %v552_v13 }
 0x3ee   :  { %801 = vmatmul.mubr.bf16.vlgmr.msra.gmra.mrb[0].mxu0 %v553_v12 }
 0x4c1   :  { %v802_v15 = vpop.f32.mrb[0].mxu0 }
 0x4c2   :  { %v669_v16 = vadd.f32 %v802_v15, %v550_v28  ;;  %v652_v17 = vpop.f32.mrb[1].mxu0 }
 0x4c3   :  { %v667_v19 = vadd.f32 %v652_v17, %v548_v14  ;;  %v803_v30 = vpop.f32.mrb[2].mxu0 }
 0x4c4   :  { %673 = vst.msk [vmem:[#allocation4 + $0x10] sm:$0xff] %vm212_vm0, %v669_v16  ;;  %v670_v20 = vadd.f32 %v803_v30, %v551_v33  ;;  %v655_v36 = vpop.f32.mrb[3].mxu0 }
 0x4c5   :  { %671 = vst.msk [vmem:[#allocation4] sm:$0xff] %vm212_vm0, %v667_v19  ;;  %v668_v21 = vadd.f32 %v655_v36, %v549_v18 }
 0x4c6   :  { %674 = vst.msk [vmem:[#allocation4 + $0x18] sm:$0xff] %vm212_vm0, %v670_v20 }
 0x4c7   :  { %672 = vst.msk [vmem:[#allocation4 + $0x8] sm:$0xff] %vm212_vm0, %v668_v21 }
 0x4cb   :  { %v684_v23 = vld [vmem:[#allocation4 + $0x10] sm:$0xff] }
 0x4cc   :  { %v682_v26 = vld [vmem:[#allocation4] sm:$0xff]  ;;  %v688_v27 = vadd.f32 %v684_v23, %v680_v22 }
 0x4cd   :  { %v685_v31 = vld [vmem:[#allocation4 + $0x18] sm:$0xff]  ;;  %v686_v34 = vadd.f32 %v682_v26, %v678_v25 }
 0x4ce   :  { %v683_v39 = vld [vmem:[#allocation4 + $0x8] sm:$0xff]  ;;  %v689_v40 = vadd.f32 %v685_v31, %v681_v29  ;;  %v699_v41 = vadd.f32 %v749_v24, %v688_v27 }
 0x4cf   :  { %v687_v42 = vadd.f32 %v683_v39, %v679_v37  ;;  %v697_v44 = vadd.f32 %v749_v24, %v686_v34 }
 0x4d0   :  { %v700_v45 = vadd.f32 %v749_v24, %v689_v40  ;;  %703 = vst.msk [vmem:[#allocation22 + $0x10] sm:$0xff] %vm212_vm0, %v699_v41 }
 0x4d1   :  { %v698_v46 = vadd.f32 %v749_v24, %v687_v42  ;;  %701 = vst.msk [vmem:[#allocation22] sm:$0xff] %vm212_vm0, %v697_v44 }
 0x4d2   :  { %704 = vst.msk [vmem:[#allocation22 + $0x18] sm:$0xff] %vm212_vm0, %v700_v45 }
 0x4d3   :  { %702 = vst.msk [vmem:[#allocation22 + $0x8] sm:$0xff] %vm212_vm0, %v698_v46 }
 0x4d4   :  { %1090 = shalt.err (!%p1087_p0)
}
 0x4d5   :  { %s1091_s28 = scalar_lea.hbm %s1409_s10, 512 }
 0x4d6   :  { %p1092_p1 = scmp.ne.s32.totalorder %s1409_s10, %s1091_s28  ;;  %p1095_p2 = scmp.lt.u32.totalorder %s1091_s28, %s1409_s10 }
 0x4d8   :  { %p1097_p3 = pnand %p1095_p2, %p1092_p1 }
 0x4da   :  { %1100 = shalt.err (!%p1097_p3)
}
 0x4db   :  { %716 = dma.vmem_to_hbm [thread:$0]  %s711_s26, 512, %s1409_s10, [#allocation7], %s1122_s7, %s1122_s7, %s1123_s16  }
 0x4dc   :  { %1113 = dma.done.wait [#allocation7], 512  }
 0x4dd   :  { %1114 = vsyncadd [#allocation7], 4294966784 }
 0x4de   :  { %720 = vsyncpa [#allocation6], 1 }
 0x4df   :  { %721 = vsyncpa [#allocation9], 1 }
 0x4e0   :  { %722 = vsyncpa [#allocation12], 1 }
 0x4e1   :  { %723 = vsyncpa [#allocation15], 1 }
 0x4e2   :  { %724 = vsyncpa [#allocation18], 1 }
 0x4e3   :  { %725 = vsyncpa [#allocation21], 1 }
 0x4e4   :  { %726 = vsyncpa [#allocation7], 1 }

// kernel: decoder_forward.4
= control target key start
LH: loop header
LB: loop body
LE: loop exit
PB: predicated region body
PF: predicated region fallthrough
CT: control target
= control target key end

     0   :  { %12 = vsyncpa [#allocation3], 0  ;;  %s729_s0 = inlined_call_operand.hbm [shape: f32[32,32], index: 0, kind: input, shape index: {}]   ;;  %s730_s1 = inlined_call_operand.hbm [shape: f32[1,32], index: 1, kind: input, shape index: {}]   ;;  %s731_s2 = inlined_call_operand.hbm [shape: f32[1,32], index: 2, kind: input, shape index: {}]   ;;  %s732_s3 = inlined_call_operand.hbm [shape: bf16[32,96], index: 3, kind: input, shape index: {}]   ;;  %s733_s4 = inlined_call_operand.hbm [shape: bf16[32,32], index: 4, kind: output, shape index: {0}]   ;;  %s734_s5 = inlined_call_operand.hbm [shape: bf16[32,32], index: 5, kind: output, shape index: {1}]   ;;  %s735_s6 = inlined_call_operand.hbm [shape: bf16[32,32], index: 6, kind: output, shape index: {2}]  }
   0x1   :  { %13 = vsyncpa [#allocation6], 0 }
   0x2   :  { %14 = vsyncpa [#allocation9], 0 }
   0x3   :  { %15 = vsyncpa [#allocation4], 0 }
   0x4   :  { %16 = vsyncpa [#allocation12], 0  ;;  %s542_s21 = smov [#allocation5]   ;;  %s543_s23 = smov [#allocation2]  }
   0x5   :  { %s35_s22 = sshll.u32 %s542_s21, 4  ;;  %s22_s24 = sshll.u32 %s543_s23, 4  ;;  %s36_s22 = int_to_ptr.vmem [resolvable:$true] %s35_s22  ;;  %s589_s24 = int_to_ptr.vmem [resolvable:$true] %s22_s24 }
   0x6   :  { %s378_s27 = scalar_lea.hbm %s730_s1, 16 }
   0x7   :  { %p379_p0 = scmp.ne.s32.totalorder %s730_s1, %s378_s27  ;;  %p382_p1 = scmp.lt.u32.totalorder %s378_s27, %s730_s1 }
   0x9   :  { %p384_p2 = pnand %p382_p1, %p379_p0 }
   0xb   :  { %387 = shalt.err (!%p384_p2)
}
   0xc   :  { %s388_s8 = scalar_lea.vmem %s36_s22, 16  ;;  %s392_s9 = scalar_lea.vmem %s36_s22, 32 }
   0xd   :  { %p389_p3 = scmp.ne.s32.totalorder %s36_s22, %s388_s8  ;;  %p393_p4 = scmp.lt.s32.totalorder %s36_s22, %s36_s22 }
   0xe   :  { %p394_p5 = scmp.lt.s32.totalorder %s392_s9, %s388_s8 }
  0x10   :  { %p395_p6 = por %p394_p5, %p393_p4 }
  0x12   :  { %p396_p7 = pnand %p395_p6, %p389_p3 }
  0x14   :  { %399 = shalt.err (!%p396_p7)
}
  0x15   :  { %38 = dma.hbm_to_vmem [thread:$0]  %s730_s1, 16, %s36_s22, [#allocation6]  }
  0x16   :  { %s400_s14 = scalar_lea.hbm %s729_s0, 512 }
  0x17   :  { %p401_p8 = scmp.ne.s32.totalorder %s729_s0, %s400_s14  ;;  %p404_p9 = scmp.lt.u32.totalorder %s400_s14, %s729_s0 }
  0x19   :  { %p406_p10 = pnand %p404_p9, %p401_p8 }
  0x1b   :  { %409 = shalt.err (!%p406_p10)
}
  0x1c   :  { %s410_s19 = scalar_lea.vmem %s589_s24, 512  ;;  %p415_p12 = scmp.lt.s32.totalorder %s589_s24, %s589_s24 }
  0x1d   :  { %p411_p11 = scmp.ne.s32.totalorder %s589_s24, %s410_s19  ;;  %p416_p13 = scmp.lt.s32.totalorder %s410_s19, %s410_s19 }
  0x1f   :  { %p417_p0 = por %p416_p13, %p415_p12 }
  0x21   :  { %p418_p1 = pnand %p417_p0, %p411_p11 }
  0x23   :  { %421 = shalt.err (!%p418_p1)
}
  0x24   :  { %s544_s1 = smov 128   ;;  %s545_s20 = smov 8  }
  0x25   :  { %28 = dma.hbm_to_vmem [thread:$0]  %s729_s0, 512, %s589_s24, [#allocation3], %s544_s1, %s544_s1, %s545_s20  }
  0x26   :  { %s546_s23 = smov [#allocation7]   ;;  %s547_s26 = smov [#allocation8]  }
  0x27   :  { %s45_s25 = sshll.u32 %s546_s23, 4  ;;  %s54_s27 = sshll.u32 %s547_s26, 4  ;;  %s46_s25 = int_to_ptr.vmem [resolvable:$true] %s45_s25  ;;  %s620_s27 = int_to_ptr.vmem [resolvable:$true] %s54_s27 }
  0x28   :  { %s422_s30 = scalar_lea.hbm %s731_s2, 16 }
  0x29   :  { %p423_p2 = scmp.ne.s32.totalorder %s731_s2, %s422_s30  ;;  %p426_p3 = scmp.lt.u32.totalorder %s422_s30, %s731_s2 }
  0x2b   :  { %p428_p4 = pnand %p426_p3, %p423_p2 }
  0x2d   :  { %431 = shalt.err (!%p428_p4)
}
  0x2e   :  { %s432_s0 = scalar_lea.vmem %s46_s25, 16  ;;  %s436_s24 = scalar_lea.vmem %s46_s25, 32 }
  0x2f   :  { %p433_p5 = scmp.ne.s32.totalorder %s46_s25, %s432_s0  ;;  %p437_p6 = scmp.lt.s32.totalorder %s46_s25, %s46_s25 }
  0x30   :  { %p438_p7 = scmp.lt.s32.totalorder %s436_s24, %s432_s0 }
  0x32   :  { %p439_p8 = por %p438_p7, %p437_p6 }
  0x34   :  { %p440_p9 = pnand %p439_p8, %p433_p5 }
  0x36   :  { %443 = shalt.err (!%p440_p9)
}
  0x37   :  { %48 = dma.hbm_to_vmem [thread:$0]  %s731_s2, 16, %s46_s25, [#allocation6]  }
  0x38   :  { %s444_s15 = scalar_lea.hbm %s732_s3, 256 }
  0x39   :  { %p445_p10 = scmp.ne.s32.totalorder %s732_s3, %s444_s15  ;;  %p448_p11 = scmp.lt.u32.totalorder %s444_s15, %s732_s3 }
  0x3b   :  { %p450_p12 = pnand %p448_p11, %p445_p10 }
  0x3d   :  { %453 = shalt.err (!%p450_p12)
}
  0x3e   :  { %s454_s1 = scalar_lea.vmem %s620_s27, 256  ;;  %p459_p0 = scmp.lt.s32.totalorder %s620_s27, %s620_s27 }
  0x3f   :  { %p455_p13 = scmp.ne.s32.totalorder %s620_s27, %s454_s1  ;;  %p460_p1 = scmp.lt.s32.totalorder %s454_s1, %s454_s1 }
  0x41   :  { %p461_p2 = por %p460_p1, %p459_p0 }
  0x43   :  { %p462_p3 = pnand %p461_p2, %p455_p13 }
  0x45   :  { %465 = shalt.err (!%p462_p3)
}
  0x46   :  { %s548_s2 = smov 64   ;;  %s549_s20 = smov 4  }
  0x47   :  { %60 = dma.hbm_to_vmem [thread:$0]  %s732_s3, 256, %s620_s27, [#allocation9], %s548_s2, %s548_s2, %s549_s20  }
  0x48   :  { %532 = dma.done.wait [#allocation3], 512  }
  0x49   :  { %533 = vsyncadd [#allocation3], 4294966784 }
  0x4a   :  { %534 = dma.done.wait [#allocation6], 32  }
  0x4b   :  { %535 = vsyncadd [#allocation6], 4294967264 }
  0x4c   :  { %536 = dma.done.wait [#allocation9], 256  }
  0x4d   :  { %537 = vsyncadd [#allocation9], 4294967040  ;;  %vm80_vm0 = vcmask 261120   ;;  %v74_v0 = vld [vmem:[#allocation2] sm:$0xff]  ;;  %v76_v1 = vld [vmem:[#allocation2 + $0x10] sm:$0xff]  ;;  %vm243_vm1 = vcmask 257024  }
  0x4e   :  { %v75_v2 = vld [vmem:[#allocation2 + $0x8] sm:$0xff]  ;;  %v81_v3 = vsel %vm80_vm0, %v74_v0, 0.0  ;;  %v87_v4 = vsel %vm80_vm0, %v76_v1, 0.0  ;;  %v77_v5 = vld [vmem:[#allocation2 + $0x18] sm:$0xff]  ;;  %v330_v44 = vld [vmem:[#allocation5] ss:$0 sm:$0xff] }
  0x4f   :  { %82 = vadd.xlane.f32.xlu0 %v81_v3  ;;  %88 = vadd.xlane.f32.xlu1 %v87_v4  ;;  %v84_v6 = vsel %vm80_vm0, %v75_v2, 0.0  ;;  %v90_v7 = vsel %vm80_vm0, %v77_v5, 0.0  ;;  %v368_v28 = vld [vmem:[#allocation8] sm:$0xff]   ;;  %v369_v29 = vld [vmem:[#allocation8 + $0x8] sm:$0xff]   ;;  %v331_v50 = vld [vmem:[#allocation7] ss:$0 sm:$0xff] }
  0x50   :  { %348 = vmatprep.subr.bf16.mxu0 %v368_v28  ;;  %s550_s3 = smov 96   ;;  %s551_s23 = smov [#allocation10]  }
  0x51   :  { %349 = vmatpush3.bf16.msra.mxu0 %v368_v28  ;;  %s285_s25 = sshll.u32 %s551_s23, 4  ;;  %s286_s25 = int_to_ptr.vmem [resolvable:$true] %s285_s25 }
  0x52   :  { %350 = vmatprep.subr.bf16.mxu0 %v369_v29  ;;  %s466_s26 = scalar_lea.vmem %s286_s25, 256  ;;  %p471_p5 = scmp.lt.s32.totalorder %s286_s25, %s286_s25 }
  0x53   :  { %85 = vadd.xlane.f32.xlu0 %v84_v6  ;;  %91 = vadd.xlane.f32.xlu1 %v90_v7  ;;  %p467_p4 = scmp.ne.s32.totalorder %s286_s25, %s466_s26  ;;  %p472_p6 = scmp.lt.s32.totalorder %s466_s26, %s466_s26 }
  0x55   :  { %351 = vmatpush3.bf16.msra.mxu0 %v369_v29  ;;  %p473_p7 = por %p472_p6, %p471_p5 }
  0x57   :  { %p474_p8 = pnand %p473_p7, %p467_p4 }
  0xdc   :  { %v83_v8 = vpop.xlane.xlu0 %82  ;;  %v89_v9 = vpop.xlane.xlu1 %88 }
  0xdd   :  { %v94_v10 = vmul.f32 0.03125, %v83_v8  ;;  %v96_v11 = vmul.f32 0.03125, %v89_v9 }
  0xdf   :  { %v98_v12 = vsub.f32 %v74_v0, %v94_v10  ;;  %v100_v13 = vsub.f32 %v76_v1, %v96_v11 }
  0xe0   :  { %v86_v14 = vpop.xlane.xlu0 %85  ;;  %v92_v15 = vpop.xlane.xlu1 %91 }
  0xe1   :  { %v95_v16 = vmul.f32 0.03125, %v86_v14  ;;  %v97_v17 = vmul.f32 0.03125, %v92_v15  ;;  %v102_v18 = vmul.f32 %v98_v12, %v98_v12  ;;  %v104_v19 = vmul.f32 %v100_v13, %v100_v13 }
  0xe3   :  { %v99_v20 = vsub.f32 %v75_v2, %v95_v16  ;;  %v101_v21 = vsub.f32 %v77_v5, %v97_v17  ;;  %v106_v22 = vsel %vm80_vm0, %v102_v18, 0.0  ;;  %v112_v23 = vsel %vm80_vm0, %v104_v19, 0.0 }
  0xe4   :  { %107 = vadd.xlane.f32.xlu0 %v106_v22 }
  0xe5   :  { %v103_v24 = vmul.f32 %v99_v20, %v99_v20  ;;  %v105_v25 = vmul.f32 %v101_v21, %v101_v21 }
  0xe7   :  { %v109_v26 = vsel %vm80_vm0, %v103_v24, 0.0  ;;  %v115_v27 = vsel %vm80_vm0, %v105_v25, 0.0 }
  0xe8   :  { %113 = vadd.xlane.f32.xlu0 %v112_v23  ;;  %110 = vadd.xlane.f32.xlu1 %v109_v26 }
  0xec   :  { %116 = vadd.xlane.f32.xlu1 %v115_v27 }
 0x171   :  { %v108_v30 = vpop.xlane.xlu0 %107 }
 0x172   :  { %v118_v31 = vmul.f32 0.03125, %v108_v30 }
 0x174   :  { %v122_v32 = vadd.f32 1e-05, %v118_v31 }
 0x175   :  { %v111_v33 = vpop.xlane.xlu1 %110  ;;  %v114_v34 = vpop.xlane.xlu0 %113 }
 0x176   :  { %370 = vrsqrt.f32 %v122_v32  ;;  %v119_v35 = vmul.f32 0.03125, %v111_v33  ;;  %v120_v36 = vmul.f32 0.03125, %v114_v34 }
 0x178   :  { %v123_v37 = vadd.f32 1e-05, %v119_v35  ;;  %v124_v38 = vadd.f32 1e-05, %v120_v36 }
 0x179   :  { %v117_v39 = vpop.xlane.xlu1 %116 }
 0x17a   :  { %372 = vrsqrt.f32 %v123_v37  ;;  %v121_v40 = vmul.f32 0.03125, %v117_v39 }
 0x17b   :  { %374 = vrsqrt.f32 %v124_v38 }
 0x17c   :  { %v125_v41 = vadd.f32 1e-05, %v121_v40 }
 0x17e   :  { %376 = vrsqrt.f32 %v125_v41 }
 0x180   :  { %v371_v42 = vpop.eup %370 }
 0x181   :  { %v130_v43 = vmul.f32 %v371_v42, %v98_v12 }
 0x183   :  { %v140_v48 = vmul.f32 %v330_v44, %v130_v43 }
 0x184   :  { %v373_v45 = vpop.eup %372 }
 0x185   :  { %v375_v46 = vpop.eup %374  ;;  %v131_v47 = vmul.f32 %v373_v45, %v99_v20  ;;  %v150_v54 = vadd.f32 %v331_v50, %v140_v48 }
 0x186   :  { %v132_v49 = vmul.f32 %v375_v46, %v100_v13 }
 0x187   :  { %v141_v51 = vmul.f32 %v330_v44, %v131_v47 }
 0x188   :  { %v377_v52 = vpop.eup %376  ;;  %v142_v56 = vmul.f32 %v330_v44, %v132_v49 }
 0x189   :  { %v133_v53 = vmul.f32 %v377_v52, %v101_v21  ;;  %v151_v55 = vadd.f32 %v331_v50, %v141_v51 }
 0x18a   :  { %v152_v59 = vadd.f32 %v331_v50, %v142_v56 }
 0x18b   :  { %v154_v57 = vpack.c.bf16 %v151_v55, %v150_v54  ;;  %v143_v58 = vmul.f32 %v330_v44, %v133_v53 }
 0x18d   :  { %352 = vmatprep.mubr.msk.bf16.mxu0 %vm80_vm0, %v154_v57  ;;  %v153_v60 = vadd.f32 %v331_v50, %v143_v58 }
 0x18f   :  { %v155_v61 = vpack.c.bf16 %v153_v60, %v152_v59 }
 0x191   :  { %353 = vmatmul.mubr.msk.bf16.vlgmr.msra.gmra.mrb[0].mxu0 %vm80_vm0, %v155_v61 }
 0x264   :  { %v354_v62 = vpop.f32.mrb[0].mxu0 }
 0x265   :  { %v342_v63 = vpack.c.bf16 %v354_v62, %v354_v62  ;;  %v212_v0 = vpop.f32.mrb[1].mxu0 }
 0x266   :  { %v340_v1 = vpack.c.bf16 %v212_v0, %v212_v0  ;;  %v355_v2 = vpop.f32.mrb[2].mxu0 }
 0x267   :  { %246 = vst.msk [vmem:[#allocation10 + $0x8] sm:$0xf] %vm243_vm1, %v342_v63  ;;  %v343_v3 = vpack.c.bf16 %v355_v2, %v355_v2  ;;  %252 = vrot.lane.b32.xlu1 %v342_v63, %s550_s3  ;;  %v215_v4 = vpop.f32.mrb[3].mxu0 }
 0x268   :  { %244 = vst.msk [vmem:[#allocation10] sm:$0xf] %vm243_vm1, %v340_v1  ;;  %v341_v5 = vpack.c.bf16 %v215_v4, %v215_v4  ;;  %248 = vrot.lane.b32.xlu0 %v340_v1, %s550_s3 }
 0x269   :  { %247 = vst.msk [vmem:[#allocation10 + $0xc] sm:$0xf] %vm243_vm1, %v343_v3 }
 0x26a   :  { %245 = vst.msk [vmem:[#allocation10 + $0x4] sm:$0xf] %vm243_vm1, %v341_v5 }
 0x26b   :  { %254 = vrot.lane.b32.xlu1 %v343_v3, %s550_s3 }
 0x26c   :  { %264 = vrot.lane.b32.xlu0 %v340_v1, %s548_s2 }
 0x26d   :  { %477 = shalt.err (!%p474_p8)
}
 0x26e   :  { %s478_s29 = scalar_lea.hbm %s733_s4, 256 }
 0x26f   :  { %p479_p9 = scmp.ne.s32.totalorder %s733_s4, %s478_s29  ;;  %p482_p10 = scmp.lt.u32.totalorder %s478_s29, %s733_s4 }
 0x271   :  { %p484_p11 = pnand %p482_p10, %p479_p9 }
 0x273   :  { %487 = shalt.err (!%p484_p11)
}
 0x274   :  { %291 = dma.vmem_to_hbm [thread:$0]  %s286_s25, 256, %s733_s4, [#allocation4], %s548_s2, %s548_s2, %s549_s20  }
 0x275   :  { %250 = vrot.lane.b32.xlu1 %v341_v5, %s550_s3  ;;  %268 = vrot.lane.b32.xlu0 %v342_v63, %s548_s2  ;;  %s552_s24 = smov [#allocation11]  }
 0x276   :  { %s297_s11 = sshll.u32 %s552_s24, 4  ;;  %s298_s11 = int_to_ptr.vmem [resolvable:$true] %s297_s11 }
 0x277   :  { %s488_s4 = scalar_lea.vmem %s298_s11, 256  ;;  %p493_p13 = scmp.lt.s32.totalorder %s298_s11, %s298_s11 }
 0x278   :  { %p489_p12 = scmp.ne.s32.totalorder %s298_s11, %s488_s4  ;;  %p494_p0 = scmp.lt.s32.totalorder %s488_s4, %s488_s4 }
 0x279   :  { %266 = vrot.lane.b32.xlu1 %v341_v5, %s548_s2 }
 0x27a   :  { %p495_p1 = por %p494_p0, %p493_p13 }
 0x27c   :  { %p496_p2 = pnand %p495_p1, %p489_p12 }
 0x27d   :  { %270 = vrot.lane.b32.xlu1 %v343_v3, %s548_s2 }
 0x2d9   :  { %v253_v6 = vpop.permute.xlu1 %252 }
 0x2da   :  { %262 = vst.msk [vmem:[#allocation11 + $0x8] sm:$0xf] %vm243_vm1, %v253_v6  ;;  %v249_v7 = vpop.permute.xlu0 %248 }
 0x2db   :  { %260 = vst.msk [vmem:[#allocation11] sm:$0xf] %vm243_vm1, %v249_v7 }
 0x2dd   :  { %v255_v8 = vpop.permute.xlu1 %254 }
 0x2de   :  { %263 = vst.msk [vmem:[#allocation11 + $0xc] sm:$0xf] %vm243_vm1, %v255_v8  ;;  %v265_v9 = vpop.permute.xlu0 %264 }
 0x2df   :  { %276 = vst.msk [vmem:[#allocation13] sm:$0xf] %vm243_vm1, %v265_v9 }
 0x2e7   :  { %v251_v10 = vpop.permute.xlu1 %250  ;;  %v269_v11 = vpop.permute.xlu0 %268 }
 0x2e8   :  { %261 = vst.msk [vmem:[#allocation11 + $0x4] sm:$0xf] %vm243_vm1, %v251_v10  ;;  %278 = vst.msk [vmem:[#allocation13 + $0x8] sm:$0xf] %vm243_vm1, %v269_v11 }
 0x2e9   :  { %499 = shalt.err (!%p496_p2)
}
 0x2ea   :  { %s500_s14 = scalar_lea.hbm %s734_s5, 256 }
 0x2eb   :  { %p501_p3 = scmp.ne.s32.totalorder %s734_s5, %s500_s14  ;;  %p504_p4 = scmp.lt.u32.totalorder %s500_s14, %s734_s5 }
 0x2ed   :  { %p506_p5 = pnand %p504_p4, %p501_p3 }
 0x2ef   :  { %509 = shalt.err (!%p506_p5)
}
 0x2f0   :  { %303 = dma.vmem_to_hbm [thread:$0]  %s298_s11, 256, %s734_s5, [#allocation12], %s548_s2, %s548_s2, %s549_s20   ;;  %v267_v12 = vpop.permute.xlu1 %266 }
 0x2f1   :  { %s553_s21 = smov [#allocation13]   ;;  %277 = vst.msk [vmem:[#allocation13 + $0x4] sm:$0xf] %vm243_vm1, %v267_v12 }
 0x2f2   :  { %s309_s22 = sshll.u32 %s553_s21, 4  ;;  %s310_s22 = int_to_ptr.vmem [resolvable:$true] %s309_s22 }
 0x2f3   :  { %s510_s3 = scalar_lea.vmem %s310_s22, 256  ;;  %p515_p7 = scmp.lt.s32.totalorder %s310_s22, %s310_s22 }
 0x2f4   :  { %v271_v13 = vpop.permute.xlu1 %270  ;;  %p511_p6 = scmp.ne.s32.totalorder %s310_s22, %s510_s3  ;;  %p516_p8 = scmp.lt.s32.totalorder %s510_s3, %s510_s3 }
 0x2f5   :  { %279 = vst.msk [vmem:[#allocation13 + $0xc] sm:$0xf] %vm243_vm1, %v271_v13 }
 0x2f6   :  { %p517_p9 = por %p516_p8, %p515_p7 }
 0x2f8   :  { %p518_p10 = pnand %p517_p9, %p511_p6 }
 0x2fa   :  { %521 = shalt.err (!%p518_p10)
}
 0x2fb   :  { %s522_s5 = scalar_lea.hbm %s735_s6, 256 }
 0x2fc   :  { %p523_p11 = scmp.ne.s32.totalorder %s735_s6, %s522_s5  ;;  %p526_p12 = scmp.lt.u32.totalorder %s522_s5, %s735_s6 }
 0x2fe   :  { %p528_p13 = pnand %p526_p12, %p523_p11 }
 0x300   :  { %531 = shalt.err (!%p528_p13)
}
 0x301   :  { %315 = dma.vmem_to_hbm [thread:$0]  %s310_s22, 256, %s735_s6, [#allocation12], %s548_s2, %s548_s2, %s549_s20  }
 0x302   :  { %538 = dma.done.wait [#allocation4], 256  }
 0x303   :  { %539 = vsyncadd [#allocation4], 4294967040 }
 0x304   :  { %540 = dma.done.wait [#allocation12], 512  }
 0x305   :  { %541 = vsyncadd [#allocation12], 4294966784 }
 0x306   :  { %325 = vsyncpa [#allocation3], 1 }
 0x307   :  { %326 = vsyncpa [#allocation6], 1 }
 0x308   :  { %327 = vsyncpa [#allocation9], 1 }
 0x309   :  { %328 = vsyncpa [#allocation4], 1 }
 0x30a   :  { %329 = vsyncpa [#allocation12], 1 }

// kernel: decoder_forward.5
= control target key start
LH: loop header
LB: loop body
LE: loop exit
PB: predicated region body
PF: predicated region fallthrough
CT: control target
= control target key end

     0   :  { %s2348_s0 = inlined_call_operand.hbm [shape: f32[2,16,32], index: 0, kind: input, shape index: {}]   ;;  %s2349_s1 = inlined_call_operand.hbm [shape: bf16[2,16,32], index: 1, kind: input, shape index: {}]   ;;  %s2350_s2 = inlined_call_operand.hbm [shape: bf16[2,16,32], index: 2, kind: input, shape index: {}]   ;;  %s2351_s3 = inlined_call_operand.hbm [shape: bf16[2,16,32], index: 3, kind: input, shape index: {}]   ;;  %s2352_s4 = inlined_call_operand.hbm [shape: bf16[32,32], index: 4, kind: input, shape index: {}]   ;;  %s2353_s5 = inlined_call_operand.hbm [shape: f32[1,32], index: 5, kind: input, shape index: {}]   ;;  %s2354_s6 = inlined_call_operand.hbm [shape: f32[2,16,32], index: 6, kind: output, shape index: {}]  }
   0x1   :  { %2378 = sst [smem:[#allocation28_spill]] %s2349_s1 }
   0x2   :  { %2379 = sst [smem:[#allocation29_spill]] %s2352_s4 }
   0x3   :  { %2380 = sst [smem:[#allocation30_spill]] %s2354_s6 }
   0x4   :  { %11 = vsyncpa [#allocation4], 0 }
   0x5   :  { %13 = vsyncpa [#allocation4 + $0x1], 0 }
   0x6   :  { %14 = vsyncpa [#allocation7], 0 }
   0x7   :  { %16 = vsyncpa [#allocation7 + $0x1], 0 }
   0x8   :  { %17 = vsyncpa [#allocation10], 0 }
   0x9   :  { %19 = vsyncpa [#allocation10 + $0x1], 0 }
   0xa   :  { %20 = vsyncpa [#allocation13], 0 }
   0xb   :  { %21 = vsyncpa [#allocation5], 0 }
   0xc   :  { %23 = vsyncpa [#allocation5 + $0x1], 0  ;;  %s1859_s21 = smov 0   ;;  %s1861_s22 = smov 0  }
   0xd   :  { %s1863_s23 = smov 0   ;;  %s1865_s24 = smov 0  }
   0xe   :  { %s1867_s25 = smov 0   ;;  %s1869_s26 = smov 0  }
   0xf LB: > { %2381 = sst [smem:[#allocation21_spill]] %s1782_s21  ;;  %s1890_s27 = sadd.s32 4294967295, %s1802_s26   ;;  %s1802_s26 = sphi %s1869_s26, %s29_s26   ;;  %s1798_s25 = sphi %s1867_s25, %s2429_s25   ;;  %s1794_s24 = sphi %s1865_s24, %s2428_s24   ;;  %s1790_s23 = sphi %s1863_s23, %s2424_s23   ;;  %s1786_s22 = sphi %s1861_s22, %s2427_s22   ;;  %s1782_s21 = sphi %s1859_s21, %s2426_s21  }
  0x10   : > { %2382 = sst [smem:[#allocation22_spill]] %s1790_s23  ;;  %s1255_s28 = sadd.s32 4294967294, %s1802_s26  }
  0x11   : > { %2383 = sst [smem:[#allocation23_spill]] %s1794_s24  ;;  %p57_p0 = scmp.ne.s32.totalorder %s1790_s23, %s1786_s22 }
  0x12   : > { %p58_p1 = scmp.eq.s32.totalorder %s1802_s26, 0  ;;  %p63_p2 = scmp.ne.s32.totalorder %s1786_s22, %s1782_s21 }
  0x13   : > { %p2355_p3 = scmp.eq.s32.totalorder %s1890_s27, 0  ;;  %p211_p4 = scmp.eq.s32.totalorder %s1890_s27, 1 }
  0x14   : > { %p1901_p5 = por %p58_p1, %p57_p0  ;;  %p217_p6 = scmp.eq.s32.totalorder %s1255_s28, 1 }
  0x15   : > { %p1907_p7 = por %p2355_p3, %p63_p2  ;;  %p1911_p8 = por %p211_p4, %p57_p0 }
  0x16   : > { %p1915_p9 = por %p217_p6, %p63_p2  ;;  %p1256_p10 = scmp.ge.s32.totalorder %s1802_s26, 1 }
  0x17   : > { %s2385_s7 = scalar_select %p1907_p7, 1, 0 }
  0x18   : > { %s2386_s8 = scalar_select %p1911_p8, 1, 0 }
  0x19   : > { %s2388_s9 = scalar_select %p1915_p9, 1, 0 }
  0x1a   : > { %2387 = sst [smem:[#allocation24_spill]] %s2386_s8  ;;  %p224_p11 = scmp.lt.s32.totalorder %s1802_s26, 3 }
  0x1b   : > { %2389 = sst [smem:[#allocation25_spill]] %s2388_s9  ;;  %s1804_s11 = smov [#allocation11]  }
  0x1c   : > { %p1921_p12 = pnand %p1256_p10, %p224_p11  ;;  %s236_s12 = sshll.u32 %s1804_s11, 4  ;;  %s1925_s12 = int_to_ptr.vmem [resolvable:$true] %s236_s12 }
  0x1d   : > { %s41_s14 = sadd.s32 1, %s1798_s25  ;;  %s1939_s15 = sand.u32 1, %s1790_s23  }
  0x1e   : > { %s2390_s10 = scalar_select %p1921_p12, 1, 0 }
  0x1f   : > { %p1398_p13 = pneg %p1921_p12  ;;  %p1941_p4 = scmp.ge.s32.totalorder %s41_s14, 2 }
  0x20   : > { %s2393_s4 = sld [smem:[#allocation29_spill]] }
  0x21   : > { %p1933_p2 = pnand %p1398_p13, %p2355_p3 }
  0x23   : > { %s2391_s13 = scalar_select %p1933_p2, 1, 0 }
  0x24   : > { %p2367_p10 = pneg %p1933_p2 }
  0x26   : > { %s1528_s19 = scalar_lea.hbm %s2393_s4, 256 }
  0x27   : > { %p1529_p6 = scmp.ne.s32.totalorder %s2393_s4, %s1528_s19  ;;  %p1535_p0 = scmp.lt.u32.totalorder %s1528_s19, %s2393_s4 }
  0x29   : > { %p1531_p11 = pnand %p2367_p10, %p1529_p6 }
  0x2b   : > { %p1532_p13 = pneg %p1531_p11 }
  0x2d   : > { %p1537_p3 = pnand %p1535_p0, %p1532_p13 }
  0x2f   : > { %1540 = shalt.err (!%p1537_p3)
}
  0x30   : > { %s1541_s17 = scalar_lea.vmem %s1925_s12, 256  ;;  %p1549_p7 = scmp.lt.s32.totalorder %s1925_s12, %s1925_s12 }
  0x31   : > { %p1542_p1 = scmp.ne.s32.totalorder %s1925_s12, %s1541_s17  ;;  %p1550_p6 = scmp.lt.s32.totalorder %s1541_s17, %s1541_s17 }
  0x33   : > { %p1544_p9 = pnand %p1542_p1, %p2367_p10  ;;  %p1551_p11 = por %p1550_p6, %p1549_p7 }
  0x35   : > { %p1545_p8 = pneg %p1544_p9 }
  0x37   : > { %p1552_p12 = pnand %p1551_p11, %p1545_p8 }
  0x39   : > { %1555 = shalt.err (!%p1552_p12)
}
  0x3a   : > { %s2361_s29 = smov 64   ;;  %s2363_s18 = smov 4  }
  0x3b   : > { %1401 = dma.hbm_to_vmem [thread:$0]  (!%p1933_p2), %s2393_s4, 256, %s1925_s12, [#allocation10], %s2361_s29, %s2361_s29, %s2363_s18  }
  0x3c   : > { %s2431_s14 = smov (%p1941_p4, %s41_s14), 0  ;;  %p2395_p3 = scmp.lt.s32.totalorder %s1802_s26, 2 }
  0x3d   : > { %2394 = sst [smem:[#allocation26_spill]] %s2431_s14  ;;  %s2366_s11 = sand.u32 1, %s1802_s26  }
  0x3e   : > { %p1983_p7 = pnand %p2395_p3, %p1901_p5  ;;  %s45_s17 = ssub.s32 %s1798_s25, %s2431_s14 }
  0x3f   : > { %p48_p8 = scmp.eq.s32.totalorder %s45_s17, 0  ;;  %s1991_s9 = sshll.u32 %s1939_s15, 3 }
  0x40   : > { %s2396_s28 = scalar_select %p1983_p7, 1, 0 }
  0x41   : > { %s1994_s21 = sshll.u32 %s1798_s25, 7  ;;  %s2397_s12 = sadd.s32 1, %s1790_s23 }
  0x42   : > { %s1999_s16 = scalar_select %p48_p8, %s1790_s23, %s2397_s12  }
  0x43   : > { %s2399_s1 = sld [smem:[#allocation28_spill]]  ;;  %s288_s29 = scalar_lea.vmem [#allocation6], %s1991_s9 }
  0x44   : > { %2398 = sst [smem:[#allocation27_spill]] %s1999_s16  ;;  %s297_s17 = sshll.u32 %s288_s29, 4  ;;  %s2008_s17 = int_to_ptr.vmem [resolvable:$true] %s297_s17 }
  0x45   : > { %s2012_s18 = scalar_lea.sflag [#allocation7], %s2366_s11  ;;  %p2018_p9 = pneg %p1983_p7 }
  0x47   : > { %s2400_s12 = scalar_select %p2018_p9, 1, 0 }
  0x49   : > { %s2005_s20 = scalar_lea.hbm %s2399_s1, %s1994_s21  ;;  %s1561_s29 = scalar_lea.hbm %s2399_s1, 256 }
  0x4a   : > { %s1556_s4 = scalar_lea.hbm %s2005_s20, 128  ;;  %p1562_p1 = scmp.lt.u32.totalorder %s2005_s20, %s2399_s1 }
  0x4b   : > { %p1557_p5 = scmp.ne.s32.totalorder %s2005_s20, %s1556_s4  ;;  %p1563_p4 = scmp.lt.u32.totalorder %s1561_s29, %s1556_s4 }
  0x4c   : > { %p1565_p6 = scmp.lt.u32.totalorder %s1556_s4, %s2005_s20 }
  0x4d   : > { %p1559_p12 = pnand %p2018_p9, %p1557_p5  ;;  %p1564_p13 = por %p1563_p4, %p1562_p1 }
  0x4f   : > { %p1560_p0 = pneg %p1559_p12  ;;  %p1566_p11 = por %p1565_p6, %p1564_p13 }
  0x51   : > { %p1567_p3 = pnand %p1566_p11, %p1560_p0 }
  0x53   : > { %1570 = shalt.err (!%p1567_p3)
}
  0x54   : > { %s1571_s11 = scalar_lea.vmem %s2008_s17, 128  ;;  %s1807_s30 = smov [#allocation6]  }
  0x55   : > { %p1572_p8 = scmp.ne.s32.totalorder %s2008_s17, %s1571_s11  ;;  %s1576_s19 = sshll.u32 %s1807_s30, 4  ;;  %s1577_s19 = int_to_ptr.vmem [resolvable:$false] %s1576_s19 }
  0x56   : > { %s1578_s14 = scalar_lea.vmem %s1577_s19, 256  ;;  %p1579_p10 = scmp.lt.s32.totalorder %s2008_s17, %s1577_s19 }
  0x57   : > { %p1574_p5 = pnand %p1572_p8, %p2018_p9  ;;  %p1580_p2 = scmp.lt.s32.totalorder %s1578_s14, %s1571_s11 }
  0x59   : > { %p1575_p12 = pneg %p1574_p5  ;;  %p1581_p1 = por %p1580_p2, %p1579_p10 }
  0x5b   : > { %p1582_p4 = pnand %p1581_p1, %p1575_p12 }
  0x5d   : > { %1585 = shalt.err (!%p1582_p4)
}
  0x5e   : > { %s2401_s4 = smov 4   ;;  %s2402_s16 = smov 64  }
  0x5f   : > { %1411 = dma.hbm_to_vmem [thread:$0]  (!%p1983_p7), %s2005_s20, 128, %s2008_s17, %s2012_s18, %s2402_s16, %s2402_s16, %s2401_s4  }
  0x60   : > { %s1808_s29 = smov [#allocation12]   ;;  %s1260_s1 = sshll.u32 %s1939_s15, 4 }
  0x61   : > { %s250_s30 = sshll.u32 %s1808_s29, 4  ;;  %s1586_s14 = scalar_lea.hbm %s2353_s5, 16  ;;  %s251_s30 = int_to_ptr.vmem [resolvable:$true] %s250_s30 }
  0x62   : > { %p1587_p2 = scmp.ne.s32.totalorder %s2353_s5, %s1586_s14  ;;  %p2403_p10 = scmp.ne.s32.totalorder %s2391_s13, 0 }
  0x63   : > { %p1593_p11 = scmp.lt.u32.totalorder %s1586_s14, %s2353_s5 }
  0x64   : > { %p2404_p0 = pneg %p2403_p10 }
  0x66   : > { %p1589_p13 = pnand %p1587_p2, %p2404_p0 }
  0x68   : > { %p1590_p6 = pneg %p1589_p13 }
  0x6a   : > { %p1595_p3 = pnand %p1593_p11, %p1590_p6 }
  0x6c   : > { %1598 = shalt.err (!%p1595_p3)
}
  0x6d   : > { %s1599_s20 = scalar_lea.vmem %s251_s30, 16  ;;  %p2405_p5 = pmov %p2404_p0 }
  0x6e   : > { %p1600_p8 = scmp.ne.s32.totalorder %s251_s30, %s1599_s20  ;;  %s1606_s17 = scalar_lea.vmem %s251_s30, 32 }
  0x6f   : > { %p1607_p4 = scmp.lt.s32.totalorder %s251_s30, %s251_s30  ;;  %p1608_p7 = scmp.lt.s32.totalorder %s1606_s17, %s1599_s20 }
  0x70   : > { %p1602_p12 = pnand %p1600_p8, %p2405_p5 }
  0x71   : > { %p1609_p9 = por %p1608_p7, %p1607_p4 }
  0x72   : > { %p1603_p1 = pneg %p1602_p12 }
  0x74   : > { %p1610_p0 = pnand %p1609_p9, %p1603_p1 }
  0x76   : > { %1613 = shalt.err (!%p1610_p0)
}
  0x77   : > { %1404 = dma.hbm_to_vmem [thread:$0]  (!%p2403_p10), %s2353_s5, 16, %s251_s30, [#allocation13]  }
  0x78   : > { %s1300_s24 = sshll.u32 %s1798_s25, 8  ;;  %s265_s11 = scalar_lea.vmem [#allocation3], %s1260_s1 }
  0x79   : > { %s2070_s19 = scalar_lea.hbm %s2348_s0, %s1300_s24  ;;  %s274_s14 = sshll.u32 %s265_s11, 4  ;;  %s2072_s14 = int_to_ptr.vmem [resolvable:$true] %s274_s14 }
  0x7a   : > { %s262_s13 = scalar_lea.sflag [#allocation4], %s1939_s15  ;;  %s1614_s20 = scalar_lea.hbm %s2070_s19, 256 }
  0x7b   : > { %p1615_p7 = scmp.ne.s32.totalorder %s2070_s19, %s1614_s20  ;;  %p2406_p9 = scmp.ne.s32.totalorder %s2400_s12, 0 }
  0x7c   : > { %s1619_s6 = scalar_lea.hbm %s2348_s0, 512  ;;  %p1620_p13 = scmp.lt.u32.totalorder %s2070_s19, %s2348_s0 }
  0x7d   : > { %p1617_p2 = pnand %p1615_p7, %p2406_p9  ;;  %p1621_p6 = scmp.lt.u32.totalorder %s1619_s6, %s1614_s20 }
  0x7e   : > { %p1623_p3 = scmp.lt.u32.totalorder %s1614_s20, %s2070_s19 }
  0x7f   : > { %p1618_p10 = pneg %p1617_p2  ;;  %p1622_p11 = por %p1621_p6, %p1620_p13 }
  0x81   : > { %p1624_p8 = por %p1623_p3, %p1622_p11 }
  0x83   : > { %p1625_p5 = pnand %p1624_p8, %p1618_p10 }
  0x85   : > { %1628 = shalt.err (!%p1625_p5)
}
  0x86   : > { %s1629_s1 = scalar_lea.vmem %s2072_s14, 256  ;;  %s1809_s8 = smov [#allocation3]  }
  0x87   : > { %p1630_p12 = scmp.ne.s32.totalorder %s2072_s14, %s1629_s1  ;;  %s1634_s29 = sshll.u32 %s1809_s8, 4  ;;  %s1635_s29 = int_to_ptr.vmem [resolvable:$false] %s1634_s29 }
  0x88   : > { %s1636_s11 = scalar_lea.vmem %s1635_s29, 512  ;;  %p1637_p0 = scmp.lt.s32.totalorder %s2072_s14, %s1635_s29 }
  0x89   : > { %p1632_p1 = pnand %p1630_p12, %p2406_p9  ;;  %p1638_p7 = scmp.lt.s32.totalorder %s1636_s11, %s1629_s1 }
  0x8b   : > { %p1633_p4 = pneg %p1632_p1  ;;  %p1639_p2 = por %p1638_p7, %p1637_p0 }
  0x8d   : > { %p1640_p13 = pnand %p1639_p2, %p1633_p4 }
  0x8f   : > { %1643 = shalt.err (!%p1640_p13)
}
  0x90   : > { %s1810_s20 = smov 128   ;;  %s1811_s30 = smov 8  }
  0x91   : > { %p2407_p10 = scmp.ne.s32.totalorder %s2396_s28, 0  ;;  %s2102_s23 = scalar_lea.hbm %s2350_s2, %s1994_s21 }
  0x92   : > { %s311_s24 = scalar_lea.vmem [#allocation8], %s1991_s9  ;;  %s1644_s8 = scalar_lea.hbm %s2102_s23, 128 }
  0x93   : > { %1408 = dma.hbm_to_vmem [thread:$0]  (!%p2407_p10), %s2070_s19, 256, %s2072_s14, %s262_s13, %s1810_s20, %s1810_s20, %s1811_s30  }
  0x94   : > { %s318_s1 = sshll.u32 %s311_s24, 4  ;;  %p1645_p6 = scmp.ne.s32.totalorder %s2102_s23, %s1644_s8  ;;  %s2105_s1 = int_to_ptr.vmem [resolvable:$true] %s318_s1 }
  0x95   : > { %s1649_s14 = scalar_lea.hbm %s2350_s2, 256  ;;  %p1650_p8 = scmp.lt.u32.totalorder %s2102_s23, %s2350_s2 }
  0x96   : > { %p1647_p11 = pnand %p1645_p6, %p2406_p9  ;;  %p1651_p5 = scmp.lt.u32.totalorder %s1649_s14, %s1644_s8 }
  0x97   : > { %p1653_p1 = scmp.lt.u32.totalorder %s1644_s8, %s2102_s23 }
  0x98   : > { %p1648_p3 = pneg %p1647_p11  ;;  %p1652_p12 = por %p1651_p5, %p1650_p8 }
  0x9a   : > { %p1654_p4 = por %p1653_p1, %p1652_p12 }
  0x9c   : > { %p1655_p0 = pnand %p1654_p4, %p1648_p3 }
  0x9e   : > { %1658 = shalt.err (!%p1655_p0)
}
  0x9f   : > { %s1659_s11 = scalar_lea.vmem %s2105_s1, 128  ;;  %s1812_s20 = smov [#allocation8]  }
  0xa0   : > { %p1660_p7 = scmp.ne.s32.totalorder %s2105_s1, %s1659_s11  ;;  %s1664_s30 = sshll.u32 %s1812_s20, 4  ;;  %s1665_s30 = int_to_ptr.vmem [resolvable:$false] %s1664_s30 }
  0xa1   : > { %s1666_s17 = scalar_lea.vmem %s1665_s30, 256  ;;  %p1667_p6 = scmp.lt.s32.totalorder %s2105_s1, %s1665_s30 }
  0xa2   : > { %p1662_p2 = pnand %p1660_p7, %p2406_p9  ;;  %p1668_p11 = scmp.lt.s32.totalorder %s1666_s17, %s1659_s11 }
  0xa4   : > { %p1663_p13 = pneg %p1662_p2  ;;  %p1669_p8 = por %p1668_p11, %p1667_p6 }
  0xa6   : > { %p1670_p5 = pnand %p1669_p8, %p1663_p13 }
  0xa8   : > { %1673 = shalt.err (!%p1670_p5)
}
  0xa9   : > { %1414 = dma.hbm_to_vmem [thread:$0]  (!%p2407_p10), %s2102_s23, 128, %s2105_s1, %s2012_s18, %s2402_s16, %s2402_s16, %s2401_s4  }
  0xaa   : > { %s2136_s8 = scalar_lea.hbm %s2351_s3, %s1994_s21  ;;  %s332_s15 = scalar_lea.vmem [#allocation9], %s1991_s9 }
  0xab   : > { %s339_s19 = sshll.u32 %s332_s15, 4  ;;  %s2408_s14 = sand.u32 1, %s1802_s26   ;;  %s2139_s19 = int_to_ptr.vmem [resolvable:$true] %s339_s19 }
  0xac   : > { %s2143_s13 = scalar_lea.sflag [#allocation10], %s2408_s14  ;;  %s1674_s29 = scalar_lea.hbm %s2136_s8, 128 }
  0xad   : > { %p1675_p3 = scmp.ne.s32.totalorder %s2136_s8, %s1674_s29  ;;  %s1679_s21 = scalar_lea.hbm %s2351_s3, 256 }
  0xae   : > { %p1680_p4 = scmp.lt.u32.totalorder %s2136_s8, %s2351_s3  ;;  %p1681_p0 = scmp.lt.u32.totalorder %s1679_s21, %s1674_s29 }
  0xaf   : > { %p1677_p12 = pnand %p1675_p3, %p2406_p9  ;;  %p1683_p2 = scmp.lt.u32.totalorder %s1674_s29, %s2136_s8 }
  0xb0   : > { %p1682_p7 = por %p1681_p0, %p1680_p4 }
  0xb1   : > { %p1678_p1 = pneg %p1677_p12 }
  0xb2   : > { %p1684_p13 = por %p1683_p2, %p1682_p7 }
  0xb4   : > { %p1685_p6 = pnand %p1684_p13, %p1678_p1 }
  0xb6   : > { %1688 = shalt.err (!%p1685_p6)
}
  0xb7   : > { %s1689_s9 = scalar_lea.vmem %s2139_s19, 128  ;;  %s1813_s20 = smov [#allocation9]  }
  0xb8   : > { %p1690_p11 = scmp.ne.s32.totalorder %s2139_s19, %s1689_s9  ;;  %s1694_s30 = sshll.u32 %s1813_s20, 4  ;;  %s1695_s30 = int_to_ptr.vmem [resolvable:$false] %s1694_s30 }
  0xb9   : > { %s1696_s17 = scalar_lea.vmem %s1695_s30, 256  ;;  %p1697_p3 = scmp.lt.s32.totalorder %s2139_s19, %s1695_s30 }
  0xba   : > { %p1692_p8 = pnand %p1690_p11, %p2406_p9  ;;  %p1698_p12 = scmp.lt.s32.totalorder %s1696_s17, %s1689_s9 }
  0xbc   : > { %p1693_p5 = pneg %p1692_p8  ;;  %p1699_p4 = por %p1698_p12, %p1697_p3 }
  0xbe   : > { %p1700_p0 = pnand %p1699_p4, %p1693_p5 }
  0xc0   : > { %1703 = shalt.err (!%p1700_p0)
}
  0xc1   : > { %1417 = dma.hbm_to_vmem [thread:$0]  (!%p2407_p10), %s2136_s8, 128, %s2139_s19, %s2143_s13, %s2402_s16, %s2402_s16, %s2401_s4  }
  0xc2   : > { %p2409_p9 = scmp.ne.s32.totalorder %s2390_s10, 0 }
  0xc3   : > { %s2173_s12 = sand.u32 (!%p2409_p9), 1, %s1786_s22   ;;  %p2410_p1 = scmp.ne.s32.totalorder (!%p2409_p9), %s2385_s7, 0 }
  0xc4   : > { %351 = sbr.rel (%p2409_p9) target bundleno = 1934 (0x78e), region = 44  ;;  %s1273_s6 = sshll.u32 (!%p2409_p9), %s2173_s12, 4 }
  0xc5   : > { %s354_s24 = scalar_lea.sflag (!%p2409_p9), [#allocation4], %s2173_s12  ;;  %s2179_s28 = scalar_lea.vmem (!%p2409_p9), [#allocation3], %s1273_s6 }
  0xcb   : > { %1757 = dma.done.wait (%p2410_p1), %s354_s24, 256  }
  0xcc   : > { %1759 = vsyncadd (%p2410_p1), %s354_s24, 4294967040  ;;  %s362_s10 = sand.u32 1, %s1890_s27   ;;  %s2187_s4 = sshll.u32 %s2173_s12, 3 }
  0xcd   : > { %s363_s16 = scalar_lea.sflag [#allocation7], %s362_s10  ;;  %s366_s8 = scalar_lea.vmem [#allocation6], %s2187_s4 }
  0xce   : > { %1761 = dma.done.wait (%p2410_p1), %s363_s16, 256  }
  0xcf   : > { %1763 = vsyncadd (%p2410_p1), %s363_s16, 4294967040  ;;  %s375_s15 = scalar_lea.vmem [#allocation8], %s2187_s4  ;;  %s381_s19 = scalar_lea.sflag [#allocation10], %s362_s10 }
  0xd0   : > { %s384_s14 = scalar_lea.vmem [#allocation9], %s2187_s4 }
  0xd1   : > { %1765 = dma.done.wait (%p2410_p1), %s381_s19, 128  }
  0xd2   : > { %1767 = vsyncadd (%p2410_p1), %s381_s19, 4294967168  ;;  %p2411_p10 = scmp.eq.s32.totalorder %s1890_s27, 0 }
  0xd4   : > { %1769 = dma.done.wait (%p2411_p10), [#allocation10], 256   ;;  %p2412_p7 = pmov %p2411_p10 }
  0xd6   : > { %1771 = vsyncadd (%p2412_p7), [#allocation10], 4294967040  ;;  %p2413_p2 = pmov %p2412_p7 }
  0xd8   : > { %1773 = dma.done.wait (%p2413_p2), [#allocation13], 16   ;;  %p2414_p13 = pmov %p2413_p2 }
  0xd9   : > { %v1814_v0 = vmov 0.0   ;;  %vm1815_vm0 = vmmov 0   ;;  %vm456_vm1 = vcmask 64512   ;;  %v1491_v1 = vld [vmem:[%s375_s15] sm:$0xff]   ;;  %v1492_v3 = vld [vmem:[%s366_s8] sm:$0xff]   ;;  %vm506_vm2 = vcmask 130048  }
  0xda   : > { %1775 = vsyncadd (%p2414_p13), [#allocation13], 4294967280  ;;  %1324 = vmatprep.subr.bf16.mxu0 %v1814_v0  ;;  %1326 = vmatprep.mubr.msk.bf16.mxu0 %vm1815_vm0, %v1814_v0  ;;  %v461_v2 = vsel %vm456_vm1, %v1491_v1, 0  ;;  %s1816_s27 = smov 120   ;;  %s1817_s7 = smov 104   ;;  %v2227_v22 = vld [vmem:[%s384_s14] sm:$0xff]  }
  0xdb   : > { %1330 = vmatprep.subr.bf16.mxu1 %v1814_v0  ;;  %1332 = vmatprep.mubr.msk.bf16.mxu1 %vm1815_vm0, %v1814_v0  ;;  %s1818_s13 = smov 112   ;;  %s1819_s29 = smov 8   ;;  %vm713_vm3 = vcmask 130112   ;;  %vm847_vm4 = vcmask 195712   ;;  %vm981_vm5 = vcmask 261312   ;;  %vm1014_vm6 = vcmask 261120  }
  0xdc   : > { %1325 = vmatpush3.bf16.xpose.msra.mxu0 %v461_v2  ;;  %1331 = vmatpush3.bf16.msra.mxu1 %v2227_v22  ;;  %s1820_s18 = smov 16   ;;  %s1821_s23 = smov 24  }
  0xdd   : > { %1342 = vmatprep.subr.bf16.mxu0 %v1814_v0  ;;  %1336 = vmatprep.subr.bf16.mxu1 %v1814_v0  ;;  %s2415_s21 = sld [smem:[#allocation23_spill]]  ;;  %s435_s1 = scalar_lea.vmem [#allocation14], %s1273_s6 }
  0xde   : > { %s1079_s11 = sshll.u32 %s435_s1, 4  ;;  %s2416_s9 = sld [smem:[#allocation24_spill]]  ;;  %s2291_s11 = int_to_ptr.vmem [resolvable:$true] %s1079_s11 }
  0xdf   : > { %s2417_s6 = sld [smem:[#allocation30_spill]]  ;;  %s1704_s10 = scalar_lea.vmem %s2291_s11, 256 }
  0xe0   : > { %p1705_p6 = scmp.ne.s32.totalorder %s2291_s11, %s1704_s10  ;;  %s1822_s4 = smov [#allocation14]  }
  0xe1   : > { %s1708_s16 = sshll.u32 %s1822_s4, 4  ;;  %s1709_s16 = int_to_ptr.vmem [resolvable:$false] %s1708_s16 }
  0xe2   : > { %s1710_s8 = scalar_lea.vmem %s1709_s16, 512  ;;  %p1711_p3 = scmp.lt.s32.totalorder %s2291_s11, %s1709_s16 }
  0xe3   : > { %1327 = vmatmul.mubr.msk.bf16.vlgmr.msra.gmra.mrb[0].mxu0 %vm456_vm1, %v1492_v3  ;;  %s1304_s20 = sshll.u32 %s2415_s21, 8  ;;  %p1712_p12 = scmp.lt.s32.totalorder %s1710_s8, %s1704_s10 }
  0xe4   : > { %1344 = vmatprep.mubr.msk.bf16.mxu0 %vm1815_vm0, %v1814_v0  ;;  %p2418_p11 = scmp.ne.s32.totalorder %s2416_s9, 0 }
  0xe5   : > { %s2297_s24 = scalar_lea.hbm %s2417_s6, %s1304_s20  ;;  %p1713_p4 = por %p1712_p12, %p1711_p3 }
  0xe6   : > { %p1706_p8 = pnand %p1705_p6, %p2418_p11 }
  0xe8   : > { %p1707_p5 = pneg %p1706_p8 }
  0xea   : > { %p1714_p0 = pnand %p1713_p4, %p1707_p5 }
 0x1b6   : > { %v497_v4 = vpop.f32.mrb[0].mxu0 }
 0x1b7   : > { %v504_v5 = vmul.f32 0.35355338, %v497_v4  ;;  %v1328_v6 = vpop.f32.mrb[1].mxu0 }
 0x1b8   : > { %v500_v7 = vpop.f32.mrb[2].mxu0 }
 0x1b9   : > { %v505_v8 = vmul.f32 0.35355338, %v500_v7  ;;  %v1329_v9 = vpop.f32.mrb[3].mxu0  ;;  %v507_v10 = vsel %vm506_vm2, %v504_v5, -inf }
 0x1ba   : > { %508 = vmax.xlane.f32.xlu0 %v507_v10 }
 0x1bb   : > { %v510_v11 = vsel %vm506_vm2, %v505_v8, -inf }
 0x1be   : > { %511 = vmax.xlane.f32.xlu0 %v510_v11 }
 0x1d4   : > { %584 = vrot.lane.b32.xlu0 %v1491_v1, %s1816_s27 }
 0x1d8   : > { %852 = vrot.lane.b32.xlu0 %v1491_v1, %s1817_s7 }
 0x247   : > { %v509_v12 = vpop.xlane.xlu0 %508 }
 0x248   : > { %v513_v13 = vsub.f32 %v504_v5, %v509_v12 }
 0x24a   : > { %v515_v14 = vmul.f32 1.442695, %v513_v13 }
 0x24b   : > { %v512_v15 = vpop.xlane.xlu0 %511 }
 0x24c   : > { %1496 = vpow2.f32 %v515_v14  ;;  %v514_v16 = vsub.f32 %v505_v8, %v512_v15 }
 0x24e   : > { %v517_v17 = vmul.f32 1.442695, %v514_v16 }
 0x24f   : > { %v585_v27 = vpop.permute.xlu0 %584 }
 0x250   : > { %1498 = vpow2.f32 %v517_v17  ;;  %v590_v31 = vsel %vm456_vm1, %v585_v27, 0 }
 0x253   : > { %v853_v35 = vpop.permute.xlu0 %852 }
 0x254   : > { %v858_v37 = vsel %vm456_vm1, %v853_v35, 0 }
 0x256   : > { %v1497_v18 = vpop.eup %1496 }
 0x257   : > { %v519_v19 = vsel %vm506_vm2, %v1497_v18, 0.0 }
 0x258   : > { %520 = vadd.xlane.f32.xlu1 %v519_v19 }
 0x25a   : > { %v1499_v20 = vpop.eup %1498 }
 0x25b   : > { %v522_v21 = vsel %vm506_vm2, %v1499_v20, 0.0 }
 0x25c   : > { %523 = vadd.xlane.f32.xlu1 %v522_v21 }
 0x26d   : > { %582 = vrot.lane.b32.xlu1 %v1492_v3, %s1816_s27 }
 0x271   : > { %718 = vrot.lane.b32.xlu1 %v1491_v1, %s1818_s13 }
 0x275   : > { %716 = vrot.lane.b32.xlu1 %v1492_v3, %s1818_s13 }
 0x279   : > { %850 = vrot.lane.b32.xlu1 %v1492_v3, %s1817_s7 }
 0x2e5   : > { %v521_v23 = vpop.xlane.xlu1 %520 }
 0x2e6   : > { %1500 = vrcp.f32 %v521_v23 }
 0x2e9   : > { %v524_v24 = vpop.xlane.xlu1 %523 }
 0x2ea   : > { %1502 = vrcp.f32 %v524_v24 }
 0x2ed   : > { %v583_v30 = vpop.permute.xlu1 %582 }
 0x2f0   : > { %v1501_v25 = vpop.eup %1500 }
 0x2f1   : > { %v527_v28 = vmul.f32 %v1501_v25, %v1497_v18  ;;  %v719_v33 = vpop.permute.xlu1 %718 }
 0x2f2   : > { %v724_v34 = vsel %vm456_vm1, %v719_v33, 0 }
 0x2f4   : > { %v1503_v26 = vpop.eup %1502 }
 0x2f5   : > { %v528_v29 = vmul.f32 %v1503_v26, %v1499_v20  ;;  %v717_v36 = vpop.permute.xlu1 %716 }
 0x2f7   : > { %v529_v32 = vpack.c.bf16 %v528_v29, %v527_v28 }
 0x2f9   : > { %1333 = vmatmul.mubr.msk.bf16.vlgmr.msra.gmra.mrb[0].mxu1 %vm506_vm2, %v529_v32  ;;  %v851_v38 = vpop.permute.xlu1 %850 }
 0x2fa   : > { %1337 = vmatpush3.bf16.xpose.msra.mxu1 %v590_v31  ;;  %1338 = vmatprep.mubr.msk.bf16.mxu1 %vm1815_vm0, %v1814_v0 }
 0x2fb   : > { %1348 = vmatprep.subr.bf16.mxu1 %v1814_v0 }
 0x301   : > { %1339 = vmatmul.mubr.msk.bf16.vlgmr.msra.gmra.mrb[4].mxu1 %vm456_vm1, %v583_v30 }
 0x302   : > { %1349 = vmatpush3.bf16.xpose.msra.mxu1 %v724_v34  ;;  %1350 = vmatprep.mubr.msk.bf16.mxu1 %vm1815_vm0, %v1814_v0 }
 0x303   : > { %1360 = vmatprep.subr.bf16.mxu1 %v1814_v0 }
 0x309   : > { %1351 = vmatmul.mubr.msk.bf16.vlgmr.msra.gmra.mrb[8].mxu1 %vm456_vm1, %v717_v36 }
 0x30a   : > { %1361 = vmatpush3.bf16.xpose.msra.mxu1 %v858_v37  ;;  %1362 = vmatprep.mubr.msk.bf16.mxu1 %vm1815_vm0, %v1814_v0 }
 0x30b   : > { %1372 = vmatprep.subr.bf16.mxu1 %v1814_v0 }
 0x311   : > { %1363 = vmatmul.mubr.msk.bf16.vlgmr.msra.gmra.mrb[12].mxu1 %vm456_vm1, %v851_v38 }
 0x312   : > { %1376 = vmatprep.mubr.msk.bf16.mxu1 %vm1815_vm0, %v1814_v0 }
 0x3cc   : > { %v573_v39 = vpop.f32.mrb[0].mxu1 }
 0x3cd   : > { %580 = vst.msk [vmem:[#allocation2] sm:$0xff] %vm456_vm1, %v573_v39  ;;  %v1334_v40 = vpop.f32.mrb[1].mxu1 }
 0x3ce   : > { %v576_v41 = vpop.f32.mrb[2].mxu1 }
 0x3cf   : > { %581 = vst.msk [vmem:[#allocation2 + $0x8] sm:$0xff] %vm456_vm1, %v576_v41  ;;  %v1335_v42 = vpop.f32.mrb[3].mxu1 }
 0x3d4   : > { %v626_v43 = vpop.f32.mrb[4].mxu1 }
 0x3d5   : > { %v633_v44 = vmul.f32 0.35355338, %v626_v43  ;;  %v1340_v45 = vpop.f32.mrb[5].mxu1 }
 0x3d6   : > { %v629_v46 = vpop.f32.mrb[6].mxu1 }
 0x3d7   : > { %v634_v47 = vmul.f32 0.35355338, %v629_v46  ;;  %v1341_v48 = vpop.f32.mrb[7].mxu1  ;;  %v635_v49 = vsel %vm506_vm2, %v633_v44, -inf }
 0x3d8   : > { %636 = vmax.xlane.f32.xlu0 %v635_v49 }
 0x3d9   : > { %v638_v50 = vsel %vm506_vm2, %v634_v47, -inf }
 0x3da   : > { %639 = vmax.xlane.f32.xlu1 %v638_v50 }
 0x3dc   : > { %v760_v51 = vpop.f32.mrb[8].mxu1 }
 0x3dd   : > { %v767_v52 = vmul.f32 0.35355338, %v760_v51  ;;  %v1352_v53 = vpop.f32.mrb[9].mxu1 }
 0x3de   : > { %v763_v54 = vpop.f32.mrb[10].mxu1 }
 0x3df   : > { %v768_v55 = vmul.f32 0.35355338, %v763_v54  ;;  %v1353_v56 = vpop.f32.mrb[11].mxu1  ;;  %v769_v57 = vsel %vm506_vm2, %v767_v52, -inf }
 0x3e0   : > { %770 = vmax.xlane.f32.xlu0 %v769_v57 }
 0x3e1   : > { %v772_v58 = vsel %vm506_vm2, %v768_v55, -inf }
 0x3e4   : > { %773 = vmax.xlane.f32.xlu0 %v772_v58  ;;  %v894_v59 = vpop.f32.mrb[12].mxu1 }
 0x3e5   : > { %v901_v60 = vmul.f32 0.35355338, %v894_v59  ;;  %v1364_v61 = vpop.f32.mrb[13].mxu1 }
 0x3e6   : > { %v897_v62 = vpop.f32.mrb[14].mxu1 }
 0x3e7   : > { %v902_v63 = vmul.f32 0.35355338, %v897_v62  ;;  %v903_v1 = vsel %vm506_vm2, %v901_v60, -inf  ;;  %v1365_v2 = vpop.f32.mrb[15].mxu1 }
 0x3e8   : > { %904 = vmax.xlane.f32.xlu0 %v903_v1 }
 0x3e9   : > { %v906_v3 = vsel %vm506_vm2, %v902_v63, -inf }
 0x3ea   : > { %907 = vmax.xlane.f32.xlu1 %v906_v3  ;;  %v1494_v3 = vld [vmem:[#allocation11] sm:$0xff]  }
 0x3eb   : > { %1373 = vmatpush3.bf16.msra.mxu1 %v1494_v3 }
 0x3ec   : > { %1374 = vmatprep.subr.bf16.mxu1 %v1814_v0 }
 0x465   : > { %v637_v4 = vpop.xlane.xlu0 %636 }
 0x466   : > { %v641_v5 = vsub.f32 %v633_v44, %v637_v4  ;;  %v1495_v4 = vld [vmem:[#allocation11 + $0x8] sm:$0xff]  }
 0x467   : > { %v640_v6 = vpop.xlane.xlu1 %639  ;;  %1375 = vmatpush3.bf16.msra.mxu1 %v1495_v4 }
 0x468   : > { %v643_v7 = vmul.f32 1.442695, %v641_v5  ;;  %v642_v8 = vsub.f32 %v634_v47, %v640_v6 }
 0x46a   : > { %1504 = vpow2.f32 %v643_v7  ;;  %v645_v9 = vmul.f32 1.442695, %v642_v8 }
 0x46c   : > { %1506 = vpow2.f32 %v645_v9 }
 0x46d   : > { %v771_v10 = vpop.xlane.xlu0 %770 }
 0x46e   : > { %v775_v11 = vsub.f32 %v767_v52, %v771_v10 }
 0x470   : > { %v777_v12 = vmul.f32 1.442695, %v775_v11 }
 0x471   : > { %v774_v13 = vpop.xlane.xlu0 %773 }
 0x472   : > { %1508 = vpow2.f32 %v777_v12  ;;  %v776_v14 = vsub.f32 %v768_v55, %v774_v13 }
 0x474   : > { %v1505_v15 = vpop.eup %1504  ;;  %v779_v16 = vmul.f32 1.442695, %v776_v14 }
 0x475   : > { %v905_v17 = vpop.xlane.xlu0 %904  ;;  %v647_v18 = vsel %vm506_vm2, %v1505_v15, 0.0 }
 0x476   : > { %v1507_v19 = vpop.eup %1506  ;;  %1510 = vpow2.f32 %v779_v16  ;;  %v909_v20 = vsub.f32 %v901_v60, %v905_v17  ;;  %648 = vadd.xlane.f32.xlu0 %v647_v18  ;;  %v984_v17 = vld [vmem:[%s2179_s28] sm:$0xff] }
 0x477   : > { %v650_v21 = vsel %vm506_vm2, %v1507_v19, 0.0  ;;  %v908_v30 = vpop.xlane.xlu1 %907  ;;  %v1291_v18 = vld [vmem:[#allocation12] ss:$0 sm:$0xff] }
 0x478   : > { %v911_v23 = vmul.f32 1.442695, %v909_v20  ;;  %651 = vadd.xlane.f32.xlu1 %v650_v21  ;;  %v910_v31 = vsub.f32 %v902_v63, %v908_v30  ;;  %v993_v20 = vadd.f32 %v1291_v18, %v984_v17 }
 0x47a   : > { %1512 = vpow2.f32 %v911_v23  ;;  %v913_v32 = vmul.f32 1.442695, %v910_v31 }
 0x47c   : > { %v1509_v24 = vpop.eup %1508  ;;  %1514 = vpow2.f32 %v913_v32 }
 0x47d   : > { %v781_v25 = vsel %vm506_vm2, %v1509_v24, 0.0 }
 0x47e   : > { %782 = vadd.xlane.f32.xlu0 %v781_v25 }
 0x480   : > { %v1511_v26 = vpop.eup %1510 }
 0x481   : > { %v784_v27 = vsel %vm506_vm2, %v1511_v26, 0.0 }
 0x482   : > { %785 = vadd.xlane.f32.xlu1 %v784_v27 }
 0x484   : > { %v1513_v28 = vpop.eup %1512 }
 0x485   : > { %v915_v29 = vsel %vm506_vm2, %v1513_v28, 0.0 }
 0x486   : > { %916 = vadd.xlane.f32.xlu0 %v915_v29  ;;  %v1515_v33 = vpop.eup %1514 }
 0x487   : > { %v918_v34 = vsel %vm506_vm2, %v1515_v33, 0.0 }
 0x493   : > { %792 = vrot.lane.b32.xlu1 %v2227_v22, %s1818_s13 }
 0x49c   : > { %658 = vrot.lane.b32.xlu0 %v2227_v22, %s1816_s27 }
 0x4b7   : > { %919 = vadd.xlane.f32.xlu1 %v918_v34 }
 0x4c8   : > { %926 = vrot.lane.b32.xlu1 %v2227_v22, %s1817_s7 }
 0x503   : > { %v649_v36 = vpop.xlane.xlu0 %648 }
 0x505   : > { %v652_v35 = vpop.xlane.xlu1 %651 }
 0x506   : > { %1516 = vrcp.f32 %v652_v35 }
 0x507   : > { %1518 = vrcp.f32 %v649_v36 }
 0x50b   : > { %v783_v37 = vpop.xlane.xlu0 %782 }
 0x50f   : > { %v786_v38 = vpop.xlane.xlu1 %785 }
 0x510   : > { %1520 = vrcp.f32 %v786_v38  ;;  %v1517_v39 = vpop.eup %1516 }
 0x511   : > { %1522 = vrcp.f32 %v783_v37  ;;  %v1519_v41 = vpop.eup %1518  ;;  %v656_v42 = vmul.f32 %v1517_v39, %v1507_v19  ;;  %v985_v19 = vld [vmem:[%s2179_s28 + $0x8] sm:$0xff]  ;;  %s1064_s28 = scalar_lea.sflag [#allocation5], %s2173_s12 }
 0x512   : > { %v655_v43 = vmul.f32 %v1519_v41, %v1505_v15  ;;  %v994_v21 = vadd.f32 %v1291_v18, %v985_v19 }
 0x513   : > { %v917_v40 = vpop.xlane.xlu0 %916  ;;  %v793_v22 = vpop.permute.xlu1 %792 }
 0x514   : > { %v657_v45 = vpack.c.bf16 %v656_v42, %v655_v43  ;;  %1524 = vrcp.f32 %v917_v40 }
 0x517   : > { %v659_v44 = vpop.permute.xlu0 %658 }
 0x518   : > { %1343 = vmatpush3.bf16.msra.mxu0 %v659_v44 }
 0x519   : > { %1354 = vmatprep.subr.bf16.mxu0 %v1814_v0 }
 0x51a   : > { %v1521_v46 = vpop.eup %1520 }
 0x51b   : > { %1345 = vmatmul.mubr.msk.bf16.vlgmr.msra.gmra.mrb[4].mxu0 %vm506_vm2, %v657_v45  ;;  %v1523_v47 = vpop.eup %1522  ;;  %v790_v48 = vmul.f32 %v1521_v46, %v1511_v26 }
 0x51c   : > { %1355 = vmatpush3.bf16.msra.mxu0 %v793_v22  ;;  %1356 = vmatprep.mubr.msk.bf16.mxu0 %vm1815_vm0, %v1814_v0  ;;  %v789_v49 = vmul.f32 %v1523_v47, %v1509_v24 }
 0x51d   : > { %1366 = vmatprep.subr.bf16.mxu0 %v1814_v0 }
 0x51e   : > { %v791_v50 = vpack.c.bf16 %v790_v48, %v789_v49  ;;  %v1525_v53 = vpop.eup %1524 }
 0x51f   : > { %v923_v55 = vmul.f32 %v1525_v53, %v1513_v28 }
 0x523   : > { %1357 = vmatmul.mubr.msk.bf16.vlgmr.msra.gmra.mrb[8].mxu0 %vm506_vm2, %v791_v50 }
 0x524   : > { %1368 = vmatprep.mubr.msk.bf16.mxu0 %vm1815_vm0, %v1814_v0 }
 0x544   : > { %v920_v51 = vpop.xlane.xlu1 %919 }
 0x545   : > { %1526 = vrcp.f32 %v920_v51 }
 0x548   : > { %v927_v52 = vpop.permute.xlu1 %926 }
 0x549   : > { %1367 = vmatpush3.bf16.msra.mxu0 %v927_v52 }
 0x54f   : > { %v1527_v54 = vpop.eup %1526 }
 0x550   : > { %v924_v56 = vmul.f32 %v1527_v54, %v1515_v33 }
 0x552   : > { %v925_v57 = vpack.c.bf16 %v924_v56, %v923_v55 }
 0x554   : > { %1369 = vmatmul.mubr.msk.bf16.vlgmr.msra.gmra.mrb[12].mxu0 %vm506_vm2, %v925_v57 }
 0x5ee   : > { %v698_v58 = vpop.f32.mrb[4].mxu0 }
 0x5ef   : > { %707 = vrot.lane.b32.xlu1 %v698_v58, %s1819_s29  ;;  %v1346_v59 = vpop.f32.mrb[5].mxu0 }
 0x5f0   : > { %v701_v60 = vpop.f32.mrb[6].mxu0 }
 0x5f1   : > { %709 = vrot.lane.b32.xlu0 %v701_v60, %s1819_s29  ;;  %v1347_v61 = vpop.f32.mrb[7].mxu0 }
 0x5f6   : > { %v832_v62 = vpop.f32.mrb[8].mxu0 }
 0x5f7   : > { %841 = vrot.lane.b32.xlu1 %v832_v62, %s1820_s18  ;;  %v1358_v63 = vpop.f32.mrb[9].mxu0 }
 0x5f8   : > { %v835_v1 = vpop.f32.mrb[10].mxu0 }
 0x5f9   : > { %843 = vrot.lane.b32.xlu0 %v835_v1, %s1820_s18  ;;  %v1359_v2 = vpop.f32.mrb[11].mxu0 }
 0x627   : > { %v966_v5 = vpop.f32.mrb[12].mxu0 }
 0x628   : > { %975 = vrot.lane.b32.xlu1 %v966_v5, %s1821_s23  ;;  %v1370_v6 = vpop.f32.mrb[13].mxu0 }
 0x629   : > { %v969_v7 = vpop.f32.mrb[14].mxu0 }
 0x62a   : > { %977 = vrot.lane.b32.xlu0 %v969_v7, %s1821_s23  ;;  %v1371_v8 = vpop.f32.mrb[15].mxu0 }
 0x661   : > { %v708_v9 = vpop.permute.xlu1 %707 }
 0x662   : > { %714 = vst.msk [vmem:[#allocation2] sm:$0xff] %vm713_vm3, %v708_v9 }
 0x663   : > { %v710_v10 = vpop.permute.xlu0 %709 }
 0x664   : > { %715 = vst.msk [vmem:[#allocation2 + $0x8] sm:$0xff] %vm713_vm3, %v710_v10 }
 0x669   : > { %v842_v11 = vpop.permute.xlu1 %841 }
 0x66a   : > { %848 = vst.msk [vmem:[#allocation2] sm:$0xff] %vm847_vm4, %v842_v11 }
 0x66b   : > { %v844_v12 = vpop.permute.xlu0 %843 }
 0x66c   : > { %849 = vst.msk [vmem:[#allocation2 + $0x8] sm:$0xff] %vm847_vm4, %v844_v12 }
 0x69a   : > { %v976_v0 = vpop.permute.xlu1 %975 }
 0x69b   : > { %982 = vst.msk [vmem:[#allocation2] sm:$0xff] %vm981_vm5, %v976_v0 }
 0x69c   : > { %v978_v13 = vpop.permute.xlu0 %977 }
 0x69d   : > { %983 = vst.msk [vmem:[#allocation2 + $0x8] sm:$0xff] %vm981_vm5, %v978_v13 }
 0x6a2   : > { %v995_v14 = vld [vmem:[#allocation2] sm:$0xff] }
 0x6a4   : > { %v996_v15 = vld [vmem:[#allocation2 + $0x8] sm:$0xff] }
 0x6a5   : > { %v997_v16 = vpack.c.bf16 %v996_v15, %v995_v14 }
 0x6a7   : > { %1377 = vmatmul.mubr.msk.bf16.vlgmr.msra.gmra.mrb[16].mxu1 %vm1014_vm6, %v997_v16 }
 0x77a   : > { %v1052_v23 = vpop.f32.mrb[16].mxu1 }
 0x77b   : > { %v1059_v24 = vadd.f32 %v1052_v23, %v993_v20  ;;  %v1378_v25 = vpop.f32.mrb[17].mxu1 }
 0x77c   : > { %v1055_v26 = vpop.f32.mrb[18].mxu1 }
 0x77d   : > { %1061 = vst.msk [vmem:[%s435_s1] sm:$0xff] %vm1014_vm6, %v1059_v24  ;;  %v1060_v27 = vadd.f32 %v1055_v26, %v994_v21  ;;  %v1379_v28 = vpop.f32.mrb[19].mxu1 }
 0x77f   : > { %1062 = vst.msk [vmem:[%s435_s1 + $0x8] sm:$0xff] %vm1014_vm6, %v1060_v27 }
 0x780   : > { %1717 = shalt.err (!%p1714_p0)
}
 0x781   : > { %s1718_s15 = scalar_lea.hbm %s2297_s24, 256  ;;  %s1722_s27 = scalar_lea.hbm %s2417_s6, 512 }
 0x782   : > { %p1719_p9 = scmp.ne.s32.totalorder %s2297_s24, %s1718_s15  ;;  %p1723_p7 = scmp.lt.u32.totalorder %s2297_s24, %s2417_s6 }
 0x783   : > { %p1724_p2 = scmp.lt.u32.totalorder %s1722_s27, %s1718_s15  ;;  %p1726_p6 = scmp.lt.u32.totalorder %s1718_s15, %s2297_s24 }
 0x784   : > { %p1720_p1 = pnand %p1719_p9, %p2418_p11 }
 0x785   : > { %p1725_p13 = por %p1724_p2, %p1723_p7 }
 0x786   : > { %p1721_p10 = pneg %p1720_p1 }
 0x787   : > { %p1727_p8 = por %p1726_p6, %p1725_p13 }
 0x789   : > { %p1728_p5 = pnand %p1727_p8, %p1721_p10 }
 0x78b   : > { %1731 = shalt.err (!%p1728_p5)
}
 0x78c   : > { %s1823_s18 = smov 128  }
 0x78d   : > { %1396 = dma.vmem_to_hbm [thread:$0]  (%p2418_p11), %s2291_s11, 256, %s2297_s24, %s1064_s28, %s1823_s18, %s1823_s18, %s1819_s29  }
 0x78e PF: > { %s2419_s23 = sld [smem:[#allocation21_spill]]  ;;  %s2420_s21 = sld [smem:[#allocation25_spill]] }
 0x78f   : > { %p2422_p12 = scmp.ge.s32.totalorder %s1802_s26, 2 }
 0x794   : > { %s1094_s1 = sand.u32 1, %s2419_s23   ;;  %p2421_p3 = scmp.ne.s32.totalorder %s2420_s21, 0 }
 0x795   : > { %s1095_s20 = scalar_lea.sflag [#allocation5], %s1094_s1 }
 0x796   : > { %p1419_p4 = pnand %p2422_p12, %p2421_p3 }
 0x798   : > { %1777 = dma.done.wait (!%p1419_p4), %s1095_s20, 256  }
 0x799   : > { %1779 = vsyncadd (!%p1419_p4), %s1095_s20, 4294967040  ;;  %s29_s26 = sadd.s32 1, %s1802_s26   ;;  %s2423_s9 = sld [smem:[#allocation22_spill]] }
 0x79a   : > { %p26_p0 = scmp.ge.s32.totalorder %s29_s26, 4   ;;  %s2424_s23 = sld [smem:[#allocation27_spill]] }
 0x79b   : > { %s2425_s12 = sld [smem:[#allocation26_spill]]  ;;  %s2426_s21 = smov %s1786_s22 }
 0x79c   : > { %s2428_s24 = smov %s1798_s25  ;;  %28 = sbr.rel (!%p26_p0) target bundleno = 15 (0xf), region = 134 }
 0x79f   : > { %s2427_s22 = smov %s2423_s9 }
 0x7a1   : > { %s2429_s25 = smov %s2425_s12 }
 0x7a3   :  { %1100 = vsyncpa [#allocation4], 1 }
 0x7a4   :  { %1102 = vsyncpa [#allocation4 + $0x1], 1 }
 0x7a5   :  { %1103 = vsyncpa [#allocation7], 1 }
 0x7a6   :  { %1105 = vsyncpa [#allocation7 + $0x1], 1 }
 0x7a7   :  { %1106 = vsyncpa [#allocation10], 1 }
 0x7a8   :  { %1108 = vsyncpa [#allocation10 + $0x1], 1 }
 0x7a9   :  { %1109 = vsyncpa [#allocation13], 1 }
 0x7aa   :  { %1110 = vsyncpa [#allocation5], 1 }
 0x7ab   :  { %1112 = vsyncpa [#allocation5 + $0x1], 1 }

// kernel: decoder_forward.6
= control target key start
LH: loop header
LB: loop body
LE: loop exit
PB: predicated region body
PF: predicated region fallthrough
CT: control target
= control target key end

     0   :  { %s3911_s0 = inlined_call_operand.hbm [shape: f32[2,16,32], index: 0, kind: input, shape index: {}]   ;;  %s3912_s1 = inlined_call_operand.hbm [shape: f32[2,16,32], index: 1, kind: input, shape index: {}]   ;;  %s3913_s2 = inlined_call_operand.hbm [shape: f32[1,32], index: 2, kind: input, shape index: {}]   ;;  %s3914_s3 = inlined_call_operand.hbm [shape: f32[1,32], index: 3, kind: input, shape index: {}]   ;;  %s3915_s4 = inlined_call_operand.hbm [shape: f32[1,32], index: 4, kind: input, shape index: {}]   ;;  %s3916_s5 = inlined_call_operand.hbm [shape: f32[1,32], index: 5, kind: input, shape index: {}]   ;;  %s3917_s6 = inlined_call_operand.hbm [shape: bf16[32,32], index: 6, kind: input, shape index: {}]   ;;  %s3918_s7 = inlined_call_operand.hbm [shape: bf16[32,32], index: 7, kind: input, shape index: {}]   ;;  %s3919_s8 = inlined_call_operand.hbm [shape: bf16[32,32], index: 8, kind: input, shape index: {}]   ;;  %s3920_s9 = inlined_call_operand.hbm [shape: bf16[32,4], index: 9, kind: input, shape index: {}]   ;;  %s3921_s10 = inlined_call_operand.hbm [shape: bf16[4,32], index: 10, kind: input, shape index: {}]   ;;  %s3922_s11 = inlined_call_operand.hbm [shape: bf16[8,32], index: 11, kind: input, shape index: {}]   ;;  %s3923_s12 = inlined_call_operand.hbm [shape: bf16[32,8], index: 12, kind: input, shape index: {}]   ;;  %s3924_s13 = inlined_call_operand.hbm [shape: bf16[2,4,16,8], index: 13, kind: output, shape index: {}]  }
   0x1   :  { %3934 = sst [smem:[#allocation35_spill]] %s3911_s0 }
   0x2   :  { %3935 = sst [smem:[#allocation36_spill]] %s3912_s1 }
   0x3   :  { %3936 = sst [smem:[#allocation37_spill]] %s3913_s2 }
   0x4   :  { %3937 = sst [smem:[#allocation38_spill]] %s3914_s3 }
   0x5   :  { %3938 = sst [smem:[#allocation39_spill]] %s3915_s4 }
   0x6   :  { %3939 = sst [smem:[#allocation40_spill]] %s3916_s5 }
   0x7   :  { %3940 = sst [smem:[#allocation41_spill]] %s3917_s6 }
   0x8   :  { %3941 = sst [smem:[#allocation42_spill]] %s3918_s7 }
   0x9   :  { %3942 = sst [smem:[#allocation43_spill]] %s3919_s8 }
   0xa   :  { %3943 = sst [smem:[#allocation44_spill]] %s3920_s9 }
   0xb   :  { %3944 = sst [smem:[#allocation45_spill]] %s3924_s13 }
   0xc   :  { %18 = vsyncpa [#allocation3], 0 }
   0xd   :  { %20 = vsyncpa [#allocation3 + $0x1], 0 }
   0xe   :  { %21 = vsyncpa [#allocation6], 0 }
   0xf   :  { %23 = vsyncpa [#allocation6 + $0x1], 0 }
  0x10   :  { %24 = vsyncpa [#allocation9], 0 }
  0x11   :  { %25 = vsyncpa [#allocation12], 0 }
  0x12   :  { %26 = vsyncpa [#allocation15], 0 }
  0x13   :  { %27 = vsyncpa [#allocation18], 0 }
  0x14   :  { %28 = vsyncpa [#allocation21], 0 }
  0x15   :  { %29 = vsyncpa [#allocation4], 0 }
  0x16   :  { %31 = vsyncpa [#allocation4 + $0x1], 0  ;;  %s3200_s25 = smov 0   ;;  %s3202_s26 = smov 0  }
  0x17   :  { %s3204_s27 = smov 0   ;;  %s3206_s28 = smov 0  }
  0x18   :  { %s3208_s29 = smov 0   ;;  %s3210_s30 = smov 0  }
  0x19 LB: > { %3945 = sst [smem:[#allocation33_spill]] %s3095_s28  ;;  %s3231_s14 = sadd.s32 4294967295, %s3103_s30   ;;  %s3103_s30 = sphi %s3210_s30, %s37_s30   ;;  %s3099_s29 = sphi %s3208_s29, %s3990_s29   ;;  %s3095_s28 = sphi %s3206_s28, %s3989_s28   ;;  %s3091_s27 = sphi %s3204_s27, %s3988_s27   ;;  %s3087_s26 = sphi %s3202_s26, %s3987_s26   ;;  %s3083_s25 = sphi %s3200_s25, %s3986_s25  }
  0x1a   : > { %p2104_p0 = scmp.ge.s32.totalorder %s3103_s30, 1  ;;  %p3927_p1 = scmp.eq.s32.totalorder %s3231_s14, 0 }
  0x1b   : > { %p369_p2 = scmp.lt.s32.totalorder %s3103_s30, 3  ;;  %s3105_s16 = smov [#allocation7]  }
  0x1c   : > { %s382_s17 = sshll.u32 %s3105_s16, 4  ;;  %s3106_s18 = smov [#allocation8]   ;;  %s383_s17 = int_to_ptr.vmem [resolvable:$true] %s382_s17 }
  0x1d   : > { %p3236_p3 = pnand %p2104_p0, %p369_p2  ;;  %s393_s19 = sshll.u32 %s3106_s18, 4  ;;  %s3249_s19 = int_to_ptr.vmem [resolvable:$true] %s393_s19 }
  0x1e   : > { %s3107_s21 = smov [#allocation11]   ;;  %s3949_s2 = sld [smem:[#allocation37_spill]] }
  0x1f   : > { %s3946_s15 = scalar_select %p3236_p3, 1, 0 }
  0x20   : > { %p2436_p5 = pneg %p3236_p3  ;;  %s415_s22 = sshll.u32 %s3107_s21, 4  ;;  %s3251_s22 = int_to_ptr.vmem [resolvable:$true] %s415_s22 }
  0x21   : > { %3947 = sst [smem:[#allocation34_spill]] %s3946_s15 }
  0x22   : > { %p3245_p6 = pnand %p2436_p5, %p3927_p1 }
  0x24   : > { %s2625_s16 = scalar_lea.hbm %s3949_s2, 16  ;;  %p3261_p8 = pneg %p3245_p6 }
  0x25   : > { %p2626_p7 = scmp.ne.s32.totalorder %s3949_s2, %s2625_s16  ;;  %p2632_p11 = scmp.lt.u32.totalorder %s2625_s16, %s3949_s2 }
  0x27   : > { %p2628_p9 = pnand %p3261_p8, %p2626_p7 }
  0x29   : > { %p2629_p10 = pneg %p2628_p9 }
  0x2b   : > { %p2634_p12 = pnand %p2632_p11, %p2629_p10 }
  0x2d   : > { %2637 = shalt.err (!%p2634_p12)
}
  0x2e   : > { %s2638_s23 = scalar_lea.vmem %s383_s17, 16  ;;  %s2645_s13 = scalar_lea.vmem %s383_s17, 32 }
  0x2f   : > { %p2639_p13 = scmp.ne.s32.totalorder %s383_s17, %s2638_s23  ;;  %p2646_p5 = scmp.lt.s32.totalorder %s383_s17, %s383_s17 }
  0x30   : > { %p2647_p4 = scmp.lt.s32.totalorder %s2645_s13, %s2638_s23 }
  0x31   : > { %p2641_p0 = pnand %p2639_p13, %p3261_p8 }
  0x32   : > { %p2648_p1 = por %p2647_p4, %p2646_p5 }
  0x33   : > { %p2642_p2 = pneg %p2641_p0 }
  0x35   : > { %p2649_p3 = pnand %p2648_p1, %p2642_p2 }
  0x37   : > { %2652 = shalt.err (!%p2649_p3)
}
  0x38   : > { %2439 = dma.hbm_to_vmem [thread:$0]  (!%p3245_p6), %s3949_s2, 16, %s383_s17, [#allocation6]  }
  0x39   : > { %s3951_s3 = sld [smem:[#allocation38_spill]] }
  0x3f   : > { %s2653_s21 = scalar_lea.hbm %s3951_s3, 16 }
  0x40   : > { %p2654_p7 = scmp.ne.s32.totalorder %s3951_s3, %s2653_s21  ;;  %p2660_p1 = scmp.lt.u32.totalorder %s2653_s21, %s3951_s3 }
  0x42   : > { %p2656_p9 = pnand %p2654_p7, %p3261_p8 }
  0x44   : > { %p2657_p4 = pneg %p2656_p9 }
  0x46   : > { %p2662_p3 = pnand %p2660_p1, %p2657_p4 }
  0x48   : > { %2665 = shalt.err (!%p2662_p3)
}
  0x49   : > { %s2666_s17 = scalar_lea.vmem %s3249_s19, 16  ;;  %s2673_s0 = scalar_lea.vmem %s3249_s19, 32 }
  0x4a   : > { %p2667_p10 = scmp.ne.s32.totalorder %s3249_s19, %s2666_s17  ;;  %p2674_p13 = scmp.lt.s32.totalorder %s3249_s19, %s3249_s19 }
  0x4b   : > { %p2675_p0 = scmp.lt.s32.totalorder %s2673_s0, %s2666_s17 }
  0x4c   : > { %p2669_p11 = pnand %p2667_p10, %p3261_p8 }
  0x4d   : > { %p2676_p2 = por %p2675_p0, %p2674_p13 }
  0x4e   : > { %p2670_p12 = pneg %p2669_p11 }
  0x50   : > { %p2677_p5 = pnand %p2676_p2, %p2670_p12 }
  0x52   : > { %2680 = shalt.err (!%p2677_p5)
}
  0x53   : > { %2442 = dma.hbm_to_vmem [thread:$0]  (!%p3245_p6), %s3951_s3, 16, %s3249_s19, [#allocation9]  }
  0x54   : > { %s3952_s5 = sld [smem:[#allocation40_spill]] }
  0x5a   : > { %s2681_s16 = scalar_lea.hbm %s3952_s5, 16 }
  0x5b   : > { %p2682_p7 = scmp.ne.s32.totalorder %s3952_s5, %s2681_s16  ;;  %p2688_p1 = scmp.lt.u32.totalorder %s2681_s16, %s3952_s5 }
  0x5d   : > { %p2684_p9 = pnand %p2682_p7, %p3261_p8 }
  0x5f   : > { %p2685_p4 = pneg %p2684_p9 }
  0x61   : > { %p2690_p3 = pnand %p2688_p1, %p2685_p4 }
  0x63   : > { %2693 = shalt.err (!%p2690_p3)
}
  0x64   : > { %s2694_s19 = scalar_lea.vmem %s3251_s22, 16  ;;  %s2701_s0 = scalar_lea.vmem %s3251_s22, 32 }
  0x65   : > { %p2695_p10 = scmp.ne.s32.totalorder %s3251_s22, %s2694_s19  ;;  %p2702_p13 = scmp.lt.s32.totalorder %s3251_s22, %s3251_s22 }
  0x66   : > { %p2703_p0 = scmp.lt.s32.totalorder %s2701_s0, %s2694_s19 }
  0x67   : > { %p2697_p11 = pnand %p2695_p10, %p3261_p8 }
  0x68   : > { %p2704_p2 = por %p2703_p0, %p2702_p13 }
  0x69   : > { %p2698_p12 = pneg %p2697_p11 }
  0x6b   : > { %p2705_p5 = pnand %p2704_p2, %p2698_p12 }
  0x6d   : > { %2708 = shalt.err (!%p2705_p5)
}
  0x6e   : > { %2448 = dma.hbm_to_vmem [thread:$0]  (!%p3245_p6), %s3952_s5, 16, %s3251_s22, [#allocation12]  }
  0x6f   : > { %s3108_s24 = smov [#allocation14]   ;;  %s3109_s16 = smov [#allocation17]  }
  0x70   : > { %s438_s15 = sshll.u32 %s3108_s24, 4  ;;  %s464_s21 = sshll.u32 %s3109_s16, 4  ;;  %s439_s15 = int_to_ptr.vmem [resolvable:$true] %s438_s15  ;;  %s465_s21 = int_to_ptr.vmem [resolvable:$true] %s464_s21 }
  0x71   : > { %s3953_s7 = sld [smem:[#allocation42_spill]] }
  0x77   : > { %s2709_s17 = scalar_lea.hbm %s3953_s7, 256 }
  0x78   : > { %p2710_p7 = scmp.ne.s32.totalorder %s3953_s7, %s2709_s17  ;;  %p2716_p1 = scmp.lt.u32.totalorder %s2709_s17, %s3953_s7 }
  0x7a   : > { %p2712_p9 = pnand %p2710_p7, %p3261_p8 }
  0x7c   : > { %p2713_p4 = pneg %p2712_p9 }
  0x7e   : > { %p2718_p3 = pnand %p2716_p1, %p2713_p4 }
  0x80   : > { %2721 = shalt.err (!%p2718_p3)
}
  0x81   : > { %s2722_s22 = scalar_lea.vmem %s439_s15, 256  ;;  %p2730_p13 = scmp.lt.s32.totalorder %s439_s15, %s439_s15 }
  0x82   : > { %p2723_p10 = scmp.ne.s32.totalorder %s439_s15, %s2722_s22  ;;  %p2731_p0 = scmp.lt.s32.totalorder %s2722_s22, %s2722_s22 }
  0x84   : > { %p2725_p11 = pnand %p2723_p10, %p3261_p8  ;;  %p2732_p2 = por %p2731_p0, %p2730_p13 }
  0x86   : > { %p2726_p12 = pneg %p2725_p11 }
  0x88   : > { %p2733_p5 = pnand %p2732_p2, %p2726_p12 }
  0x8a   : > { %2736 = shalt.err (!%p2733_p5)
}
  0x8b   : > { %s3110_s28 = smov 64   ;;  %s3111_s24 = smov 4  }
  0x8c   : > { %2454 = dma.hbm_to_vmem [thread:$0]  (!%p3245_p6), %s3953_s7, 256, %s439_s15, [#allocation15], %s3110_s28, %s3110_s28, %s3111_s24  }
  0x8d   : > { %s3954_s9 = sld [smem:[#allocation44_spill]] }
  0x93   : > { %s2737_s17 = scalar_lea.hbm %s3954_s9, 256 }
  0x94   : > { %p2738_p7 = scmp.ne.s32.totalorder %s3954_s9, %s2737_s17  ;;  %p2744_p1 = scmp.lt.u32.totalorder %s2737_s17, %s3954_s9 }
  0x96   : > { %p2740_p9 = pnand %p2738_p7, %p3261_p8 }
  0x98   : > { %p2741_p4 = pneg %p2740_p9 }
  0x9a   : > { %p2746_p3 = pnand %p2744_p1, %p2741_p4 }
  0x9c   : > { %2749 = shalt.err (!%p2746_p3)
}
  0x9d   : > { %s2750_s2 = scalar_lea.vmem %s465_s21, 256  ;;  %p2758_p13 = scmp.lt.s32.totalorder %s465_s21, %s465_s21 }
  0x9e   : > { %p2751_p10 = scmp.ne.s32.totalorder %s465_s21, %s2750_s2  ;;  %p2759_p0 = scmp.lt.s32.totalorder %s2750_s2, %s2750_s2 }
  0xa0   : > { %p2753_p11 = pnand %p2751_p10, %p3261_p8  ;;  %p2760_p2 = por %p2759_p0, %p2758_p13 }
  0xa2   : > { %p2754_p12 = pneg %p2753_p11 }
  0xa4   : > { %p2761_p5 = pnand %p2760_p2, %p2754_p12 }
  0xa6   : > { %2764 = shalt.err (!%p2761_p5)
}
  0xa7   : > { %2460 = dma.hbm_to_vmem [thread:$0]  (!%p3245_p6), %s3954_s9, 256, %s465_s21, [#allocation18], %s3110_s28, %s3110_s28, %s3111_s24  }
  0xa8   : > { %s3112_s23 = smov [#allocation20]   ;;  %s3113_s17 = smov [#allocation10]  }
  0xa9   : > { %s489_s13 = sshll.u32 %s3112_s23, 4  ;;  %s404_s19 = sshll.u32 %s3113_s17, 4  ;;  %s490_s13 = int_to_ptr.vmem [resolvable:$true] %s489_s13  ;;  %s405_s19 = int_to_ptr.vmem [resolvable:$true] %s404_s19 }
  0xaa   : > { %s2765_s22 = scalar_lea.hbm %s3922_s11, 64 }
  0xab   : > { %p2766_p7 = scmp.ne.s32.totalorder %s3922_s11, %s2765_s22  ;;  %p2772_p1 = scmp.lt.u32.totalorder %s2765_s22, %s3922_s11 }
  0xad   : > { %p2768_p9 = pnand %p2766_p7, %p3261_p8 }
  0xaf   : > { %p2769_p4 = pneg %p2768_p9 }
  0xb1   : > { %p2774_p3 = pnand %p2772_p1, %p2769_p4 }
  0xb3   : > { %2777 = shalt.err (!%p2774_p3)
}
  0xb4   : > { %s2778_s21 = scalar_lea.vmem %s490_s13, 64  ;;  %p2786_p13 = scmp.lt.s32.totalorder %s490_s13, %s490_s13 }
  0xb5   : > { %p2779_p10 = scmp.ne.s32.totalorder %s490_s13, %s2778_s21  ;;  %p2787_p0 = scmp.lt.s32.totalorder %s2778_s21, %s2778_s21 }
  0xb7   : > { %p2781_p11 = pnand %p2779_p10, %p3261_p8  ;;  %p2788_p2 = por %p2787_p0, %p2786_p13 }
  0xb9   : > { %p2782_p12 = pneg %p2781_p11 }
  0xbb   : > { %p2789_p5 = pnand %p2788_p2, %p2782_p12 }
  0xbd   : > { %2792 = shalt.err (!%p2789_p5)
}
  0xbe   : > { %2466 = dma.hbm_to_vmem [thread:$0]  (!%p3245_p6), %s3922_s11, 64, %s490_s13, [#allocation21]  }
  0xbf   : > { %s3955_s4 = sld [smem:[#allocation39_spill]] }
  0xc5   : > { %s2793_s17 = scalar_lea.hbm %s3955_s4, 16 }
  0xc6   : > { %p2794_p7 = scmp.ne.s32.totalorder %s3955_s4, %s2793_s17  ;;  %p2800_p1 = scmp.lt.u32.totalorder %s2793_s17, %s3955_s4 }
  0xc8   : > { %p2796_p9 = pnand %p2794_p7, %p3261_p8 }
  0xca   : > { %p2797_p4 = pneg %p2796_p9 }
  0xcc   : > { %p2802_p3 = pnand %p2800_p1, %p2797_p4 }
  0xce   : > { %2805 = shalt.err (!%p2802_p3)
}
  0xcf   : > { %s2806_s15 = scalar_lea.vmem %s405_s19, 16  ;;  %s2813_s13 = scalar_lea.vmem %s405_s19, 32 }
  0xd0   : > { %p2807_p10 = scmp.ne.s32.totalorder %s405_s19, %s2806_s15  ;;  %p2814_p13 = scmp.lt.s32.totalorder %s405_s19, %s405_s19 }
  0xd1   : > { %p2815_p0 = scmp.lt.s32.totalorder %s2813_s13, %s2806_s15 }
  0xd2   : > { %p2809_p11 = pnand %p2807_p10, %p3261_p8 }
  0xd3   : > { %p2816_p2 = por %p2815_p0, %p2814_p13 }
  0xd4   : > { %p2810_p12 = pneg %p2809_p11 }
  0xd6   : > { %p2817_p5 = pnand %p2816_p2, %p2810_p12 }
  0xd8   : > { %2820 = shalt.err (!%p2817_p5)
}
  0xd9   : > { %2445 = dma.hbm_to_vmem [thread:$0]  (!%p3245_p6), %s3955_s4, 16, %s405_s19, [#allocation9]  }
  0xda   : > { %s3114_s16 = smov [#allocation13]   ;;  %s3115_s23 = smov [#allocation16]  }
  0xdb   : > { %s425_s5 = sshll.u32 %s3114_s16, 4  ;;  %s451_s17 = sshll.u32 %s3115_s23, 4  ;;  %s426_s5 = int_to_ptr.vmem [resolvable:$true] %s425_s5  ;;  %s452_s17 = int_to_ptr.vmem [resolvable:$true] %s451_s17 }
  0xdc   : > { %s3956_s6 = sld [smem:[#allocation41_spill]] }
  0xe2   : > { %s2821_s22 = scalar_lea.hbm %s3956_s6, 256 }
  0xe3   : > { %p2822_p7 = scmp.ne.s32.totalorder %s3956_s6, %s2821_s22  ;;  %p2828_p1 = scmp.lt.u32.totalorder %s2821_s22, %s3956_s6 }
  0xe5   : > { %p2824_p9 = pnand %p2822_p7, %p3261_p8 }
  0xe7   : > { %p2825_p4 = pneg %p2824_p9 }
  0xe9   : > { %p2830_p3 = pnand %p2828_p1, %p2825_p4 }
  0xeb   : > { %2833 = shalt.err (!%p2830_p3)
}
  0xec   : > { %s2834_s19 = scalar_lea.vmem %s426_s5, 256  ;;  %p2842_p13 = scmp.lt.s32.totalorder %s426_s5, %s426_s5 }
  0xed   : > { %p2835_p10 = scmp.ne.s32.totalorder %s426_s5, %s2834_s19  ;;  %p2843_p0 = scmp.lt.s32.totalorder %s2834_s19, %s2834_s19 }
  0xef   : > { %p2837_p11 = pnand %p2835_p10, %p3261_p8  ;;  %p2844_p2 = por %p2843_p0, %p2842_p13 }
  0xf1   : > { %p2838_p12 = pneg %p2837_p11 }
  0xf3   : > { %p2845_p5 = pnand %p2844_p2, %p2838_p12 }
  0xf5   : > { %2848 = shalt.err (!%p2845_p5)
}
  0xf6   : > { %2451 = dma.hbm_to_vmem [thread:$0]  (!%p3245_p6), %s3956_s6, 256, %s426_s5, [#allocation12], %s3110_s28, %s3110_s28, %s3111_s24  }
  0xf7   : > { %s3957_s8 = sld [smem:[#allocation43_spill]] }
  0xfd   : > { %s2849_s1 = scalar_lea.hbm %s3957_s8, 256 }
  0xfe   : > { %p2850_p7 = scmp.ne.s32.totalorder %s3957_s8, %s2849_s1  ;;  %p2856_p1 = scmp.lt.u32.totalorder %s2849_s1, %s3957_s8 }
 0x100   : > { %p2852_p9 = pnand %p2850_p7, %p3261_p8 }
 0x102   : > { %p2853_p4 = pneg %p2852_p9 }
 0x104   : > { %p2858_p3 = pnand %p2856_p1, %p2853_p4 }
 0x106   : > { %2861 = shalt.err (!%p2858_p3)
}
 0x107   : > { %s2862_s21 = scalar_lea.vmem %s452_s17, 256  ;;  %p2870_p13 = scmp.lt.s32.totalorder %s452_s17, %s452_s17 }
 0x108   : > { %p2863_p10 = scmp.ne.s32.totalorder %s452_s17, %s2862_s21  ;;  %p2871_p0 = scmp.lt.s32.totalorder %s2862_s21, %s2862_s21 }
 0x10a   : > { %p2865_p11 = pnand %p2863_p10, %p3261_p8  ;;  %p2872_p2 = por %p2871_p0, %p2870_p13 }
 0x10c   : > { %p2866_p12 = pneg %p2865_p11 }
 0x10e   : > { %p2873_p5 = pnand %p2872_p2, %p2866_p12 }
 0x110   : > { %2876 = shalt.err (!%p2873_p5)
}
 0x111   : > { %2457 = dma.hbm_to_vmem [thread:$0]  (!%p3245_p6), %s3957_s8, 256, %s452_s17, [#allocation15], %s3110_s28, %s3110_s28, %s3111_s24  }
 0x112   : > { %s3116_s3 = smov [#allocation19]   ;;  %s3117_s23 = smov [#allocation22]  }
 0x113   : > { %s478_s16 = sshll.u32 %s3116_s3, 4  ;;  %s499_s0 = sshll.u32 %s3117_s23, 4  ;;  %s479_s16 = int_to_ptr.vmem [resolvable:$true] %s478_s16  ;;  %s500_s0 = int_to_ptr.vmem [resolvable:$true] %s499_s0 }
 0x114   : > { %s2877_s2 = scalar_lea.hbm %s3921_s10, 32 }
 0x115   : > { %p2878_p7 = scmp.ne.s32.totalorder %s3921_s10, %s2877_s2  ;;  %p2884_p1 = scmp.lt.u32.totalorder %s2877_s2, %s3921_s10 }
 0x117   : > { %p2880_p9 = pnand %p2878_p7, %p3261_p8 }
 0x119   : > { %p2881_p4 = pneg %p2880_p9 }
 0x11b   : > { %p2886_p3 = pnand %p2884_p1, %p2881_p4 }
 0x11d   : > { %2889 = shalt.err (!%p2886_p3)
}
 0x11e   : > { %s2890_s17 = scalar_lea.vmem %s479_s16, 32  ;;  %p2898_p13 = scmp.lt.s32.totalorder %s479_s16, %s479_s16 }
 0x11f   : > { %p2891_p10 = scmp.ne.s32.totalorder %s479_s16, %s2890_s17  ;;  %p2899_p0 = scmp.lt.s32.totalorder %s2890_s17, %s2890_s17 }
 0x121   : > { %p2893_p11 = pnand %p2891_p10, %p3261_p8  ;;  %p2900_p2 = por %p2899_p0, %p2898_p13 }
 0x123   : > { %p2894_p12 = pneg %p2893_p11 }
 0x125   : > { %p2901_p5 = pnand %p2900_p2, %p2894_p12 }
 0x127   : > { %2904 = shalt.err (!%p2901_p5)
}
 0x128   : > { %2463 = dma.hbm_to_vmem [thread:$0]  (!%p3245_p6), %s3921_s10, 32, %s479_s16, [#allocation18]  }
 0x129   : > { %s2905_s22 = scalar_lea.hbm %s3923_s12, 256 }
 0x12a   : > { %p2906_p7 = scmp.ne.s32.totalorder %s3923_s12, %s2905_s22  ;;  %p2912_p1 = scmp.lt.u32.totalorder %s2905_s22, %s3923_s12 }
 0x12c   : > { %p2908_p9 = pnand %p2906_p7, %p3261_p8 }
 0x12e   : > { %p2909_p4 = pneg %p2908_p9 }
 0x130   : > { %p2914_p3 = pnand %p2912_p1, %p2909_p4 }
 0x132   : > { %2917 = shalt.err (!%p2914_p3)
}
 0x133   : > { %s2918_s5 = scalar_lea.vmem %s500_s0, 256  ;;  %p2926_p13 = scmp.lt.s32.totalorder %s500_s0, %s500_s0 }
 0x134   : > { %p2919_p10 = scmp.ne.s32.totalorder %s500_s0, %s2918_s5  ;;  %p2927_p0 = scmp.lt.s32.totalorder %s2918_s5, %s2918_s5 }
 0x136   : > { %p2921_p11 = pnand %p2919_p10, %p3261_p8  ;;  %p2928_p2 = por %p2927_p0, %p2926_p13 }
 0x138   : > { %p2922_p12 = pneg %p2921_p11 }
 0x13a   : > { %p2929_p5 = pnand %p2928_p2, %p2922_p12 }
 0x13c   : > { %2932 = shalt.err (!%p2929_p5)
}
 0x13d   : > { %2469 = dma.hbm_to_vmem [thread:$0]  (!%p3245_p6), %s3923_s12, 256, %s500_s0, [#allocation21], %s3110_s28, %s3110_s28, %s3111_s24  }
 0x13e   : > { %s2103_s20 = sadd.s32 4294967294, %s3103_s30   ;;  %s49_s18 = sadd.s32 1, %s3099_s29 }
 0x13f   : > { %s58_s19 = sadd.s32 1, %s3091_s27  ;;  %p51_p8 = scmp.ge.s32.totalorder %s49_s18, 2 }
 0x140   : > { %p65_p7 = scmp.ne.s32.totalorder %s3091_s27, %s3087_s26  ;;  %p66_p9 = scmp.eq.s32.totalorder %s3103_s30, 0 }
 0x141   : > { %p71_p4 = scmp.ne.s32.totalorder %s3087_s26, %s3083_s25  ;;  %s3992_s18 = smov (%p51_p8, %s49_s18), 0 }
 0x142   : > { %p3494_p1 = por %p66_p9, %p65_p7  ;;  %p3959_p6 = scmp.eq.s32.totalorder %s3231_s14, 0 }
 0x143   : > { %s53_s24 = ssub.s32 %s3099_s29, %s3992_s18  ;;  %p356_p10 = scmp.eq.s32.totalorder %s3231_s14, 1 }
 0x144   : > { %p3500_p3 = por %p3959_p6, %p71_p4  ;;  %p56_p11 = scmp.eq.s32.totalorder %s53_s24, 0 }
 0x145   : > { %p362_p12 = scmp.eq.s32.totalorder %s2103_s20, 1  ;;  %p3507_p13 = por %p356_p10, %p65_p7 }
 0x146   : > { %p2492_p0 = scmp.lt.s32.totalorder %s3103_s30, 2  ;;  %s513_s22 = sand.u32 1, %s3091_s27  }
 0x147   : > { %s3961_s0 = scalar_select %p3507_p13, 1, 0 }
 0x148   : > { %s3513_s23 = scalar_select %p56_p11, %s3091_s27, %s58_s19  }
 0x149   : > { %p3515_p2 = por %p362_p12, %p71_p4  ;;  %s3520_s2 = sshll.u32 %s513_s22, 4 }
 0x14a   : > { %s3931_s15 = sshll.u32 %s3099_s29, 8  ;;  %s3963_s5 = sld [smem:[#allocation35_spill]] }
 0x14b   : > { %s3962_s1 = scalar_select %p3515_p2, 1, 0 }
 0x14c   : > { %s517_s17 = scalar_lea.vmem [#allocation2], %s3520_s2  ;;  %p3535_p5 = pnand %p2492_p0, %p3494_p1 }
 0x14d   : > { %s526_s20 = sshll.u32 %s517_s17, 4  ;;  %s3539_s24 = scalar_lea.sflag [#allocation3], %s513_s22  ;;  %s3531_s20 = int_to_ptr.vmem [resolvable:$true] %s526_s20 }
 0x14e   : > { %p2935_p7 = pneg %p3535_p5 }
 0x150   : > { %s3528_s16 = scalar_lea.hbm %s3963_s5, %s3931_s15  ;;  %s2938_s3 = scalar_lea.hbm %s3963_s5, 512 }
 0x151   : > { %s2933_s13 = scalar_lea.hbm %s3528_s16, 256  ;;  %p2939_p1 = scmp.lt.u32.totalorder %s3528_s16, %s3963_s5 }
 0x152   : > { %p2934_p8 = scmp.ne.s32.totalorder %s3528_s16, %s2933_s13  ;;  %p2940_p6 = scmp.lt.u32.totalorder %s2938_s3, %s2933_s13 }
 0x153   : > { %p2942_p11 = scmp.lt.u32.totalorder %s2933_s13, %s3528_s16 }
 0x154   : > { %p2936_p9 = pnand %p2935_p7, %p2934_p8  ;;  %p2941_p10 = por %p2940_p6, %p2939_p1 }
 0x156   : > { %p2937_p4 = pneg %p2936_p9  ;;  %p2943_p12 = por %p2942_p11, %p2941_p10 }
 0x158   : > { %p2944_p0 = pnand %p2943_p12, %p2937_p4 }
 0x15a   : > { %2947 = shalt.err (!%p2944_p0)
}
 0x15b   : > { %s2948_s22 = scalar_lea.vmem %s3531_s20, 256  ;;  %s3118_s21 = smov [#allocation2]  }
 0x15c   : > { %p2949_p8 = scmp.ne.s32.totalorder %s3531_s20, %s2948_s22  ;;  %s2953_s17 = sshll.u32 %s3118_s21, 4  ;;  %s2954_s17 = int_to_ptr.vmem [resolvable:$false] %s2953_s17 }
 0x15d   : > { %s2955_s4 = scalar_lea.vmem %s2954_s17, 512  ;;  %p2956_p13 = scmp.lt.s32.totalorder %s3531_s20, %s2954_s17 }
 0x15e   : > { %p2951_p9 = pnand %p2949_p8, %p2935_p7  ;;  %p2957_p1 = scmp.lt.s32.totalorder %s2955_s4, %s2948_s22 }
 0x160   : > { %p2952_p2 = pneg %p2951_p9  ;;  %p2958_p6 = por %p2957_p1, %p2956_p13 }
 0x162   : > { %p2959_p10 = pnand %p2958_p6, %p2952_p2 }
 0x164   : > { %2962 = shalt.err (!%p2959_p10)
}
 0x165   : > { %s3119_s15 = smov 128   ;;  %s3120_s13 = smov 8  }
 0x166   : > { %2473 = dma.hbm_to_vmem [thread:$0]  (!%p3535_p5), %s3528_s16, 256, %s3531_s20, %s3539_s24, %s3119_s15, %s3119_s15, %s3120_s13  }
 0x167   : > { %s3965_s3 = sshll.u32 %s3099_s29, 8  ;;  %s3966_s17 = sld [smem:[#allocation36_spill]] }
 0x168   : > { %s540_s5 = scalar_lea.vmem [#allocation5], %s3520_s2  ;;  %s536_s7 = sand.u32 1, %s3103_s30  }
 0x169   : > { %s549_s6 = sshll.u32 %s540_s5, 4  ;;  %s3581_s8 = scalar_lea.sflag [#allocation6], %s536_s7  ;;  %s3578_s6 = int_to_ptr.vmem [resolvable:$true] %s549_s6 }
 0x16d   : > { %s3575_s4 = scalar_lea.hbm %s3966_s17, %s3965_s3  ;;  %s2968_s24 = scalar_lea.hbm %s3966_s17, 512 }
 0x16e   : > { %s2963_s9 = scalar_lea.hbm %s3575_s4, 256  ;;  %p2969_p11 = scmp.lt.u32.totalorder %s3575_s4, %s3966_s17 }
 0x16f   : > { %p2964_p13 = scmp.ne.s32.totalorder %s3575_s4, %s2963_s9  ;;  %p2970_p12 = scmp.lt.u32.totalorder %s2968_s24, %s2963_s9 }
 0x170   : > { %p2972_p8 = scmp.lt.u32.totalorder %s2963_s9, %s3575_s4 }
 0x171   : > { %p2966_p2 = pnand %p2964_p13, %p2935_p7  ;;  %p2971_p0 = por %p2970_p12, %p2969_p11 }
 0x173   : > { %p2967_p4 = pneg %p2966_p2  ;;  %p2973_p9 = por %p2972_p8, %p2971_p0 }
 0x175   : > { %p2974_p1 = pnand %p2973_p9, %p2967_p4 }
 0x177   : > { %2977 = shalt.err (!%p2974_p1)
}
 0x178   : > { %s2978_s7 = scalar_lea.vmem %s3578_s6, 256  ;;  %s3121_s2 = smov [#allocation5]  }
 0x179   : > { %p2979_p6 = scmp.ne.s32.totalorder %s3578_s6, %s2978_s7  ;;  %s2983_s5 = sshll.u32 %s3121_s2, 4  ;;  %s2984_s5 = int_to_ptr.vmem [resolvable:$false] %s2983_s5 }
 0x17a   : > { %s2985_s21 = scalar_lea.vmem %s2984_s5, 512  ;;  %p2986_p2 = scmp.lt.s32.totalorder %s3578_s6, %s2984_s5 }
 0x17b   : > { %p2981_p10 = pnand %p2979_p6, %p2935_p7  ;;  %p2987_p11 = scmp.lt.s32.totalorder %s2985_s21, %s2978_s7 }
 0x17d   : > { %p2982_p13 = pneg %p2981_p10  ;;  %p2988_p12 = por %p2987_p11, %p2986_p2 }
 0x17f   : > { %p2989_p0 = pnand %p2988_p12, %p2982_p13 }
 0x181   : > { %2992 = shalt.err (!%p2989_p0)
}
 0x182   : > { %2476 = dma.hbm_to_vmem [thread:$0]  (!%p3535_p5), %s3575_s4, 256, %s3578_s6, %s3581_s8, %s3119_s15, %s3119_s15, %s3120_s13  }
 0x183   : > { %s3967_s9 = sld [smem:[#allocation34_spill]] }
 0x189   : > { %p3968_p7 = scmp.ne.s32.totalorder %s3967_s9, 0 }
 0x18a   : > { %s3613_s16 = sand.u32 (!%p3968_p7), 1, %s3087_s26  }
 0x18b   : > { %561 = sbr.rel (%p3968_p7) target bundleno = 4440 (0x1158), region = 72  ;;  %s2124_s20 = sshll.u32 (!%p3968_p7), %s3613_s16, 4 }
 0x18c   : > { %s564_s24 = scalar_lea.sflag (!%p3968_p7), [#allocation3], %s3613_s16  ;;  %s567_s3 = scalar_lea.vmem (!%p3968_p7), [#allocation2], %s2124_s20 }
 0x192   : > { %3046 = dma.done.wait (%p3500_p3), %s564_s24, 256  }
 0x193   : > { %3048 = vsyncadd (%p3500_p3), %s564_s24, 4294967040  ;;  %s572_s6 = sand.u32 1, %s3231_s14   ;;  %s3622_s19 = scalar_lea.vmem [#allocation5], %s2124_s20 }
 0x194   : > { %s573_s8 = scalar_lea.sflag [#allocation6], %s572_s6 }
 0x195   : > { %3050 = dma.done.wait (%p3500_p3), %s573_s8, 256  }
 0x196   : > { %3052 = vsyncadd (%p3500_p3), %s573_s8, 4294967040  ;;  %p3969_p5 = scmp.eq.s32.totalorder %s3231_s14, 0 }
 0x198   : > { %3054 = dma.done.wait (%p3969_p5), [#allocation6], 16   ;;  %p3970_p4 = pmov %p3969_p5 }
 0x19a   : > { %3056 = vsyncadd (%p3970_p4), [#allocation6], 4294967280  ;;  %p3971_p8 = pmov %p3970_p4 }
 0x19b   : > { %p3972_p9 = pmov %p3970_p4 }
 0x19c   : > { %3058 = dma.done.wait (%p3971_p8), [#allocation9], 32  }
 0x19d   : > { %3060 = vsyncadd (%p3972_p9), [#allocation9], 4294967264  ;;  %p3973_p1 = pmov %p3970_p4 }
 0x19f   : > { %3062 = dma.done.wait (%p3973_p1), [#allocation12], 272   ;;  %p3974_p6 = pmov %p3973_p1 }
 0x1a0   : > { %p3975_p3 = pmov %p3973_p1 }
 0x1a1   : > { %3064 = vsyncadd (%p3974_p6), [#allocation12], 4294967024 }
 0x1a2   : > { %3066 = dma.done.wait (%p3975_p3), [#allocation15], 512   ;;  %p3976_p10 = pmov %p3973_p1 }
 0x1a3   : > { %p3977_p13 = pmov %p3973_p1 }
 0x1a4   : > { %3068 = vsyncadd (%p3976_p10), [#allocation15], 4294966784 }
 0x1a5   : > { %3070 = dma.done.wait (%p3977_p13), [#allocation18], 288   ;;  %p3978_p2 = pmov %p3973_p1 }
 0x1a6   : > { %p3979_p11 = pmov %p3973_p1 }
 0x1a7   : > { %3072 = vsyncadd (%p3978_p2), [#allocation18], 4294967008 }
 0x1a8   : > { %3074 = dma.done.wait (%p3979_p11), [#allocation21], 320   ;;  %p3980_p12 = pmov %p3973_p1 }
 0x1a9   : > { %vm676_vm0 = vcmask 261120   ;;  %v672_v0 = vld [vmem:[%s567_s3] sm:$0xff]  ;;  %v673_v1 = vld [vmem:[%s567_s3 + $0x8] sm:$0xff]  ;;  %v3122_v24 = vmov 0.0   ;;  %vm3123_vm1 = vmmov 0   ;;  %vm960_vm2 = vcmask 1043456  }
 0x1aa   : > { %3076 = vsyncadd (%p3980_p12), [#allocation21], 4294966976  ;;  %v721_v2 = vld [vmem:[%s3622_s19] sm:$0xff]  ;;  %v677_v3 = vsel %vm676_vm0, %v672_v0, 0.0  ;;  %v680_v4 = vsel %vm676_vm0, %v673_v1, 0.0  ;;  %v722_v17 = vld [vmem:[%s3622_s19 + $0x8] sm:$0xff]  ;;  %2250 = vmatprep.subr.bf16.mxu0 %v3122_v24  ;;  %2258 = vmatprep.subr.bf16.mxu1 %v3122_v24 }
 0x1ab   : > { %v725_v5 = vsel %vm676_vm0, %v721_v2, 0.0  ;;  %678 = vadd.xlane.f32.xlu0 %v677_v3  ;;  %v728_v20 = vsel %vm676_vm0, %v722_v17, 0.0  ;;  %v2575_v23 = vld [vmem:[#allocation13] sm:$0xff]   ;;  %v2576_v25 = vld [vmem:[#allocation13 + $0x8] sm:$0xff]   ;;  %2254 = vmatprep.mubr.msk.bf16.mxu0 %vm3123_vm1, %v3122_v24  ;;  %v2138_v39 = vld [vmem:[#allocation7] ss:$0 sm:$0xff] }
 0x1ac   : > { %2251 = vmatpush3.bf16.msra.mxu0 %v2575_v23  ;;  %2262 = vmatprep.mubr.msk.bf16.mxu1 %vm3123_vm1, %v3122_v24  ;;  %v2139_v43 = vld [vmem:[#allocation8] ss:$0 sm:$0xff]  ;;  %v2577_v48 = vld [vmem:[#allocation14] sm:$0xff]   ;;  %v2578_v49 = vld [vmem:[#allocation16] sm:$0xff]   ;;  %vm956_vm3 = vcmask 64512   ;;  %vm1066_vm4 = vcmask 31744  }
 0x1ad   : > { %2252 = vmatprep.subr.bf16.mxu0 %v3122_v24  ;;  %2259 = vmatpush3.bf16.msra.mxu1 %v2577_v48  ;;  %v2579_v50 = vld [vmem:[#allocation14 + $0x8] sm:$0xff]   ;;  %v2580_v51 = vld [vmem:[#allocation16 + $0x8] sm:$0xff]   ;;  %s3124_s14 = smov 120   ;;  %v949_v48 = vld [vmem:[#allocation19] sm:$0x3]  ;;  %vm1093_vm5 = vcmask 1041408  }
 0x1ae   : > { %2260 = vmatprep.subr.bf16.mxu1 %v3122_v24  ;;  %v2140_v60 = vld [vmem:[#allocation10] ss:$0 sm:$0xff]  ;;  %s2137_s28 = sshll.u32 %s3613_s16, 5  ;;  %vm1205_vm6 = vcmask 60416   ;;  %s3125_s13 = smov 112  }
 0x1af   : > { %681 = vadd.xlane.f32.xlu0 %v680_v4  ;;  %s3765_s15 = scalar_lea.vmem [#allocation23], %s2137_s28  ;;  %s3126_s4 = smov 104  }
 0x1b0   : > { %2253 = vmatpush3.bf16.msra.mxu0 %v2576_v25  ;;  %s3981_s22 = sld [smem:[#allocation33_spill]]  ;;  %s1885_s2 = sshll.u32 %s3765_s15, 4  ;;  %s3858_s2 = int_to_ptr.vmem [resolvable:$true] %s1885_s2 }
 0x1b1   : > { %2266 = vmatprep.subr.bf16.mxu0 %v3122_v24  ;;  %2261 = vmatpush3.bf16.msra.mxu1 %v2579_v50  ;;  %v3728_v50 = vld [vmem:[#allocation22] sm:$0xff]   ;;  %s3982_s9 = sld [smem:[#allocation45_spill]]  ;;  %s1870_s24 = scalar_lea.sflag [#allocation4], %s3613_s16 }
 0x1b2   : > { %2274 = vmatprep.subr.bf16.mxu1 %v3122_v24  ;;  %s2993_s3 = scalar_lea.vmem %s3858_s2, 512  ;;  %p3983_p7 = scmp.ne.s32.totalorder %s3961_s0, 0 }
 0x1b3   : > { %726 = vadd.xlane.f32.xlu0 %v725_v5  ;;  %p2994_p0 = scmp.ne.s32.totalorder %s3858_s2, %s2993_s3  ;;  %s3127_s6 = smov [#allocation23]  }
 0x1b4   : > { %s2997_s8 = sshll.u32 %s3127_s6, 4  ;;  %s2998_s8 = int_to_ptr.vmem [resolvable:$false] %s2997_s8 }
 0x1b5   : > { %p2995_p5 = pnand %p2994_p0, %p3983_p7  ;;  %s2999_s19 = scalar_lea.vmem %s2998_s8, 1024 }
 0x1b6   : > { %s2200_s7 = sshll.u32 %s3981_s22, 9  ;;  %p3000_p8 = scmp.lt.s32.totalorder %s3858_s2, %s2998_s8 }
 0x1b7   : > { %s3856_s20 = scalar_lea.hbm %s3982_s9, %s2200_s7  ;;  %p2996_p4 = pneg %p2995_p5 }
 0x1b8   : > { %p3001_p9 = scmp.lt.s32.totalorder %s2999_s19, %s2993_s3 }
 0x1ba   : > { %p3002_p1 = por %p3001_p9, %p3000_p8 }
 0x1bc   : > { %p3003_p6 = pnand %p3002_p1, %p2996_p4 }
 0x238   : > { %v679_v6 = vpop.xlane.xlu0 %678 }
 0x239   : > { %v684_v7 = vmul.f32 0.03125, %v679_v6 }
 0x23b   : > { %v686_v8 = vsub.f32 %v672_v0, %v684_v7  ;;  %v2141_v0 = vld [vmem:[#allocation11] ss:$0 sm:$0xff] }
 0x23c   : > { %v682_v9 = vpop.xlane.xlu0 %681 }
 0x23d   : > { %v685_v10 = vmul.f32 0.03125, %v682_v9  ;;  %v688_v11 = vmul.f32 %v686_v8, %v686_v8 }
 0x23f   : > { %v687_v12 = vsub.f32 %v673_v1, %v685_v10  ;;  %v690_v13 = vsel %vm676_vm0, %v688_v11, 0.0 }
 0x240   : > { %691 = vadd.xlane.f32.xlu1 %v690_v13  ;;  %v727_v14 = vpop.xlane.xlu0 %726  ;;  %v3702_v13 = vld [vmem:[#allocation17 + $0x8] sm:$0xff]  }
 0x241   : > { %v689_v15 = vmul.f32 %v687_v12, %v687_v12  ;;  %v731_v16 = vmul.f32 0.03125, %v727_v14 }
 0x243   : > { %v693_v18 = vsel %vm676_vm0, %v689_v15, 0.0  ;;  %v3659_v19 = vsub.f32 %v721_v2, %v731_v16  ;;  %v950_v2 = vld [vmem:[#allocation20] sm:$0xf] }
 0x244   : > { %694 = vadd.xlane.f32.xlu1 %v693_v18  ;;  %v3682_v6 = vsel %vm960_vm2, %v950_v2, 0 }
 0x245   : > { %v735_v21 = vmul.f32 %v3659_v19, %v3659_v19 }
 0x247   : > { %v737_v22 = vsel %vm676_vm0, %v735_v21, 0.0 }
 0x248   : > { %729 = vadd.xlane.f32.xlu1 %v728_v20  ;;  %738 = vadd.xlane.f32.xlu0 %v737_v22 }
 0x2cd   : > { %v692_v26 = vpop.xlane.xlu1 %691 }
 0x2ce   : > { %v696_v27 = vmul.f32 0.03125, %v692_v26 }
 0x2d0   : > { %v698_v28 = vadd.f32 1e-05, %v696_v27 }
 0x2d1   : > { %v695_v29 = vpop.xlane.xlu1 %694 }
 0x2d2   : > { %2585 = vrsqrt.f32 %v698_v28  ;;  %v697_v30 = vmul.f32 0.03125, %v695_v29 }
 0x2d4   : > { %v699_v31 = vadd.f32 1e-05, %v697_v30 }
 0x2d5   : > { %v730_v32 = vpop.xlane.xlu1 %729  ;;  %v739_v52 = vpop.xlane.xlu0 %738 }
 0x2d6   : > { %2587 = vrsqrt.f32 %v699_v31  ;;  %v732_v33 = vmul.f32 0.03125, %v730_v32  ;;  %v743_v53 = vmul.f32 0.03125, %v739_v52 }
 0x2d8   : > { %v734_v34 = vsub.f32 %v722_v17, %v732_v33  ;;  %v745_v54 = vadd.f32 1e-05, %v743_v53 }
 0x2da   : > { %v736_v35 = vmul.f32 %v734_v34, %v734_v34  ;;  %2589 = vrsqrt.f32 %v745_v54 }
 0x2dc   : > { %v2586_v36 = vpop.eup %2585  ;;  %v740_v37 = vsel %vm676_vm0, %v736_v35, 0.0 }
 0x2dd   : > { %v702_v38 = vmul.f32 %v2586_v36, %v686_v8  ;;  %741 = vadd.xlane.f32.xlu1 %v740_v37 }
 0x2df   : > { %v710_v42 = vmul.f32 %v2138_v39, %v702_v38 }
 0x2e0   : > { %v2588_v40 = vpop.eup %2587 }
 0x2e1   : > { %v703_v41 = vmul.f32 %v2588_v40, %v687_v12  ;;  %v718_v45 = vadd.f32 %v2139_v43, %v710_v42  ;;  %v3698_v12 = vld [vmem:[#allocation17] sm:$0xff]  }
 0x2e3   : > { %v711_v44 = vmul.f32 %v2138_v39, %v703_v41 }
 0x2e4   : > { %v2590_v58 = vpop.eup %2589 }
 0x2e5   : > { %v719_v46 = vadd.f32 %v2139_v43, %v711_v44  ;;  %v749_v59 = vmul.f32 %v2590_v58, %v3659_v19 }
 0x2e7   : > { %v720_v47 = vpack.c.bf16 %v719_v46, %v718_v45  ;;  %v757_v63 = vmul.f32 %v2140_v60, %v749_v59  ;;  %v3742_v59 = vld [vmem:[#allocation22 + $0x8] sm:$0xff]  }
 0x2e9   : > { %2255 = vmatmul.mubr.msk.bf16.vlgmr.msra.gmra.mrb[0].mxu0 %vm676_vm0, %v720_v47  ;;  %v765_v3 = vadd.f32 %v2141_v0, %v757_v63 }
 0x2ea   : > { %2270 = vmatprep.mubr.msk.bf16.mxu0 %vm3123_vm1, %v3122_v24  ;;  %2267 = vmatpush3.bf16.msra.mxu0 %v2578_v49  ;;  %v3724_v49 = vsel %vm1093_vm5, %v949_v48, 0 }
 0x2eb   : > { %2268 = vmatprep.subr.bf16.mxu0 %v3122_v24 }
 0x2ee   : > { %2269 = vmatpush3.bf16.msra.mxu0 %v2580_v51 }
 0x2ef   : > { %2280 = vmatprep.subr.bf16.mxu0 %v3122_v24 }
 0x36a   : > { %v742_v55 = vpop.xlane.xlu1 %741 }
 0x36b   : > { %v744_v56 = vmul.f32 0.03125, %v742_v55 }
 0x36d   : > { %v746_v57 = vadd.f32 1e-05, %v744_v56 }
 0x36f   : > { %2591 = vrsqrt.f32 %v746_v57 }
 0x379   : > { %v2592_v61 = vpop.eup %2591 }
 0x37a   : > { %v750_v62 = vmul.f32 %v2592_v61, %v734_v34 }
 0x37c   : > { %v758_v1 = vmul.f32 %v2140_v60, %v750_v62 }
 0x37e   : > { %v766_v4 = vadd.f32 %v2141_v0, %v758_v1 }
 0x380   : > { %v767_v5 = vpack.c.bf16 %v766_v4, %v765_v3 }
 0x382   : > { %2263 = vmatmul.mubr.msk.bf16.vlgmr.msra.gmra.mrb[0].mxu1 %vm676_vm0, %v767_v5  ;;  %2271 = vmatmul.mubr.msk.bf16.vlgmr.msra.gmra.mrb[4].mxu0 %vm676_vm0, %v767_v5 }
 0x383   : > { %2275 = vmatpush3.bf16.msra.mxu1 %v3682_v6  ;;  %2276 = vmatprep.mubr.msk.bf16.mxu1 %vm3123_vm1, %v3122_v24 }
 0x384   : > { %2284 = vmatprep.mubr.msk.bf16.mxu0 %vm3123_vm1, %v3122_v24  ;;  %2288 = vmatprep.subr.bf16.mxu1 %v3122_v24 }
 0x385   : > { %2281 = vmatpush3.bf16.msra.mxu0 %v3698_v12 }
 0x386   : > { %2282 = vmatprep.subr.bf16.mxu0 %v3122_v24 }
 0x389   : > { %2283 = vmatpush3.bf16.msra.mxu0 %v3702_v13 }
 0x38a   : > { %2294 = vmatprep.subr.bf16.mxu0 %v3122_v24 }
 0x3bc   : > { %v821_v7 = vpop.f32.mrb[0].mxu0 }
 0x3bd   : > { %v2256_v8 = vpop.f32.mrb[1].mxu0 }
 0x3be   : > { %v824_v9 = vpop.f32.mrb[2].mxu0 }
 0x3bf   : > { %v3692_v10 = vpack.c.bf16 %v824_v9, %v821_v7  ;;  %v2257_v11 = vpop.f32.mrb[3].mxu0 }
 0x3c1   : > { %2277 = vmatmul.mubr.msk.bf16.vlgmr.msra.gmra.mrb[4].mxu1 %vm956_vm3, %v3692_v10 }
 0x3c2   : > { %2290 = vmatprep.mubr.msk.bf16.mxu1 %vm3123_vm1, %v3122_v24  ;;  %2289 = vmatpush3.bf16.msra.mxu1 %v3724_v49 }
 0x3c3   : > { %2302 = vmatprep.subr.bf16.mxu1 %v3122_v24 }
 0x455   : > { %v3706_v14 = vpop.f32.mrb[0].mxu1  ;;  %v3708_v15 = vpop.f32.mrb[4].mxu0 }
 0x456   : > { %v2264_v16 = vpop.f32.mrb[1].mxu1  ;;  %v2272_v17 = vpop.f32.mrb[5].mxu0 }
 0x457   : > { %v3710_v18 = vpop.f32.mrb[2].mxu1  ;;  %v3712_v19 = vpop.f32.mrb[6].mxu0 }
 0x458   : > { %v2265_v20 = vpop.f32.mrb[3].mxu1  ;;  %v2273_v21 = vpop.f32.mrb[7].mxu0 }
 0x494   : > { %v998_v22 = vpop.f32.mrb[4].mxu1 }
 0x495   : > { %v1005_v23 = vmul.f32 %v998_v22, %v3706_v14  ;;  %v2278_v25 = vpop.f32.mrb[5].mxu1 }
 0x496   : > { %v1001_v26 = vpop.f32.mrb[6].mxu1 }
 0x497   : > { %v1006_v27 = vmul.f32 %v1001_v26, %v3710_v18  ;;  %v2279_v28 = vpop.f32.mrb[7].mxu1 }
 0x499   : > { %v1007_v29 = vpack.c.bf16 %v1006_v27, %v1005_v23 }
 0x49b   : > { %2285 = vmatmul.mubr.msk.bf16.vlgmr.msra.gmra.mrb[8].mxu0 %vm676_vm0, %v1007_v29 }
 0x49c   : > { %2298 = vmatprep.mubr.msk.bf16.mxu0 %vm3123_vm1, %v3122_v24  ;;  %2295 = vmatpush3.bf16.msra.mxu0 %v3728_v50 }
 0x49d   : > { %2296 = vmatprep.subr.bf16.mxu0 %v3122_v24 }
 0x4a0   : > { %2297 = vmatpush3.bf16.msra.mxu0 %v3742_v59 }
 0x4a1   : > { %2308 = vmatprep.subr.bf16.mxu0 %v3122_v24 }
 0x56e   : > { %v1057_v30 = vpop.f32.mrb[8].mxu0 }
 0x56f   : > { %v1064_v31 = vmul.f32 0.35355338, %v1057_v30  ;;  %v2286_v32 = vpop.f32.mrb[9].mxu0 }
 0x570   : > { %v1060_v33 = vpop.f32.mrb[10].mxu0 }
 0x571   : > { %v1065_v34 = vmul.f32 0.35355338, %v1060_v33  ;;  %v2287_v35 = vpop.f32.mrb[11].mxu0  ;;  %v1067_v36 = vsel %vm1066_vm4, %v1064_v31, -inf }
 0x572   : > { %1068 = vmax.xlane.f32.xlu0 %v1067_v36 }
 0x573   : > { %v1070_v37 = vsel %vm1066_vm4, %v1065_v34, -inf }
 0x574   : > { %1071 = vmax.xlane.f32.xlu1 %v1070_v37 }
 0x5ff   : > { %v1069_v38 = vpop.xlane.xlu0 %1068 }
 0x600   : > { %v1073_v39 = vsub.f32 %v1064_v31, %v1069_v38 }
 0x601   : > { %v1072_v40 = vpop.xlane.xlu1 %1071 }
 0x602   : > { %v1075_v41 = vmul.f32 1.442695, %v1073_v39  ;;  %v1074_v42 = vsub.f32 %v1065_v34, %v1072_v40 }
 0x604   : > { %2593 = vpow2.f32 %v1075_v41  ;;  %v1077_v43 = vmul.f32 1.442695, %v1074_v42 }
 0x606   : > { %2595 = vpow2.f32 %v1077_v43 }
 0x60e   : > { %v2594_v44 = vpop.eup %2593 }
 0x60f   : > { %v1079_v45 = vsel %vm1066_vm4, %v2594_v44, 0.0 }
 0x610   : > { %v2596_v46 = vpop.eup %2595  ;;  %1080 = vadd.xlane.f32.xlu0 %v1079_v45 }
 0x611   : > { %v1082_v47 = vsel %vm1066_vm4, %v2596_v46, 0.0 }
 0x612   : > { %1083 = vadd.xlane.f32.xlu1 %v1082_v47 }
 0x626   : > { %1209 = vrot.lane.b32.xlu0 %v3692_v10, %s3124_s14 }
 0x69d   : > { %v1081_v51 = vpop.xlane.xlu0 %1080 }
 0x69e   : > { %2597 = vrcp.f32 %v1081_v51 }
 0x69f   : > { %v1084_v52 = vpop.xlane.xlu1 %1083 }
 0x6a0   : > { %2599 = vrcp.f32 %v1084_v52 }
 0x6a1   : > { %v1210_v58 = vpop.permute.xlu0 %1209 }
 0x6a8   : > { %v2598_v53 = vpop.eup %2597 }
 0x6a9   : > { %v1087_v55 = vmul.f32 %v2598_v53, %v2594_v44 }
 0x6aa   : > { %v2600_v54 = vpop.eup %2599 }
 0x6ab   : > { %v1088_v56 = vmul.f32 %v2600_v54, %v2596_v46 }
 0x6ad   : > { %v1089_v57 = vpack.c.bf16 %v1088_v56, %v1087_v55 }
 0x6af   : > { %2291 = vmatmul.mubr.msk.bf16.vlgmr.msra.gmra.mrb[8].mxu1 %vm1066_vm4, %v1089_v57 }
 0x6b0   : > { %2303 = vmatpush3.bf16.msra.mxu1 %v3682_v6  ;;  %2304 = vmatprep.mubr.msk.bf16.mxu1 %vm3123_vm1, %v3122_v24 }
 0x6b1   : > { %2316 = vmatprep.subr.bf16.mxu1 %v3122_v24 }
 0x6b7   : > { %2305 = vmatmul.mubr.msk.bf16.vlgmr.msra.gmra.mrb[12].mxu1 %vm956_vm3, %v1210_v58 }
 0x6b8   : > { %2317 = vmatpush3.bf16.msra.mxu1 %v3724_v49  ;;  %2318 = vmatprep.mubr.msk.bf16.mxu1 %vm3123_vm1, %v3122_v24 }
 0x6b9   : > { %2330 = vmatprep.subr.bf16.mxu1 %v3122_v24 }
 0x782   : > { %v1131_v60 = vpop.f32.mrb[8].mxu1 }
 0x783   : > { %v1138_v61 = vmul.f32 %v1131_v60, %v3708_v15  ;;  %v2292_v62 = vpop.f32.mrb[9].mxu1 }
 0x784   : > { %v1134_v63 = vpop.f32.mrb[10].mxu1 }
 0x785   : > { %v1139_v0 = vmul.f32 %v1134_v63, %v3712_v19  ;;  %v2293_v1 = vpop.f32.mrb[11].mxu1 }
 0x787   : > { %v1140_v2 = vpack.c.bf16 %v1139_v0, %v1138_v61 }
 0x789   : > { %2299 = vmatmul.mubr.msk.bf16.vlgmr.msra.gmra.mrb[12].mxu0 %vm676_vm0, %v1140_v2 }
 0x78a   : > { %2309 = vmatpush3.bf16.msra.mxu0 %v3698_v12  ;;  %v1248_v3 = vpop.f32.mrb[12].mxu1  ;;  %2312 = vmatprep.mubr.msk.bf16.mxu0 %vm3123_vm1, %v3122_v24 }
 0x78b   : > { %v1255_v4 = vmul.f32 %v1248_v3, %v3706_v14  ;;  %v2306_v5 = vpop.f32.mrb[13].mxu1  ;;  %2310 = vmatprep.subr.bf16.mxu0 %v3122_v24 }
 0x78c   : > { %v1251_v7 = vpop.f32.mrb[14].mxu1 }
 0x78d   : > { %v1256_v8 = vmul.f32 %v1251_v7, %v3710_v18  ;;  %v2307_v9 = vpop.f32.mrb[15].mxu1 }
 0x78e   : > { %2311 = vmatpush3.bf16.msra.mxu0 %v3702_v13 }
 0x78f   : > { %v1257_v11 = vpack.c.bf16 %v1256_v8, %v1255_v4  ;;  %2322 = vmatprep.subr.bf16.mxu0 %v3122_v24 }
 0x791   : > { %2313 = vmatmul.mubr.msk.bf16.vlgmr.msra.gmra.mrb[16].mxu0 %vm676_vm0, %v1257_v11 }
 0x792   : > { %2323 = vmatpush3.bf16.msra.mxu0 %v3728_v50  ;;  %2326 = vmatprep.mubr.msk.bf16.mxu0 %vm3123_vm1, %v3122_v24 }
 0x793   : > { %2324 = vmatprep.subr.bf16.mxu0 %v3122_v24 }
 0x796   : > { %2325 = vmatpush3.bf16.msra.mxu0 %v3742_v59 }
 0x797   : > { %2336 = vmatprep.subr.bf16.mxu0 %v3122_v24 }
 0x85c   : > { %v1190_v16 = vpop.f32.mrb[12].mxu0 }
 0x85d   : > { %v2192_v17 = vpack.c.bf16 %v1190_v16, %v1190_v16  ;;  %v2300_v20 = vpop.f32.mrb[13].mxu0 }
 0x85e   : > { %v1193_v21 = vpop.f32.mrb[14].mxu0 }
 0x85f   : > { %1206 = vst.msk [vmem:[%s3765_s15] sm:$0xf] %vm1205_vm6, %v2192_v17  ;;  %v2193_v22 = vpack.c.bf16 %v1193_v21, %v1193_v21  ;;  %v2301_v23 = vpop.f32.mrb[15].mxu0 }
 0x861   : > { %1207 = vst.msk [vmem:[%s3765_s15 + $0x4] sm:$0xf] %vm1205_vm6, %v2193_v22 }
 0x864   : > { %v1295_v25 = vpop.f32.mrb[16].mxu0 }
 0x865   : > { %v1302_v26 = vmul.f32 0.35355338, %v1295_v25  ;;  %v2314_v27 = vpop.f32.mrb[17].mxu0 }
 0x866   : > { %v1298_v28 = vpop.f32.mrb[18].mxu0 }
 0x867   : > { %v1303_v29 = vmul.f32 0.35355338, %v1298_v28  ;;  %v2315_v30 = vpop.f32.mrb[19].mxu0  ;;  %v1304_v31 = vsel %vm1066_vm4, %v1302_v26, -inf }
 0x868   : > { %1305 = vmax.xlane.f32.xlu1 %v1304_v31 }
 0x869   : > { %v1307_v32 = vsel %vm1066_vm4, %v1303_v29, -inf }
 0x86c   : > { %1308 = vmax.xlane.f32.xlu1 %v1307_v32 }
 0x8f5   : > { %v1306_v33 = vpop.xlane.xlu1 %1305 }
 0x8f6   : > { %v1310_v34 = vsub.f32 %v1302_v26, %v1306_v33 }
 0x8f8   : > { %v1312_v35 = vmul.f32 1.442695, %v1310_v34 }
 0x8f9   : > { %v1309_v36 = vpop.xlane.xlu1 %1308 }
 0x8fa   : > { %2601 = vpow2.f32 %v1312_v35  ;;  %v1311_v37 = vsub.f32 %v1303_v29, %v1309_v36 }
 0x8fc   : > { %v1314_v38 = vmul.f32 1.442695, %v1311_v37 }
 0x8fe   : > { %2603 = vpow2.f32 %v1314_v38 }
 0x904   : > { %v2602_v39 = vpop.eup %2601 }
 0x905   : > { %v1316_v40 = vsel %vm1066_vm4, %v2602_v39, 0.0 }
 0x906   : > { %1317 = vadd.xlane.f32.xlu1 %v1316_v40 }
 0x908   : > { %v2604_v41 = vpop.eup %2603 }
 0x909   : > { %v1319_v42 = vsel %vm1066_vm4, %v2604_v41, 0.0 }
 0x90a   : > { %1320 = vadd.xlane.f32.xlu1 %v1319_v42 }
 0x91b   : > { %1429 = vrot.lane.b32.xlu1 %v3692_v10, %s3125_s13 }
 0x993   : > { %v1318_v43 = vpop.xlane.xlu1 %1317 }
 0x994   : > { %2605 = vrcp.f32 %v1318_v43 }
 0x997   : > { %v1321_v44 = vpop.xlane.xlu1 %1320 }
 0x998   : > { %2607 = vrcp.f32 %v1321_v44 }
 0x99b   : > { %v1430_v52 = vpop.permute.xlu1 %1429 }
 0x99e   : > { %v2606_v45 = vpop.eup %2605 }
 0x99f   : > { %v1324_v47 = vmul.f32 %v2606_v45, %v2602_v39 }
 0x9a2   : > { %v2608_v46 = vpop.eup %2607 }
 0x9a3   : > { %v1325_v48 = vmul.f32 %v2608_v46, %v2604_v41 }
 0x9a5   : > { %v1326_v51 = vpack.c.bf16 %v1325_v48, %v1324_v47 }
 0x9a7   : > { %2319 = vmatmul.mubr.msk.bf16.vlgmr.msra.gmra.mrb[16].mxu1 %vm1066_vm4, %v1326_v51 }
 0x9a8   : > { %2331 = vmatpush3.bf16.msra.mxu1 %v3682_v6  ;;  %2332 = vmatprep.mubr.msk.bf16.mxu1 %vm3123_vm1, %v3122_v24 }
 0x9a9   : > { %2344 = vmatprep.subr.bf16.mxu1 %v3122_v24 }
 0x9af   : > { %2333 = vmatmul.mubr.msk.bf16.vlgmr.msra.gmra.mrb[20].mxu1 %vm956_vm3, %v1430_v52 }
 0x9b0   : > { %2345 = vmatpush3.bf16.msra.mxu1 %v3724_v49  ;;  %2346 = vmatprep.mubr.msk.bf16.mxu1 %vm3123_vm1, %v3122_v24 }
 0x9b1   : > { %2358 = vmatprep.subr.bf16.mxu1 %v3122_v24 }
 0xa7a   : > { %v1364_v53 = vpop.f32.mrb[16].mxu1 }
 0xa7b   : > { %v1371_v54 = vmul.f32 %v1364_v53, %v3708_v15  ;;  %v2320_v55 = vpop.f32.mrb[17].mxu1 }
 0xa7c   : > { %v1367_v56 = vpop.f32.mrb[18].mxu1 }
 0xa7d   : > { %v1372_v57 = vmul.f32 %v1367_v56, %v3712_v19  ;;  %v2321_v58 = vpop.f32.mrb[19].mxu1 }
 0xa7f   : > { %v1373_v60 = vpack.c.bf16 %v1372_v57, %v1371_v54 }
 0xa81   : > { %2327 = vmatmul.mubr.msk.bf16.vlgmr.msra.gmra.mrb[20].mxu0 %vm676_vm0, %v1373_v60 }
 0xa82   : > { %2337 = vmatpush3.bf16.msra.mxu0 %v3698_v12  ;;  %v1468_v61 = vpop.f32.mrb[20].mxu1  ;;  %2340 = vmatprep.mubr.msk.bf16.mxu0 %vm3123_vm1, %v3122_v24 }
 0xa83   : > { %v1475_v62 = vmul.f32 %v1468_v61, %v3706_v14  ;;  %v2334_v63 = vpop.f32.mrb[21].mxu1  ;;  %2338 = vmatprep.subr.bf16.mxu0 %v3122_v24 }
 0xa84   : > { %v1471_v0 = vpop.f32.mrb[22].mxu1 }
 0xa85   : > { %v1476_v1 = vmul.f32 %v1471_v0, %v3710_v18  ;;  %v2335_v2 = vpop.f32.mrb[23].mxu1 }
 0xa86   : > { %2339 = vmatpush3.bf16.msra.mxu0 %v3702_v13 }
 0xa87   : > { %v1477_v3 = vpack.c.bf16 %v1476_v1, %v1475_v62  ;;  %2350 = vmatprep.subr.bf16.mxu0 %v3122_v24 }
 0xa89   : > { %2341 = vmatmul.mubr.msk.bf16.vlgmr.msra.gmra.mrb[24].mxu0 %vm676_vm0, %v1477_v3 }
 0xa8a   : > { %2351 = vmatpush3.bf16.msra.mxu0 %v3728_v50  ;;  %2354 = vmatprep.mubr.msk.bf16.mxu0 %vm3123_vm1, %v3122_v24 }
 0xa8b   : > { %2352 = vmatprep.subr.bf16.mxu0 %v3122_v24 }
 0xa8e   : > { %2353 = vmatpush3.bf16.msra.mxu0 %v3742_v59 }
 0xa8f   : > { %2364 = vmatprep.subr.bf16.mxu0 %v3122_v24 }
 0xb54   : > { %v1411_v4 = vpop.f32.mrb[20].mxu0 }
 0xb55   : > { %v2194_v5 = vpack.c.bf16 %v1411_v4, %v1411_v4  ;;  %v2328_v7 = vpop.f32.mrb[21].mxu0 }
 0xb56   : > { %v1414_v8 = vpop.f32.mrb[22].mxu0 }
 0xb57   : > { %2167 = vst.msk [vmem:[%s3765_s15 + $0x8] sm:$0xf] %vm1205_vm6, %v2194_v5  ;;  %v2195_v9 = vpack.c.bf16 %v1414_v8, %v1414_v8  ;;  %v2329_v11 = vpop.f32.mrb[23].mxu0 }
 0xb59   : > { %2168 = vst.msk [vmem:[%s3765_s15 + $0xc] sm:$0xf] %vm1205_vm6, %v2195_v9 }
 0xb5c   : > { %v1515_v16 = vpop.f32.mrb[24].mxu0 }
 0xb5d   : > { %v1522_v17 = vmul.f32 0.35355338, %v1515_v16  ;;  %v2342_v20 = vpop.f32.mrb[25].mxu0 }
 0xb5e   : > { %v1518_v21 = vpop.f32.mrb[26].mxu0 }
 0xb5f   : > { %v1523_v22 = vmul.f32 0.35355338, %v1518_v21  ;;  %v2343_v23 = vpop.f32.mrb[27].mxu0  ;;  %v1524_v25 = vsel %vm1066_vm4, %v1522_v17, -inf }
 0xb60   : > { %1525 = vmax.xlane.f32.xlu0 %v1524_v25 }
 0xb61   : > { %v1527_v26 = vsel %vm1066_vm4, %v1523_v22, -inf }
 0xb62   : > { %1528 = vmax.xlane.f32.xlu1 %v1527_v26 }
 0xbed   : > { %v1526_v27 = vpop.xlane.xlu0 %1525 }
 0xbee   : > { %v1530_v28 = vsub.f32 %v1522_v17, %v1526_v27 }
 0xbef   : > { %v1529_v29 = vpop.xlane.xlu1 %1528 }
 0xbf0   : > { %v1532_v30 = vmul.f32 1.442695, %v1530_v28  ;;  %v1531_v31 = vsub.f32 %v1523_v22, %v1529_v29 }
 0xbf2   : > { %2609 = vpow2.f32 %v1532_v30  ;;  %v1534_v32 = vmul.f32 1.442695, %v1531_v31 }
 0xbf4   : > { %2611 = vpow2.f32 %v1534_v32 }
 0xbfc   : > { %v2610_v33 = vpop.eup %2609 }
 0xbfd   : > { %v1536_v34 = vsel %vm1066_vm4, %v2610_v33, 0.0 }
 0xbfe   : > { %v2612_v35 = vpop.eup %2611  ;;  %1537 = vadd.xlane.f32.xlu0 %v1536_v34 }
 0xbff   : > { %v1539_v36 = vsel %vm1066_vm4, %v2612_v35, 0.0 }
 0xc02   : > { %1540 = vadd.xlane.f32.xlu0 %v1539_v36 }
 0xc18   : > { %1649 = vrot.lane.b32.xlu0 %v3692_v10, %s3126_s4 }
 0xc8b   : > { %v1538_v37 = vpop.xlane.xlu0 %1537 }
 0xc8c   : > { %2613 = vrcp.f32 %v1538_v37 }
 0xc8f   : > { %v1541_v38 = vpop.xlane.xlu0 %1540 }
 0xc90   : > { %2615 = vrcp.f32 %v1541_v38 }
 0xc93   : > { %v1650_v44 = vpop.permute.xlu0 %1649 }
 0xc96   : > { %v2614_v39 = vpop.eup %2613 }
 0xc97   : > { %v1544_v41 = vmul.f32 %v2614_v39, %v2610_v33 }
 0xc9a   : > { %v2616_v40 = vpop.eup %2615 }
 0xc9b   : > { %v1545_v42 = vmul.f32 %v2616_v40, %v2612_v35 }
 0xc9d   : > { %v1546_v43 = vpack.c.bf16 %v1545_v42, %v1544_v41 }
 0xc9f   : > { %2347 = vmatmul.mubr.msk.bf16.vlgmr.msra.gmra.mrb[24].mxu1 %vm1066_vm4, %v1546_v43 }
 0xca0   : > { %2359 = vmatpush3.bf16.msra.mxu1 %v3682_v6  ;;  %2360 = vmatprep.mubr.msk.bf16.mxu1 %vm3123_vm1, %v3122_v24 }
 0xca1   : > { %2372 = vmatprep.subr.bf16.mxu1 %v3122_v24 }
 0xca7   : > { %2361 = vmatmul.mubr.msk.bf16.vlgmr.msra.gmra.mrb[28].mxu1 %vm956_vm3, %v1650_v44 }
 0xca8   : > { %2373 = vmatpush3.bf16.msra.mxu1 %v3724_v49  ;;  %2374 = vmatprep.mubr.msk.bf16.mxu1 %vm3123_vm1, %v3122_v24 }
 0xd72   : > { %v1584_v10 = vpop.f32.mrb[24].mxu1 }
 0xd73   : > { %v1591_v45 = vmul.f32 %v1584_v10, %v3708_v15  ;;  %v2348_v46 = vpop.f32.mrb[25].mxu1 }
 0xd74   : > { %v1587_v47 = vpop.f32.mrb[26].mxu1 }
 0xd75   : > { %v1592_v6 = vmul.f32 %v1587_v47, %v3712_v19  ;;  %v2349_v48 = vpop.f32.mrb[27].mxu1 }
 0xd77   : > { %v1593_v51 = vpack.c.bf16 %v1592_v6, %v1591_v45 }
 0xd79   : > { %2355 = vmatmul.mubr.msk.bf16.vlgmr.msra.gmra.mrb[28].mxu0 %vm676_vm0, %v1593_v51 }
 0xd7a   : > { %2365 = vmatpush3.bf16.msra.mxu0 %v3698_v12  ;;  %v1688_v52 = vpop.f32.mrb[28].mxu1  ;;  %2368 = vmatprep.mubr.msk.bf16.mxu0 %vm3123_vm1, %v3122_v24 }
 0xd7b   : > { %v1695_v49 = vmul.f32 %v1688_v52, %v3706_v14  ;;  %v2362_v53 = vpop.f32.mrb[29].mxu1  ;;  %2366 = vmatprep.subr.bf16.mxu0 %v3122_v24 }
 0xd7c   : > { %v1691_v54 = vpop.f32.mrb[30].mxu1 }
 0xd7d   : > { %v1696_v55 = vmul.f32 %v1691_v54, %v3710_v18  ;;  %v2363_v56 = vpop.f32.mrb[31].mxu1 }
 0xd7e   : > { %2367 = vmatpush3.bf16.msra.mxu0 %v3702_v13 }
 0xd7f   : > { %v1697_v57 = vpack.c.bf16 %v1696_v55, %v1695_v49  ;;  %2378 = vmatprep.subr.bf16.mxu0 %v3122_v24 }
 0xd81   : > { %2369 = vmatmul.mubr.msk.bf16.vlgmr.msra.gmra.mrb[32].mxu0 %vm676_vm0, %v1697_v57 }
 0xd82   : > { %2379 = vmatpush3.bf16.msra.mxu0 %v3728_v50  ;;  %2382 = vmatprep.mubr.msk.bf16.mxu0 %vm3123_vm1, %v3122_v24 }
 0xd83   : > { %2380 = vmatprep.subr.bf16.mxu0 %v3122_v24 }
 0xd86   : > { %2381 = vmatpush3.bf16.msra.mxu0 %v3742_v59 }
 0xe4c   : > { %v1631_v12 = vpop.f32.mrb[28].mxu0 }
 0xe4d   : > { %v2196_v14 = vpack.c.bf16 %v1631_v12, %v1631_v12  ;;  %v2356_v18 = vpop.f32.mrb[29].mxu0 }
 0xe4e   : > { %v1634_v58 = vpop.f32.mrb[30].mxu0 }
 0xe4f   : > { %2175 = vst.msk [vmem:[%s3765_s15 + $0x10] sm:$0xf] %vm1205_vm6, %v2196_v14  ;;  %v2197_v13 = vpack.c.bf16 %v1634_v58, %v1634_v58  ;;  %v2357_v60 = vpop.f32.mrb[31].mxu0 }
 0xe51   : > { %2176 = vst.msk [vmem:[%s3765_s15 + $0x14] sm:$0xf] %vm1205_vm6, %v2197_v13 }
 0xe54   : > { %v1735_v61 = vpop.f32.mrb[32].mxu0 }
 0xe55   : > { %v1742_v62 = vmul.f32 0.35355338, %v1735_v61  ;;  %v2370_v50 = vpop.f32.mrb[33].mxu0 }
 0xe56   : > { %v1738_v63 = vpop.f32.mrb[34].mxu0 }
 0xe57   : > { %v1743_v0 = vmul.f32 0.35355338, %v1738_v63  ;;  %v2371_v1 = vpop.f32.mrb[35].mxu0  ;;  %v1744_v24 = vsel %vm1066_vm4, %v1742_v62, -inf }
 0xe58   : > { %1745 = vmax.xlane.f32.xlu1 %v1744_v24 }
 0xe59   : > { %v1747_v59 = vsel %vm1066_vm4, %v1743_v0, -inf }
 0xe5c   : > { %1748 = vmax.xlane.f32.xlu1 %v1747_v59 }
 0xee5   : > { %v1746_v2 = vpop.xlane.xlu1 %1745 }
 0xee6   : > { %v1750_v3 = vsub.f32 %v1742_v62, %v1746_v2 }
 0xee8   : > { %v1752_v4 = vmul.f32 1.442695, %v1750_v3 }
 0xee9   : > { %v1749_v5 = vpop.xlane.xlu1 %1748 }
 0xeea   : > { %2617 = vpow2.f32 %v1752_v4  ;;  %v1751_v7 = vsub.f32 %v1743_v0, %v1749_v5 }
 0xeec   : > { %v1754_v8 = vmul.f32 1.442695, %v1751_v7 }
 0xeee   : > { %2619 = vpow2.f32 %v1754_v8 }
 0xef4   : > { %v2618_v9 = vpop.eup %2617 }
 0xef5   : > { %v1756_v11 = vsel %vm1066_vm4, %v2618_v9, 0.0 }
 0xef6   : > { %1757 = vadd.xlane.f32.xlu1 %v1756_v11 }
 0xef8   : > { %v2620_v16 = vpop.eup %2619 }
 0xef9   : > { %v1759_v17 = vsel %vm1066_vm4, %v2620_v16, 0.0 }
 0xefa   : > { %1760 = vadd.xlane.f32.xlu1 %v1759_v17 }
 0xf83   : > { %v1758_v20 = vpop.xlane.xlu1 %1757 }
 0xf84   : > { %2621 = vrcp.f32 %v1758_v20 }
 0xf87   : > { %v1761_v21 = vpop.xlane.xlu1 %1760 }
 0xf88   : > { %2623 = vrcp.f32 %v1761_v21 }
 0xf8e   : > { %v2622_v22 = vpop.eup %2621 }
 0xf8f   : > { %v1764_v25 = vmul.f32 %v2622_v22, %v2618_v9 }
 0xf92   : > { %v2624_v23 = vpop.eup %2623 }
 0xf93   : > { %v1765_v26 = vmul.f32 %v2624_v23, %v2620_v16 }
 0xf95   : > { %v1766_v27 = vpack.c.bf16 %v1765_v26, %v1764_v25 }
 0xf97   : > { %2375 = vmatmul.mubr.msk.bf16.vlgmr.msra.gmra.mrb[32].mxu1 %vm1066_vm4, %v1766_v27 }
0x106a   : > { %v1804_v28 = vpop.f32.mrb[32].mxu1 }
0x106b   : > { %v1811_v29 = vmul.f32 %v1804_v28, %v3708_v15  ;;  %v2376_v30 = vpop.f32.mrb[33].mxu1 }
0x106c   : > { %v1807_v31 = vpop.f32.mrb[34].mxu1 }
0x106d   : > { %v1812_v32 = vmul.f32 %v1807_v31, %v3712_v19  ;;  %v2377_v33 = vpop.f32.mrb[35].mxu1 }
0x106f   : > { %v1813_v34 = vpack.c.bf16 %v1812_v32, %v1811_v29 }
0x1071   : > { %2383 = vmatmul.mubr.msk.bf16.vlgmr.msra.gmra.mrb[36].mxu0 %vm676_vm0, %v1813_v34 }
0x1144   : > { %v1851_v35 = vpop.f32.mrb[36].mxu0 }
0x1145   : > { %v2198_v36 = vpack.c.bf16 %v1851_v35, %v1851_v35  ;;  %v2384_v37 = vpop.f32.mrb[37].mxu0 }
0x1146   : > { %v1854_v38 = vpop.f32.mrb[38].mxu0 }
0x1147   : > { %2183 = vst.msk [vmem:[%s3765_s15 + $0x18] sm:$0xf] %vm1205_vm6, %v2198_v36  ;;  %v2199_v15 = vpack.c.bf16 %v1854_v38, %v1854_v38  ;;  %v2385_v19 = vpop.f32.mrb[39].mxu0 }
0x1149   : > { %2184 = vst.msk [vmem:[%s3765_s15 + $0x1c] sm:$0xf] %vm1205_vm6, %v2199_v15 }
0x114a   : > { %3006 = shalt.err (!%p3003_p6)
}
0x114b   : > { %s3007_s14 = scalar_lea.hbm %s3856_s20, 512  ;;  %s3011_s13 = scalar_lea.hbm %s3982_s9, 1024 }
0x114c   : > { %p3008_p3 = scmp.ne.s32.totalorder %s3856_s20, %s3007_s14  ;;  %p3012_p2 = scmp.lt.u32.totalorder %s3856_s20, %s3982_s9 }
0x114d   : > { %p3013_p11 = scmp.lt.u32.totalorder %s3011_s13, %s3007_s14  ;;  %p3015_p0 = scmp.lt.u32.totalorder %s3007_s14, %s3856_s20 }
0x114e   : > { %p3009_p10 = pnand %p3008_p3, %p3983_p7 }
0x114f   : > { %p3014_p12 = por %p3013_p11, %p3012_p2 }
0x1150   : > { %p3010_p13 = pneg %p3009_p10 }
0x1151   : > { %p3016_p5 = por %p3015_p0, %p3014_p12 }
0x1153   : > { %p3017_p4 = pnand %p3016_p5, %p3010_p13 }
0x1155   : > { %3020 = shalt.err (!%p3017_p4)
}
0x1156   : > { %s3128_s7 = smov 64   ;;  %s3129_s5 = smov 4  }
0x1157   : > { %2434 = dma.vmem_to_hbm [thread:$0]  (%p3983_p7), %s3858_s2, 512, %s3856_s20, %s1870_s24, %s3128_s7, %s3128_s7, %s3129_s5  }
0x1158 PF: > { %s1900_s21 = sand.u32 1, %s3083_s25   ;;  %p3984_p8 = scmp.ne.s32.totalorder %s3962_s1, 0 }
0x1159   : > { %p3985_p9 = scmp.ge.s32.totalorder %s3103_s30, 2  ;;  %s1901_s3 = scalar_lea.sflag [#allocation4], %s1900_s21 }
0x115b   : > { %p2478_p1 = pnand %p3985_p9, %p3984_p8 }
0x115d   : > { %3078 = dma.done.wait (!%p2478_p1), %s1901_s3, 512  }
0x115e   : > { %3080 = vsyncadd (!%p2478_p1), %s1901_s3, 4294966784  ;;  %s37_s30 = sadd.s32 1, %s3103_s30   ;;  %s3986_s25 = smov %s3087_s26 }
0x115f   : > { %p34_p6 = scmp.ge.s32.totalorder %s37_s30, 4   ;;  %s3987_s26 = smov %s3091_s27 }
0x1160   : > { %s3988_s27 = smov %s3513_s23  ;;  %s3989_s28 = smov %s3099_s29 }
0x1161   : > { %s3990_s29 = smov %s3992_s18  ;;  %36 = sbr.rel (!%p34_p6) target bundleno = 25 (0x19), region = 177 }
0x1168   :  { %1906 = vsyncpa [#allocation3], 1 }
0x1169   :  { %1908 = vsyncpa [#allocation3 + $0x1], 1 }
0x116a   :  { %1909 = vsyncpa [#allocation6], 1 }
0x116b   :  { %1911 = vsyncpa [#allocation6 + $0x1], 1 }
0x116c   :  { %1912 = vsyncpa [#allocation9], 1 }
0x116d   :  { %1913 = vsyncpa [#allocation12], 1 }
0x116e   :  { %1914 = vsyncpa [#allocation15], 1 }
0x116f   :  { %1915 = vsyncpa [#allocation18], 1 }
0x1170   :  { %1916 = vsyncpa [#allocation21], 1 }
0x1171   :  { %1917 = vsyncpa [#allocation4], 1 }
0x1172   :  { %1919 = vsyncpa [#allocation4 + $0x1], 1 }

// kernel: decoder_forward.7
= control target key start
LH: loop header
LB: loop body
LE: loop exit
PB: predicated region body
PF: predicated region fallthrough
CT: control target
= control target key end

     0   :  { %15 = vsyncpa [#allocation6], 0  ;;  %s1399_s0 = inlined_call_operand.hbm [shape: f32[32,32], index: 0, kind: input, shape index: {}]   ;;  %s1400_s1 = inlined_call_operand.hbm [shape: bf16[32,32], index: 1, kind: input, shape index: {}]   ;;  %s1401_s2 = inlined_call_operand.hbm [shape: bf16[32,32], index: 2, kind: input, shape index: {}]   ;;  %s1402_s3 = inlined_call_operand.hbm [shape: f32[1,32], index: 3, kind: input, shape index: {}]   ;;  %s1403_s4 = inlined_call_operand.hbm [shape: f32[1,32], index: 4, kind: input, shape index: {}]   ;;  %s1404_s5 = inlined_call_operand.hbm [shape: f32[1,32], index: 5, kind: input, shape index: {}]   ;;  %s1405_s6 = inlined_call_operand.hbm [shape: bf16[32,128], index: 6, kind: input, shape index: {}]   ;;  %s1406_s7 = inlined_call_operand.hbm [shape: f32[1,128], index: 7, kind: input, shape index: {}]   ;;  %s1407_s8 = inlined_call_operand.hbm [shape: bf16[128,32], index: 8, kind: input, shape index: {}]   ;;  %s1408_s9 = inlined_call_operand.hbm [shape: f32[1,32], index: 9, kind: input, shape index: {}]   ;;  %s1409_s10 = inlined_call_operand.hbm [shape: f32[32,32], index: 10, kind: output, shape index: {}]  }
   0x1   :  { %16 = vsyncpa [#allocation9], 0 }
   0x2   :  { %17 = vsyncpa [#allocation12], 0 }
   0x3   :  { %18 = vsyncpa [#allocation15], 0 }
   0x4   :  { %19 = vsyncpa [#allocation18], 0 }
   0x5   :  { %20 = vsyncpa [#allocation21], 0 }
   0x6   :  { %21 = vsyncpa [#allocation7], 0  ;;  %s1115_s13 = smov [#allocation8]   ;;  %s859_s17 = scalar_lea.hbm %s1400_s1, 256 }
   0x7   :  { %s39_s14 = sshll.u32 %s1115_s13, 4  ;;  %p860_p0 = scmp.ne.s32.totalorder %s1400_s1, %s859_s17  ;;  %s40_s14 = int_to_ptr.vmem [resolvable:$true] %s39_s14 }
   0x8   :  { %p863_p1 = scmp.lt.u32.totalorder %s859_s17, %s1400_s1 }
   0xa   :  { %p865_p2 = pnand %p863_p1, %p860_p0 }
   0xc   :  { %868 = shalt.err (!%p865_p2)
}
   0xd   :  { %s869_s22 = scalar_lea.vmem %s40_s14, 256  ;;  %p874_p4 = scmp.lt.s32.totalorder %s40_s14, %s40_s14 }
   0xe   :  { %p870_p3 = scmp.ne.s32.totalorder %s40_s14, %s869_s22  ;;  %p875_p5 = scmp.lt.s32.totalorder %s869_s22, %s869_s22 }
  0x10   :  { %p876_p6 = por %p875_p5, %p874_p4 }
  0x12   :  { %p877_p7 = pnand %p876_p6, %p870_p3 }
  0x14   :  { %880 = shalt.err (!%p877_p7)
}
  0x15   :  { %s1116_s23 = smov 64   ;;  %s1117_s24 = smov 4  }
  0x16   :  { %45 = dma.hbm_to_vmem [thread:$0]  %s1400_s1, 256, %s40_s14, [#allocation9], %s1116_s23, %s1116_s23, %s1117_s24  }
  0x17   :  { %s1118_s27 = smov [#allocation11]   ;;  %s1119_s29 = smov [#allocation14]  }
  0x18   :  { %s64_s28 = sshll.u32 %s1118_s27, 4  ;;  %s84_s30 = sshll.u32 %s1119_s29, 4  ;;  %s65_s28 = int_to_ptr.vmem [resolvable:$true] %s64_s28  ;;  %s85_s30 = int_to_ptr.vmem [resolvable:$true] %s84_s30 }
  0x19   :  { %s881_s13 = scalar_lea.hbm %s1402_s3, 16 }
  0x1a   :  { %p882_p8 = scmp.ne.s32.totalorder %s1402_s3, %s881_s13  ;;  %p885_p9 = scmp.lt.u32.totalorder %s881_s13, %s1402_s3 }
  0x1c   :  { %p887_p10 = pnand %p885_p9, %p882_p8 }
  0x1e   :  { %890 = shalt.err (!%p887_p10)
}
  0x1f   :  { %s891_s1 = scalar_lea.vmem %s65_s28, 16  ;;  %s895_s14 = scalar_lea.vmem %s65_s28, 32 }
  0x20   :  { %p892_p11 = scmp.ne.s32.totalorder %s65_s28, %s891_s1  ;;  %p896_p12 = scmp.lt.s32.totalorder %s65_s28, %s65_s28 }
  0x21   :  { %p897_p13 = scmp.lt.s32.totalorder %s895_s14, %s891_s1 }
  0x23   :  { %p898_p0 = por %p897_p13, %p896_p12 }
  0x25   :  { %p899_p1 = pnand %p898_p0, %p892_p11 }
  0x27   :  { %902 = shalt.err (!%p899_p1)
}
  0x28   :  { %67 = dma.hbm_to_vmem [thread:$0]  %s1402_s3, 16, %s65_s28, [#allocation12]  }
  0x29   :  { %s903_s25 = scalar_lea.hbm %s1404_s5, 16 }
  0x2a   :  { %p904_p2 = scmp.ne.s32.totalorder %s1404_s5, %s903_s25  ;;  %p907_p3 = scmp.lt.u32.totalorder %s903_s25, %s1404_s5 }
  0x2c   :  { %p909_p4 = pnand %p907_p3, %p904_p2 }
  0x2e   :  { %912 = shalt.err (!%p909_p4)
}
  0x2f   :  { %s913_s12 = scalar_lea.vmem %s85_s30, 16  ;;  %s917_s13 = scalar_lea.vmem %s85_s30, 32 }
  0x30   :  { %p914_p5 = scmp.ne.s32.totalorder %s85_s30, %s913_s12  ;;  %p918_p6 = scmp.lt.s32.totalorder %s85_s30, %s85_s30 }
  0x31   :  { %p919_p7 = scmp.lt.s32.totalorder %s917_s13, %s913_s12 }
  0x33   :  { %p920_p8 = por %p919_p7, %p918_p6 }
  0x35   :  { %p921_p9 = pnand %p920_p8, %p914_p5 }
  0x37   :  { %924 = shalt.err (!%p921_p9)
}
  0x38   :  { %87 = dma.hbm_to_vmem [thread:$0]  %s1404_s5, 16, %s85_s30, [#allocation15]  }
  0x39   :  { %s1120_s15 = smov [#allocation17]   ;;  %s1121_s17 = smov [#allocation5]  }
  0x3a   :  { %s106_s16 = sshll.u32 %s1120_s15, 4  ;;  %s27_s18 = sshll.u32 %s1121_s17, 4  ;;  %s107_s16 = int_to_ptr.vmem [resolvable:$true] %s106_s16  ;;  %s28_s18 = int_to_ptr.vmem [resolvable:$true] %s27_s18 }
  0x3b   :  { %s925_s19 = scalar_lea.hbm %s1406_s7, 16 }
  0x3c   :  { %p926_p10 = scmp.ne.s32.totalorder %s1406_s7, %s925_s19  ;;  %p929_p11 = scmp.lt.u32.totalorder %s925_s19, %s1406_s7 }
  0x3e   :  { %p931_p12 = pnand %p929_p11, %p926_p10 }
  0x40   :  { %934 = shalt.err (!%p931_p12)
}
  0x41   :  { %s935_s5 = scalar_lea.vmem %s107_s16, 16  ;;  %s939_s30 = scalar_lea.vmem %s107_s16, 32 }
  0x42   :  { %p936_p13 = scmp.ne.s32.totalorder %s107_s16, %s935_s5  ;;  %p940_p0 = scmp.lt.s32.totalorder %s107_s16, %s107_s16 }
  0x43   :  { %p941_p1 = scmp.lt.s32.totalorder %s939_s30, %s935_s5 }
  0x45   :  { %p942_p2 = por %p941_p1, %p940_p0 }
  0x47   :  { %p943_p3 = pnand %p942_p2, %p936_p13 }
  0x49   :  { %946 = shalt.err (!%p943_p3)
}
  0x4a   :  { %109 = dma.hbm_to_vmem [thread:$0]  %s1406_s7, 16, %s107_s16, [#allocation18]  }
  0x4b   :  { %s947_s12 = scalar_lea.hbm %s1399_s0, 512 }
  0x4c   :  { %p948_p4 = scmp.ne.s32.totalorder %s1399_s0, %s947_s12  ;;  %p951_p5 = scmp.lt.u32.totalorder %s947_s12, %s1399_s0 }
  0x4e   :  { %p953_p6 = pnand %p951_p5, %p948_p4 }
  0x50   :  { %956 = shalt.err (!%p953_p6)
}
  0x51   :  { %s957_s17 = scalar_lea.vmem %s28_s18, 512  ;;  %p962_p8 = scmp.lt.s32.totalorder %s28_s18, %s28_s18 }
  0x52   :  { %p958_p7 = scmp.ne.s32.totalorder %s28_s18, %s957_s17  ;;  %p963_p9 = scmp.lt.s32.totalorder %s957_s17, %s957_s17 }
  0x54   :  { %p964_p10 = por %p963_p9, %p962_p8 }
  0x56   :  { %p965_p11 = pnand %p964_p10, %p958_p7 }
  0x58   :  { %968 = shalt.err (!%p965_p11)
}
  0x59   :  { %s1122_s7 = smov 128   ;;  %s1123_s16 = smov 8  }
  0x5a   :  { %33 = dma.hbm_to_vmem [thread:$0]  %s1399_s0, 512, %s28_s18, [#allocation6], %s1122_s7, %s1122_s7, %s1123_s16  }
  0x5b   :  { %s1124_s19 = smov [#allocation10]   ;;  %s1125_s21 = smov [#allocation13]  }
  0x5c   :  { %s51_s20 = sshll.u32 %s1124_s19, 4  ;;  %s74_s22 = sshll.u32 %s1125_s21, 4  ;;  %s52_s20 = int_to_ptr.vmem [resolvable:$true] %s51_s20  ;;  %s75_s22 = int_to_ptr.vmem [resolvable:$true] %s74_s22 }
  0x5d   :  { %s969_s30 = scalar_lea.hbm %s1401_s2, 256 }
  0x5e   :  { %p970_p12 = scmp.ne.s32.totalorder %s1401_s2, %s969_s30  ;;  %p973_p13 = scmp.lt.u32.totalorder %s969_s30, %s1401_s2 }
  0x60   :  { %p975_p0 = pnand %p973_p13, %p970_p12 }
  0x62   :  { %978 = shalt.err (!%p975_p0)
}
  0x63   :  { %s979_s0 = scalar_lea.vmem %s52_s20, 256  ;;  %p984_p2 = scmp.lt.s32.totalorder %s52_s20, %s52_s20 }
  0x64   :  { %p980_p1 = scmp.ne.s32.totalorder %s52_s20, %s979_s0  ;;  %p985_p3 = scmp.lt.s32.totalorder %s979_s0, %s979_s0 }
  0x66   :  { %p986_p4 = por %p985_p3, %p984_p2 }
  0x68   :  { %p987_p5 = pnand %p986_p4, %p980_p1 }
  0x6a   :  { %990 = shalt.err (!%p987_p5)
}
  0x6b   :  { %57 = dma.hbm_to_vmem [thread:$0]  %s1401_s2, 256, %s52_s20, [#allocation9], %s1116_s23, %s1116_s23, %s1117_s24  }
  0x6c   :  { %s991_s28 = scalar_lea.hbm %s1403_s4, 16 }
  0x6d   :  { %p992_p6 = scmp.ne.s32.totalorder %s1403_s4, %s991_s28  ;;  %p995_p7 = scmp.lt.u32.totalorder %s991_s28, %s1403_s4 }
  0x6f   :  { %p997_p8 = pnand %p995_p7, %p992_p6 }
  0x71   :  { %1000 = shalt.err (!%p997_p8)
}
  0x72   :  { %s1001_s19 = scalar_lea.vmem %s75_s22, 16  ;;  %s1005_s21 = scalar_lea.vmem %s75_s22, 32 }
  0x73   :  { %p1002_p9 = scmp.ne.s32.totalorder %s75_s22, %s1001_s19  ;;  %p1006_p10 = scmp.lt.s32.totalorder %s75_s22, %s75_s22 }
  0x74   :  { %p1007_p11 = scmp.lt.s32.totalorder %s1005_s21, %s1001_s19 }
  0x76   :  { %p1008_p12 = por %p1007_p11, %p1006_p10 }
  0x78   :  { %p1009_p13 = pnand %p1008_p12, %p1002_p9 }
  0x7a   :  { %1012 = shalt.err (!%p1009_p13)
}
  0x7b   :  { %77 = dma.hbm_to_vmem [thread:$0]  %s1403_s4, 16, %s75_s22, [#allocation12]  }
  0x7c   :  { %s1126_s25 = smov [#allocation16]   ;;  %s1127_s30 = smov [#allocation19]  }
  0x7d   :  { %s93_s5 = sshll.u32 %s1126_s25, 4  ;;  %s115_s26 = sshll.u32 %s1127_s30, 4  ;;  %s94_s5 = int_to_ptr.vmem [resolvable:$true] %s93_s5  ;;  %s116_s26 = int_to_ptr.vmem [resolvable:$true] %s115_s26 }
  0x7e   :  { %s1013_s11 = scalar_lea.hbm %s1405_s6, 256 }
  0x7f   :  { %p1014_p0 = scmp.ne.s32.totalorder %s1405_s6, %s1013_s11  ;;  %p1017_p1 = scmp.lt.u32.totalorder %s1013_s11, %s1405_s6 }
  0x81   :  { %p1019_p2 = pnand %p1017_p1, %p1014_p0 }
  0x83   :  { %1022 = shalt.err (!%p1019_p2)
}
  0x84   :  { %s1023_s4 = scalar_lea.vmem %s94_s5, 256  ;;  %p1028_p4 = scmp.lt.s32.totalorder %s94_s5, %s94_s5 }
  0x85   :  { %p1024_p3 = scmp.ne.s32.totalorder %s94_s5, %s1023_s4  ;;  %p1029_p5 = scmp.lt.s32.totalorder %s1023_s4, %s1023_s4 }
  0x87   :  { %p1030_p6 = por %p1029_p5, %p1028_p4 }
  0x89   :  { %p1031_p7 = pnand %p1030_p6, %p1024_p3 }
  0x8b   :  { %1034 = shalt.err (!%p1031_p7)
}
  0x8c   :  { %99 = dma.hbm_to_vmem [thread:$0]  %s1405_s6, 256, %s94_s5, [#allocation15], %s1116_s23, %s1116_s23, %s1117_s24  }
  0x8d   :  { %s1035_s17 = scalar_lea.hbm %s1407_s8, 1024 }
  0x8e   :  { %p1036_p8 = scmp.ne.s32.totalorder %s1407_s8, %s1035_s17  ;;  %p1039_p9 = scmp.lt.u32.totalorder %s1035_s17, %s1407_s8 }
  0x90   :  { %p1041_p10 = pnand %p1039_p9, %p1036_p8 }
  0x92   :  { %1044 = shalt.err (!%p1041_p10)
}
  0x93   :  { %s1045_s2 = scalar_lea.vmem %s116_s26, 1024  ;;  %p1050_p12 = scmp.lt.s32.totalorder %s116_s26, %s116_s26 }
  0x94   :  { %p1046_p11 = scmp.ne.s32.totalorder %s116_s26, %s1045_s2  ;;  %p1051_p13 = scmp.lt.s32.totalorder %s1045_s2, %s1045_s2 }
  0x96   :  { %p1052_p0 = por %p1051_p13, %p1050_p12 }
  0x98   :  { %p1053_p1 = pnand %p1052_p0, %p1046_p11 }
  0x9a   :  { %1056 = shalt.err (!%p1053_p1)
}
  0x9b   :  { %121 = dma.hbm_to_vmem [thread:$0]  %s1407_s8, 1024, %s116_s26, [#allocation18], %s1116_s23, %s1116_s23, %s1117_s24  }
  0x9c   :  { %s1128_s25 = smov [#allocation20]   ;;  %s1057_s29 = scalar_lea.hbm %s1408_s9, 16 }
  0x9d   :  { %s128_s5 = sshll.u32 %s1128_s25, 4  ;;  %p1058_p2 = scmp.ne.s32.totalorder %s1408_s9, %s1057_s29  ;;  %s129_s5 = int_to_ptr.vmem [resolvable:$true] %s128_s5 }
  0x9e   :  { %p1061_p3 = scmp.lt.u32.totalorder %s1057_s29, %s1408_s9 }
  0xa0   :  { %p1063_p4 = pnand %p1061_p3, %p1058_p2 }
  0xa2   :  { %1066 = shalt.err (!%p1063_p4)
}
  0xa3   :  { %s1067_s13 = scalar_lea.vmem %s129_s5, 16  ;;  %s1071_s8 = scalar_lea.vmem %s129_s5, 32 }
  0xa4   :  { %p1068_p5 = scmp.ne.s32.totalorder %s129_s5, %s1067_s13  ;;  %p1072_p6 = scmp.lt.s32.totalorder %s129_s5, %s129_s5 }
  0xa5   :  { %p1073_p7 = scmp.lt.s32.totalorder %s1071_s8, %s1067_s13 }
  0xa7   :  { %p1074_p8 = por %p1073_p7, %p1072_p6 }
  0xa9   :  { %p1075_p9 = pnand %p1074_p8, %p1068_p5 }
  0xab   :  { %1078 = shalt.err (!%p1075_p9)
}
  0xac   :  { %131 = dma.hbm_to_vmem [thread:$0]  %s1408_s9, 16, %s129_s5, [#allocation21]  }
  0xad   :  { %1101 = dma.done.wait [#allocation6], 512  }
  0xae   :  { %1102 = vsyncadd [#allocation6], 4294966784 }
  0xaf   :  { %1103 = dma.done.wait [#allocation9], 512  }
  0xb0   :  { %1104 = vsyncadd [#allocation9], 4294966784 }
  0xb1   :  { %1105 = dma.done.wait [#allocation12], 32  }
  0xb2   :  { %1106 = vsyncadd [#allocation12], 4294967264 }
  0xb3   :  { %1107 = dma.done.wait [#allocation15], 272  }
  0xb4   :  { %1108 = vsyncadd [#allocation15], 4294967024 }
  0xb5   :  { %1109 = dma.done.wait [#allocation18], 1040  }
  0xb6   :  { %1110 = vsyncadd [#allocation18], 4294966256 }
  0xb7   :  { %1111 = dma.done.wait [#allocation21], 16  }
  0xb8   :  { %1112 = vsyncadd [#allocation21], 4294967280  ;;  %v821_v0 = vld [vmem:[#allocation10] sm:$0xff]   ;;  %v822_v1 = vld [vmem:[#allocation10 + $0x8] sm:$0xff]   ;;  %vm212_vm0 = vcmask 261120   ;;  %s1131_s9 = smov [#allocation22]  }
  0xb9   :  { %768 = vmatprep.subr.bf16.mxu1 %v821_v0  ;;  %v823_v2 = vld [vmem:[#allocation8] sm:$0xff]   ;;  %v824_v3 = vld [vmem:[#allocation8 + $0x8] sm:$0xff]   ;;  %v169_v4 = vld [vmem:[#allocation5 + $0x10] sm:$0xff]  ;;  %s710_s26 = sshll.u32 %s1131_s9, 4  ;;  %s711_s26 = int_to_ptr.vmem [resolvable:$true] %s710_s26 }
  0xba   :  { %769 = vmatpush3.bf16.msra.mxu1 %v821_v0  ;;  %772 = vmatprep.mubr.msk.bf16.mxu1 %vm212_vm0, %v823_v2  ;;  %v727_v5 = vld [vmem:[#allocation11] ss:$0 sm:$0xff]  ;;  %v170_v7 = vld [vmem:[#allocation5 + $0x18] sm:$0xff]  ;;  %v168_v9 = vld [vmem:[#allocation5 + $0x8] sm:$0xff]  ;;  %s1079_s4 = scalar_lea.vmem %s711_s26, 512  ;;  %p1084_p11 = scmp.lt.s32.totalorder %s711_s26, %s711_s26 }
  0xbb   :  { %770 = vmatprep.subr.bf16.mxu1 %v822_v1  ;;  %v167_v6 = vld [vmem:[#allocation5] sm:$0xff]  ;;  %v180_v8 = vadd.f32 %v727_v5, %v169_v4  ;;  %v181_v11 = vadd.f32 %v727_v5, %v170_v7  ;;  %v179_v13 = vadd.f32 %v727_v5, %v168_v9  ;;  %v826_v46 = vld [vmem:[#allocation16 + $0x8] sm:$0xff]   ;;  %p1080_p10 = scmp.ne.s32.totalorder %s711_s26, %s1079_s4  ;;  %p1085_p12 = scmp.lt.s32.totalorder %s1079_s4, %s1079_s4 }
  0xbc   :  { %v178_v10 = vadd.f32 %v727_v5, %v167_v6  ;;  %v825_v45 = vld [vmem:[#allocation16] sm:$0xff]   ;;  %v734_v61 = vld [vmem:[#allocation13] ss:$0 sm:$0xff]  ;;  %v735_v2 = vld [vmem:[#allocation14] ss:$0 sm:$0xff] }
  0xbd   :  { %p1086_p13 = por %p1085_p12, %p1084_p11 }
  0xbe   :  { %771 = vmatpush3.bf16.msra.mxu1 %v822_v1 }
  0xbf   :  { %776 = vmatprep.subr.bf16.mxu1 %v825_v45  ;;  %p1087_p0 = pnand %p1086_p13, %p1080_p10 }
  0xc1   :  { %773 = vmatmul.mubr.msk.bf16.vlgmr.msra.gmra.mrb[0].mxu1 %vm212_vm0, %v824_v3 }
  0xc2   :  { %777 = vmatpush3.bf16.msra.mxu1 %v825_v45 }
  0xc3   :  { %778 = vmatprep.subr.bf16.mxu1 %v826_v46 }
  0xc6   :  { %779 = vmatpush3.bf16.msra.mxu1 %v826_v46 }
 0x194   :  { %v774_v12 = vpop.f32.mrb[0].mxu1 }
 0x195   :  { %v270_v14 = vadd.f32 %v774_v12, %v180_v8  ;;  %v253_v15 = vpop.f32.mrb[1].mxu1 }
 0x196   :  { %v268_v16 = vadd.f32 %v253_v15, %v178_v10  ;;  %v775_v17 = vpop.f32.mrb[2].mxu1 }
 0x197   :  { %274 = vst.msk [vmem:[#allocation2 + $0x10] sm:$0xff] %vm212_vm0, %v270_v14  ;;  %v271_v18 = vadd.f32 %v775_v17, %v181_v11  ;;  %v256_v19 = vpop.f32.mrb[3].mxu1  ;;  %v284_v20 = vsel %vm212_vm0, %v270_v14, 0.0  ;;  %v827_v17 = vld [vmem:[#allocation19] sm:$0xff]  }
 0x198   :  { %272 = vst.msk [vmem:[#allocation2] sm:$0xff] %vm212_vm0, %v268_v16  ;;  %v269_v21 = vadd.f32 %v256_v19, %v179_v13  ;;  %285 = vadd.xlane.f32.xlu1 %v284_v20  ;;  %v278_v22 = vsel %vm212_vm0, %v268_v16, 0.0  ;;  %784 = vmatprep.subr.bf16.mxu0 %v827_v17  ;;  %v829_v19 = vld [vmem:[#allocation19 + $0x10] sm:$0xff]   ;;  %v830_v20 = vld [vmem:[#allocation19 + $0x18] sm:$0xff]  }
 0x199   :  { %275 = vst.msk [vmem:[#allocation2 + $0x18] sm:$0xff] %vm212_vm0, %v271_v18  ;;  %279 = vadd.xlane.f32.xlu0 %v278_v22  ;;  %v287_v23 = vsel %vm212_vm0, %v271_v18, 0.0  ;;  %785 = vmatpush3.bf16.msra.mxu0 %v827_v17  ;;  %v832_v22 = vld [vmem:[#allocation19 + $0x28] sm:$0xff]  }
 0x19a   :  { %273 = vst.msk [vmem:[#allocation2 + $0x8] sm:$0xff] %vm212_vm0, %v269_v21  ;;  %v281_v24 = vsel %vm212_vm0, %v269_v21, 0.0 }
 0x19c   :  { %288 = vadd.xlane.f32.xlu1 %v287_v23  ;;  %v833_v23 = vld [vmem:[#allocation19 + $0x30] sm:$0xff]  }
 0x19d   :  { %282 = vadd.xlane.f32.xlu0 %v281_v24  ;;  %v834_v24 = vld [vmem:[#allocation19 + $0x38] sm:$0xff]  }
 0x225   :  { %v286_v25 = vpop.xlane.xlu1 %285 }
 0x226   :  { %v293_v26 = vmul.f32 0.03125, %v286_v25  ;;  %v280_v27 = vpop.xlane.xlu0 %279  ;;  %v1129_v25 = vmov 0.0  }
 0x227   :  { %v291_v28 = vmul.f32 0.03125, %v280_v27  ;;  %357 = vst.msk [vmem:[#allocation4 + $0x10] sm:$0xff] %vm212_vm0, %v1129_v25  ;;  %355 = vst.msk [vmem:[#allocation4] sm:$0xff] %vm212_vm0, %v1129_v25 }
 0x228   :  { %v297_v29 = vsub.f32 %v270_v14, %v293_v26  ;;  %356 = vst.msk [vmem:[#allocation4 + $0x8] sm:$0xff] %vm212_vm0, %v1129_v25  ;;  %358 = vst.msk [vmem:[#allocation4 + $0x18] sm:$0xff] %vm212_vm0, %v1129_v25  ;;  %v736_v26 = vld [vmem:[#allocation17] ss:$0 sm:$0xff] }
 0x229   :  { %v295_v30 = vsub.f32 %v268_v16, %v291_v28  ;;  %v289_v31 = vpop.xlane.xlu1 %288 }
 0x22a   :  { %v294_v32 = vmul.f32 0.03125, %v289_v31  ;;  %v283_v33 = vpop.xlane.xlu0 %282  ;;  %v301_v39 = vmul.f32 %v297_v29, %v297_v29 }
 0x22b   :  { %v292_v34 = vmul.f32 0.03125, %v283_v33  ;;  %v299_v35 = vmul.f32 %v295_v30, %v295_v30 }
 0x22c   :  { %v298_v36 = vsub.f32 %v271_v18, %v294_v32  ;;  %v309_v41 = vsel %vm212_vm0, %v301_v39, 0.0  ;;  %v828_v18 = vld [vmem:[#allocation19 + $0x8] sm:$0xff]  }
 0x22d   :  { %v296_v37 = vsub.f32 %v269_v21, %v292_v34  ;;  %v303_v38 = vsel %vm212_vm0, %v299_v35, 0.0  ;;  %786 = vmatprep.subr.bf16.mxu0 %v828_v18  ;;  %v831_v21 = vld [vmem:[#allocation19 + $0x20] sm:$0xff]  }
 0x22e   :  { %304 = vadd.xlane.f32.xlu0 %v303_v38  ;;  %v302_v43 = vmul.f32 %v298_v36, %v298_v36  ;;  %787 = vmatpush3.bf16.msra.mxu0 %v828_v18 }
 0x22f   :  { %v300_v40 = vmul.f32 %v296_v37, %v296_v37  ;;  %788 = vmatprep.subr.bf16.mxu0 %v829_v19 }
 0x230   :  { %v312_v44 = vsel %vm212_vm0, %v302_v43, 0.0 }
 0x231   :  { %v306_v42 = vsel %vm212_vm0, %v300_v40, 0.0 }
 0x232   :  { %310 = vadd.xlane.f32.xlu0 %v309_v41  ;;  %307 = vadd.xlane.f32.xlu1 %v306_v42 }
 0x233   :  { %789 = vmatpush3.bf16.msra.mxu0 %v829_v19 }
 0x234   :  { %790 = vmatprep.subr.bf16.mxu0 %v830_v20 }
 0x236   :  { %313 = vadd.xlane.f32.xlu1 %v312_v44 }
 0x237   :  { %791 = vmatpush3.bf16.msra.mxu0 %v830_v20 }
 0x238   :  { %792 = vmatprep.subr.bf16.mxu0 %v831_v21 }
 0x23b   :  { %793 = vmatpush3.bf16.msra.mxu0 %v831_v21 }
 0x23c   :  { %794 = vmatprep.subr.bf16.mxu0 %v832_v22 }
 0x23f   :  { %795 = vmatpush3.bf16.msra.mxu0 %v832_v22 }
 0x240   :  { %796 = vmatprep.subr.bf16.mxu0 %v833_v23 }
 0x243   :  { %797 = vmatpush3.bf16.msra.mxu0 %v833_v23 }
 0x244   :  { %798 = vmatprep.subr.bf16.mxu0 %v834_v24 }
 0x247   :  { %799 = vmatpush3.bf16.msra.mxu0 %v834_v24 }
 0x2bb   :  { %v305_v47 = vpop.xlane.xlu0 %304 }
 0x2bc   :  { %v315_v48 = vmul.f32 0.03125, %v305_v47 }
 0x2be   :  { %v319_v49 = vadd.f32 1e-05, %v315_v48 }
 0x2bf   :  { %v308_v50 = vpop.xlane.xlu1 %307  ;;  %v311_v51 = vpop.xlane.xlu0 %310 }
 0x2c0   :  { %835 = vrsqrt.f32 %v319_v49  ;;  %v316_v52 = vmul.f32 0.03125, %v308_v50  ;;  %v317_v53 = vmul.f32 0.03125, %v311_v51 }
 0x2c2   :  { %v320_v54 = vadd.f32 1e-05, %v316_v52  ;;  %v321_v55 = vadd.f32 1e-05, %v317_v53 }
 0x2c3   :  { %v314_v56 = vpop.xlane.xlu1 %313 }
 0x2c4   :  { %837 = vrsqrt.f32 %v320_v54  ;;  %v318_v57 = vmul.f32 0.03125, %v314_v56 }
 0x2c5   :  { %839 = vrsqrt.f32 %v321_v55 }
 0x2c6   :  { %v322_v58 = vadd.f32 1e-05, %v318_v57 }
 0x2c8   :  { %841 = vrsqrt.f32 %v322_v58 }
 0x2ca   :  { %v836_v59 = vpop.eup %835 }
 0x2cb   :  { %v327_v60 = vmul.f32 %v836_v59, %v295_v30 }
 0x2cd   :  { %v337_v0 = vmul.f32 %v734_v61, %v327_v60 }
 0x2ce   :  { %v838_v62 = vpop.eup %837 }
 0x2cf   :  { %v840_v63 = vpop.eup %839  ;;  %v328_v1 = vmul.f32 %v838_v62, %v296_v37  ;;  %v347_v6 = vadd.f32 %v735_v2, %v337_v0 }
 0x2d0   :  { %v329_v3 = vmul.f32 %v840_v63, %v297_v29 }
 0x2d1   :  { %v338_v4 = vmul.f32 %v734_v61, %v328_v1 }
 0x2d2   :  { %v842_v5 = vpop.eup %841  ;;  %v339_v8 = vmul.f32 %v734_v61, %v329_v3 }
 0x2d3   :  { %v348_v7 = vadd.f32 %v735_v2, %v338_v4  ;;  %v330_v9 = vmul.f32 %v842_v5, %v298_v36 }
 0x2d4   :  { %v349_v12 = vadd.f32 %v735_v2, %v339_v8 }
 0x2d5   :  { %v351_v10 = vpack.c.bf16 %v348_v7, %v347_v6  ;;  %v340_v11 = vmul.f32 %v734_v61, %v330_v9 }
 0x2d7   :  { %353 = vst.msk [vmem:[#allocation3] sm:$0xff] %vm212_vm0, %v351_v10  ;;  %v350_v13 = vadd.f32 %v735_v2, %v340_v11 }
 0x2d9   :  { %v352_v14 = vpack.c.bf16 %v350_v13, %v349_v12 }
 0x2db   :  { %354 = vst.msk [vmem:[#allocation3 + $0x8] sm:$0xff] %vm212_vm0, %v352_v14 }
 0x2de   :  { %v359_v15 = vld [vmem:[#allocation3] sm:$0xff] }
 0x2df   :  { %780 = vmatprep.mubr.msk.bf16.mxu1 %vm212_vm0, %v359_v15 }
 0x2e2   :  { %v360_v16 = vld [vmem:[#allocation3 + $0x8] sm:$0xff] }
 0x2e3   :  { %781 = vmatmul.mubr.msk.bf16.vlgmr.msra.gmra.mrb[4].mxu1 %vm212_vm0, %v360_v16 }
 0x3b6   :  { %v782_v27 = vpop.f32.mrb[4].mxu1 }
 0x3b7   :  { %v1344_v28 = vadd.f32 %v782_v27, %v736_v26  ;;  %v425_v29 = vpop.f32.mrb[5].mxu1 }
 0x3b8   :  { %v1346_v30 = vadd.f32 %v736_v26, %v425_v29  ;;  %v783_v31 = vpop.f32.mrb[6].mxu1 }
 0x3b9   :  { %v1349_v32 = vmul.f32 0.70710677, %v1344_v28  ;;  %v1351_v33 = vadd.f32 %v783_v31, %v736_v26  ;;  %v428_v34 = vpop.f32.mrb[7].mxu1 }
 0x3ba   :  { %v1354_v35 = vmul.f32 0.70710677, %v1346_v30  ;;  %v1356_v36 = vadd.f32 %v736_v26, %v428_v34 }
 0x3bb   :  { %v458_v37 = vand.u32 2147483647, %v1349_v32  ;;  %v1360_v38 = vmul.f32 0.70710677, %v1351_v33  ;;  %vm450_vm1 = vcmp.ge.f32.partialorder %v1349_v32, 0.0 }
 0x3bc   :  { %v456_v39 = vand.u32 2147483647, %v1354_v35  ;;  %v1365_v43 = vmul.f32 0.70710677, %v1356_v36  ;;  %vm448_vm2 = vcmp.ge.f32.partialorder %v1354_v35, 0.0 }
 0x3bd   :  { %v462_v40 = vmul.f32 0.3275911, %v458_v37  ;;  %v459_v41 = vand.u32 2147483647, %v1360_v38  ;;  %v514_v51 = vsub.f32 0.0, %v458_v37  ;;  %vm451_vm3 = vcmp.ge.f32.partialorder %v1360_v38, 0.0 }
 0x3be   :  { %v460_v42 = vmul.f32 0.3275911, %v456_v39  ;;  %v457_v47 = vand.u32 2147483647, %v1365_v43  ;;  %v512_v52 = vsub.f32 0.0, %v456_v39  ;;  %vm449_vm4 = vcmp.ge.f32.partialorder %v1365_v43, 0.0 }
 0x3bf   :  { %v466_v44 = vadd.f32 1.0, %v462_v40  ;;  %v463_v45 = vmul.f32 0.3275911, %v459_v41  ;;  %v518_v54 = vmul.f32 %v514_v51, %v458_v37  ;;  %v515_v55 = vsub.f32 0.0, %v459_v41 }
 0x3c0   :  { %v464_v46 = vadd.f32 1.0, %v460_v42  ;;  %v461_v49 = vmul.f32 0.3275911, %v457_v47  ;;  %v516_v58 = vmul.f32 %v512_v52, %v456_v39  ;;  %v513_v59 = vsub.f32 0.0, %v457_v47 }
 0x3c1   :  { %843 = vrcp.f32 %v466_v44  ;;  %v467_v48 = vadd.f32 1.0, %v463_v45  ;;  %v524_v63 = vmul.f32 1.442695, %v518_v54  ;;  %v519_v0 = vmul.f32 %v515_v55, %v459_v41 }
 0x3c2   :  { %845 = vrcp.f32 %v464_v46  ;;  %v465_v50 = vadd.f32 1.0, %v461_v49  ;;  %v520_v3 = vmul.f32 1.442695, %v516_v58  ;;  %v517_v6 = vmul.f32 %v513_v59, %v457_v47 }
 0x3c3   :  { %847 = vrcp.f32 %v467_v48  ;;  %v526_v11 = vmul.f32 1.442695, %v519_v0  ;;  %v1130_v52 = vmov -1.0   ;;  %v441_v43 = vmul.f32 0.5, %v1356_v36 }
 0x3c4   :  { %849 = vrcp.f32 %v465_v50  ;;  %v522_v16 = vmul.f32 1.442695, %v517_v6  ;;  %v454_v54 = vsel %vm450_vm1, 1.0, %v1130_v52  ;;  %v452_v32 = vsel %vm448_vm2, 1.0, %v1130_v52 }
 0x3c5   :  { %851 = vpow2.f32 %v524_v63  ;;  %v455_v63 = vsel %vm451_vm3, 1.0, %v1130_v52 }
 0x3c6   :  { %853 = vpow2.f32 %v520_v3  ;;  %v443_v3 = vmul.f32 0.5, %v1351_v33  ;;  %v551_v33 = vld [vmem:[#allocation4 + $0x18] sm:$0xff] }
 0x3c7   :  { %855 = vpow2.f32 %v526_v11 }
 0x3c8   :  { %857 = vpow2.f32 %v522_v16 }
 0x3cb   :  { %v844_v53 = vpop.eup %843 }
 0x3cc   :  { %v846_v56 = vpop.eup %845  ;;  %v478_v57 = vmul.f32 1.0614054, %v844_v53 }
 0x3cd   :  { %v476_v60 = vmul.f32 1.0614054, %v846_v56  ;;  %v848_v62 = vpop.eup %847 }
 0x3ce   :  { %v482_v61 = vadd.f32 -1.4531521, %v478_v57  ;;  %v479_v4 = vmul.f32 1.0614054, %v848_v62  ;;  %v850_v5 = vpop.eup %849 }
 0x3cf   :  { %v480_v1 = vadd.f32 -1.4531521, %v476_v60  ;;  %v477_v10 = vmul.f32 1.0614054, %v850_v5  ;;  %v852_v40 = vpop.eup %851 }
 0x3d0   :  { %v486_v2 = vmul.f32 %v844_v53, %v482_v61  ;;  %v483_v9 = vadd.f32 -1.4531521, %v479_v4  ;;  %v854_v42 = vpop.eup %853 }
 0x3d1   :  { %v484_v7 = vmul.f32 %v846_v56, %v480_v1  ;;  %v481_v15 = vadd.f32 -1.4531521, %v477_v10  ;;  %v856_v51 = vpop.eup %855  ;;  %v442_v1 = vmul.f32 0.5, %v1344_v28  ;;  %v550_v28 = vld [vmem:[#allocation4 + $0x10] sm:$0xff] }
 0x3d2   :  { %v490_v8 = vadd.f32 1.4214138, %v486_v2  ;;  %v487_v14 = vmul.f32 %v848_v62, %v483_v9  ;;  %v858_v58 = vpop.eup %857  ;;  %v453_v2 = vsel %vm449_vm4, 1.0, %v1130_v52 }
 0x3d3   :  { %v488_v12 = vadd.f32 1.4214138, %v484_v7  ;;  %v485_v20 = vmul.f32 %v850_v5, %v481_v15 }
 0x3d4   :  { %v494_v13 = vmul.f32 %v844_v53, %v490_v8  ;;  %v491_v19 = vadd.f32 1.4214138, %v487_v14  ;;  %v548_v14 = vld [vmem:[#allocation4] sm:$0xff] }
 0x3d5   :  { %v492_v17 = vmul.f32 %v846_v56, %v488_v12  ;;  %v489_v24 = vadd.f32 1.4214138, %v485_v20 }
 0x3d6   :  { %v498_v18 = vadd.f32 -0.28449672, %v494_v13  ;;  %v495_v23 = vmul.f32 %v848_v62, %v491_v19 }
 0x3d7   :  { %v496_v21 = vadd.f32 -0.28449672, %v492_v17  ;;  %v493_v29 = vmul.f32 %v850_v5, %v489_v24  ;;  %v749_v24 = vld [vmem:[#allocation20] ss:$0 sm:$0xff] }
 0x3d8   :  { %v502_v22 = vmul.f32 %v844_v53, %v498_v18  ;;  %v499_v27 = vadd.f32 -0.28449672, %v495_v23  ;;  %v549_v18 = vld [vmem:[#allocation4 + $0x8] sm:$0xff] }
 0x3d9   :  { %v500_v25 = vmul.f32 %v846_v56, %v496_v21  ;;  %v497_v39 = vadd.f32 -0.28449672, %v493_v29  ;;  %v681_v29 = vld [vmem:[#allocation2 + $0x18] sm:$0xff] }
 0x3da   :  { %v506_v26 = vadd.f32 0.2548296, %v502_v22  ;;  %v503_v37 = vmul.f32 %v848_v62, %v499_v27  ;;  %v680_v22 = vld [vmem:[#allocation2 + $0x10] sm:$0xff] }
 0x3db   :  { %v504_v31 = vadd.f32 0.2548296, %v500_v25  ;;  %v501_v46 = vmul.f32 %v850_v5, %v497_v39  ;;  %v678_v25 = vld [vmem:[#allocation2] sm:$0xff] }
 0x3dc   :  { %v510_v34 = vmul.f32 %v844_v53, %v506_v26  ;;  %v507_v45 = vadd.f32 0.2548296, %v503_v37  ;;  %v679_v37 = vld [vmem:[#allocation2 + $0x8] sm:$0xff] }
 0x3dd   :  { %v508_v41 = vmul.f32 %v846_v56, %v504_v31  ;;  %v505_v50 = vadd.f32 0.2548296, %v501_v46 }
 0x3de   :  { %v530_v44 = vmul.f32 %v852_v40, %v510_v34  ;;  %v511_v49 = vmul.f32 %v848_v62, %v507_v45 }
 0x3df   :  { %v528_v47 = vmul.f32 %v854_v42, %v508_v41  ;;  %v509_v57 = vmul.f32 %v850_v5, %v505_v50  ;;  %v440_v5 = vmul.f32 0.5, %v1346_v30 }
 0x3e0   :  { %v534_v48 = vsub.f32 1.0, %v530_v44  ;;  %v531_v56 = vmul.f32 %v856_v51, %v511_v49 }
 0x3e1   :  { %v532_v53 = vsub.f32 1.0, %v528_v47  ;;  %v529_v60 = vmul.f32 %v858_v58, %v509_v57 }
 0x3e2   :  { %v538_v55 = vmul.f32 %v534_v48, %v454_v54  ;;  %v535_v59 = vsub.f32 1.0, %v531_v56 }
 0x3e3   :  { %v536_v61 = vmul.f32 %v532_v53, %v452_v32  ;;  %v533_v0 = vsub.f32 1.0, %v529_v60 }
 0x3e4   :  { %v542_v35 = vadd.f32 1.0, %v538_v55  ;;  %v539_v62 = vmul.f32 %v535_v59, %v455_v63 }
 0x3e5   :  { %v537_v38 = vmul.f32 %v533_v0, %v453_v2  ;;  %v540_v6 = vadd.f32 1.0, %v536_v61 }
 0x3e6   :  { %v543_v4 = vadd.f32 1.0, %v539_v62  ;;  %v546_v7 = vmul.f32 %v542_v35, %v442_v1 }
 0x3e7   :  { %v541_v9 = vadd.f32 1.0, %v537_v38  ;;  %v544_v10 = vmul.f32 %v540_v6, %v440_v5 }
 0x3e8   :  { %v547_v8 = vmul.f32 %v543_v4, %v443_v3 }
 0x3e9   :  { %v545_v11 = vmul.f32 %v541_v9, %v441_v43 }
 0x3ea   :  { %v553_v12 = vpack.c.bf16 %v547_v8, %v546_v7 }
 0x3eb   :  { %v552_v13 = vpack.c.bf16 %v545_v11, %v544_v10 }
 0x3ed   :  { %800 = vmatprep.mubr.bf16.mxu0 %v552_v13 }
 0x3ee   :  { %801 = vmatmul.mubr.bf16.vlgmr.msra.gmra.mrb[0].mxu0 %v553_v12 }
 0x4c1   :  { %v802_v15 = vpop.f32.mrb[0].mxu0 }
 0x4c2   :  { %v669_v16 = vadd.f32 %v802_v15, %v550_v28  ;;  %v652_v17 = vpop.f32.mrb[1].mxu0 }
 0x4c3   :  { %v667_v19 = vadd.f32 %v652_v17, %v548_v14  ;;  %v803_v30 = vpop.f32.mrb[2].mxu0 }
 0x4c4   :  { %673 = vst.msk [vmem:[#allocation4 + $0x10] sm:$0xff] %vm212_vm0, %v669_v16  ;;  %v670_v20 = vadd.f32 %v803_v30, %v551_v33  ;;  %v655_v36 = vpop.f32.mrb[3].mxu0 }
 0x4c5   :  { %671 = vst.msk [vmem:[#allocation4] sm:$0xff] %vm212_vm0, %v667_v19  ;;  %v668_v21 = vadd.f32 %v655_v36, %v549_v18 }
 0x4c6   :  { %674 = vst.msk [vmem:[#allocation4 + $0x18] sm:$0xff] %vm212_vm0, %v670_v20 }
 0x4c7   :  { %672 = vst.msk [vmem:[#allocation4 + $0x8] sm:$0xff] %vm212_vm0, %v668_v21 }
 0x4cb   :  { %v684_v23 = vld [vmem:[#allocation4 + $0x10] sm:$0xff] }
 0x4cc   :  { %v682_v26 = vld [vmem:[#allocation4] sm:$0xff]  ;;  %v688_v27 = vadd.f32 %v684_v23, %v680_v22 }
 0x4cd   :  { %v685_v31 = vld [vmem:[#allocation4 + $0x18] sm:$0xff]  ;;  %v686_v34 = vadd.f32 %v682_v26, %v678_v25 }
 0x4ce   :  { %v683_v39 = vld [vmem:[#allocation4 + $0x8] sm:$0xff]  ;;  %v689_v40 = vadd.f32 %v685_v31, %v681_v29  ;;  %v699_v41 = vadd.f32 %v749_v24, %v688_v27 }
 0x4cf   :  { %v687_v42 = vadd.f32 %v683_v39, %v679_v37  ;;  %v697_v44 = vadd.f32 %v749_v24, %v686_v34 }
 0x4d0   :  { %v700_v45 = vadd.f32 %v749_v24, %v689_v40  ;;  %703 = vst.msk [vmem:[#allocation22 + $0x10] sm:$0xff] %vm212_vm0, %v699_v41 }
 0x4d1   :  { %v698_v46 = vadd.f32 %v749_v24, %v687_v42  ;;  %701 = vst.msk [vmem:[#allocation22] sm:$0xff] %vm212_vm0, %v697_v44 }
 0x4d2   :  { %704 = vst.msk [vmem:[#allocation22 + $0x18] sm:$0xff] %vm212_vm0, %v700_v45 }
 0x4d3   :  { %702 = vst.msk [vmem:[#allocation22 + $0x8] sm:$0xff] %vm212_vm0, %v698_v46 }
 0x4d4   :  { %1090 = shalt.err (!%p1087_p0)
}
 0x4d5   :  { %s1091_s28 = scalar_lea.hbm %s1409_s10, 512 }
 0x4d6   :  { %p1092_p1 = scmp.ne.s32.totalorder %s1409_s10, %s1091_s28  ;;  %p1095_p2 = scmp.lt.u32.totalorder %s1091_s28, %s1409_s10 }
 0x4d8   :  { %p1097_p3 = pnand %p1095_p2, %p1092_p1 }
 0x4da   :  { %1100 = shalt.err (!%p1097_p3)
}
 0x4db   :  { %716 = dma.vmem_to_hbm [thread:$0]  %s711_s26, 512, %s1409_s10, [#allocation7], %s1122_s7, %s1122_s7, %s1123_s16  }
 0x4dc   :  { %1113 = dma.done.wait [#allocation7], 512  }
 0x4dd   :  { %1114 = vsyncadd [#allocation7], 4294966784 }
 0x4de   :  { %720 = vsyncpa [#allocation6], 1 }
 0x4df   :  { %721 = vsyncpa [#allocation9], 1 }
 0x4e0   :  { %722 = vsyncpa [#allocation12], 1 }
 0x4e1   :  { %723 = vsyncpa [#allocation15], 1 }
 0x4e2   :  { %724 = vsyncpa [#allocation18], 1 }
 0x4e3   :  { %725 = vsyncpa [#allocation21], 1 }
 0x4e4   :  { %726 = vsyncpa [#allocation7], 1 }

</bundles_post_ra>
